<compile_context>
chip_gen: v6e
topology: v6e:2x2x1
jax: 0.10.0
libtpu: 0.0.40
codegen_flags: <defaults>
</compile_context>

<pallas_src>
import functools

import jax
import jax.numpy as jnp
from jax.experimental import pallas as pl
from jax.experimental.pallas import tpu as pltpu

IMG_CHANNEL = 3
INIT_CHANNEL = 64
SLOPE = 0.2
BN_EPS = 1e-5


# ------------------------------ Pallas kernels ------------------------------ #

def _flat_matmul_kernel(x_ref, w_ref, *out_refs, fuse_lrelu, with_stats, group):
    """Dense conv-as-matmul for a block of images with pre-flattened spatial.

    x_ref : (B, M0, K)       bf16   (M0 = Ho*Wo, K = 16*Cin im2col channels)
    w_ref : (1, 1, K, Cout)  bf16
    y_ref : (B, M0, Cout)    bf16
    stats_ref (optional): (1, 8, Cout) f32  row0 = sum, row1 = sum of squares
    """
    if with_stats:
        y_ref, stats_ref = out_refs
    else:
        (y_ref,) = out_refs
        stats_ref = None

    b, m0, k = x_ref.shape
    cout = y_ref.shape[-1]
    f32 = jnp.float32

    ssum = jnp.zeros((1, cout), f32)
    sqsum = jnp.zeros((1, cout), f32)

    # Static unroll over image-groups; each dot has M = group*M0 (>= 256-512).
    for i in range(b // group):
        lhs = x_ref[i * group:(i + 1) * group].reshape(group * m0, k)
        acc = jnp.dot(lhs, w_ref[0, 0], preferred_element_type=f32)

        if with_stats:
            # BatchNorm statistics on the raw (pre-activation) conv output.
            ssum = ssum + jnp.sum(acc, axis=0, keepdims=True)
            sqsum = sqsum + jnp.sum(acc * acc, axis=0, keepdims=True)
        if fuse_lrelu:
            acc = jnp.where(acc >= 0, acc, SLOPE * acc)

        y_ref[i * group:(i + 1) * group] = (
            acc.reshape(group, m0, cout).astype(y_ref.dtype))

    if with_stats:
        stats_ref[0] = jnp.concatenate(
            [ssum, sqsum, jnp.zeros((6, cout), f32)], axis=0)


def _s2d_conv4x4s2_kernel(x_ref, w_ref, y_ref, stats_ref):
    """4x4/stride-2 conv on a space-to-depth block (conv2: 1x activation HBM).

    x_ref : (B, Hs, Ws, 4*Cin)  bf16   (Hs = Ho+1, Ws = Wo+1)
    w_ref : (2, 2, 4*Cin, Cout) bf16   (4 folded taps)
    y_ref : (B, Ho*Wo, Cout)    bf16   (raw conv output, flattened spatial)
    stats_ref: (1, 8, Cout)     f32    row0 = sum, row1 = sum of squares
    """
    b, hs, ws, k = x_ref.shape
    cout = y_ref.shape[-1]
    ho, wo = hs - 1, ws - 1
    f32 = jnp.float32

    ssum = jnp.zeros((1, cout), f32)
    sqsum = jnp.zeros((1, cout), f32)

    # Per image: 4 whole-image tap dots (M = Ho*Wo = 256) chained into one
    # f32 accumulator; the +1 tap shift happens once per tap, not per row.
    for i in range(b):
        acc = None
        for di in range(2):
            for dj in range(2):
                slab = x_ref[i, di:di + ho, dj:dj + wo, :].reshape(ho * wo, k)
                part = jnp.dot(slab, w_ref[di, dj], preferred_element_type=f32)
                acc = part if acc is None else acc + part

        ssum = ssum + jnp.sum(acc, axis=0, keepdims=True)
        sqsum = sqsum + jnp.sum(acc * acc, axis=0, keepdims=True)
        y_ref[i] = acc.astype(y_ref.dtype)

    stats_ref[0] = jnp.concatenate(
        [ssum, sqsum, jnp.zeros((6, cout), f32)], axis=0)


# --------------------------- pallas_call wrappers --------------------------- #

def _pick_block(n, target):
    """Largest divisor of n <= target, preferring >= 2 grid steps (v7x TCs)."""
    divs = [d for d in range(1, n + 1) if n % d == 0 and d <= target]
    multi = [d for d in divs if n // d >= 2]
    return max(multi) if multi else max(divs)


def _pick_group(b, m0, target_m=512):
    """Images per dot so that M = group*M0 ~ target (MXU-filling)."""
    g = 1
    for d in range(1, b + 1):
        if b % d == 0 and d * m0 <= target_m:
            g = d
    return g


_COMPILER_PARAMS = pltpu.CompilerParams(
    dimension_semantics=("parallel",),   # batch blocks shard across v7x TCs
    vmem_limit_bytes=48 << 20,           # worst case block ~22 MiB; v7x phys 64 MiB
)


def conv_flat(x, w, *, fuse_lrelu, with_stats, block_target):
    """x: (N, M0, K) bf16 im2col LHS; w: (1, 1, K, Cout) bf16."""
    n, m0, k = x.shape
    cout = w.shape[-1]
    bb = _pick_block(n, block_target)
    nb = n // bb
    group = _pick_group(bb, m0)

    kern = functools.partial(_flat_matmul_kernel, fuse_lrelu=fuse_lrelu,
                             with_stats=with_stats, group=group)

    y_shape = jax.ShapeDtypeStruct((n, m0, cout), jnp.bfloat16)
    y_spec = pl.BlockSpec((bb, m0, cout), lambda i: (i, 0, 0))
    if with_stats:
        out_shape = (y_shape, jax.ShapeDtypeStruct((nb, 8, cout), jnp.float32))
        out_specs = (y_spec, pl.BlockSpec((1, 8, cout), lambda i: (i, 0, 0)))
    else:
        out_shape = y_shape
        out_specs = y_spec

    return pl.pallas_call(
        kern,
        out_shape=out_shape,
        grid_spec=pltpu.PrefetchScalarGridSpec(
            num_scalar_prefetch=0,
            grid=(nb,),
            in_specs=[
                pl.BlockSpec((bb, m0, k), lambda i: (i, 0, 0)),
                # Constant index -> the (small, bf16) weight is fetched once.
                pl.BlockSpec((1, 1, k, cout), lambda i: (0, 0, 0, 0)),
            ],
            out_specs=out_specs,
        ),
        compiler_params=_COMPILER_PARAMS,
    )(x, w)


def conv_s2d(x, w, *, block_target):
    """x: (N, Hs, Ws, 4Cin) bf16 space-to-depth; w: (2, 2, 4Cin, Cout) bf16."""
    n, hs, ws, k = x.shape
    cout = w.shape[-1]
    ho, wo = hs - 1, ws - 1
    m0 = ho * wo
    bb = _pick_block(n, block_target)
    nb = n // bb

    out_shape = (jax.ShapeDtypeStruct((n, m0, cout), jnp.bfloat16),
                 jax.ShapeDtypeStruct((nb, 8, cout), jnp.float32))
    out_specs = (pl.BlockSpec((bb, m0, cout), lambda i: (i, 0, 0)),
                 pl.BlockSpec((1, 8, cout), lambda i: (i, 0, 0)))

    return pl.pallas_call(
        _s2d_conv4x4s2_kernel,
        out_shape=out_shape,
        grid_spec=pltpu.PrefetchScalarGridSpec(
            num_scalar_prefetch=0,
            grid=(nb,),
            in_specs=[
                pl.BlockSpec((bb, hs, ws, k), lambda i: (i, 0, 0, 0)),
                pl.BlockSpec((2, 2, k, cout), lambda i: (0, 0, 0, 0)),
            ],
            out_specs=out_specs,
        ),
        compiler_params=_COMPILER_PARAMS,
    )(x, w)


# ------------------------------- JAX glue ---------------------------------- #

def _leaky(x):
    return jnp.where(x >= 0, x, SLOPE * x)


def _prep_im2col(y, hw=None, scale=None, shift=None):
    """Optional folded BN affine + LeakyReLU, then pad-1 / 4x4-stride-2 im2col.
    Returns a lane-dense, spatially-flattened bf16 LHS (N, Ho*Wo, 16*C)."""
    if y.ndim == 3:
        n = y.shape[0]
        c = y.shape[-1]
        y = y.reshape(n, hw, hw, c)
    y = y.astype(jnp.float32)
    if scale is not None:
        y = _leaky(y * scale + shift)
    n, h, w, c = y.shape
    xp = jnp.pad(y, ((0, 0), (1, 1), (1, 1), (0, 0)))
    ho, wo = h // 2, w // 2
    cols = []
    for kh in range(4):
        for kw in range(4):
            cols.append(xp[:, kh:kh + 2 * ho - 1:2, kw:kw + 2 * wo - 1:2, :])
    x = jnp.concatenate(cols, axis=-1)                  # (N, Ho, Wo, 16*C)
    return x.reshape(n, ho * wo, 16 * c).astype(jnp.bfloat16)


def _prep_s2d(y_flat, hw):
    """Zero-pad by 1, 2x2 space-to-depth, bf16 (conv2 input; no BN on conv1)."""
    n, _, c = y_flat.shape
    x = y_flat.reshape(n, hw, hw, c).astype(jnp.bfloat16)
    x = jnp.pad(x, ((0, 0), (1, 1), (1, 1), (0, 0)))
    hp = hw + 2
    x = x.reshape(n, hp // 2, 2, hp // 2, 2, c)
    x = x.transpose(0, 1, 3, 2, 4, 5).reshape(n, hp // 2, hp // 2, 4 * c)
    return x


def _bn_scale_shift(stats, count):
    """Training-mode BatchNorm2d (gamma=1, beta=0) from fused per-block stats."""
    s = jnp.sum(stats[:, 0, :], axis=0)          # per-channel sum
    q = jnp.sum(stats[:, 1, :], axis=0)          # per-channel sum of squares
    mean = s / count
    var = jnp.maximum(q / count - mean * mean, 0.0)
    scale = jax.lax.rsqrt(var + BN_EPS)          # * gamma (=1)
    shift = -mean * scale                        # + beta  (=0)
    return scale, shift


def _fold_w_im2col(w_oihw):
    """PyTorch (Cout, Cin, 4, 4) -> (1, 1, 16*Cin, Cout) matching im2col order."""
    cout, cin, kh, kw = w_oihw.shape
    w = jnp.transpose(w_oihw, (2, 3, 1, 0)).reshape(kh * kw * cin, cout)
    return w[None, None].astype(jnp.bfloat16)


def _fold_weight_s2d(w_oihw):
    """(Cout, Cin, 4, 4) -> (2, 2, 4*Cin, Cout) taps matching the s2d packing:
    row (pr*2+pc)*Cin + cin of tap (di, dj) holds w[cout, cin, 2*di+pr, 2*dj+pc]."""
    cout, cin, kh, kw = w_oihw.shape
    assert kh == 4 and kw == 4
    w = jnp.transpose(w_oihw, (2, 3, 1, 0))       # (kh, kw, Cin, Cout)
    w = w.reshape(2, 2, 2, 2, cin, cout)          # (di, pr, dj, pc, Cin, Cout)
    w = jnp.transpose(w, (0, 2, 1, 3, 4, 5))      # (di, dj, pr, pc, Cin, Cout)
    return w.reshape(2, 2, 4 * cin, cout).astype(jnp.bfloat16)


def init_params(key):
    """nn.init.normal(weight, 0, 0.02) for every Conv2d; BN affine is (1, 0)."""
    shapes = [
        (INIT_CHANNEL, IMG_CHANNEL, 4, 4),
        (INIT_CHANNEL * 2, INIT_CHANNEL, 4, 4),
        (INIT_CHANNEL * 4, INIT_CHANNEL * 2, 4, 4),
        (INIT_CHANNEL * 8, INIT_CHANNEL * 4, 4, 4),
        (1, INIT_CHANNEL * 8, 4, 4),
    ]
    keys = jax.random.split(key, len(shapes))
    return [0.02 * jax.random.normal(k, s, dtype=jnp.float32)
            for k, s in zip(keys, shapes)]


def prepare_params(params):
    """One-time (outside jit) weight re-layout."""
    w1, w2, w3, w4, w5 = params
    return (
        _fold_w_im2col(w1),                                          # (1,1,48,64)
        _fold_weight_s2d(w2),                                        # (2,2,256,128)
        _fold_w_im2col(w3),                                          # (1,1,2048,256)
        _fold_w_im2col(w4),                                          # (1,1,4096,512)
        jnp.transpose(w5, (2, 3, 1, 0)).reshape(-1, 1).astype(jnp.float32),
    )


@jax.jit
def discriminator_forward(x_nchw, prepared):
    w1, w2, w3, w4, w5 = prepared
    n, _, h, w = x_nchw.shape
    assert h == 64 and w == 64, "DCGAN discriminator expects 64x64 inputs"

    x = jnp.transpose(x_nchw, (0, 2, 3, 1)).astype(jnp.float32)      # NHWC

    # conv1 + LeakyReLU: lane-dense im2col (K=48), epilogue fused in kernel.
    x1 = _prep_im2col(x)                                             # (N,1024,48)
    y1 = conv_flat(x1, w1, fuse_lrelu=True, with_stats=False,
                   block_target=8)                                   # (N,1024,64) bf16

    # conv2 + BN + LeakyReLU: space-to-depth (1x HBM), BN stats out of kernel.
    x2 = _prep_s2d(y1, 32)                                           # (N,17,17,256)
    y2, st2 = conv_s2d(x2, w2, block_target=8)                       # (N,256,128) bf16
    sc2, sh2 = _bn_scale_shift(st2, n * 256)

    # conv3 + BN + LeakyReLU (previous BN+LeakyReLU folded into the prep pass).
    x3 = _prep_im2col(y2, hw=16, scale=sc2, shift=sh2)               # (N,64,2048)
    y3, st3 = conv_flat(x3, w3, fuse_lrelu=False, with_stats=True,
                        block_target=16)                             # (N,64,256) bf16
    sc3, sh3 = _bn_scale_shift(st3, n * 64)

    # conv4 + BN + LeakyReLU
    x4 = _prep_im2col(y3, hw=8, scale=sc3, shift=sh3)                # (N,16,4096)
    y4, st4 = conv_flat(x4, w4, fuse_lrelu=False, with_stats=True,
                        block_target=32)                             # (N,16,512) bf16
    sc4, sh4 = _bn_scale_shift(st4, n * 16)

    z = _leaky(y4.astype(jnp.float32) * sc4 + sh4)                   # (N,16,512) f32

    # conv5: 4x4 VALID conv -> 1x1 with one output channel == one dot product
    # per image; a pallas_call here would be pure launch overhead.
    out = z.reshape(n, -1) @ w5                                      # (N, 1)
    return out.reshape(n)                                            # .view(N)


# ------------------------- pure-JAX reference check ------------------------- #

@jax.jit
def _reference_forward(x_nchw, params):
    w1, w2, w3, w4, w5 = [w.astype(jnp.float32) for w in params]

    def conv(x, wt, stride, pad):
        return jax.lax.conv_general_dilated(
            x, wt, window_strides=(stride, stride),
            padding=[(pad, pad), (pad, pad)],
            dimension_numbers=("NCHW", "OIHW", "NCHW"),
            precision=jax.lax.Precision.HIGHEST)

    def bn(x):
        mean = jnp.mean(x, axis=(0, 2, 3), keepdims=True)
        var = jnp.mean((x - mean) ** 2, axis=(0, 2, 3), keepdims=True)
        return (x - mean) * jax.lax.rsqrt(var + BN_EPS)

    y = _leaky(conv(x_nchw, w1, 2, 1))
    y = _leaky(bn(conv(y, w2, 2, 1)))
    y = _leaky(bn(conv(y, w3, 2, 1)))
    y = _leaky(bn(conv(y, w4, 2, 1)))
    y = conv(y, w5, 1, 0)
    return y.reshape(x_nchw.shape[0])


if __name__ == "__main__":
    key = jax.random.PRNGKey(0)
    pkey, xkey = jax.random.split(key)
    params = init_params(pkey)
    prepared = prepare_params(params)

    # 64x64 is the smallest spatial size consistent with conv5 producing 1x1.
    x = jax.random.normal(xkey, (2, IMG_CHANNEL, 64, 64), dtype=jnp.float32)

    out = jax.block_until_ready(discriminator_forward(x, prepared))
    assert out.shape == (2,)
    assert bool(jnp.all(jnp.isfinite(out)))

    # Loose tolerance: matmul operands are bf16 (f32 accumulation), reference is f32.
    ref = jax.block_until_ready(_reference_forward(x, params))
    max_err = float(jnp.max(jnp.abs(out - ref)))
    tol = 0.1 + 0.1 * float(jnp.max(jnp.abs(ref)))
    assert max_err < tol, f"mismatch vs reference: {max_err} >= {tol}"

    print("KERNEL_OK")
</pallas_src>

<mosaic_0001>
module attributes {stable_mosaic.version = 11 : i64} {
  func.func @_flat_matmul_kernel(%arg0: i32, %arg1: memref<1x1024x48xbf16, #tpu.memory_space<vmem>>, %arg2: memref<1x1x48x64xbf16, #tpu.memory_space<vmem>>, %arg3: memref<1x1024x64xbf16, #tpu.memory_space<vmem>>) attributes {dimension_semantics = [#tpu.dimension_semantics<parallel>], iteration_bounds = array<i64: 2>, scalar_prefetch = 0 : i64, scratch_operands = 0 : i64, tpu.core_type = #tpu.core_type<tc>, window_params = [{transform_indices = @transform_0, window_bounds = array<i64: 1, 1024, 48>}, {pipeline_mode = #tpu.pipeline_mode<synchronous>, transform_indices = @transform_1, window_bounds = array<i64: 1, 1, 48, 64>}, {transform_indices = @transform_2, window_bounds = array<i64: 1, 1024, 64>}]} {
    %c0 = arith.constant 0 : index
    %c0_0 = arith.constant 0 : index
    %c0_1 = arith.constant 0 : index
    %0 = vector.load %arg1[%c0, %c0_0, %c0_1] : memref<1x1024x48xbf16, #tpu.memory_space<vmem>>, vector<1x1024x48xbf16>
    %1 = vector.shape_cast %0 : vector<1x1024x48xbf16> to vector<1024x48xbf16>
    %c0_2 = arith.constant 0 : index
    %c0_3 = arith.constant 0 : index
    %c0_4 = arith.constant 0 : index
    %c0_5 = arith.constant 0 : index
    %2 = vector.load %arg2[%c0_2, %c0_3, %c0_4, %c0_5] : memref<1x1x48x64xbf16, #tpu.memory_space<vmem>>, vector<1x1x48x64xbf16>
    %3 = vector.shape_cast %2 : vector<1x1x48x64xbf16> to vector<48x64xbf16>
    %cst = arith.constant dense<0.000000e+00> : vector<1024x64xf32>
    %4 = tpu.matmul %1, %3, %cst {dimension_numbers = #tpu.dot_dimension_numbers<[1], [0], [0], [1], [0, 0, 1, 1], [], []>} : vector<1024x48xbf16>, vector<48x64xbf16>, vector<1024x64xf32> -> vector<1024x64xf32>
    %cst_6 = arith.constant 0.000000e+00 : f32
    %5 = vector.broadcast %cst_6 : f32 to vector<1024x64xf32>
    %6 = arith.cmpf oge, %4, %5 : vector<1024x64xf32>
    %cst_7 = arith.constant 2.000000e-01 : f32
    %7 = vector.broadcast %cst_7 : f32 to vector<1024x64xf32>
    %8 = arith.mulf %7, %4 : vector<1024x64xf32>
    %9 = arith.select %6, %4, %8 : vector<1024x64xi1>, vector<1024x64xf32>
    %10 = vector.shape_cast %9 : vector<1024x64xf32> to vector<1x1024x64xf32>
    %11 = arith.truncf %10 : vector<1x1024x64xf32> to vector<1x1024x64xbf16>
    %c0_8 = arith.constant 0 : index
    %c0_9 = arith.constant 0 : index
    %c0_10 = arith.constant 0 : index
    %12 = vector.load %arg3[%c0_8, %c0_9, %c0_10] : memref<1x1024x64xbf16, #tpu.memory_space<vmem>>, vector<1x1024x64xbf16>
    tpu.vector_store %arg3[%c0_8, %c0_9, %c0_10], %11 {strides = array<i32>} : memref<1x1024x64xbf16, #tpu.memory_space<vmem>>, vector<1x1024x64xbf16>,
    return
  }
  func.func @transform_0(%arg0: i32) -> (i32, i32, i32) {
    %c0_i32 = arith.constant 0 : i32
    %c0_i32_0 = arith.constant 0 : i32
    %c0_i32_1 = arith.constant 0 : i32
    return %arg0, %c0_i32, %c0_i32_0 : i32, i32, i32
  }
  func.func @transform_1(%arg0: i32) -> (i32, i32, i32, i32) {
    %c0_i32 = arith.constant 0 : i32
    %c0_i32_0 = arith.constant 0 : i32
    %c0_i32_1 = arith.constant 0 : i32
    %c0_i32_2 = arith.constant 0 : i32
    %c0_i32_3 = arith.constant 0 : i32
    return %c0_i32, %c0_i32_0, %c0_i32_1, %c0_i32_2 : i32, i32, i32, i32
  }
  func.func @transform_2(%arg0: i32) -> (i32, i32, i32) {
    %c0_i32 = arith.constant 0 : i32
    %c0_i32_0 = arith.constant 0 : i32
    %c0_i32_1 = arith.constant 0 : i32
    return %arg0, %c0_i32, %c0_i32_0 : i32, i32, i32
  }
}

module attributes {stable_mosaic.version = 11 : i64} {
  func.func @_s2d_conv4x4s2_kernel(%arg0: i32, %arg1: memref<1x17x17x256xbf16, #tpu.memory_space<vmem>>, %arg2: memref<2x2x256x128xbf16, #tpu.memory_space<vmem>>, %arg3: memref<1x256x128xbf16, #tpu.memory_space<vmem>>, %arg4: memref<1x8x128xf32, #tpu.memory_space<vmem>>) attributes {dimension_semantics = [#tpu.dimension_semantics<parallel>], iteration_bounds = array<i64: 2>, scalar_prefetch = 0 : i64, scratch_operands = 0 : i64, tpu.core_type = #tpu.core_type<tc>, window_params = [{transform_indices = @transform_0, window_bounds = array<i64: 1, 17, 17, 256>}, {pipeline_mode = #tpu.pipeline_mode<synchronous>, transform_indices = @transform_1, window_bounds = array<i64: 2, 2, 256, 128>}, {transform_indices = @transform_2, window_bounds = array<i64: 1, 256, 128>}, {transform_indices = @transform_3, window_bounds = array<i64: 1, 8, 128>}]} {
    %cst = arith.constant 0.000000e+00 : f32
    %0 = vector.broadcast %cst : f32 to vector<1x128xf32>
    %cst_0 = arith.constant 0.000000e+00 : f32
    %1 = vector.broadcast %cst_0 : f32 to vector<1x128xf32>
    %c0 = arith.constant 0 : index
    %c0_1 = arith.constant 0 : index
    %c0_2 = arith.constant 0 : index
    %c0_3 = arith.constant 0 : index
    %2 = vector.load %arg1[%c0, %c0_1, %c0_2, %c0_3] : memref<1x17x17x256xbf16, #tpu.memory_space<vmem>>, vector<1x16x16x256xbf16>
    %3 = vector.shape_cast %2 : vector<1x16x16x256xbf16> to vector<16x16x256xbf16>
    %4 = vector.shape_cast %3 : vector<16x16x256xbf16> to vector<256x256xbf16>
    %c0_4 = arith.constant 0 : index
    %c0_5 = arith.constant 0 : index
    %c0_6 = arith.constant 0 : index
    %c0_7 = arith.constant 0 : index
    %5 = vector.load %arg2[%c0_4, %c0_5, %c0_6, %c0_7] : memref<2x2x256x128xbf16, #tpu.memory_space<vmem>>, vector<1x1x256x128xbf16>
    %6 = vector.shape_cast %5 : vector<1x1x256x128xbf16> to vector<256x128xbf16>
    %cst_8 = arith.constant dense<0.000000e+00> : vector<256x128xf32>
    %7 = tpu.matmul %4, %6, %cst_8 {dimension_numbers = #tpu.dot_dimension_numbers<[1], [0], [0], [1], [0, 0, 1, 1], [], []>} : vector<256x256xbf16>, vector<256x128xbf16>, vector<256x128xf32> -> vector<256x128xf32>
    %c0_9 = arith.constant 0 : index
    %c0_10 = arith.constant 0 : index
    %c1 = arith.constant 1 : index
    %c0_11 = arith.constant 0 : index
    %8 = vector.load %arg1[%c0_9, %c0_10, %c1, %c0_11] : memref<1x17x17x256xbf16, #tpu.memory_space<vmem>>, vector<1x16x16x256xbf16>
    %9 = vector.shape_cast %8 : vector<1x16x16x256xbf16> to vector<16x16x256xbf16>
    %10 = vector.shape_cast %9 : vector<16x16x256xbf16> to vector<256x256xbf16>
    %c0_12 = arith.constant 0 : index
    %c1_13 = arith.constant 1 : index
    %c0_14 = arith.constant 0 : index
    %c0_15 = arith.constant 0 : index
    %11 = vector.load %arg2[%c0_12, %c1_13, %c0_14, %c0_15] : memref<2x2x256x128xbf16, #tpu.memory_space<vmem>>, vector<1x1x256x128xbf16>
    %12 = vector.shape_cast %11 : vector<1x1x256x128xbf16> to vector<256x128xbf16>
    %cst_16 = arith.constant dense<0.000000e+00> : vector<256x128xf32>
    %13 = tpu.matmul %10, %12, %cst_16 {dimension_numbers = #tpu.dot_dimension_numbers<[1], [0], [0], [1], [0, 0, 1, 1], [], []>} : vector<256x256xbf16>, vector<256x128xbf16>, vector<256x128xf32> -> vector<256x128xf32>
    %14 = arith.addf %7, %13 : vector<256x128xf32>
    %c0_17 = arith.constant 0 : index
    %c1_18 = arith.constant 1 : index
    %c0_19 = arith.constant 0 : index
    %c0_20 = arith.constant 0 : index
    %15 = vector.load %arg1[%c0_17, %c1_18, %c0_19, %c0_20] : memref<1x17x17x256xbf16, #tpu.memory_space<vmem>>, vector<1x16x16x256xbf16>
    %16 = vector.shape_cast %15 : vector<1x16x16x256xbf16> to vector<16x16x256xbf16>
    %17 = vector.shape_cast %16 : vector<16x16x256xbf16> to vector<256x256xbf16>
    %c1_21 = arith.constant 1 : index
    %c0_22 = arith.constant 0 : index
    %c0_23 = arith.constant 0 : index
    %c0_24 = arith.constant 0 : index
    %18 = vector.load %arg2[%c1_21, %c0_22, %c0_23, %c0_24] : memref<2x2x256x128xbf16, #tpu.memory_space<vmem>>, vector<1x1x256x128xbf16>
    %19 = vector.shape_cast %18 : vector<1x1x256x128xbf16> to vector<256x128xbf16>
    %cst_25 = arith.constant dense<0.000000e+00> : vector<256x128xf32>
    %20 = tpu.matmul %17, %19, %cst_25 {dimension_numbers = #tpu.dot_dimension_numbers<[1], [0], [0], [1], [0, 0, 1, 1], [], []>} : vector<256x256xbf16>, vector<256x128xbf16>, vector<256x128xf32> -> vector<256x128xf32>
    %21 = arith.addf %14, %20 : vector<256x128xf32>
    %c0_26 = arith.constant 0 : index
    %c1_27 = arith.constant 1 : index
    %c1_28 = arith.constant 1 : index
    %c0_29 = arith.constant 0 : index
    %22 = vector.load %arg1[%c0_26, %c1_27, %c1_28, %c0_29] : memref<1x17x17x256xbf16, #tpu.memory_space<vmem>>, vector<1x16x16x256xbf16>
    %23 = vector.shape_cast %22 : vector<1x16x16x256xbf16> to vector<16x16x256xbf16>
    %24 = vector.shape_cast %23 : vector<16x16x256xbf16> to vector<256x256xbf16>
    %c1_30 = arith.constant 1 : index
    %c1_31 = arith.constant 1 : index
    %c0_32 = arith.constant 0 : index
    %c0_33 = arith.constant 0 : index
    %25 = vector.load %arg2[%c1_30, %c1_31, %c0_32, %c0_33] : memref<2x2x256x128xbf16, #tpu.memory_space<vmem>>, vector<1x1x256x128xbf16>
    %26 = vector.shape_cast %25 : vector<1x1x256x128xbf16> to vector<256x128xbf16>
    %cst_34 = arith.constant dense<0.000000e+00> : vector<256x128xf32>
    %27 = tpu.matmul %24, %26, %cst_34 {dimension_numbers = #tpu.dot_dimension_numbers<[1], [0], [0], [1], [0, 0, 1, 1], [], []>} : vector<256x256xbf16>, vector<256x128xbf16>, vector<256x128xf32> -> vector<256x128xf32>
    %28 = arith.addf %21, %27 : vector<256x128xf32>
    %cst_35 = arith.constant dense<0.000000e+00> : vector<128xf32>
    %29 = vector.multi_reduction <add>, %28, %cst_35 [0] : vector<256x128xf32> to vector<128xf32>
    %30 = vector.shape_cast %29 : vector<128xf32> to vector<1x128xf32>
    %31 = arith.addf %0, %30 : vector<1x128xf32>
    %32 = arith.mulf %28, %28 : vector<256x128xf32>
    %cst_36 = arith.constant dense<0.000000e+00> : vector<128xf32>
    %33 = vector.multi_reduction <add>, %32, %cst_36 [0] : vector<256x128xf32> to vector<128xf32>
    %34 = vector.shape_cast %33 : vector<128xf32> to vector<1x128xf32>
    %35 = arith.addf %1, %34 : vector<1x128xf32>
    %36 = arith.truncf %28 : vector<256x128xf32> to vector<256x128xbf16>
    %c0_37 = arith.constant 0 : index
    %c0_38 = arith.constant 0 : index
    %c0_39 = arith.constant 0 : index
    %37 = vector.load %arg3[%c0_37, %c0_38, %c0_39] : memref<1x256x128xbf16, #tpu.memory_space<vmem>>, vector<1x256x128xbf16>
    %38 = vector.shape_cast %37 : vector<1x256x128xbf16> to vector<256x128xbf16>
    %39 = vector.shape_cast %36 : vector<256x128xbf16> to vector<1x256x128xbf16>
    tpu.vector_store %arg3[%c0_37, %c0_38, %c0_39], %39 {strides = array<i32>} : memref<1x256x128xbf16, #tpu.memory_space<vmem>>, vector<1x256x128xbf16>,
    %cst_40 = arith.constant 0.000000e+00 : f32
    %40 = vector.broadcast %cst_40 : f32 to vector<6x128xf32>
    %41 = tpu.concatenate %31, %35, %40 in 0 : vector<1x128xf32>, vector<1x128xf32>, vector<6x128xf32> -> vector<8x128xf32>
    %c0_41 = arith.constant 0 : index
    %c0_42 = arith.constant 0 : index
    %c0_43 = arith.constant 0 : index
    %42 = vector.load %arg4[%c0_41, %c0_42, %c0_43] : memref<1x8x128xf32, #tpu.memory_space<vmem>>, vector<1x8x128xf32>
    %43 = vector.shape_cast %42 : vector<1x8x128xf32> to vector<8x128xf32>
    %44 = vector.shape_cast %41 : vector<8x128xf32> to vector<1x8x128xf32>
    tpu.vector_store %arg4[%c0_41, %c0_42, %c0_43], %44 {strides = array<i32>} : memref<1x8x128xf32, #tpu.memory_space<vmem>>, vector<1x8x128xf32>,
    return
  }
  func.func @transform_0(%arg0: i32) -> (i32, i32, i32, i32) {
    %c0_i32 = arith.constant 0 : i32
    %c0_i32_0 = arith.constant 0 : i32
    %c0_i32_1 = arith.constant 0 : i32
    %c0_i32_2 = arith.constant 0 : i32
    return %arg0, %c0_i32, %c0_i32_0, %c0_i32_1 : i32, i32, i32, i32
  }
  func.func @transform_1(%arg0: i32) -> (i32, i32, i32, i32) {
    %c0_i32 = arith.constant 0 : i32
    %c0_i32_0 = arith.constant 0 : i32
    %c0_i32_1 = arith.constant 0 : i32
    %c0_i32_2 = arith.constant 0 : i32
    %c0_i32_3 = arith.constant 0 : i32
    return %c0_i32, %c0_i32_0, %c0_i32_1, %c0_i32_2 : i32, i32, i32, i32
  }
  func.func @transform_2(%arg0: i32) -> (i32, i32, i32) {
    %c0_i32 = arith.constant 0 : i32
    %c0_i32_0 = arith.constant 0 : i32
    %c0_i32_1 = arith.constant 0 : i32
    return %arg0, %c0_i32, %c0_i32_0 : i32, i32, i32
  }
  func.func @transform_3(%arg0: i32) -> (i32, i32, i32) {
    %c0_i32 = arith.constant 0 : i32
    %c0_i32_0 = arith.constant 0 : i32
    %c0_i32_1 = arith.constant 0 : i32
    return %arg0, %c0_i32, %c0_i32_0 : i32, i32, i32
  }
}

module attributes {stable_mosaic.version = 11 : i64} {
  func.func @_flat_matmul_kernel(%arg0: i32, %arg1: memref<1x64x2048xbf16, #tpu.memory_space<vmem>>, %arg2: memref<1x1x2048x256xbf16, #tpu.memory_space<vmem>>, %arg3: memref<1x64x256xbf16, #tpu.memory_space<vmem>>, %arg4: memref<1x8x256xf32, #tpu.memory_space<vmem>>) attributes {dimension_semantics = [#tpu.dimension_semantics<parallel>], iteration_bounds = array<i64: 2>, scalar_prefetch = 0 : i64, scratch_operands = 0 : i64, tpu.core_type = #tpu.core_type<tc>, window_params = [{transform_indices = @transform_0, window_bounds = array<i64: 1, 64, 2048>}, {pipeline_mode = #tpu.pipeline_mode<synchronous>, transform_indices = @transform_1, window_bounds = array<i64: 1, 1, 2048, 256>}, {transform_indices = @transform_2, window_bounds = array<i64: 1, 64, 256>}, {transform_indices = @transform_3, window_bounds = array<i64: 1, 8, 256>}]} {
    %cst = arith.constant 0.000000e+00 : f32
    %0 = vector.broadcast %cst : f32 to vector<1x256xf32>
    %cst_0 = arith.constant 0.000000e+00 : f32
    %1 = vector.broadcast %cst_0 : f32 to vector<1x256xf32>
    %c0 = arith.constant 0 : index
    %c0_1 = arith.constant 0 : index
    %c0_2 = arith.constant 0 : index
    %2 = vector.load %arg1[%c0, %c0_1, %c0_2] : memref<1x64x2048xbf16, #tpu.memory_space<vmem>>, vector<1x64x2048xbf16>
    %3 = vector.shape_cast %2 : vector<1x64x2048xbf16> to vector<64x2048xbf16>
    %c0_3 = arith.constant 0 : index
    %c0_4 = arith.constant 0 : index
    %c0_5 = arith.constant 0 : index
    %c0_6 = arith.constant 0 : index
    %4 = vector.load %arg2[%c0_3, %c0_4, %c0_5, %c0_6] : memref<1x1x2048x256xbf16, #tpu.memory_space<vmem>>, vector<1x1x2048x256xbf16>
    %5 = vector.shape_cast %4 : vector<1x1x2048x256xbf16> to vector<2048x256xbf16>
    %cst_7 = arith.constant dense<0.000000e+00> : vector<64x256xf32>
    %6 = tpu.matmul %3, %5, %cst_7 {dimension_numbers = #tpu.dot_dimension_numbers<[1], [0], [0], [1], [0, 0, 1, 1], [], []>} : vector<64x2048xbf16>, vector<2048x256xbf16>, vector<64x256xf32> -> vector<64x256xf32>
    %cst_8 = arith.constant dense<0.000000e+00> : vector<256xf32>
    %7 = vector.multi_reduction <add>, %6, %cst_8 [0] : vector<64x256xf32> to vector<256xf32>
    %8 = vector.shape_cast %7 : vector<256xf32> to vector<1x256xf32>
    %9 = arith.addf %0, %8 : vector<1x256xf32>
    %10 = arith.mulf %6, %6 : vector<64x256xf32>
    %cst_9 = arith.constant dense<0.000000e+00> : vector<256xf32>
    %11 = vector.multi_reduction <add>, %10, %cst_9 [0] : vector<64x256xf32> to vector<256xf32>
    %12 = vector.shape_cast %11 : vector<256xf32> to vector<1x256xf32>
    %13 = arith.addf %1, %12 : vector<1x256xf32>
    %14 = vector.shape_cast %6 : vector<64x256xf32> to vector<1x64x256xf32>
    %15 = arith.truncf %14 : vector<1x64x256xf32> to vector<1x64x256xbf16>
    %c0_10 = arith.constant 0 : index
    %c0_11 = arith.constant 0 : index
    %c0_12 = arith.constant 0 : index
    %16 = vector.load %arg3[%c0_10, %c0_11, %c0_12] : memref<1x64x256xbf16, #tpu.memory_space<vmem>>, vector<1x64x256xbf16>
    tpu.vector_store %arg3[%c0_10, %c0_11, %c0_12], %15 {strides = array<i32>} : memref<1x64x256xbf16, #tpu.memory_space<vmem>>, vector<1x64x256xbf16>,
    %cst_13 = arith.constant 0.000000e+00 : f32
    %17 = vector.broadcast %cst_13 : f32 to vector<6x256xf32>
    %18 = tpu.concatenate %9, %13, %17 in 0 : vector<1x256xf32>, vector<1x256xf32>, vector<6x256xf32> -> vector<8x256xf32>
    %c0_14 = arith.constant 0 : index
    %c0_15 = arith.constant 0 : index
    %c0_16 = arith.constant 0 : index
    %19 = vector.load %arg4[%c0_14, %c0_15, %c0_16] : memref<1x8x256xf32, #tpu.memory_space<vmem>>, vector<1x8x256xf32>
    %20 = vector.shape_cast %19 : vector<1x8x256xf32> to vector<8x256xf32>
    %21 = vector.shape_cast %18 : vector<8x256xf32> to vector<1x8x256xf32>
    tpu.vector_store %arg4[%c0_14, %c0_15, %c0_16], %21 {strides = array<i32>} : memref<1x8x256xf32, #tpu.memory_space<vmem>>, vector<1x8x256xf32>,
    return
  }
  func.func @transform_0(%arg0: i32) -> (i32, i32, i32) {
    %c0_i32 = arith.constant 0 : i32
    %c0_i32_0 = arith.constant 0 : i32
    %c0_i32_1 = arith.constant 0 : i32
    return %arg0, %c0_i32, %c0_i32_0 : i32, i32, i32
  }
  func.func @transform_1(%arg0: i32) -> (i32, i32, i32, i32) {
    %c0_i32 = arith.constant 0 : i32
    %c0_i32_0 = arith.constant 0 : i32
    %c0_i32_1 = arith.constant 0 : i32
    %c0_i32_2 = arith.constant 0 : i32
    %c0_i32_3 = arith.constant 0 : i32
    return %c0_i32, %c0_i32_0, %c0_i32_1, %c0_i32_2 : i32, i32, i32, i32
  }
  func.func @transform_2(%arg0: i32) -> (i32, i32, i32) {
    %c0_i32 = arith.constant 0 : i32
    %c0_i32_0 = arith.constant 0 : i32
    %c0_i32_1 = arith.constant 0 : i32
    return %arg0, %c0_i32, %c0_i32_0 : i32, i32, i32
  }
  func.func @transform_3(%arg0: i32) -> (i32, i32, i32) {
    %c0_i32 = arith.constant 0 : i32
    %c0_i32_0 = arith.constant 0 : i32
    %c0_i32_1 = arith.constant 0 : i32
    return %arg0, %c0_i32, %c0_i32_0 : i32, i32, i32
  }
}

module attributes {stable_mosaic.version = 11 : i64} {
  func.func @_flat_matmul_kernel(%arg0: i32, %arg1: memref<1x16x4096xbf16, #tpu.memory_space<vmem>>, %arg2: memref<1x1x4096x512xbf16, #tpu.memory_space<vmem>>, %arg3: memref<1x16x512xbf16, #tpu.memory_space<vmem>>, %arg4: memref<1x8x512xf32, #tpu.memory_space<vmem>>) attributes {dimension_semantics = [#tpu.dimension_semantics<parallel>], iteration_bounds = array<i64: 2>, scalar_prefetch = 0 : i64, scratch_operands = 0 : i64, tpu.core_type = #tpu.core_type<tc>, window_params = [{transform_indices = @transform_0, window_bounds = array<i64: 1, 16, 4096>}, {pipeline_mode = #tpu.pipeline_mode<synchronous>, transform_indices = @transform_1, window_bounds = array<i64: 1, 1, 4096, 512>}, {transform_indices = @transform_2, window_bounds = array<i64: 1, 16, 512>}, {transform_indices = @transform_3, window_bounds = array<i64: 1, 8, 512>}]} {
    %cst = arith.constant 0.000000e+00 : f32
    %0 = vector.broadcast %cst : f32 to vector<1x512xf32>
    %cst_0 = arith.constant 0.000000e+00 : f32
    %1 = vector.broadcast %cst_0 : f32 to vector<1x512xf32>
    %c0 = arith.constant 0 : index
    %c0_1 = arith.constant 0 : index
    %c0_2 = arith.constant 0 : index
    %2 = vector.load %arg1[%c0, %c0_1, %c0_2] : memref<1x16x4096xbf16, #tpu.memory_space<vmem>>, vector<1x16x4096xbf16>
    %3 = vector.shape_cast %2 : vector<1x16x4096xbf16> to vector<16x4096xbf16>
    %c0_3 = arith.constant 0 : index
    %c0_4 = arith.constant 0 : index
    %c0_5 = arith.constant 0 : index
    %c0_6 = arith.constant 0 : index
    %4 = vector.load %arg2[%c0_3, %c0_4, %c0_5, %c0_6] : memref<1x1x4096x512xbf16, #tpu.memory_space<vmem>>, vector<1x1x4096x512xbf16>
    %5 = vector.shape_cast %4 : vector<1x1x4096x512xbf16> to vector<4096x512xbf16>
    %cst_7 = arith.constant dense<0.000000e+00> : vector<16x512xf32>
    %6 = tpu.matmul %3, %5, %cst_7 {dimension_numbers = #tpu.dot_dimension_numbers<[1], [0], [0], [1], [0, 0, 1, 1], [], []>} : vector<16x4096xbf16>, vector<4096x512xbf16>, vector<16x512xf32> -> vector<16x512xf32>
    %cst_8 = arith.constant dense<0.000000e+00> : vector<512xf32>
    %7 = vector.multi_reduction <add>, %6, %cst_8 [0] : vector<16x512xf32> to vector<512xf32>
    %8 = vector.shape_cast %7 : vector<512xf32> to vector<1x512xf32>
    %9 = arith.addf %0, %8 : vector<1x512xf32>
    %10 = arith.mulf %6, %6 : vector<16x512xf32>
    %cst_9 = arith.constant dense<0.000000e+00> : vector<512xf32>
    %11 = vector.multi_reduction <add>, %10, %cst_9 [0] : vector<16x512xf32> to vector<512xf32>
    %12 = vector.shape_cast %11 : vector<512xf32> to vector<1x512xf32>
    %13 = arith.addf %1, %12 : vector<1x512xf32>
    %14 = vector.shape_cast %6 : vector<16x512xf32> to vector<1x16x512xf32>
    %15 = arith.truncf %14 : vector<1x16x512xf32> to vector<1x16x512xbf16>
    %c0_10 = arith.constant 0 : index
    %c0_11 = arith.constant 0 : index
    %c0_12 = arith.constant 0 : index
    %16 = vector.load %arg3[%c0_10, %c0_11, %c0_12] : memref<1x16x512xbf16, #tpu.memory_space<vmem>>, vector<1x16x512xbf16>
    tpu.vector_store %arg3[%c0_10, %c0_11, %c0_12], %15 {strides = array<i32>} : memref<1x16x512xbf16, #tpu.memory_space<vmem>>, vector<1x16x512xbf16>,
    %cst_13 = arith.constant 0.000000e+00 : f32
    %17 = vector.broadcast %cst_13 : f32 to vector<6x512xf32>
    %18 = tpu.concatenate %9, %13, %17 in 0 : vector<1x512xf32>, vector<1x512xf32>, vector<6x512xf32> -> vector<8x512xf32>
    %c0_14 = arith.constant 0 : index
    %c0_15 = arith.constant 0 : index
    %c0_16 = arith.constant 0 : index
    %19 = vector.load %arg4[%c0_14, %c0_15, %c0_16] : memref<1x8x512xf32, #tpu.memory_space<vmem>>, vector<1x8x512xf32>
    %20 = vector.shape_cast %19 : vector<1x8x512xf32> to vector<8x512xf32>
    %21 = vector.shape_cast %18 : vector<8x512xf32> to vector<1x8x512xf32>
    tpu.vector_store %arg4[%c0_14, %c0_15, %c0_16], %21 {strides = array<i32>} : memref<1x8x512xf32, #tpu.memory_space<vmem>>, vector<1x8x512xf32>,
    return
  }
  func.func @transform_0(%arg0: i32) -> (i32, i32, i32) {
    %c0_i32 = arith.constant 0 : i32
    %c0_i32_0 = arith.constant 0 : i32
    %c0_i32_1 = arith.constant 0 : i32
    return %arg0, %c0_i32, %c0_i32_0 : i32, i32, i32
  }
  func.func @transform_1(%arg0: i32) -> (i32, i32, i32, i32) {
    %c0_i32 = arith.constant 0 : i32
    %c0_i32_0 = arith.constant 0 : i32
    %c0_i32_1 = arith.constant 0 : i32
    %c0_i32_2 = arith.constant 0 : i32
    %c0_i32_3 = arith.constant 0 : i32
    return %c0_i32, %c0_i32_0, %c0_i32_1, %c0_i32_2 : i32, i32, i32, i32
  }
  func.func @transform_2(%arg0: i32) -> (i32, i32, i32) {
    %c0_i32 = arith.constant 0 : i32
    %c0_i32_0 = arith.constant 0 : i32
    %c0_i32_1 = arith.constant 0 : i32
    return %arg0, %c0_i32, %c0_i32_0 : i32, i32, i32
  }
  func.func @transform_3(%arg0: i32) -> (i32, i32, i32) {
    %c0_i32 = arith.constant 0 : i32
    %c0_i32_0 = arith.constant 0 : i32
    %c0_i32_1 = arith.constant 0 : i32
    return %arg0, %c0_i32, %c0_i32_0 : i32, i32, i32
  }
}

</mosaic_0001>

<bundles_post_ra>
// kernel: discriminator_forward.4
= control target key start
LH: loop header
LB: loop body
LE: loop exit
PB: predicated region body
PF: predicated region fallthrough
CT: control target
= control target key end

     0   :  { %s3140_s9 = smov 0   ;;  %s3561_s0 = inlined_call_operand.vmem [shape: bf16[2,1024,48], index: 0, kind: input, shape index: {}]   ;;  %s3562_s1 = inlined_call_operand.vmem [shape: bf16[1,1,48,64], index: 1, kind: input, shape index: {}]   ;;  %s3563_s2 = inlined_call_operand.vmem [shape: bf16[2,1024,64], index: 2, kind: output, shape index: {}]  }
   0x1 LB: > { %s2435_s10 = sadd.s32 4294967295, %s3123_s9   ;;  %p2439_p0 = scmp.ge.s32.totalorder %s3123_s9, 1  ;;  %s3123_s9 = sphi %s3140_s9, %s12_s9  }
   0x2   : > { %p112_p1 = scmp.lt.s32.totalorder %s3123_s9, 3 }
   0x4   : > { %p113_p2 = pnand %p2439_p0, %p112_p1 }
   0x5   : > { %p134_p3 = scmp.lt.s32.totalorder (!%p113_p2), %s2435_s10, 1 }
   0x6   : > { %116 = sbr.rel (%p113_p2) target bundleno = 350 (0x15e), region = 28 }
   0xb   : > { %v3050_v0 = vld [vmem:[%s3562_s1 + $0x10] sm:$0xff]   ;;  %v3051_v1 = vld [vmem:[%s3562_s1 + $0x8] sm:$0xff]   ;;  %s3565_s10 = smov (!%p134_p3, %s2435_s10), 1  ;;  %v3052_v2 = vld [vmem:[%s3562_s1] sm:$0xff]   ;;  %vm617_vm0 = vcmask 392192   ;;  %vm2251_vm3 = vcmask 519168  }
   0xc   : > { %2902 = vmatprep.subr.bf16.mxu0 %v3050_v0  ;;  %3036 = vmatprep.subr.bf16.mxu1 %v3050_v0  ;;  %s2705_s17 = sshll.u32 %s3565_s10, 9 }
   0xd   : > { %2903 = vmatpush3.bf16.msra.mxu0 %v3050_v0  ;;  %3039 = vmatpush3.bf16.msra.mxu1 %v3050_v0  ;;  %s3165_s20 = scalar_lea.vmem %s3561_s0, %s2705_s17  ;;  %s3300_s23 = scalar_lea.vmem %s3563_s2, %s2705_s17 }
   0xe   : > { %2904 = vmatprep.subr.bf16.mxu0 %v3051_v1  ;;  %3037 = vmatprep.subr.bf16.mxu1 %v3051_v1  ;;  %v3053_v3 = vld [vmem:[%s3165_s20] sm:$0xff]   ;;  %v3055_v5 = vld [vmem:[%s3165_s20 + $0x8] sm:$0xff]   ;;  %v3057_v7 = vld [vmem:[%s3165_s20 + $0x10] sm:$0xff]  }
   0xf   : > { %v3054_v4 = vld [vmem:[%s3165_s20 + $0x100] sm:$0xff]   ;;  %2908 = vmatprep.mubr.msk.bf16.mxu0 %vm617_vm0, %v3053_v3  ;;  %v3056_v6 = vld [vmem:[%s3165_s20 + $0x108] sm:$0xff]   ;;  %v3058_v8 = vld [vmem:[%s3165_s20 + $0x110] sm:$0xff]  }
  0x10   : > { %2972 = vmatprep.mubr.msk.bf16.mxu1 %vm617_vm0, %v3054_v4  ;;  %v3059_v9 = vld [vmem:[%s3165_s20 + $0x18] sm:$0xff]   ;;  %v3061_v11 = vld [vmem:[%s3165_s20 + $0x20] sm:$0xff]   ;;  %v3063_v13 = vld [vmem:[%s3165_s20 + $0x28] sm:$0xff]  }
  0x11   : > { %2905 = vmatpush3.bf16.msra.mxu0 %v3051_v1  ;;  %3040 = vmatpush3.bf16.msra.mxu1 %v3051_v1  ;;  %v3060_v10 = vld [vmem:[%s3165_s20 + $0x118] sm:$0xff]   ;;  %v3062_v12 = vld [vmem:[%s3165_s20 + $0x120] sm:$0xff]   ;;  %v3064_v14 = vld [vmem:[%s3165_s20 + $0x128] sm:$0xff]  }
  0x12   : > { %2906 = vmatprep.subr.bf16.mxu0 %v3052_v2  ;;  %3038 = vmatprep.subr.bf16.mxu1 %v3052_v2  ;;  %v3065_v15 = vld [vmem:[%s3165_s20 + $0x30] sm:$0xff]   ;;  %v3067_v17 = vld [vmem:[%s3165_s20 + $0x38] sm:$0xff]   ;;  %v3069_v19 = vld [vmem:[%s3165_s20 + $0x40] sm:$0xff]  }
  0x13   : > { %v3066_v16 = vld [vmem:[%s3165_s20 + $0x130] sm:$0xff]   ;;  %v3068_v18 = vld [vmem:[%s3165_s20 + $0x138] sm:$0xff]   ;;  %v3070_v20 = vld [vmem:[%s3165_s20 + $0x140] sm:$0xff]  }
  0x14   : > { %v3071_v21 = vld [vmem:[%s3165_s20 + $0x48] sm:$0xff]   ;;  %v3073_v23 = vld [vmem:[%s3165_s20 + $0x50] sm:$0xff]   ;;  %v3075_v25 = vld [vmem:[%s3165_s20 + $0x58] sm:$0xff]  }
  0x15   : > { %2907 = vmatpush3.bf16.msra.mxu0 %v3052_v2  ;;  %3041 = vmatpush3.bf16.msra.mxu1 %v3052_v2  ;;  %v3072_v22 = vld [vmem:[%s3165_s20 + $0x148] sm:$0xff]   ;;  %v3074_v24 = vld [vmem:[%s3165_s20 + $0x150] sm:$0xff]   ;;  %v3076_v26 = vld [vmem:[%s3165_s20 + $0x158] sm:$0xff]  }
  0x16   : > { %v3077_v27 = vld [vmem:[%s3165_s20 + $0x60] sm:$0xff]   ;;  %v3079_v29 = vld [vmem:[%s3165_s20 + $0x68] sm:$0xff]   ;;  %v3081_v31 = vld [vmem:[%s3165_s20 + $0x70] sm:$0xff]  }
  0x17   : > { %v3078_v28 = vld [vmem:[%s3165_s20 + $0x160] sm:$0xff]   ;;  %v3080_v30 = vld [vmem:[%s3165_s20 + $0x168] sm:$0xff]   ;;  %v3082_v32 = vld [vmem:[%s3165_s20 + $0x170] sm:$0xff]  }
  0x18   : > { %2909 = vmatmul.mubr.msk.bf16.vlgmr.msra.gmra.mxu0 %vm617_vm0, %v3055_v5  ;;  %2973 = vmatmul.mubr.msk.bf16.vlgmr.msra.gmra.mxu1 %vm617_vm0, %v3056_v6  ;;  %v3083_v33 = vld [vmem:[%s3165_s20 + $0x78] sm:$0xff]   ;;  %v3085_v35 = vld [vmem:[%s3165_s20 + $0x80] sm:$0xff]   ;;  %v3087_v37 = vld [vmem:[%s3165_s20 + $0x88] sm:$0xff]  }
  0x19   : > { %2912 = vmatprep.mubr.msk.bf16.mxu0 %vm617_vm0, %v3057_v7  ;;  %2976 = vmatprep.mubr.msk.bf16.mxu1 %vm617_vm0, %v3058_v8  ;;  %v3084_v34 = vld [vmem:[%s3165_s20 + $0x178] sm:$0xff]   ;;  %v3086_v36 = vld [vmem:[%s3165_s20 + $0x180] sm:$0xff]   ;;  %v3088_v38 = vld [vmem:[%s3165_s20 + $0x188] sm:$0xff]  }
  0x1a   : > { %v3089_v39 = vld [vmem:[%s3165_s20 + $0x90] sm:$0xff]   ;;  %v3091_v41 = vld [vmem:[%s3165_s20 + $0x98] sm:$0xff]   ;;  %v3093_v43 = vld [vmem:[%s3165_s20 + $0xa0] sm:$0xff]  }
  0x1b   : > { %v3090_v40 = vld [vmem:[%s3165_s20 + $0x190] sm:$0xff]   ;;  %v3092_v42 = vld [vmem:[%s3165_s20 + $0x198] sm:$0xff]   ;;  %v3094_v44 = vld [vmem:[%s3165_s20 + $0x1a0] sm:$0xff]  }
  0x1c   : > { %v3095_v45 = vld [vmem:[%s3165_s20 + $0xa8] sm:$0xff]   ;;  %v3097_v47 = vld [vmem:[%s3165_s20 + $0xb0] sm:$0xff]   ;;  %v3099_v49 = vld [vmem:[%s3165_s20 + $0xb8] sm:$0xff]  }
  0x1d   : > { %v3096_v46 = vld [vmem:[%s3165_s20 + $0x1a8] sm:$0xff]   ;;  %v3098_v48 = vld [vmem:[%s3165_s20 + $0x1b0] sm:$0xff]   ;;  %v3100_v50 = vld [vmem:[%s3165_s20 + $0x1b8] sm:$0xff]  }
  0x1e   : > { %v3101_v51 = vld [vmem:[%s3165_s20 + $0xc0] sm:$0xff]   ;;  %v3103_v53 = vld [vmem:[%s3165_s20 + $0xc8] sm:$0xff]   ;;  %v3105_v55 = vld [vmem:[%s3165_s20 + $0xd0] sm:$0xff]  }
  0x1f   : > { %v3102_v52 = vld [vmem:[%s3165_s20 + $0x1c0] sm:$0xff]   ;;  %v3104_v54 = vld [vmem:[%s3165_s20 + $0x1c8] sm:$0xff]   ;;  %v3106_v56 = vld [vmem:[%s3165_s20 + $0x1d0] sm:$0xff]  }
  0x20   : > { %2913 = vmatmul.mubr.msk.bf16.gmra.mxu0 %vm617_vm0, %v3059_v9  ;;  %2977 = vmatmul.mubr.msk.bf16.gmra.mxu1 %vm617_vm0, %v3060_v10  ;;  %v3107_v57 = vld [vmem:[%s3165_s20 + $0xd8] sm:$0xff]   ;;  %v3109_v59 = vld [vmem:[%s3165_s20 + $0xe0] sm:$0xff]   ;;  %v3111_v61 = vld [vmem:[%s3165_s20 + $0xe8] sm:$0xff]  }
  0x21   : > { %2916 = vmatprep.mubr.msk.bf16.mxu0 %vm617_vm0, %v3061_v11  ;;  %2980 = vmatprep.mubr.msk.bf16.mxu1 %vm617_vm0, %v3062_v12  ;;  %v3108_v58 = vld [vmem:[%s3165_s20 + $0x1d8] sm:$0xff]   ;;  %v3110_v60 = vld [vmem:[%s3165_s20 + $0x1e0] sm:$0xff]   ;;  %v3112_v62 = vld [vmem:[%s3165_s20 + $0x1e8] sm:$0xff]  }
  0x22   : > { %v3113_v63 = vld [vmem:[%s3165_s20 + $0xf0] sm:$0xff]   ;;  %v3115_v1 = vld [vmem:[%s3165_s20 + $0xf8] sm:$0xff]  }
  0x23   : > { %v3114_v0 = vld [vmem:[%s3165_s20 + $0x1f0] sm:$0xff]   ;;  %v3116_v2 = vld [vmem:[%s3165_s20 + $0x1f8] sm:$0xff]  }
  0x28   : > { %2917 = vmatmul.mubr.msk.bf16.gmra.mxu0 %vm617_vm0, %v3063_v13  ;;  %2981 = vmatmul.mubr.msk.bf16.gmra.mxu1 %vm617_vm0, %v3064_v14 }
  0x29   : > { %2920 = vmatprep.mubr.msk.bf16.mxu0 %vm617_vm0, %v3065_v15  ;;  %2984 = vmatprep.mubr.msk.bf16.mxu1 %vm617_vm0, %v3066_v16 }
  0x30   : > { %2921 = vmatmul.mubr.msk.bf16.gmra.mxu0 %vm617_vm0, %v3067_v17  ;;  %2985 = vmatmul.mubr.msk.bf16.gmra.mxu1 %vm617_vm0, %v3068_v18 }
  0x31   : > { %2924 = vmatprep.mubr.msk.bf16.mxu0 %vm617_vm0, %v3069_v19  ;;  %2988 = vmatprep.mubr.msk.bf16.mxu1 %vm617_vm0, %v3070_v20 }
  0x38   : > { %2925 = vmatmul.mubr.msk.bf16.gmra.mxu0 %vm617_vm0, %v3071_v21  ;;  %2989 = vmatmul.mubr.msk.bf16.gmra.mxu1 %vm617_vm0, %v3072_v22 }
  0x39   : > { %2928 = vmatprep.mubr.msk.bf16.mxu0 %vm617_vm0, %v3073_v23  ;;  %2992 = vmatprep.mubr.msk.bf16.mxu1 %vm617_vm0, %v3074_v24 }
  0x40   : > { %2929 = vmatmul.mubr.msk.bf16.gmra.mxu0 %vm617_vm0, %v3075_v25  ;;  %2993 = vmatmul.mubr.msk.bf16.gmra.mxu1 %vm617_vm0, %v3076_v26 }
  0x41   : > { %2932 = vmatprep.mubr.msk.bf16.mxu0 %vm617_vm0, %v3077_v27  ;;  %2996 = vmatprep.mubr.msk.bf16.mxu1 %vm617_vm0, %v3078_v28 }
  0x48   : > { %2933 = vmatmul.mubr.msk.bf16.gmra.mxu0 %vm617_vm0, %v3079_v29  ;;  %2997 = vmatmul.mubr.msk.bf16.gmra.mxu1 %vm617_vm0, %v3080_v30 }
  0x49   : > { %2936 = vmatprep.mubr.msk.bf16.mxu0 %vm617_vm0, %v3081_v31  ;;  %3000 = vmatprep.mubr.msk.bf16.mxu1 %vm617_vm0, %v3082_v32 }
  0x50   : > { %2937 = vmatmul.mubr.msk.bf16.gmra.mxu0 %vm617_vm0, %v3083_v33  ;;  %3001 = vmatmul.mubr.msk.bf16.gmra.mxu1 %vm617_vm0, %v3084_v34 }
  0x51   : > { %2940 = vmatprep.mubr.msk.bf16.mxu0 %vm617_vm0, %v3085_v35  ;;  %3004 = vmatprep.mubr.msk.bf16.mxu1 %vm617_vm0, %v3086_v36 }
  0x58   : > { %2941 = vmatmul.mubr.msk.bf16.gmra.mxu0 %vm617_vm0, %v3087_v37  ;;  %3005 = vmatmul.mubr.msk.bf16.gmra.mxu1 %vm617_vm0, %v3088_v38 }
  0x59   : > { %2944 = vmatprep.mubr.msk.bf16.mxu0 %vm617_vm0, %v3089_v39  ;;  %3008 = vmatprep.mubr.msk.bf16.mxu1 %vm617_vm0, %v3090_v40 }
  0x60   : > { %2945 = vmatmul.mubr.msk.bf16.gmra.mxu0 %vm617_vm0, %v3091_v41  ;;  %3009 = vmatmul.mubr.msk.bf16.gmra.mxu1 %vm617_vm0, %v3092_v42 }
  0x61   : > { %2948 = vmatprep.mubr.msk.bf16.mxu0 %vm617_vm0, %v3093_v43  ;;  %3012 = vmatprep.mubr.msk.bf16.mxu1 %vm617_vm0, %v3094_v44 }
  0x68   : > { %2949 = vmatmul.mubr.msk.bf16.gmra.mxu0 %vm617_vm0, %v3095_v45  ;;  %3013 = vmatmul.mubr.msk.bf16.gmra.mxu1 %vm617_vm0, %v3096_v46 }
  0x69   : > { %2952 = vmatprep.mubr.msk.bf16.mxu0 %vm617_vm0, %v3097_v47  ;;  %3016 = vmatprep.mubr.msk.bf16.mxu1 %vm617_vm0, %v3098_v48 }
  0x70   : > { %2953 = vmatmul.mubr.msk.bf16.gmra.mxu0 %vm617_vm0, %v3099_v49  ;;  %3017 = vmatmul.mubr.msk.bf16.gmra.mxu1 %vm617_vm0, %v3100_v50 }
  0x71   : > { %2956 = vmatprep.mubr.msk.bf16.mxu0 %vm617_vm0, %v3101_v51  ;;  %3020 = vmatprep.mubr.msk.bf16.mxu1 %vm617_vm0, %v3102_v52 }
  0x78   : > { %2957 = vmatmul.mubr.msk.bf16.gmra.mxu0 %vm617_vm0, %v3103_v53  ;;  %3021 = vmatmul.mubr.msk.bf16.gmra.mxu1 %vm617_vm0, %v3104_v54 }
  0x79   : > { %2960 = vmatprep.mubr.msk.bf16.mxu0 %vm617_vm0, %v3105_v55  ;;  %3024 = vmatprep.mubr.msk.bf16.mxu1 %vm617_vm0, %v3106_v56 }
  0x80   : > { %2961 = vmatmul.mubr.msk.bf16.gmra.mxu0 %vm617_vm0, %v3107_v57  ;;  %3025 = vmatmul.mubr.msk.bf16.gmra.mxu1 %vm617_vm0, %v3108_v58 }
  0x81   : > { %2964 = vmatprep.mubr.msk.bf16.mxu0 %vm617_vm0, %v3109_v59  ;;  %3028 = vmatprep.mubr.msk.bf16.mxu1 %vm617_vm0, %v3110_v60 }
  0x88   : > { %2965 = vmatmul.mubr.msk.bf16.gmra.mxu0 %vm617_vm0, %v3111_v61  ;;  %3029 = vmatmul.mubr.msk.bf16.gmra.mxu1 %vm617_vm0, %v3112_v62 }
  0x89   : > { %2968 = vmatprep.mubr.msk.bf16.mxu0 %vm617_vm0, %v3113_v63  ;;  %3032 = vmatprep.mubr.msk.bf16.mxu1 %vm617_vm0, %v3114_v0 }
  0x90   : > { %2969 = vmatmul.mubr.msk.bf16.gmra.mxu0 %vm617_vm0, %v3115_v1  ;;  %3033 = vmatmul.mubr.msk.bf16.gmra.mxu1 %vm617_vm0, %v3116_v2 }
  0xd8   : > { %v2910_v3 = vpop.f32.mrf.mxu0  ;;  %v2974_v4 = vpop.f32.mrf.mxu1 }
  0xd9   : > { %vm1357_vm1 = vcmp.ge.f32.partialorder %v2910_v3, 0.0  ;;  %v1485_v5 = vmul.f32 0.2, %v2910_v3  ;;  %vm1421_vm2 = vcmp.ge.f32.partialorder %v2974_v4, 0.0  ;;  %v1549_v6 = vmul.f32 0.2, %v2974_v4 }
  0xda   : > { %v844_v7 = vpop.f32.mrf.mxu0  ;;  %v1100_v8 = vpop.f32.mrf.mxu1 }
  0xdb   : > { %v1613_v9 = vsel %vm1357_vm1, %v2910_v3, %v1485_v5  ;;  %v1677_v10 = vsel %vm1421_vm2, %v2974_v4, %v1549_v6  ;;  %vm1355_vm4 = vcmp.ge.f32.partialorder %v844_v7, 0.0  ;;  %v1483_v11 = vmul.f32 0.2, %v844_v7 }
  0xdc   : > { %v2709_v12 = vpack.c.bf16 %v1613_v9, %v1613_v9  ;;  %v2773_v13 = vpack.c.bf16 %v1677_v10, %v1677_v10  ;;  %vm1419_vm5 = vcmp.ge.f32.partialorder %v1100_v8, 0.0  ;;  %v1547_v14 = vmul.f32 0.2, %v1100_v8  ;;  %v2911_v15 = vpop.f32.mrf.mxu0  ;;  %v2975_v16 = vpop.f32.mrf.mxu1 }
  0xdd   : > { %v1611_v17 = vsel %vm1355_vm4, %v844_v7, %v1483_v11  ;;  %vm1358_vm6 = vcmp.ge.f32.partialorder %v2911_v15, 0.0  ;;  %v1486_v18 = vmul.f32 0.2, %v2911_v15  ;;  %vm1422_vm7 = vcmp.ge.f32.partialorder %v2975_v16, 0.0 }
  0xde   : > { %2254 = vst.msk [vmem:[%s3300_s23 + $0x8] sm:$0xf] %vm2251_vm3, %v2709_v12  ;;  %2318 = vst.msk [vmem:[%s3300_s23 + $0x108] sm:$0xf] %vm2251_vm3, %v2773_v13  ;;  %v2707_v19 = vpack.c.bf16 %v1611_v17, %v1611_v17  ;;  %v1675_v20 = vsel %vm1419_vm5, %v1100_v8, %v1547_v14  ;;  %v1550_v21 = vmul.f32 0.2, %v2975_v16  ;;  %v847_v22 = vpop.f32.mrf.mxu0  ;;  %v1103_v23 = vpop.f32.mrf.mxu1 }
  0xdf   : > { %v2771_v24 = vpack.c.bf16 %v1675_v20, %v1675_v20  ;;  %v1614_v25 = vsel %vm1358_vm6, %v2911_v15, %v1486_v18  ;;  %vm1356_vm8 = vcmp.ge.f32.partialorder %v847_v22, 0.0  ;;  %v1484_v26 = vmul.f32 0.2, %v847_v22 }
  0xe0   : > { %2252 = vst.msk [vmem:[%s3300_s23] sm:$0xf] %vm2251_vm3, %v2707_v19  ;;  %v2710_v27 = vpack.c.bf16 %v1614_v25, %v1614_v25  ;;  %v1678_v28 = vsel %vm1422_vm7, %v2975_v16, %v1550_v21  ;;  %vm1420_vm9 = vcmp.ge.f32.partialorder %v1103_v23, 0.0  ;;  %v1548_v29 = vmul.f32 0.2, %v1103_v23  ;;  %v2914_v30 = vpop.f32.mrf.mxu0  ;;  %v2978_v31 = vpop.f32.mrf.mxu1 }
  0xe1   : > { %2316 = vst.msk [vmem:[%s3300_s23 + $0x100] sm:$0xf] %vm2251_vm3, %v2771_v24  ;;  %v2774_v32 = vpack.c.bf16 %v1678_v28, %v1678_v28  ;;  %v1612_v33 = vsel %vm1356_vm8, %v847_v22, %v1484_v26  ;;  %vm1361_vm10 = vcmp.ge.f32.partialorder %v2914_v30, 0.0  ;;  %v1489_v34 = vmul.f32 0.2, %v2914_v30 }
  0xe2   : > { %2255 = vst.msk [vmem:[%s3300_s23 + $0xc] sm:$0xf] %vm2251_vm3, %v2710_v27  ;;  %v2708_v35 = vpack.c.bf16 %v1612_v33, %v1612_v33  ;;  %v1676_v36 = vsel %vm1420_vm9, %v1103_v23, %v1548_v29  ;;  %vm1425_vm11 = vcmp.ge.f32.partialorder %v2978_v31, 0.0  ;;  %v1553_v37 = vmul.f32 0.2, %v2978_v31  ;;  %v860_v38 = vpop.f32.mrf.mxu0  ;;  %v1116_v39 = vpop.f32.mrf.mxu1 }
  0xe3   : > { %2319 = vst.msk [vmem:[%s3300_s23 + $0x10c] sm:$0xf] %vm2251_vm3, %v2774_v32  ;;  %v2772_v40 = vpack.c.bf16 %v1676_v36, %v1676_v36  ;;  %v1617_v41 = vsel %vm1361_vm10, %v2914_v30, %v1489_v34  ;;  %vm1359_vm12 = vcmp.ge.f32.partialorder %v860_v38, 0.0  ;;  %v1487_v42 = vmul.f32 0.2, %v860_v38 }
  0xe4   : > { %2253 = vst.msk [vmem:[%s3300_s23 + $0x4] sm:$0xf] %vm2251_vm3, %v2708_v35  ;;  %v2713_v43 = vpack.c.bf16 %v1617_v41, %v1617_v41  ;;  %v1681_v44 = vsel %vm1425_vm11, %v2978_v31, %v1553_v37  ;;  %vm1423_vm13 = vcmp.ge.f32.partialorder %v1116_v39, 0.0  ;;  %v1551_v45 = vmul.f32 0.2, %v1116_v39  ;;  %v2915_v46 = vpop.f32.mrf.mxu0  ;;  %v2979_v47 = vpop.f32.mrf.mxu1 }
  0xe5   : > { %2317 = vst.msk [vmem:[%s3300_s23 + $0x104] sm:$0xf] %vm2251_vm3, %v2772_v40  ;;  %v2777_v48 = vpack.c.bf16 %v1681_v44, %v1681_v44  ;;  %v1615_v49 = vsel %vm1359_vm12, %v860_v38, %v1487_v42  ;;  %vm1362_vm14 = vcmp.ge.f32.partialorder %v2915_v46, 0.0  ;;  %v1490_v50 = vmul.f32 0.2, %v2915_v46 }
  0xe6   : > { %2258 = vst.msk [vmem:[%s3300_s23 + $0x18] sm:$0xf] %vm2251_vm3, %v2713_v43  ;;  %v2711_v51 = vpack.c.bf16 %v1615_v49, %v1615_v49  ;;  %v1679_v52 = vsel %vm1423_vm13, %v1116_v39, %v1551_v45  ;;  %vm1426_vm15 = vcmp.ge.f32.partialorder %v2979_v47, 0.0  ;;  %v1554_v53 = vmul.f32 0.2, %v2979_v47  ;;  %v863_v54 = vpop.f32.mrf.mxu0  ;;  %v1119_v55 = vpop.f32.mrf.mxu1 }
  0xe7   : > { %2322 = vst.msk [vmem:[%s3300_s23 + $0x118] sm:$0xf] %vm2251_vm3, %v2777_v48  ;;  %v2775_v56 = vpack.c.bf16 %v1679_v52, %v1679_v52  ;;  %v1618_v57 = vsel %vm1362_vm14, %v2915_v46, %v1490_v50  ;;  %vm1360_vm0 = vcmp.ge.f32.partialorder %v863_v54, 0.0  ;;  %v1488_v58 = vmul.f32 0.2, %v863_v54 }
  0xe8   : > { %2256 = vst.msk [vmem:[%s3300_s23 + $0x10] sm:$0xf] %vm2251_vm3, %v2711_v51  ;;  %v2714_v59 = vpack.c.bf16 %v1618_v57, %v1618_v57  ;;  %v1682_v60 = vsel %vm1426_vm15, %v2979_v47, %v1554_v53  ;;  %vm1424_vm1 = vcmp.ge.f32.partialorder %v1119_v55, 0.0  ;;  %v1552_v61 = vmul.f32 0.2, %v1119_v55  ;;  %v2918_v62 = vpop.f32.mrf.mxu0  ;;  %v2982_v63 = vpop.f32.mrf.mxu1 }
  0xe9   : > { %2320 = vst.msk [vmem:[%s3300_s23 + $0x110] sm:$0xf] %vm2251_vm3, %v2775_v56  ;;  %v2778_v0 = vpack.c.bf16 %v1682_v60, %v1682_v60  ;;  %v1616_v1 = vsel %vm1360_vm0, %v863_v54, %v1488_v58  ;;  %vm1365_vm2 = vcmp.ge.f32.partialorder %v2918_v62, 0.0  ;;  %v1493_v2 = vmul.f32 0.2, %v2918_v62 }
  0xea   : > { %2259 = vst.msk [vmem:[%s3300_s23 + $0x1c] sm:$0xf] %vm2251_vm3, %v2714_v59  ;;  %v2712_v3 = vpack.c.bf16 %v1616_v1, %v1616_v1  ;;  %v1680_v4 = vsel %vm1424_vm1, %v1119_v55, %v1552_v61  ;;  %vm1429_vm4 = vcmp.ge.f32.partialorder %v2982_v63, 0.0  ;;  %v1557_v5 = vmul.f32 0.2, %v2982_v63  ;;  %v876_v6 = vpop.f32.mrf.mxu0  ;;  %v1132_v7 = vpop.f32.mrf.mxu1 }
  0xeb   : > { %2323 = vst.msk [vmem:[%s3300_s23 + $0x11c] sm:$0xf] %vm2251_vm3, %v2778_v0  ;;  %v2776_v8 = vpack.c.bf16 %v1680_v4, %v1680_v4  ;;  %v1621_v9 = vsel %vm1365_vm2, %v2918_v62, %v1493_v2  ;;  %vm1363_vm5 = vcmp.ge.f32.partialorder %v876_v6, 0.0  ;;  %v1491_v10 = vmul.f32 0.2, %v876_v6 }
  0xec   : > { %2257 = vst.msk [vmem:[%s3300_s23 + $0x14] sm:$0xf] %vm2251_vm3, %v2712_v3  ;;  %v2717_v11 = vpack.c.bf16 %v1621_v9, %v1621_v9  ;;  %v1685_v12 = vsel %vm1429_vm4, %v2982_v63, %v1557_v5  ;;  %vm1427_vm6 = vcmp.ge.f32.partialorder %v1132_v7, 0.0  ;;  %v1555_v13 = vmul.f32 0.2, %v1132_v7  ;;  %v2919_v14 = vpop.f32.mrf.mxu0  ;;  %v2983_v15 = vpop.f32.mrf.mxu1 }
  0xed   : > { %2321 = vst.msk [vmem:[%s3300_s23 + $0x114] sm:$0xf] %vm2251_vm3, %v2776_v8  ;;  %v2781_v16 = vpack.c.bf16 %v1685_v12, %v1685_v12  ;;  %v1619_v17 = vsel %vm1363_vm5, %v876_v6, %v1491_v10  ;;  %vm1366_vm7 = vcmp.ge.f32.partialorder %v2919_v14, 0.0  ;;  %v1494_v18 = vmul.f32 0.2, %v2919_v14 }
  0xee   : > { %2262 = vst.msk [vmem:[%s3300_s23 + $0x28] sm:$0xf] %vm2251_vm3, %v2717_v11  ;;  %v2715_v19 = vpack.c.bf16 %v1619_v17, %v1619_v17  ;;  %v1683_v20 = vsel %vm1427_vm6, %v1132_v7, %v1555_v13  ;;  %vm1430_vm8 = vcmp.ge.f32.partialorder %v2983_v15, 0.0  ;;  %v1558_v21 = vmul.f32 0.2, %v2983_v15  ;;  %v879_v22 = vpop.f32.mrf.mxu0  ;;  %v1135_v23 = vpop.f32.mrf.mxu1 }
  0xef   : > { %2326 = vst.msk [vmem:[%s3300_s23 + $0x128] sm:$0xf] %vm2251_vm3, %v2781_v16  ;;  %v2779_v24 = vpack.c.bf16 %v1683_v20, %v1683_v20  ;;  %v1622_v25 = vsel %vm1366_vm7, %v2919_v14, %v1494_v18  ;;  %vm1364_vm9 = vcmp.ge.f32.partialorder %v879_v22, 0.0  ;;  %v1492_v26 = vmul.f32 0.2, %v879_v22 }
  0xf0   : > { %2260 = vst.msk [vmem:[%s3300_s23 + $0x20] sm:$0xf] %vm2251_vm3, %v2715_v19  ;;  %v2718_v27 = vpack.c.bf16 %v1622_v25, %v1622_v25  ;;  %v1686_v28 = vsel %vm1430_vm8, %v2983_v15, %v1558_v21  ;;  %vm1428_vm10 = vcmp.ge.f32.partialorder %v1135_v23, 0.0  ;;  %v1556_v29 = vmul.f32 0.2, %v1135_v23  ;;  %v2922_v30 = vpop.f32.mrf.mxu0  ;;  %v2986_v31 = vpop.f32.mrf.mxu1 }
  0xf1   : > { %2324 = vst.msk [vmem:[%s3300_s23 + $0x120] sm:$0xf] %vm2251_vm3, %v2779_v24  ;;  %v2782_v32 = vpack.c.bf16 %v1686_v28, %v1686_v28  ;;  %v1620_v33 = vsel %vm1364_vm9, %v879_v22, %v1492_v26  ;;  %vm1369_vm11 = vcmp.ge.f32.partialorder %v2922_v30, 0.0  ;;  %v1497_v34 = vmul.f32 0.2, %v2922_v30 }
  0xf2   : > { %2263 = vst.msk [vmem:[%s3300_s23 + $0x2c] sm:$0xf] %vm2251_vm3, %v2718_v27  ;;  %v2716_v35 = vpack.c.bf16 %v1620_v33, %v1620_v33  ;;  %v1684_v36 = vsel %vm1428_vm10, %v1135_v23, %v1556_v29  ;;  %vm1433_vm12 = vcmp.ge.f32.partialorder %v2986_v31, 0.0  ;;  %v1561_v37 = vmul.f32 0.2, %v2986_v31  ;;  %v892_v38 = vpop.f32.mrf.mxu0  ;;  %v1148_v39 = vpop.f32.mrf.mxu1 }
  0xf3   : > { %2327 = vst.msk [vmem:[%s3300_s23 + $0x12c] sm:$0xf] %vm2251_vm3, %v2782_v32  ;;  %v2780_v40 = vpack.c.bf16 %v1684_v36, %v1684_v36  ;;  %v1625_v41 = vsel %vm1369_vm11, %v2922_v30, %v1497_v34  ;;  %vm1367_vm13 = vcmp.ge.f32.partialorder %v892_v38, 0.0  ;;  %v1495_v42 = vmul.f32 0.2, %v892_v38 }
  0xf4   : > { %2261 = vst.msk [vmem:[%s3300_s23 + $0x24] sm:$0xf] %vm2251_vm3, %v2716_v35  ;;  %v2721_v43 = vpack.c.bf16 %v1625_v41, %v1625_v41  ;;  %v1689_v44 = vsel %vm1433_vm12, %v2986_v31, %v1561_v37  ;;  %vm1431_vm14 = vcmp.ge.f32.partialorder %v1148_v39, 0.0  ;;  %v1559_v45 = vmul.f32 0.2, %v1148_v39  ;;  %v2923_v46 = vpop.f32.mrf.mxu0  ;;  %v2987_v47 = vpop.f32.mrf.mxu1 }
  0xf5   : > { %2325 = vst.msk [vmem:[%s3300_s23 + $0x124] sm:$0xf] %vm2251_vm3, %v2780_v40  ;;  %v2785_v48 = vpack.c.bf16 %v1689_v44, %v1689_v44  ;;  %v1623_v49 = vsel %vm1367_vm13, %v892_v38, %v1495_v42  ;;  %vm1370_vm15 = vcmp.ge.f32.partialorder %v2923_v46, 0.0  ;;  %v1498_v50 = vmul.f32 0.2, %v2923_v46 }
  0xf6   : > { %2266 = vst.msk [vmem:[%s3300_s23 + $0x38] sm:$0xf] %vm2251_vm3, %v2721_v43  ;;  %v2719_v51 = vpack.c.bf16 %v1623_v49, %v1623_v49  ;;  %v1687_v52 = vsel %vm1431_vm14, %v1148_v39, %v1559_v45  ;;  %vm1434_vm0 = vcmp.ge.f32.partialorder %v2987_v47, 0.0  ;;  %v1562_v53 = vmul.f32 0.2, %v2987_v47  ;;  %v895_v54 = vpop.f32.mrf.mxu0  ;;  %v1151_v55 = vpop.f32.mrf.mxu1 }
  0xf7   : > { %2330 = vst.msk [vmem:[%s3300_s23 + $0x138] sm:$0xf] %vm2251_vm3, %v2785_v48  ;;  %v2783_v56 = vpack.c.bf16 %v1687_v52, %v1687_v52  ;;  %v1626_v57 = vsel %vm1370_vm15, %v2923_v46, %v1498_v50  ;;  %vm1368_vm1 = vcmp.ge.f32.partialorder %v895_v54, 0.0  ;;  %v1496_v58 = vmul.f32 0.2, %v895_v54 }
  0xf8   : > { %2264 = vst.msk [vmem:[%s3300_s23 + $0x30] sm:$0xf] %vm2251_vm3, %v2719_v51  ;;  %v2722_v59 = vpack.c.bf16 %v1626_v57, %v1626_v57  ;;  %v1690_v60 = vsel %vm1434_vm0, %v2987_v47, %v1562_v53  ;;  %vm1432_vm2 = vcmp.ge.f32.partialorder %v1151_v55, 0.0  ;;  %v1560_v61 = vmul.f32 0.2, %v1151_v55  ;;  %v2926_v62 = vpop.f32.mrf.mxu0  ;;  %v2990_v63 = vpop.f32.mrf.mxu1 }
  0xf9   : > { %2328 = vst.msk [vmem:[%s3300_s23 + $0x130] sm:$0xf] %vm2251_vm3, %v2783_v56  ;;  %v2786_v0 = vpack.c.bf16 %v1690_v60, %v1690_v60  ;;  %v1624_v1 = vsel %vm1368_vm1, %v895_v54, %v1496_v58  ;;  %vm1373_vm4 = vcmp.ge.f32.partialorder %v2926_v62, 0.0  ;;  %v1501_v2 = vmul.f32 0.2, %v2926_v62 }
  0xfa   : > { %2267 = vst.msk [vmem:[%s3300_s23 + $0x3c] sm:$0xf] %vm2251_vm3, %v2722_v59  ;;  %v2720_v3 = vpack.c.bf16 %v1624_v1, %v1624_v1  ;;  %v1688_v4 = vsel %vm1432_vm2, %v1151_v55, %v1560_v61  ;;  %vm1437_vm5 = vcmp.ge.f32.partialorder %v2990_v63, 0.0  ;;  %v1565_v5 = vmul.f32 0.2, %v2990_v63  ;;  %v908_v6 = vpop.f32.mrf.mxu0  ;;  %v1164_v7 = vpop.f32.mrf.mxu1 }
  0xfb   : > { %2331 = vst.msk [vmem:[%s3300_s23 + $0x13c] sm:$0xf] %vm2251_vm3, %v2786_v0  ;;  %v2784_v8 = vpack.c.bf16 %v1688_v4, %v1688_v4  ;;  %v1629_v9 = vsel %vm1373_vm4, %v2926_v62, %v1501_v2  ;;  %vm1371_vm6 = vcmp.ge.f32.partialorder %v908_v6, 0.0  ;;  %v1499_v10 = vmul.f32 0.2, %v908_v6 }
  0xfc   : > { %2265 = vst.msk [vmem:[%s3300_s23 + $0x34] sm:$0xf] %vm2251_vm3, %v2720_v3  ;;  %v2725_v11 = vpack.c.bf16 %v1629_v9, %v1629_v9  ;;  %v1693_v12 = vsel %vm1437_vm5, %v2990_v63, %v1565_v5  ;;  %vm1435_vm7 = vcmp.ge.f32.partialorder %v1164_v7, 0.0  ;;  %v1563_v13 = vmul.f32 0.2, %v1164_v7  ;;  %v2927_v14 = vpop.f32.mrf.mxu0  ;;  %v2991_v15 = vpop.f32.mrf.mxu1 }
  0xfd   : > { %2329 = vst.msk [vmem:[%s3300_s23 + $0x134] sm:$0xf] %vm2251_vm3, %v2784_v8  ;;  %v2789_v16 = vpack.c.bf16 %v1693_v12, %v1693_v12  ;;  %v1627_v17 = vsel %vm1371_vm6, %v908_v6, %v1499_v10  ;;  %vm1374_vm8 = vcmp.ge.f32.partialorder %v2927_v14, 0.0  ;;  %v1502_v18 = vmul.f32 0.2, %v2927_v14 }
  0xfe   : > { %2270 = vst.msk [vmem:[%s3300_s23 + $0x48] sm:$0xf] %vm2251_vm3, %v2725_v11  ;;  %v2723_v19 = vpack.c.bf16 %v1627_v17, %v1627_v17  ;;  %v1691_v20 = vsel %vm1435_vm7, %v1164_v7, %v1563_v13  ;;  %vm1438_vm9 = vcmp.ge.f32.partialorder %v2991_v15, 0.0  ;;  %v1566_v21 = vmul.f32 0.2, %v2991_v15  ;;  %v911_v22 = vpop.f32.mrf.mxu0  ;;  %v1167_v23 = vpop.f32.mrf.mxu1 }
  0xff   : > { %2334 = vst.msk [vmem:[%s3300_s23 + $0x148] sm:$0xf] %vm2251_vm3, %v2789_v16  ;;  %v2787_v24 = vpack.c.bf16 %v1691_v20, %v1691_v20  ;;  %v1630_v25 = vsel %vm1374_vm8, %v2927_v14, %v1502_v18  ;;  %vm1372_vm10 = vcmp.ge.f32.partialorder %v911_v22, 0.0  ;;  %v1500_v26 = vmul.f32 0.2, %v911_v22 }
 0x100   : > { %2268 = vst.msk [vmem:[%s3300_s23 + $0x40] sm:$0xf] %vm2251_vm3, %v2723_v19  ;;  %v2726_v27 = vpack.c.bf16 %v1630_v25, %v1630_v25  ;;  %v1694_v28 = vsel %vm1438_vm9, %v2991_v15, %v1566_v21  ;;  %vm1436_vm11 = vcmp.ge.f32.partialorder %v1167_v23, 0.0  ;;  %v1564_v29 = vmul.f32 0.2, %v1167_v23  ;;  %v2930_v30 = vpop.f32.mrf.mxu0  ;;  %v2994_v31 = vpop.f32.mrf.mxu1 }
 0x101   : > { %2332 = vst.msk [vmem:[%s3300_s23 + $0x140] sm:$0xf] %vm2251_vm3, %v2787_v24  ;;  %v2790_v32 = vpack.c.bf16 %v1694_v28, %v1694_v28  ;;  %v1628_v33 = vsel %vm1372_vm10, %v911_v22, %v1500_v26  ;;  %vm1377_vm12 = vcmp.ge.f32.partialorder %v2930_v30, 0.0  ;;  %v1505_v34 = vmul.f32 0.2, %v2930_v30 }
 0x102   : > { %2271 = vst.msk [vmem:[%s3300_s23 + $0x4c] sm:$0xf] %vm2251_vm3, %v2726_v27  ;;  %v2724_v35 = vpack.c.bf16 %v1628_v33, %v1628_v33  ;;  %v1692_v36 = vsel %vm1436_vm11, %v1167_v23, %v1564_v29  ;;  %vm1441_vm13 = vcmp.ge.f32.partialorder %v2994_v31, 0.0  ;;  %v1569_v37 = vmul.f32 0.2, %v2994_v31  ;;  %v924_v38 = vpop.f32.mrf.mxu0  ;;  %v1180_v39 = vpop.f32.mrf.mxu1 }
 0x103   : > { %2335 = vst.msk [vmem:[%s3300_s23 + $0x14c] sm:$0xf] %vm2251_vm3, %v2790_v32  ;;  %v2788_v40 = vpack.c.bf16 %v1692_v36, %v1692_v36  ;;  %v1633_v41 = vsel %vm1377_vm12, %v2930_v30, %v1505_v34  ;;  %vm1375_vm14 = vcmp.ge.f32.partialorder %v924_v38, 0.0  ;;  %v1503_v42 = vmul.f32 0.2, %v924_v38 }
 0x104   : > { %2269 = vst.msk [vmem:[%s3300_s23 + $0x44] sm:$0xf] %vm2251_vm3, %v2724_v35  ;;  %v2729_v43 = vpack.c.bf16 %v1633_v41, %v1633_v41  ;;  %v1697_v44 = vsel %vm1441_vm13, %v2994_v31, %v1569_v37  ;;  %vm1439_vm15 = vcmp.ge.f32.partialorder %v1180_v39, 0.0  ;;  %v1567_v45 = vmul.f32 0.2, %v1180_v39  ;;  %v2931_v46 = vpop.f32.mrf.mxu0  ;;  %v2995_v47 = vpop.f32.mrf.mxu1 }
 0x105   : > { %2333 = vst.msk [vmem:[%s3300_s23 + $0x144] sm:$0xf] %vm2251_vm3, %v2788_v40  ;;  %v2793_v48 = vpack.c.bf16 %v1697_v44, %v1697_v44  ;;  %v1631_v49 = vsel %vm1375_vm14, %v924_v38, %v1503_v42  ;;  %vm1378_vm0 = vcmp.ge.f32.partialorder %v2931_v46, 0.0  ;;  %v1506_v50 = vmul.f32 0.2, %v2931_v46 }
 0x106   : > { %2274 = vst.msk [vmem:[%s3300_s23 + $0x58] sm:$0xf] %vm2251_vm3, %v2729_v43  ;;  %v2727_v51 = vpack.c.bf16 %v1631_v49, %v1631_v49  ;;  %v1695_v52 = vsel %vm1439_vm15, %v1180_v39, %v1567_v45  ;;  %vm1442_vm1 = vcmp.ge.f32.partialorder %v2995_v47, 0.0  ;;  %v1570_v53 = vmul.f32 0.2, %v2995_v47  ;;  %v927_v54 = vpop.f32.mrf.mxu0  ;;  %v1183_v55 = vpop.f32.mrf.mxu1 }
 0x107   : > { %2338 = vst.msk [vmem:[%s3300_s23 + $0x158] sm:$0xf] %vm2251_vm3, %v2793_v48  ;;  %v2791_v56 = vpack.c.bf16 %v1695_v52, %v1695_v52  ;;  %v1634_v57 = vsel %vm1378_vm0, %v2931_v46, %v1506_v50  ;;  %vm1376_vm2 = vcmp.ge.f32.partialorder %v927_v54, 0.0  ;;  %v1504_v58 = vmul.f32 0.2, %v927_v54 }
 0x108   : > { %2272 = vst.msk [vmem:[%s3300_s23 + $0x50] sm:$0xf] %vm2251_vm3, %v2727_v51  ;;  %v2730_v59 = vpack.c.bf16 %v1634_v57, %v1634_v57  ;;  %v1698_v60 = vsel %vm1442_vm1, %v2995_v47, %v1570_v53  ;;  %vm1440_vm4 = vcmp.ge.f32.partialorder %v1183_v55, 0.0  ;;  %v1568_v61 = vmul.f32 0.2, %v1183_v55  ;;  %v2934_v62 = vpop.f32.mrf.mxu0  ;;  %v2998_v63 = vpop.f32.mrf.mxu1 }
 0x109   : > { %2336 = vst.msk [vmem:[%s3300_s23 + $0x150] sm:$0xf] %vm2251_vm3, %v2791_v56  ;;  %v2794_v0 = vpack.c.bf16 %v1698_v60, %v1698_v60  ;;  %v1632_v1 = vsel %vm1376_vm2, %v927_v54, %v1504_v58  ;;  %vm1381_vm5 = vcmp.ge.f32.partialorder %v2934_v62, 0.0  ;;  %v1509_v2 = vmul.f32 0.2, %v2934_v62 }
 0x10a   : > { %2275 = vst.msk [vmem:[%s3300_s23 + $0x5c] sm:$0xf] %vm2251_vm3, %v2730_v59  ;;  %v2728_v3 = vpack.c.bf16 %v1632_v1, %v1632_v1  ;;  %v1696_v4 = vsel %vm1440_vm4, %v1183_v55, %v1568_v61  ;;  %vm1445_vm6 = vcmp.ge.f32.partialorder %v2998_v63, 0.0  ;;  %v1573_v5 = vmul.f32 0.2, %v2998_v63  ;;  %v940_v6 = vpop.f32.mrf.mxu0  ;;  %v1196_v7 = vpop.f32.mrf.mxu1 }
 0x10b   : > { %2339 = vst.msk [vmem:[%s3300_s23 + $0x15c] sm:$0xf] %vm2251_vm3, %v2794_v0  ;;  %v2792_v8 = vpack.c.bf16 %v1696_v4, %v1696_v4  ;;  %v1637_v9 = vsel %vm1381_vm5, %v2934_v62, %v1509_v2  ;;  %vm1379_vm7 = vcmp.ge.f32.partialorder %v940_v6, 0.0  ;;  %v1507_v10 = vmul.f32 0.2, %v940_v6 }
 0x10c   : > { %2273 = vst.msk [vmem:[%s3300_s23 + $0x54] sm:$0xf] %vm2251_vm3, %v2728_v3  ;;  %v2733_v11 = vpack.c.bf16 %v1637_v9, %v1637_v9  ;;  %v1701_v12 = vsel %vm1445_vm6, %v2998_v63, %v1573_v5  ;;  %vm1443_vm8 = vcmp.ge.f32.partialorder %v1196_v7, 0.0  ;;  %v1571_v13 = vmul.f32 0.2, %v1196_v7  ;;  %v2935_v14 = vpop.f32.mrf.mxu0  ;;  %v2999_v15 = vpop.f32.mrf.mxu1 }
 0x10d   : > { %2337 = vst.msk [vmem:[%s3300_s23 + $0x154] sm:$0xf] %vm2251_vm3, %v2792_v8  ;;  %v2797_v16 = vpack.c.bf16 %v1701_v12, %v1701_v12  ;;  %v1635_v17 = vsel %vm1379_vm7, %v940_v6, %v1507_v10  ;;  %vm1382_vm9 = vcmp.ge.f32.partialorder %v2935_v14, 0.0  ;;  %v1510_v18 = vmul.f32 0.2, %v2935_v14 }
 0x10e   : > { %2278 = vst.msk [vmem:[%s3300_s23 + $0x68] sm:$0xf] %vm2251_vm3, %v2733_v11  ;;  %v2731_v19 = vpack.c.bf16 %v1635_v17, %v1635_v17  ;;  %v1699_v20 = vsel %vm1443_vm8, %v1196_v7, %v1571_v13  ;;  %vm1446_vm10 = vcmp.ge.f32.partialorder %v2999_v15, 0.0  ;;  %v1574_v21 = vmul.f32 0.2, %v2999_v15  ;;  %v943_v22 = vpop.f32.mrf.mxu0  ;;  %v1199_v23 = vpop.f32.mrf.mxu1 }
 0x10f   : > { %2342 = vst.msk [vmem:[%s3300_s23 + $0x168] sm:$0xf] %vm2251_vm3, %v2797_v16  ;;  %v2795_v24 = vpack.c.bf16 %v1699_v20, %v1699_v20  ;;  %v1638_v25 = vsel %vm1382_vm9, %v2935_v14, %v1510_v18  ;;  %vm1380_vm11 = vcmp.ge.f32.partialorder %v943_v22, 0.0  ;;  %v1508_v26 = vmul.f32 0.2, %v943_v22 }
 0x110   : > { %2276 = vst.msk [vmem:[%s3300_s23 + $0x60] sm:$0xf] %vm2251_vm3, %v2731_v19  ;;  %v2734_v27 = vpack.c.bf16 %v1638_v25, %v1638_v25  ;;  %v1702_v28 = vsel %vm1446_vm10, %v2999_v15, %v1574_v21  ;;  %vm1444_vm12 = vcmp.ge.f32.partialorder %v1199_v23, 0.0  ;;  %v1572_v29 = vmul.f32 0.2, %v1199_v23  ;;  %v2938_v30 = vpop.f32.mrf.mxu0  ;;  %v3002_v31 = vpop.f32.mrf.mxu1 }
 0x111   : > { %2340 = vst.msk [vmem:[%s3300_s23 + $0x160] sm:$0xf] %vm2251_vm3, %v2795_v24  ;;  %v2798_v32 = vpack.c.bf16 %v1702_v28, %v1702_v28  ;;  %v1636_v33 = vsel %vm1380_vm11, %v943_v22, %v1508_v26  ;;  %vm1385_vm13 = vcmp.ge.f32.partialorder %v2938_v30, 0.0  ;;  %v1513_v34 = vmul.f32 0.2, %v2938_v30 }
 0x112   : > { %2279 = vst.msk [vmem:[%s3300_s23 + $0x6c] sm:$0xf] %vm2251_vm3, %v2734_v27  ;;  %v2732_v35 = vpack.c.bf16 %v1636_v33, %v1636_v33  ;;  %v1700_v36 = vsel %vm1444_vm12, %v1199_v23, %v1572_v29  ;;  %vm1449_vm14 = vcmp.ge.f32.partialorder %v3002_v31, 0.0  ;;  %v1577_v37 = vmul.f32 0.2, %v3002_v31  ;;  %v956_v38 = vpop.f32.mrf.mxu0  ;;  %v1212_v39 = vpop.f32.mrf.mxu1 }
 0x113   : > { %2343 = vst.msk [vmem:[%s3300_s23 + $0x16c] sm:$0xf] %vm2251_vm3, %v2798_v32  ;;  %v2796_v40 = vpack.c.bf16 %v1700_v36, %v1700_v36  ;;  %v1641_v41 = vsel %vm1385_vm13, %v2938_v30, %v1513_v34  ;;  %vm1383_vm15 = vcmp.ge.f32.partialorder %v956_v38, 0.0  ;;  %v1511_v42 = vmul.f32 0.2, %v956_v38 }
 0x114   : > { %2277 = vst.msk [vmem:[%s3300_s23 + $0x64] sm:$0xf] %vm2251_vm3, %v2732_v35  ;;  %v2737_v43 = vpack.c.bf16 %v1641_v41, %v1641_v41  ;;  %v1705_v44 = vsel %vm1449_vm14, %v3002_v31, %v1577_v37  ;;  %vm1447_vm0 = vcmp.ge.f32.partialorder %v1212_v39, 0.0  ;;  %v1575_v45 = vmul.f32 0.2, %v1212_v39  ;;  %v2939_v46 = vpop.f32.mrf.mxu0  ;;  %v3003_v47 = vpop.f32.mrf.mxu1 }
 0x115   : > { %2341 = vst.msk [vmem:[%s3300_s23 + $0x164] sm:$0xf] %vm2251_vm3, %v2796_v40  ;;  %v2801_v48 = vpack.c.bf16 %v1705_v44, %v1705_v44  ;;  %v1639_v49 = vsel %vm1383_vm15, %v956_v38, %v1511_v42  ;;  %vm1386_vm1 = vcmp.ge.f32.partialorder %v2939_v46, 0.0  ;;  %v1514_v50 = vmul.f32 0.2, %v2939_v46 }
 0x116   : > { %2282 = vst.msk [vmem:[%s3300_s23 + $0x78] sm:$0xf] %vm2251_vm3, %v2737_v43  ;;  %v2735_v51 = vpack.c.bf16 %v1639_v49, %v1639_v49  ;;  %v1703_v52 = vsel %vm1447_vm0, %v1212_v39, %v1575_v45  ;;  %vm1450_vm2 = vcmp.ge.f32.partialorder %v3003_v47, 0.0  ;;  %v1578_v53 = vmul.f32 0.2, %v3003_v47  ;;  %v959_v54 = vpop.f32.mrf.mxu0  ;;  %v1215_v55 = vpop.f32.mrf.mxu1 }
 0x117   : > { %2346 = vst.msk [vmem:[%s3300_s23 + $0x178] sm:$0xf] %vm2251_vm3, %v2801_v48  ;;  %v2799_v56 = vpack.c.bf16 %v1703_v52, %v1703_v52  ;;  %v1642_v57 = vsel %vm1386_vm1, %v2939_v46, %v1514_v50  ;;  %vm1384_vm4 = vcmp.ge.f32.partialorder %v959_v54, 0.0  ;;  %v1512_v58 = vmul.f32 0.2, %v959_v54 }
 0x118   : > { %2280 = vst.msk [vmem:[%s3300_s23 + $0x70] sm:$0xf] %vm2251_vm3, %v2735_v51  ;;  %v2738_v59 = vpack.c.bf16 %v1642_v57, %v1642_v57  ;;  %v1706_v60 = vsel %vm1450_vm2, %v3003_v47, %v1578_v53  ;;  %vm1448_vm5 = vcmp.ge.f32.partialorder %v1215_v55, 0.0  ;;  %v1576_v61 = vmul.f32 0.2, %v1215_v55  ;;  %v2942_v62 = vpop.f32.mrf.mxu0  ;;  %v3006_v63 = vpop.f32.mrf.mxu1 }
 0x119   : > { %2344 = vst.msk [vmem:[%s3300_s23 + $0x170] sm:$0xf] %vm2251_vm3, %v2799_v56  ;;  %v2802_v0 = vpack.c.bf16 %v1706_v60, %v1706_v60  ;;  %v1640_v1 = vsel %vm1384_vm4, %v959_v54, %v1512_v58  ;;  %vm1389_vm6 = vcmp.ge.f32.partialorder %v2942_v62, 0.0  ;;  %v1517_v2 = vmul.f32 0.2, %v2942_v62 }
 0x11a   : > { %2283 = vst.msk [vmem:[%s3300_s23 + $0x7c] sm:$0xf] %vm2251_vm3, %v2738_v59  ;;  %v2736_v3 = vpack.c.bf16 %v1640_v1, %v1640_v1  ;;  %v1704_v4 = vsel %vm1448_vm5, %v1215_v55, %v1576_v61  ;;  %vm1453_vm7 = vcmp.ge.f32.partialorder %v3006_v63, 0.0  ;;  %v1581_v5 = vmul.f32 0.2, %v3006_v63  ;;  %v972_v6 = vpop.f32.mrf.mxu0  ;;  %v1228_v7 = vpop.f32.mrf.mxu1 }
 0x11b   : > { %2347 = vst.msk [vmem:[%s3300_s23 + $0x17c] sm:$0xf] %vm2251_vm3, %v2802_v0  ;;  %v2800_v8 = vpack.c.bf16 %v1704_v4, %v1704_v4  ;;  %v1645_v9 = vsel %vm1389_vm6, %v2942_v62, %v1517_v2  ;;  %vm1387_vm8 = vcmp.ge.f32.partialorder %v972_v6, 0.0  ;;  %v1515_v10 = vmul.f32 0.2, %v972_v6 }
 0x11c   : > { %2281 = vst.msk [vmem:[%s3300_s23 + $0x74] sm:$0xf] %vm2251_vm3, %v2736_v3  ;;  %v2741_v11 = vpack.c.bf16 %v1645_v9, %v1645_v9  ;;  %v1709_v12 = vsel %vm1453_vm7, %v3006_v63, %v1581_v5  ;;  %vm1451_vm9 = vcmp.ge.f32.partialorder %v1228_v7, 0.0  ;;  %v1579_v13 = vmul.f32 0.2, %v1228_v7  ;;  %v2943_v14 = vpop.f32.mrf.mxu0  ;;  %v3007_v15 = vpop.f32.mrf.mxu1 }
 0x11d   : > { %2345 = vst.msk [vmem:[%s3300_s23 + $0x174] sm:$0xf] %vm2251_vm3, %v2800_v8  ;;  %v2805_v16 = vpack.c.bf16 %v1709_v12, %v1709_v12  ;;  %v1643_v17 = vsel %vm1387_vm8, %v972_v6, %v1515_v10  ;;  %vm1390_vm10 = vcmp.ge.f32.partialorder %v2943_v14, 0.0  ;;  %v1518_v18 = vmul.f32 0.2, %v2943_v14 }
 0x11e   : > { %2286 = vst.msk [vmem:[%s3300_s23 + $0x88] sm:$0xf] %vm2251_vm3, %v2741_v11  ;;  %v2739_v19 = vpack.c.bf16 %v1643_v17, %v1643_v17  ;;  %v1707_v20 = vsel %vm1451_vm9, %v1228_v7, %v1579_v13  ;;  %vm1454_vm11 = vcmp.ge.f32.partialorder %v3007_v15, 0.0  ;;  %v1582_v21 = vmul.f32 0.2, %v3007_v15  ;;  %v975_v22 = vpop.f32.mrf.mxu0  ;;  %v1231_v23 = vpop.f32.mrf.mxu1 }
 0x11f   : > { %2350 = vst.msk [vmem:[%s3300_s23 + $0x188] sm:$0xf] %vm2251_vm3, %v2805_v16  ;;  %v2803_v24 = vpack.c.bf16 %v1707_v20, %v1707_v20  ;;  %v1646_v25 = vsel %vm1390_vm10, %v2943_v14, %v1518_v18  ;;  %vm1388_vm12 = vcmp.ge.f32.partialorder %v975_v22, 0.0  ;;  %v1516_v26 = vmul.f32 0.2, %v975_v22 }
 0x120   : > { %2284 = vst.msk [vmem:[%s3300_s23 + $0x80] sm:$0xf] %vm2251_vm3, %v2739_v19  ;;  %v2742_v27 = vpack.c.bf16 %v1646_v25, %v1646_v25  ;;  %v1710_v28 = vsel %vm1454_vm11, %v3007_v15, %v1582_v21  ;;  %vm1452_vm13 = vcmp.ge.f32.partialorder %v1231_v23, 0.0  ;;  %v1580_v29 = vmul.f32 0.2, %v1231_v23  ;;  %v2946_v30 = vpop.f32.mrf.mxu0  ;;  %v3010_v31 = vpop.f32.mrf.mxu1 }
 0x121   : > { %2348 = vst.msk [vmem:[%s3300_s23 + $0x180] sm:$0xf] %vm2251_vm3, %v2803_v24  ;;  %v2806_v32 = vpack.c.bf16 %v1710_v28, %v1710_v28  ;;  %v1644_v33 = vsel %vm1388_vm12, %v975_v22, %v1516_v26  ;;  %vm1393_vm14 = vcmp.ge.f32.partialorder %v2946_v30, 0.0  ;;  %v1521_v34 = vmul.f32 0.2, %v2946_v30 }
 0x122   : > { %2287 = vst.msk [vmem:[%s3300_s23 + $0x8c] sm:$0xf] %vm2251_vm3, %v2742_v27  ;;  %v2740_v35 = vpack.c.bf16 %v1644_v33, %v1644_v33  ;;  %v1708_v36 = vsel %vm1452_vm13, %v1231_v23, %v1580_v29  ;;  %vm1457_vm15 = vcmp.ge.f32.partialorder %v3010_v31, 0.0  ;;  %v1585_v37 = vmul.f32 0.2, %v3010_v31  ;;  %v988_v38 = vpop.f32.mrf.mxu0  ;;  %v1244_v39 = vpop.f32.mrf.mxu1 }
 0x123   : > { %2351 = vst.msk [vmem:[%s3300_s23 + $0x18c] sm:$0xf] %vm2251_vm3, %v2806_v32  ;;  %v2804_v40 = vpack.c.bf16 %v1708_v36, %v1708_v36  ;;  %v1649_v41 = vsel %vm1393_vm14, %v2946_v30, %v1521_v34  ;;  %vm1391_vm0 = vcmp.ge.f32.partialorder %v988_v38, 0.0  ;;  %v1519_v42 = vmul.f32 0.2, %v988_v38 }
 0x124   : > { %2285 = vst.msk [vmem:[%s3300_s23 + $0x84] sm:$0xf] %vm2251_vm3, %v2740_v35  ;;  %v2745_v43 = vpack.c.bf16 %v1649_v41, %v1649_v41  ;;  %v1713_v44 = vsel %vm1457_vm15, %v3010_v31, %v1585_v37  ;;  %vm1455_vm1 = vcmp.ge.f32.partialorder %v1244_v39, 0.0  ;;  %v1583_v45 = vmul.f32 0.2, %v1244_v39  ;;  %v2947_v46 = vpop.f32.mrf.mxu0  ;;  %v3011_v47 = vpop.f32.mrf.mxu1 }
 0x125   : > { %2349 = vst.msk [vmem:[%s3300_s23 + $0x184] sm:$0xf] %vm2251_vm3, %v2804_v40  ;;  %v2809_v48 = vpack.c.bf16 %v1713_v44, %v1713_v44  ;;  %v1647_v49 = vsel %vm1391_vm0, %v988_v38, %v1519_v42  ;;  %vm1394_vm2 = vcmp.ge.f32.partialorder %v2947_v46, 0.0  ;;  %v1522_v50 = vmul.f32 0.2, %v2947_v46 }
 0x126   : > { %2290 = vst.msk [vmem:[%s3300_s23 + $0x98] sm:$0xf] %vm2251_vm3, %v2745_v43  ;;  %v2743_v51 = vpack.c.bf16 %v1647_v49, %v1647_v49  ;;  %v1711_v52 = vsel %vm1455_vm1, %v1244_v39, %v1583_v45  ;;  %vm1458_vm4 = vcmp.ge.f32.partialorder %v3011_v47, 0.0  ;;  %v1586_v53 = vmul.f32 0.2, %v3011_v47  ;;  %v991_v54 = vpop.f32.mrf.mxu0  ;;  %v1247_v55 = vpop.f32.mrf.mxu1 }
 0x127   : > { %2354 = vst.msk [vmem:[%s3300_s23 + $0x198] sm:$0xf] %vm2251_vm3, %v2809_v48  ;;  %v2807_v56 = vpack.c.bf16 %v1711_v52, %v1711_v52  ;;  %v1650_v57 = vsel %vm1394_vm2, %v2947_v46, %v1522_v50  ;;  %vm1392_vm5 = vcmp.ge.f32.partialorder %v991_v54, 0.0  ;;  %v1520_v58 = vmul.f32 0.2, %v991_v54 }
 0x128   : > { %2288 = vst.msk [vmem:[%s3300_s23 + $0x90] sm:$0xf] %vm2251_vm3, %v2743_v51  ;;  %v2746_v59 = vpack.c.bf16 %v1650_v57, %v1650_v57  ;;  %v1714_v60 = vsel %vm1458_vm4, %v3011_v47, %v1586_v53  ;;  %vm1456_vm6 = vcmp.ge.f32.partialorder %v1247_v55, 0.0  ;;  %v1584_v61 = vmul.f32 0.2, %v1247_v55  ;;  %v2950_v62 = vpop.f32.mrf.mxu0  ;;  %v3014_v63 = vpop.f32.mrf.mxu1 }
 0x129   : > { %2352 = vst.msk [vmem:[%s3300_s23 + $0x190] sm:$0xf] %vm2251_vm3, %v2807_v56  ;;  %v2810_v0 = vpack.c.bf16 %v1714_v60, %v1714_v60  ;;  %v1648_v1 = vsel %vm1392_vm5, %v991_v54, %v1520_v58  ;;  %vm1397_vm7 = vcmp.ge.f32.partialorder %v2950_v62, 0.0  ;;  %v1525_v2 = vmul.f32 0.2, %v2950_v62 }
 0x12a   : > { %2291 = vst.msk [vmem:[%s3300_s23 + $0x9c] sm:$0xf] %vm2251_vm3, %v2746_v59  ;;  %v2744_v3 = vpack.c.bf16 %v1648_v1, %v1648_v1  ;;  %v1712_v4 = vsel %vm1456_vm6, %v1247_v55, %v1584_v61  ;;  %vm1461_vm8 = vcmp.ge.f32.partialorder %v3014_v63, 0.0  ;;  %v1589_v5 = vmul.f32 0.2, %v3014_v63  ;;  %v1004_v6 = vpop.f32.mrf.mxu0  ;;  %v1260_v7 = vpop.f32.mrf.mxu1 }
 0x12b   : > { %2355 = vst.msk [vmem:[%s3300_s23 + $0x19c] sm:$0xf] %vm2251_vm3, %v2810_v0  ;;  %v2808_v8 = vpack.c.bf16 %v1712_v4, %v1712_v4  ;;  %v1653_v9 = vsel %vm1397_vm7, %v2950_v62, %v1525_v2  ;;  %vm1395_vm9 = vcmp.ge.f32.partialorder %v1004_v6, 0.0  ;;  %v1523_v10 = vmul.f32 0.2, %v1004_v6 }
 0x12c   : > { %2289 = vst.msk [vmem:[%s3300_s23 + $0x94] sm:$0xf] %vm2251_vm3, %v2744_v3  ;;  %v2749_v11 = vpack.c.bf16 %v1653_v9, %v1653_v9  ;;  %v1717_v12 = vsel %vm1461_vm8, %v3014_v63, %v1589_v5  ;;  %vm1459_vm10 = vcmp.ge.f32.partialorder %v1260_v7, 0.0  ;;  %v1587_v13 = vmul.f32 0.2, %v1260_v7  ;;  %v2951_v14 = vpop.f32.mrf.mxu0  ;;  %v3015_v15 = vpop.f32.mrf.mxu1 }
 0x12d   : > { %2353 = vst.msk [vmem:[%s3300_s23 + $0x194] sm:$0xf] %vm2251_vm3, %v2808_v8  ;;  %v2813_v16 = vpack.c.bf16 %v1717_v12, %v1717_v12  ;;  %v1651_v17 = vsel %vm1395_vm9, %v1004_v6, %v1523_v10  ;;  %vm1398_vm11 = vcmp.ge.f32.partialorder %v2951_v14, 0.0  ;;  %v1526_v18 = vmul.f32 0.2, %v2951_v14 }
 0x12e   : > { %2294 = vst.msk [vmem:[%s3300_s23 + $0xa8] sm:$0xf] %vm2251_vm3, %v2749_v11  ;;  %v2747_v19 = vpack.c.bf16 %v1651_v17, %v1651_v17  ;;  %v1715_v20 = vsel %vm1459_vm10, %v1260_v7, %v1587_v13  ;;  %vm1462_vm12 = vcmp.ge.f32.partialorder %v3015_v15, 0.0  ;;  %v1590_v21 = vmul.f32 0.2, %v3015_v15  ;;  %v1007_v22 = vpop.f32.mrf.mxu0  ;;  %v1263_v23 = vpop.f32.mrf.mxu1 }
 0x12f   : > { %2358 = vst.msk [vmem:[%s3300_s23 + $0x1a8] sm:$0xf] %vm2251_vm3, %v2813_v16  ;;  %v2811_v24 = vpack.c.bf16 %v1715_v20, %v1715_v20  ;;  %v1654_v25 = vsel %vm1398_vm11, %v2951_v14, %v1526_v18  ;;  %vm1396_vm13 = vcmp.ge.f32.partialorder %v1007_v22, 0.0  ;;  %v1524_v26 = vmul.f32 0.2, %v1007_v22 }
 0x130   : > { %2292 = vst.msk [vmem:[%s3300_s23 + $0xa0] sm:$0xf] %vm2251_vm3, %v2747_v19  ;;  %v2750_v27 = vpack.c.bf16 %v1654_v25, %v1654_v25  ;;  %v1718_v28 = vsel %vm1462_vm12, %v3015_v15, %v1590_v21  ;;  %vm1460_vm14 = vcmp.ge.f32.partialorder %v1263_v23, 0.0  ;;  %v1588_v29 = vmul.f32 0.2, %v1263_v23  ;;  %v2954_v30 = vpop.f32.mrf.mxu0  ;;  %v3018_v31 = vpop.f32.mrf.mxu1 }
 0x131   : > { %2356 = vst.msk [vmem:[%s3300_s23 + $0x1a0] sm:$0xf] %vm2251_vm3, %v2811_v24  ;;  %v2814_v32 = vpack.c.bf16 %v1718_v28, %v1718_v28  ;;  %v1652_v33 = vsel %vm1396_vm13, %v1007_v22, %v1524_v26  ;;  %vm1401_vm15 = vcmp.ge.f32.partialorder %v2954_v30, 0.0  ;;  %v1529_v34 = vmul.f32 0.2, %v2954_v30 }
 0x132   : > { %2295 = vst.msk [vmem:[%s3300_s23 + $0xac] sm:$0xf] %vm2251_vm3, %v2750_v27  ;;  %v2748_v35 = vpack.c.bf16 %v1652_v33, %v1652_v33  ;;  %v1716_v36 = vsel %vm1460_vm14, %v1263_v23, %v1588_v29  ;;  %vm1465_vm0 = vcmp.ge.f32.partialorder %v3018_v31, 0.0  ;;  %v1593_v37 = vmul.f32 0.2, %v3018_v31  ;;  %v1020_v38 = vpop.f32.mrf.mxu0  ;;  %v1276_v39 = vpop.f32.mrf.mxu1 }
 0x133   : > { %2359 = vst.msk [vmem:[%s3300_s23 + $0x1ac] sm:$0xf] %vm2251_vm3, %v2814_v32  ;;  %v2812_v40 = vpack.c.bf16 %v1716_v36, %v1716_v36  ;;  %v1657_v41 = vsel %vm1401_vm15, %v2954_v30, %v1529_v34  ;;  %vm1399_vm1 = vcmp.ge.f32.partialorder %v1020_v38, 0.0  ;;  %v1527_v42 = vmul.f32 0.2, %v1020_v38 }
 0x134   : > { %2293 = vst.msk [vmem:[%s3300_s23 + $0xa4] sm:$0xf] %vm2251_vm3, %v2748_v35  ;;  %v2753_v43 = vpack.c.bf16 %v1657_v41, %v1657_v41  ;;  %v1721_v44 = vsel %vm1465_vm0, %v3018_v31, %v1593_v37  ;;  %vm1463_vm2 = vcmp.ge.f32.partialorder %v1276_v39, 0.0  ;;  %v1591_v45 = vmul.f32 0.2, %v1276_v39  ;;  %v2955_v46 = vpop.f32.mrf.mxu0  ;;  %v3019_v47 = vpop.f32.mrf.mxu1 }
 0x135   : > { %2357 = vst.msk [vmem:[%s3300_s23 + $0x1a4] sm:$0xf] %vm2251_vm3, %v2812_v40  ;;  %v2817_v48 = vpack.c.bf16 %v1721_v44, %v1721_v44  ;;  %v1655_v49 = vsel %vm1399_vm1, %v1020_v38, %v1527_v42  ;;  %vm1402_vm4 = vcmp.ge.f32.partialorder %v2955_v46, 0.0  ;;  %v1530_v50 = vmul.f32 0.2, %v2955_v46 }
 0x136   : > { %2298 = vst.msk [vmem:[%s3300_s23 + $0xb8] sm:$0xf] %vm2251_vm3, %v2753_v43  ;;  %v2751_v51 = vpack.c.bf16 %v1655_v49, %v1655_v49  ;;  %v1719_v52 = vsel %vm1463_vm2, %v1276_v39, %v1591_v45  ;;  %vm1466_vm5 = vcmp.ge.f32.partialorder %v3019_v47, 0.0  ;;  %v1594_v53 = vmul.f32 0.2, %v3019_v47  ;;  %v1023_v54 = vpop.f32.mrf.mxu0  ;;  %v1279_v55 = vpop.f32.mrf.mxu1 }
 0x137   : > { %2362 = vst.msk [vmem:[%s3300_s23 + $0x1b8] sm:$0xf] %vm2251_vm3, %v2817_v48  ;;  %v2815_v56 = vpack.c.bf16 %v1719_v52, %v1719_v52  ;;  %v1658_v57 = vsel %vm1402_vm4, %v2955_v46, %v1530_v50  ;;  %vm1400_vm6 = vcmp.ge.f32.partialorder %v1023_v54, 0.0  ;;  %v1528_v58 = vmul.f32 0.2, %v1023_v54 }
 0x138   : > { %2296 = vst.msk [vmem:[%s3300_s23 + $0xb0] sm:$0xf] %vm2251_vm3, %v2751_v51  ;;  %v2754_v59 = vpack.c.bf16 %v1658_v57, %v1658_v57  ;;  %v1722_v60 = vsel %vm1466_vm5, %v3019_v47, %v1594_v53  ;;  %vm1464_vm7 = vcmp.ge.f32.partialorder %v1279_v55, 0.0  ;;  %v1592_v61 = vmul.f32 0.2, %v1279_v55  ;;  %v2958_v62 = vpop.f32.mrf.mxu0  ;;  %v3022_v63 = vpop.f32.mrf.mxu1 }
 0x139   : > { %2360 = vst.msk [vmem:[%s3300_s23 + $0x1b0] sm:$0xf] %vm2251_vm3, %v2815_v56  ;;  %v2818_v0 = vpack.c.bf16 %v1722_v60, %v1722_v60  ;;  %v1656_v1 = vsel %vm1400_vm6, %v1023_v54, %v1528_v58  ;;  %vm1405_vm8 = vcmp.ge.f32.partialorder %v2958_v62, 0.0  ;;  %v1533_v2 = vmul.f32 0.2, %v2958_v62 }
 0x13a   : > { %2299 = vst.msk [vmem:[%s3300_s23 + $0xbc] sm:$0xf] %vm2251_vm3, %v2754_v59  ;;  %v2752_v3 = vpack.c.bf16 %v1656_v1, %v1656_v1  ;;  %v1720_v4 = vsel %vm1464_vm7, %v1279_v55, %v1592_v61  ;;  %vm1469_vm9 = vcmp.ge.f32.partialorder %v3022_v63, 0.0  ;;  %v1597_v5 = vmul.f32 0.2, %v3022_v63  ;;  %v1036_v6 = vpop.f32.mrf.mxu0  ;;  %v1292_v7 = vpop.f32.mrf.mxu1 }
 0x13b   : > { %2363 = vst.msk [vmem:[%s3300_s23 + $0x1bc] sm:$0xf] %vm2251_vm3, %v2818_v0  ;;  %v2816_v8 = vpack.c.bf16 %v1720_v4, %v1720_v4  ;;  %v1661_v9 = vsel %vm1405_vm8, %v2958_v62, %v1533_v2  ;;  %vm1403_vm10 = vcmp.ge.f32.partialorder %v1036_v6, 0.0  ;;  %v1531_v10 = vmul.f32 0.2, %v1036_v6 }
 0x13c   : > { %2297 = vst.msk [vmem:[%s3300_s23 + $0xb4] sm:$0xf] %vm2251_vm3, %v2752_v3  ;;  %v2757_v11 = vpack.c.bf16 %v1661_v9, %v1661_v9  ;;  %v1725_v12 = vsel %vm1469_vm9, %v3022_v63, %v1597_v5  ;;  %vm1467_vm11 = vcmp.ge.f32.partialorder %v1292_v7, 0.0  ;;  %v1595_v13 = vmul.f32 0.2, %v1292_v7  ;;  %v2959_v14 = vpop.f32.mrf.mxu0  ;;  %v3023_v15 = vpop.f32.mrf.mxu1 }
 0x13d   : > { %2361 = vst.msk [vmem:[%s3300_s23 + $0x1b4] sm:$0xf] %vm2251_vm3, %v2816_v8  ;;  %v2821_v16 = vpack.c.bf16 %v1725_v12, %v1725_v12  ;;  %v1659_v17 = vsel %vm1403_vm10, %v1036_v6, %v1531_v10  ;;  %vm1406_vm12 = vcmp.ge.f32.partialorder %v2959_v14, 0.0  ;;  %v1534_v18 = vmul.f32 0.2, %v2959_v14 }
 0x13e   : > { %2302 = vst.msk [vmem:[%s3300_s23 + $0xc8] sm:$0xf] %vm2251_vm3, %v2757_v11  ;;  %v2755_v19 = vpack.c.bf16 %v1659_v17, %v1659_v17  ;;  %v1723_v20 = vsel %vm1467_vm11, %v1292_v7, %v1595_v13  ;;  %vm1470_vm13 = vcmp.ge.f32.partialorder %v3023_v15, 0.0  ;;  %v1598_v21 = vmul.f32 0.2, %v3023_v15  ;;  %v1039_v22 = vpop.f32.mrf.mxu0  ;;  %v1295_v23 = vpop.f32.mrf.mxu1 }
 0x13f   : > { %2366 = vst.msk [vmem:[%s3300_s23 + $0x1c8] sm:$0xf] %vm2251_vm3, %v2821_v16  ;;  %v2819_v24 = vpack.c.bf16 %v1723_v20, %v1723_v20  ;;  %v1662_v25 = vsel %vm1406_vm12, %v2959_v14, %v1534_v18  ;;  %vm1404_vm14 = vcmp.ge.f32.partialorder %v1039_v22, 0.0  ;;  %v1532_v26 = vmul.f32 0.2, %v1039_v22 }
 0x140   : > { %2300 = vst.msk [vmem:[%s3300_s23 + $0xc0] sm:$0xf] %vm2251_vm3, %v2755_v19  ;;  %v2758_v27 = vpack.c.bf16 %v1662_v25, %v1662_v25  ;;  %v1726_v28 = vsel %vm1470_vm13, %v3023_v15, %v1598_v21  ;;  %vm1468_vm15 = vcmp.ge.f32.partialorder %v1295_v23, 0.0  ;;  %v1596_v29 = vmul.f32 0.2, %v1295_v23  ;;  %v2962_v30 = vpop.f32.mrf.mxu0  ;;  %v3026_v31 = vpop.f32.mrf.mxu1 }
 0x141   : > { %2364 = vst.msk [vmem:[%s3300_s23 + $0x1c0] sm:$0xf] %vm2251_vm3, %v2819_v24  ;;  %v2822_v32 = vpack.c.bf16 %v1726_v28, %v1726_v28  ;;  %v1660_v33 = vsel %vm1404_vm14, %v1039_v22, %v1532_v26  ;;  %vm1409_vm0 = vcmp.ge.f32.partialorder %v2962_v30, 0.0  ;;  %v1537_v34 = vmul.f32 0.2, %v2962_v30 }
 0x142   : > { %2303 = vst.msk [vmem:[%s3300_s23 + $0xcc] sm:$0xf] %vm2251_vm3, %v2758_v27  ;;  %v2756_v35 = vpack.c.bf16 %v1660_v33, %v1660_v33  ;;  %v1724_v36 = vsel %vm1468_vm15, %v1295_v23, %v1596_v29  ;;  %vm1473_vm1 = vcmp.ge.f32.partialorder %v3026_v31, 0.0  ;;  %v1601_v37 = vmul.f32 0.2, %v3026_v31  ;;  %v1052_v38 = vpop.f32.mrf.mxu0  ;;  %v1308_v39 = vpop.f32.mrf.mxu1 }
 0x143   : > { %2367 = vst.msk [vmem:[%s3300_s23 + $0x1cc] sm:$0xf] %vm2251_vm3, %v2822_v32  ;;  %v2820_v40 = vpack.c.bf16 %v1724_v36, %v1724_v36  ;;  %v1665_v41 = vsel %vm1409_vm0, %v2962_v30, %v1537_v34  ;;  %vm1407_vm2 = vcmp.ge.f32.partialorder %v1052_v38, 0.0  ;;  %v1535_v42 = vmul.f32 0.2, %v1052_v38 }
 0x144   : > { %2301 = vst.msk [vmem:[%s3300_s23 + $0xc4] sm:$0xf] %vm2251_vm3, %v2756_v35  ;;  %v2761_v43 = vpack.c.bf16 %v1665_v41, %v1665_v41  ;;  %v1729_v44 = vsel %vm1473_vm1, %v3026_v31, %v1601_v37  ;;  %vm1471_vm4 = vcmp.ge.f32.partialorder %v1308_v39, 0.0  ;;  %v1599_v45 = vmul.f32 0.2, %v1308_v39  ;;  %v2963_v46 = vpop.f32.mrf.mxu0  ;;  %v3027_v47 = vpop.f32.mrf.mxu1 }
 0x145   : > { %2365 = vst.msk [vmem:[%s3300_s23 + $0x1c4] sm:$0xf] %vm2251_vm3, %v2820_v40  ;;  %v2825_v48 = vpack.c.bf16 %v1729_v44, %v1729_v44  ;;  %v1663_v49 = vsel %vm1407_vm2, %v1052_v38, %v1535_v42  ;;  %vm1410_vm5 = vcmp.ge.f32.partialorder %v2963_v46, 0.0  ;;  %v1538_v50 = vmul.f32 0.2, %v2963_v46 }
 0x146   : > { %2306 = vst.msk [vmem:[%s3300_s23 + $0xd8] sm:$0xf] %vm2251_vm3, %v2761_v43  ;;  %v2759_v51 = vpack.c.bf16 %v1663_v49, %v1663_v49  ;;  %v1727_v52 = vsel %vm1471_vm4, %v1308_v39, %v1599_v45  ;;  %vm1474_vm6 = vcmp.ge.f32.partialorder %v3027_v47, 0.0  ;;  %v1602_v53 = vmul.f32 0.2, %v3027_v47  ;;  %v1055_v54 = vpop.f32.mrf.mxu0  ;;  %v1311_v55 = vpop.f32.mrf.mxu1 }
 0x147   : > { %2370 = vst.msk [vmem:[%s3300_s23 + $0x1d8] sm:$0xf] %vm2251_vm3, %v2825_v48  ;;  %v2823_v56 = vpack.c.bf16 %v1727_v52, %v1727_v52  ;;  %v1666_v57 = vsel %vm1410_vm5, %v2963_v46, %v1538_v50  ;;  %vm1408_vm7 = vcmp.ge.f32.partialorder %v1055_v54, 0.0  ;;  %v1536_v58 = vmul.f32 0.2, %v1055_v54 }
 0x148   : > { %2304 = vst.msk [vmem:[%s3300_s23 + $0xd0] sm:$0xf] %vm2251_vm3, %v2759_v51  ;;  %v2762_v59 = vpack.c.bf16 %v1666_v57, %v1666_v57  ;;  %v1730_v60 = vsel %vm1474_vm6, %v3027_v47, %v1602_v53  ;;  %vm1472_vm8 = vcmp.ge.f32.partialorder %v1311_v55, 0.0  ;;  %v1600_v61 = vmul.f32 0.2, %v1311_v55  ;;  %v2966_v62 = vpop.f32.mrf.mxu0  ;;  %v3030_v63 = vpop.f32.mrf.mxu1 }
 0x149   : > { %2368 = vst.msk [vmem:[%s3300_s23 + $0x1d0] sm:$0xf] %vm2251_vm3, %v2823_v56  ;;  %v2826_v0 = vpack.c.bf16 %v1730_v60, %v1730_v60  ;;  %v1664_v1 = vsel %vm1408_vm7, %v1055_v54, %v1536_v58  ;;  %vm1413_vm9 = vcmp.ge.f32.partialorder %v2966_v62, 0.0  ;;  %v1541_v2 = vmul.f32 0.2, %v2966_v62 }
 0x14a   : > { %2307 = vst.msk [vmem:[%s3300_s23 + $0xdc] sm:$0xf] %vm2251_vm3, %v2762_v59  ;;  %v2760_v3 = vpack.c.bf16 %v1664_v1, %v1664_v1  ;;  %v1728_v4 = vsel %vm1472_vm8, %v1311_v55, %v1600_v61  ;;  %vm1477_vm10 = vcmp.ge.f32.partialorder %v3030_v63, 0.0  ;;  %v1605_v5 = vmul.f32 0.2, %v3030_v63  ;;  %v1068_v6 = vpop.f32.mrf.mxu0  ;;  %v1324_v7 = vpop.f32.mrf.mxu1 }
 0x14b   : > { %2371 = vst.msk [vmem:[%s3300_s23 + $0x1dc] sm:$0xf] %vm2251_vm3, %v2826_v0  ;;  %v2824_v8 = vpack.c.bf16 %v1728_v4, %v1728_v4  ;;  %v1669_v9 = vsel %vm1413_vm9, %v2966_v62, %v1541_v2  ;;  %vm1411_vm11 = vcmp.ge.f32.partialorder %v1068_v6, 0.0  ;;  %v1539_v10 = vmul.f32 0.2, %v1068_v6 }
 0x14c   : > { %2305 = vst.msk [vmem:[%s3300_s23 + $0xd4] sm:$0xf] %vm2251_vm3, %v2760_v3  ;;  %v2765_v11 = vpack.c.bf16 %v1669_v9, %v1669_v9  ;;  %v1733_v12 = vsel %vm1477_vm10, %v3030_v63, %v1605_v5  ;;  %vm1475_vm12 = vcmp.ge.f32.partialorder %v1324_v7, 0.0  ;;  %v1603_v13 = vmul.f32 0.2, %v1324_v7  ;;  %v2967_v14 = vpop.f32.mrf.mxu0  ;;  %v3031_v15 = vpop.f32.mrf.mxu1 }
 0x14d   : > { %2369 = vst.msk [vmem:[%s3300_s23 + $0x1d4] sm:$0xf] %vm2251_vm3, %v2824_v8  ;;  %v2829_v16 = vpack.c.bf16 %v1733_v12, %v1733_v12  ;;  %v1667_v17 = vsel %vm1411_vm11, %v1068_v6, %v1539_v10  ;;  %vm1414_vm13 = vcmp.ge.f32.partialorder %v2967_v14, 0.0  ;;  %v1542_v18 = vmul.f32 0.2, %v2967_v14 }
 0x14e   : > { %2310 = vst.msk [vmem:[%s3300_s23 + $0xe8] sm:$0xf] %vm2251_vm3, %v2765_v11  ;;  %v2763_v19 = vpack.c.bf16 %v1667_v17, %v1667_v17  ;;  %v1731_v20 = vsel %vm1475_vm12, %v1324_v7, %v1603_v13  ;;  %vm1478_vm14 = vcmp.ge.f32.partialorder %v3031_v15, 0.0  ;;  %v1606_v21 = vmul.f32 0.2, %v3031_v15  ;;  %v1071_v22 = vpop.f32.mrf.mxu0  ;;  %v1327_v23 = vpop.f32.mrf.mxu1 }
 0x14f   : > { %2374 = vst.msk [vmem:[%s3300_s23 + $0x1e8] sm:$0xf] %vm2251_vm3, %v2829_v16  ;;  %v2827_v24 = vpack.c.bf16 %v1731_v20, %v1731_v20  ;;  %v1670_v25 = vsel %vm1414_vm13, %v2967_v14, %v1542_v18  ;;  %vm1412_vm15 = vcmp.ge.f32.partialorder %v1071_v22, 0.0  ;;  %v1540_v26 = vmul.f32 0.2, %v1071_v22 }
 0x150   : > { %2308 = vst.msk [vmem:[%s3300_s23 + $0xe0] sm:$0xf] %vm2251_vm3, %v2763_v19  ;;  %v2766_v27 = vpack.c.bf16 %v1670_v25, %v1670_v25  ;;  %v1734_v28 = vsel %vm1478_vm14, %v3031_v15, %v1606_v21  ;;  %vm1476_vm0 = vcmp.ge.f32.partialorder %v1327_v23, 0.0  ;;  %v1604_v29 = vmul.f32 0.2, %v1327_v23  ;;  %v2970_v30 = vpop.f32.mrf.mxu0  ;;  %v3034_v31 = vpop.f32.mrf.mxu1 }
 0x151   : > { %2372 = vst.msk [vmem:[%s3300_s23 + $0x1e0] sm:$0xf] %vm2251_vm3, %v2827_v24  ;;  %v2830_v32 = vpack.c.bf16 %v1734_v28, %v1734_v28  ;;  %v1668_v33 = vsel %vm1412_vm15, %v1071_v22, %v1540_v26  ;;  %vm1417_vm1 = vcmp.ge.f32.partialorder %v2970_v30, 0.0  ;;  %v1545_v34 = vmul.f32 0.2, %v2970_v30 }
 0x152   : > { %2311 = vst.msk [vmem:[%s3300_s23 + $0xec] sm:$0xf] %vm2251_vm3, %v2766_v27  ;;  %v2764_v35 = vpack.c.bf16 %v1668_v33, %v1668_v33  ;;  %v1732_v36 = vsel %vm1476_vm0, %v1327_v23, %v1604_v29  ;;  %vm1481_vm2 = vcmp.ge.f32.partialorder %v3034_v31, 0.0  ;;  %v1609_v37 = vmul.f32 0.2, %v3034_v31  ;;  %v1084_v38 = vpop.f32.mrf.mxu0  ;;  %v1340_v39 = vpop.f32.mrf.mxu1 }
 0x153   : > { %2375 = vst.msk [vmem:[%s3300_s23 + $0x1ec] sm:$0xf] %vm2251_vm3, %v2830_v32  ;;  %v2828_v40 = vpack.c.bf16 %v1732_v36, %v1732_v36  ;;  %v1673_v41 = vsel %vm1417_vm1, %v2970_v30, %v1545_v34  ;;  %vm1415_vm4 = vcmp.ge.f32.partialorder %v1084_v38, 0.0  ;;  %v1543_v42 = vmul.f32 0.2, %v1084_v38 }
 0x154   : > { %2309 = vst.msk [vmem:[%s3300_s23 + $0xe4] sm:$0xf] %vm2251_vm3, %v2764_v35  ;;  %v2769_v43 = vpack.c.bf16 %v1673_v41, %v1673_v41  ;;  %v1737_v44 = vsel %vm1481_vm2, %v3034_v31, %v1609_v37  ;;  %vm1479_vm5 = vcmp.ge.f32.partialorder %v1340_v39, 0.0  ;;  %v1607_v45 = vmul.f32 0.2, %v1340_v39  ;;  %v2971_v46 = vpop.f32.mrf.mxu0  ;;  %v3035_v47 = vpop.f32.mrf.mxu1 }
 0x155   : > { %2373 = vst.msk [vmem:[%s3300_s23 + $0x1e4] sm:$0xf] %vm2251_vm3, %v2828_v40  ;;  %v2833_v48 = vpack.c.bf16 %v1737_v44, %v1737_v44  ;;  %v1671_v49 = vsel %vm1415_vm4, %v1084_v38, %v1543_v42  ;;  %vm1418_vm6 = vcmp.ge.f32.partialorder %v2971_v46, 0.0  ;;  %v1546_v50 = vmul.f32 0.2, %v2971_v46 }
 0x156   : > { %2314 = vst.msk [vmem:[%s3300_s23 + $0xf8] sm:$0xf] %vm2251_vm3, %v2769_v43  ;;  %v2767_v51 = vpack.c.bf16 %v1671_v49, %v1671_v49  ;;  %v1735_v52 = vsel %vm1479_vm5, %v1340_v39, %v1607_v45  ;;  %vm1482_vm7 = vcmp.ge.f32.partialorder %v3035_v47, 0.0  ;;  %v1610_v53 = vmul.f32 0.2, %v3035_v47  ;;  %v1087_v54 = vpop.f32.mrf.mxu0  ;;  %v1343_v55 = vpop.f32.mrf.mxu1 }
 0x157   : > { %2378 = vst.msk [vmem:[%s3300_s23 + $0x1f8] sm:$0xf] %vm2251_vm3, %v2833_v48  ;;  %v2831_v56 = vpack.c.bf16 %v1735_v52, %v1735_v52  ;;  %v1674_v57 = vsel %vm1418_vm6, %v2971_v46, %v1546_v50  ;;  %vm1416_vm8 = vcmp.ge.f32.partialorder %v1087_v54, 0.0  ;;  %v1544_v58 = vmul.f32 0.2, %v1087_v54 }
 0x158   : > { %2312 = vst.msk [vmem:[%s3300_s23 + $0xf0] sm:$0xf] %vm2251_vm3, %v2767_v51  ;;  %v2770_v59 = vpack.c.bf16 %v1674_v57, %v1674_v57  ;;  %v1738_v60 = vsel %vm1482_vm7, %v3035_v47, %v1610_v53  ;;  %vm1480_vm9 = vcmp.ge.f32.partialorder %v1343_v55, 0.0  ;;  %v1608_v61 = vmul.f32 0.2, %v1343_v55 }
 0x159   : > { %2376 = vst.msk [vmem:[%s3300_s23 + $0x1f0] sm:$0xf] %vm2251_vm3, %v2831_v56  ;;  %v2834_v62 = vpack.c.bf16 %v1738_v60, %v1738_v60  ;;  %v1672_v63 = vsel %vm1416_vm8, %v1087_v54, %v1544_v58 }
 0x15a   : > { %2315 = vst.msk [vmem:[%s3300_s23 + $0xfc] sm:$0xf] %vm2251_vm3, %v2770_v59  ;;  %v2768_v0 = vpack.c.bf16 %v1672_v63, %v1672_v63  ;;  %v1736_v1 = vsel %vm1480_vm9, %v1343_v55, %v1608_v61 }
 0x15b   : > { %2379 = vst.msk [vmem:[%s3300_s23 + $0x1fc] sm:$0xf] %vm2251_vm3, %v2834_v62  ;;  %v2832_v2 = vpack.c.bf16 %v1736_v1, %v1736_v1 }
 0x15c   : > { %2313 = vst.msk [vmem:[%s3300_s23 + $0xf4] sm:$0xf] %vm2251_vm3, %v2768_v0 }
 0x15d   : > { %2377 = vst.msk [vmem:[%s3300_s23 + $0x1f4] sm:$0xf] %vm2251_vm3, %v2832_v2 }
 0x15e PF: > { %s12_s9 = sadd.s32 1, %s3123_s9  }
 0x15f   : > { %p9_p4 = scmp.ge.s32.totalorder %s12_s9, 4  }
 0x161   :  { %11 = sbr.rel (!%p9_p4) target bundleno = 1 (0x1), region = 58 }

// kernel: discriminator_forward.5
= control target key start
LH: loop header
LB: loop body
LE: loop exit
PB: predicated region body
PF: predicated region fallthrough
CT: control target
= control target key end

     0   :  { %s4371_s12 = smov 0   ;;  %s5456_s0 = inlined_call_operand.vmem [shape: bf16[2,17,17,256], index: 0, kind: input, shape index: {}]   ;;  %s5457_s1 = inlined_call_operand.vmem [shape: bf16[2,2,256,128], index: 1, kind: input, shape index: {}]   ;;  %s5458_s2 = inlined_call_operand.vmem [shape: bf16[2,256,128], index: 2, kind: output, shape index: {0}]   ;;  %s5459_s3 = inlined_call_operand.vmem [shape: f32[2,8,128], index: 3, kind: output, shape index: {1}]  }
   0x1 LB: > { %s3241_s13 = sadd.s32 4294967295, %s4349_s12   ;;  %p3245_p0 = scmp.ge.s32.totalorder %s4349_s12, 1  ;;  %s4349_s12 = sphi %s4371_s12, %s14_s12  }
   0x2   : > { %p140_p1 = scmp.lt.s32.totalorder %s4349_s12, 3 }
   0x4   : > { %p141_p2 = pnand %p3245_p0, %p140_p1 }
   0x6   : > { %144 = sbr.rel (%p141_p2) target bundleno = 517 (0x205), region = 28 }
   0xb   : > { %v4237_v0 = vld [vmem:[%s5457_s1 + $0xf8] sm:$0xff]   ;;  %v4241_v4 = vld [vmem:[%s5457_s1 + $0xf0] sm:$0xff]   ;;  %v4245_v8 = vld [vmem:[%s5457_s1 + $0xe8] sm:$0xff]   ;;  %p168_p3 = scmp.lt.s32.totalorder %s3241_s13, 1  ;;  %vm263_vm0 = vsmask.f32 3328 }
   0xc   : > { %v4238_v1 = vld [vmem:[%s5457_s1 + $0x78] sm:$0xff]   ;;  %3780 = vmatprep.subr.bf16.mxu0 %v4237_v0  ;;  %v4242_v5 = vld [vmem:[%s5457_s1 + $0x70] sm:$0xff]   ;;  %v4246_v9 = vld [vmem:[%s5457_s1 + $0x68] sm:$0xff]   ;;  %vm264_vm1 = vsmask.f32 7440  ;;  %vm3150_vm3 = vcmask 1040384  }
   0xd   : > { %v4239_v2 = vld [vmem:[%s5457_s1 + $0xb8] sm:$0xff]   ;;  %3892 = vmatprep.subr.bf16.mxu1 %v4238_v1  ;;  %v4243_v6 = vld [vmem:[%s5457_s1 + $0xb0] sm:$0xff]   ;;  %v4247_v10 = vld [vmem:[%s5457_s1 + $0xa8] sm:$0xff]   ;;  %s5543_s13 = smov (!%p168_p3, %s3241_s13), 1  ;;  %vm3152_vm4 = vcmask 1041408  }
   0xe   : > { %v4240_v3 = vld [vmem:[%s5457_s1 + $0x38] sm:$0xff]   ;;  %3781 = vmatpush3.bf16.msra.mxu0 %v4239_v2  ;;  %v4244_v7 = vld [vmem:[%s5457_s1 + $0x30] sm:$0xff]   ;;  %v4248_v11 = vld [vmem:[%s5457_s1 + $0x28] sm:$0xff]   ;;  %s4228_s16 = smul.u32 408, %s5543_s13  ;;  %s3249_s26 = sshll.u32 %s5543_s13, 3 }
   0xf   : > { %3893 = vmatpush3.bf16.msra.mxu1 %v4240_v3  ;;  %3782 = vmatprep.subr.bf16.mxu0 %v4241_v4  ;;  %v4249_v12 = vld [vmem:[%s5457_s1 + $0xe0] sm:$0xff]   ;;  %v4253_v16 = vld [vmem:[%s5457_s1 + $0xd8] sm:$0xff]   ;;  %v4257_v20 = vld [vmem:[%s5457_s1 + $0xd0] sm:$0xff]   ;;  %s181_s30 = scalar_lea.vmem %s5459_s3, %s3249_s26 }
  0x10   : > { %3894 = vmatprep.subr.bf16.mxu1 %v4242_v5  ;;  %v4250_v13 = vld [vmem:[%s5457_s1 + $0x60] sm:$0xff]   ;;  %v4254_v17 = vld [vmem:[%s5457_s1 + $0x58] sm:$0xff]   ;;  %v4258_v21 = vld [vmem:[%s5457_s1 + $0x50] sm:$0xff]   ;;  %s4479_s27 = scalar_lea.vmem %s5456_s0, %s4228_s16 }
  0x11   : > { %v4251_v14 = vld [vmem:[%s5457_s1 + $0xa0] sm:$0xff]   ;;  %v4255_v18 = vld [vmem:[%s5457_s1 + $0x98] sm:$0xff]   ;;  %v4259_v22 = vld [vmem:[%s5457_s1 + $0x90] sm:$0xff]  }
  0x12   : > { %3783 = vmatpush3.bf16.msra.mxu0 %v4243_v6  ;;  %v4252_v15 = vld [vmem:[%s5457_s1 + $0x20] sm:$0xff]   ;;  %v4256_v19 = vld [vmem:[%s5457_s1 + $0x18] sm:$0xff]   ;;  %v4260_v23 = vld [vmem:[%s5457_s1 + $0x10] sm:$0xff]  }
  0x13   : > { %3895 = vmatpush3.bf16.msra.mxu1 %v4244_v7  ;;  %3784 = vmatprep.subr.bf16.mxu0 %v4245_v8  ;;  %v4261_v24 = vld [vmem:[%s5457_s1 + $0xc8] sm:$0xff]   ;;  %v4265_v28 = vld [vmem:[%s5457_s1 + $0xc0] sm:$0xff]   ;;  %v247_v34 = vld [vmem:[%s4479_s27 + $0x10] sm:$0x11] }
  0x14   : > { %3896 = vmatprep.subr.bf16.mxu1 %v4246_v9  ;;  %v4262_v25 = vld [vmem:[%s5457_s1 + $0x48] sm:$0xff]   ;;  %v4266_v29 = vld [vmem:[%s5457_s1 + $0x40] sm:$0xff]   ;;  %v4271_v38 = vld [vmem:[%s5457_s1 + $0x178] sm:$0xff]   ;;  %v286_v40 = vshll.u32 %v247_v34, 16 }
  0x15   : > { %v4263_v26 = vld [vmem:[%s5457_s1 + $0x88] sm:$0xff]   ;;  %v4267_v30 = vld [vmem:[%s5457_s1 + $0x80] sm:$0xff]   ;;  %vm4494_vm2 = vmor %vm263_vm0, %vm264_vm1 }
  0x16   : > { %3785 = vmatpush3.bf16.msra.mxu0 %v4247_v10  ;;  %v4264_v27 = vld [vmem:[%s5457_s1 + $0x8] sm:$0xff]   ;;  %v4268_v31 = vld [vmem:[%s5457_s1] sm:$0xff]   ;;  %v4273_v49 = vld [vmem:[%s5457_s1 + $0x1f8] sm:$0xff]   ;;  %v288_v51 = vrot.slane %v286_v40, 5 }
  0x17   : > { %3897 = vmatpush3.bf16.msra.mxu1 %v4248_v11  ;;  %3786 = vmatprep.subr.bf16.mxu0 %v4249_v12  ;;  %v183_v32 = vld [vmem:[%s4479_s27] sm:$0xff]  ;;  %v184_v33 = vld [vmem:[%s4479_s27 + $0x8] sm:$0xff]  ;;  %v4274_v52 = vld [vmem:[%s5457_s1 + $0x1b8] sm:$0xff]  }
  0x18   : > { %3898 = vmatprep.subr.bf16.mxu1 %v4250_v13  ;;  %v267_v35 = vshrl.u32 %v183_v32, 16  ;;  %v270_v36 = vshll.u32 %v183_v32, 16  ;;  %v276_v37 = vshll.u32 %v184_v33, 16  ;;  %v280_v39 = vshrl.u32 %v184_v33, 16  ;;  %v185_v53 = vld [vmem:[%s4479_s27 + $0x18] sm:$0xff]  ;;  %v186_v55 = vld [vmem:[%s4479_s27 + $0x20] sm:$0xff] }
  0x19   : > { %v3331_v41 = vcombine.high %v183_v32, %v184_v33  ;;  %v3330_v42 = vcombine.low %v183_v32, %v184_v33  ;;  %v248_v56 = vld [vmem:[%s4479_s27 + $0x28] sm:$0x11]  ;;  %v291_v57 = vshrl.u32 %v185_v53, 16  ;;  %v294_v58 = vshll.u32 %v185_v53, 16  ;;  %v4508_v63 = vld [vmem:[%s4479_s27 + $0x30] sm:$0xff]  ;;  %v4511_v0 = vld [vmem:[%s4479_s27 + $0x38] sm:$0xff] }
  0x1a   : > { %3787 = vmatpush3.bf16.msra.mxu0 %v4251_v14  ;;  %v269_v43 = vrot.slane %v267_v35, 4  ;;  %v272_v44 = vrot.slane %v270_v36, 5  ;;  %v278_v45 = vrot.slane %v276_v37, 5  ;;  %v282_v47 = vrot.slane %v280_v39, 4  ;;  %v249_v5 = vld [vmem:[%s4479_s27 + $0x40] sm:$0x11] }
  0x1b   : > { %3899 = vmatpush3.bf16.msra.mxu1 %v4252_v15  ;;  %3788 = vmatprep.subr.bf16.mxu0 %v4253_v16  ;;  %v300_v60 = vshll.u32 %v186_v55, 16  ;;  %v304_v61 = vshrl.u32 %v186_v55, 16  ;;  %v310_v62 = vshll.u32 %v248_v56, 16  ;;  %v293_v2 = vrot.slane %v291_v57, 4  ;;  %v4272_v7 = vld [vmem:[%s5457_s1 + $0x138] sm:$0xff]   ;;  %v4279_v15 = vld [vmem:[%s5457_s1 + $0x170] sm:$0xff]  }
  0x1c   : > { %3900 = vmatprep.subr.bf16.mxu1 %v4254_v17  ;;  %1356 = vmatprep.mubr.bf16.mxu1 %v3331_v41  ;;  %v273_v48 = vor.u32 %v272_v44, %v269_v43  ;;  %v283_v50 = vor.u32 %v282_v47, %v278_v45  ;;  %v296_v3 = vrot.slane %v294_v58, 5  ;;  %v3333_v4 = vcombine.high %v185_v53, %v186_v55  ;;  %v189_v35 = vld [vmem:[%s4479_s27 + $0x48] sm:$0xff]  ;;  %v190_v36 = vld [vmem:[%s4479_s27 + $0x50] sm:$0xff]  ;;  %v250_v39 = vld [vmem:[%s4479_s27 + $0x58] sm:$0x11] }
  0x1d   : > { %v302_v8 = vrot.slane %v300_v60, 5  ;;  %v306_v9 = vrot.slane %v304_v61, 4  ;;  %v312_v10 = vrot.slane %v310_v62, 5  ;;  %v3332_v14 = vcombine.low %v185_v53, %v186_v55  ;;  %v4549_v47 = vld [vmem:[%s4479_s27 + $0x60] sm:$0xff]  ;;  %v4555_v53 = vld [vmem:[%s4479_s27 + $0x68] sm:$0xff] }
  0x1e   : > { %3789 = vmatpush3.bf16.msra.mxu0 %v4255_v18  ;;  %v274_v54 = vrot.slane %v273_v48, 4  ;;  %v284_v59 = vrot.slane %v283_v50, 4  ;;  %v297_v13 = vor.u32 %v296_v3, %v293_v2  ;;  %v315_v17 = vshrl.u32 %v4508_v63, 16  ;;  %v4287_v48 = vld [vmem:[%s5457_s1 + $0x168] sm:$0xff]   ;;  %v251_v58 = vld [vmem:[%s4479_s27 + $0x70] sm:$0x11] }
  0x1f   : > { %3901 = vmatpush3.bf16.msra.mxu1 %v4256_v19  ;;  %3790 = vmatprep.subr.bf16.mxu0 %v4257_v20  ;;  %v307_v16 = vor.u32 %v306_v9, %v302_v8  ;;  %v318_v18 = vshll.u32 %v4508_v63, 16  ;;  %v324_v19 = vshll.u32 %v4511_v0, 16  ;;  %v4281_v20 = vld [vmem:[%s5457_s1 + $0x1f0] sm:$0xff]   ;;  %v3334_v34 = vcombine.low %v4508_v63, %v4511_v0 }
  0x20   : > { %3902 = vmatprep.subr.bf16.mxu1 %v4258_v21  ;;  %v279_v1 = vsel %vm4494_vm2, %v274_v54, %v278_v45  ;;  %v289_v6 = vsel %vm4494_vm2, %v284_v59, %v288_v51  ;;  %v298_v21 = vrot.slane %v297_v13, 4  ;;  %v339_v40 = vshrl.u32 %v189_v35, 16  ;;  %v4288_v59 = vld [vmem:[%s5457_s1 + $0x128] sm:$0xff]   ;;  %v4581_v13 = vld [vmem:[%s4479_s27 + $0x78] sm:$0xff] }
  0x21   : > { %v3282_v11 = vcombine.low %v279_v1, %v289_v6  ;;  %v3283_v12 = vcombine.high %v279_v1, %v289_v6  ;;  %v342_v41 = vshll.u32 %v189_v35, 16  ;;  %v348_v45 = vshll.u32 %v190_v36, 16 }
  0x22   : > { %3791 = vmatpush3.bf16.msra.mxu0 %v4259_v22  ;;  %v328_v22 = vshrl.u32 %v4511_v0, 16  ;;  %v341_v50 = vrot.slane %v339_v40, 4  ;;  %v358_v56 = vshll.u32 %v250_v39, 16  ;;  %v4557_v57 = vcombine.high %v189_v35, %v190_v36 }
  0x23   : > { %3903 = vmatpush3.bf16.msra.mxu1 %v4260_v23  ;;  %3792 = vmatprep.subr.bf16.mxu0 %v4261_v24  ;;  %v334_v23 = vshll.u32 %v249_v5, 16  ;;  %v3335_v24 = vcombine.high %v4508_v63, %v4511_v0  ;;  %v344_v51 = vrot.slane %v342_v41, 5  ;;  %v350_v55 = vrot.slane %v348_v45, 5  ;;  %v4289_v63 = vld [vmem:[%s5457_s1 + $0x1e8] sm:$0xff]   ;;  %v4298_v45 = vld [vmem:[%s5457_s1 + $0x1a0] sm:$0xff]  }
  0x24   : > { %3904 = vmatprep.subr.bf16.mxu1 %v4262_v25  ;;  %939 = vmatprep.mubr.bf16.mxu0 %v3283_v12  ;;  %v4280_v25 = vld [vmem:[%s5457_s1 + $0x130] sm:$0xff]   ;;  %v330_v32 = vrot.slane %v328_v22, 4  ;;  %v4570_v1 = vcombine.low %v189_v35, %v190_v36  ;;  %v363_v2 = vshrl.u32 %v4549_v47, 16  ;;  %v366_v3 = vshll.u32 %v4549_v47, 16 }
  0x25   : > { %v336_v33 = vrot.slane %v334_v23, 5  ;;  %v345_v61 = vor.u32 %v344_v51, %v341_v50  ;;  %v376_v12 = vshrl.u32 %v4555_v53, 16  ;;  %v4597_v23 = vcombine.high %v4549_v47, %v4555_v53 }
  0x26   : > { %3793 = vmatpush3.bf16.msra.mxu0 %v4263_v26  ;;  %v4282_v26 = vld [vmem:[%s5457_s1 + $0x1b0] sm:$0xff]   ;;  %v365_v9 = vrot.slane %v363_v2, 4 }
  0x27   : > { %3905 = vmatpush3.bf16.msra.mxu1 %v4264_v27  ;;  %3794 = vmatprep.subr.bf16.mxu0 %v4265_v28  ;;  %v308_v27 = vrot.slane %v307_v16, 4  ;;  %v317_v28 = vrot.slane %v315_v17, 4  ;;  %v346_v6 = vrot.slane %v345_v61, 4  ;;  %v382_v17 = vshll.u32 %v251_v58, 16  ;;  %5482 = vst [vmem:[#allocation2_spill] sm:$0xff] %v4597_v23  ;;  %v4654_v2 = vld [vmem:[%s4479_s27 + $0xb0] sm:$0xff] }
  0x28   : > { %3906 = vmatprep.subr.bf16.mxu1 %v4266_v29  ;;  %v320_v29 = vrot.slane %v318_v18, 5  ;;  %v4590_v18 = vld [vmem:[%s4479_s27 + $0x80] sm:$0xff]  ;;  %v378_v22 = vrot.slane %v376_v12, 4 }
  0x29   : > { %v313_v37 = vsel %vm4494_vm2, %v308_v27, %v312_v10  ;;  %v368_v10 = vrot.slane %v366_v3, 5  ;;  %v387_v27 = vshrl.u32 %v4581_v13, 16 }
  0x2a   : > { %3795 = vmatpush3.bf16.msra.mxu0 %v4267_v30  ;;  %v326_v30 = vrot.slane %v324_v19, 5  ;;  %v4295_v19 = vld [vmem:[%s5457_s1 + $0x160] sm:$0xff]  }
  0x2b   : > { %3907 = vmatpush3.bf16.msra.mxu1 %v4268_v31  ;;  %4004 = vmatprep.subr.bf16.mxu0 %v4271_v38  ;;  %v303_v31 = vsel %vm4494_vm2, %v298_v21, %v302_v8  ;;  %v321_v38 = vor.u32 %v320_v29, %v317_v28  ;;  %v360_v8 = vrot.slane %v358_v56, 5  ;;  %v390_v28 = vshll.u32 %v4581_v13, 16  ;;  %v4606_v29 = vld [vmem:[%s4479_s27 + $0x90] sm:$0xff] }
  0x2c   : > { %4116 = vmatprep.subr.bf16.mxu1 %v4273_v49  ;;  %v3284_v43 = vcombine.low %v303_v31, %v313_v37  ;;  %v331_v44 = vor.u32 %v330_v32, %v326_v30  ;;  %v389_v35 = vrot.slane %v387_v27, 4 }
  0x2d   : > { %940 = vmatmul.mubr.bf16.vlgmr.msra.gmra.mxu0 %v3282_v11  ;;  %v322_v49 = vrot.slane %v321_v38, 4  ;;  %v372_v11 = vshll.u32 %v4555_v53, 16  ;;  %v400_v38 = vshrl.u32 %v4590_v18, 16 }
  0x2e   : > { %1357 = vmatmul.mubr.bf16.vlgmr.msra.gmra.mxu1 %v3330_v42  ;;  %4005 = vmatpush3.bf16.msra.mxu0 %v4272_v7  ;;  %v3285_v42 = vcombine.high %v303_v31, %v313_v37  ;;  %v332_v54 = vrot.slane %v331_v44, 4  ;;  %v396_v37 = vshll.u32 %v4590_v18, 16  ;;  %v4622_v44 = vld [vmem:[%s4479_s27 + $0x98] sm:$0xff] }
  0x2f   : > { %4117 = vmatpush3.bf16.msra.mxu1 %v4274_v52  ;;  %1364 = vmatprep.mubr.bf16.mxu1 %v3333_v4  ;;  %v352_v52 = vshrl.u32 %v190_v36, 16  ;;  %v327_v60 = vsel %vm4494_vm2, %v322_v49, %v326_v30  ;;  %v4290_v4 = vld [vmem:[%s5457_s1 + $0x1a8] sm:$0xff]   ;;  %v374_v21 = vrot.slane %v372_v11, 5  ;;  %v4296_v30 = vld [vmem:[%s5457_s1 + $0x120] sm:$0xff]   ;;  %v392_v36 = vrot.slane %v390_v28, 5  ;;  %v4306_v11 = vld [vmem:[%s5457_s1 + $0x198] sm:$0xff]  }
  0x30   : > { %4118 = vmatprep.subr.bf16.mxu1 %v4281_v20  ;;  %4006 = vmatprep.subr.bf16.mxu0 %v4279_v15  ;;  %v337_v0 = vsel %vm4494_vm2, %v332_v54, %v336_v33  ;;  %v4585_v15 = vsel %vm4494_vm2, %v346_v6, %v350_v55  ;;  %v369_v20 = vor.u32 %v368_v10, %v365_v9  ;;  %v414_v49 = vshll.u32 %v4606_v29, 16  ;;  %v4305_v9 = vld [vmem:[%s5457_s1 + $0x1d8] sm:$0xff]   ;;  %v4691_v28 = vld [vmem:[%s4479_s27 + $0xc0] sm:$0xff] }
  0x31   : > { %947 = vmatprep.mubr.bf16.mxu0 %v3285_v42  ;;  %v354_v62 = vrot.slane %v352_v52, 4  ;;  %v3287_v5 = vcombine.high %v327_v60, %v337_v0  ;;  %v379_v33 = vor.u32 %v378_v22, %v374_v21  ;;  %v393_v41 = vor.u32 %v392_v36, %v389_v35  ;;  %v4707_v36 = vld [vmem:[%s4479_s27 + $0xc8] sm:$0xff] }
  0x32   : > { %4007 = vmatpush3.bf16.msra.mxu0 %v4280_v25  ;;  %v370_v32 = vrot.slane %v369_v20, 4  ;;  %v398_v42 = vrot.slane %v396_v37, 5  ;;  %v4640_v54 = vcombine.low %v4549_v47, %v4555_v53  ;;  %v420_v56 = vshll.u32 %v4622_v44, 16  ;;  %v4303_v47 = vld [vmem:[%s5457_s1 + $0x158] sm:$0xff]  }
  0x33   : > { %4119 = vmatpush3.bf16.msra.mxu1 %v4282_v26  ;;  %4008 = vmatprep.subr.bf16.mxu0 %v4287_v48  ;;  %v355_v7 = vor.u32 %v354_v62, %v350_v55  ;;  %v384_v26 = vrot.slane %v382_v17, 5  ;;  %v4618_v39 = vrot.slane %v379_v33, 4  ;;  %v411_v48 = vshrl.u32 %v4606_v29, 16  ;;  %v4304_v53 = vld [vmem:[%s5457_s1 + $0x118] sm:$0xff]  }
  0x34   : > { %4120 = vmatprep.subr.bf16.mxu1 %v4289_v63  ;;  %v4631_v50 = vsel %vm4494_vm2, %v370_v32, %v374_v21  ;;  %5483 = vst [vmem:[#allocation3_spill] sm:$0xff] %v4640_v54  ;;  %v424_v58 = vshrl.u32 %v4622_v44, 16  ;;  %v394_v61 = vrot.slane %v393_v41, 4  ;;  %v4650_v62 = vcombine.high %v4581_v13, %v4590_v18  ;;  %v253_v63 = vld [vmem:[%s4479_s27 + $0xa0] sm:$0x11] }
  0x35   : > { %948 = vmatmul.mubr.bf16.gmra.mxu0 %v3284_v43  ;;  %v4587_v16 = vrot.slane %v355_v7, 4  ;;  %v402_v43 = vrot.slane %v400_v38, 4  ;;  %v4636_v51 = vsel %vm4494_vm2, %v4618_v39, %v384_v26  ;;  %v422_v6 = vrot.slane %v420_v56, 5 }
  0x36   : > { %1365 = vmatmul.mubr.bf16.gmra.mxu1 %v3332_v14  ;;  %4009 = vmatpush3.bf16.msra.mxu0 %v4288_v59  ;;  %v3286_v14 = vcombine.low %v327_v60, %v337_v0  ;;  %v4645_v59 = vld [vmem:[%s4479_s27 + $0xa8] sm:$0xff]  ;;  %5484 = vst [vmem:[#allocation4_spill] sm:$0xff] %v4650_v62  ;;  %v413_v0 = vrot.slane %v411_v48, 4  ;;  %v3291_v3 = vcombine.high %v4631_v50, %v4636_v51  ;;  %v426_v7 = vrot.slane %v424_v58, 4 }
  0x37   : > { %1372 = vmatprep.mubr.bf16.mxu1 %v3335_v24  ;;  %955 = vmatprep.mubr.bf16.mxu0 %v3287_v5  ;;  %v252_v24 = vld [vmem:[%s4479_s27 + $0x88] sm:$0x11]  ;;  %v361_v25 = vsel %vm4494_vm2, %v4587_v16, %v360_v8  ;;  %v403_v52 = vor.u32 %v402_v43, %v398_v42  ;;  %v416_v5 = vrot.slane %v414_v49, 5  ;;  %v435_v8 = vshrl.u32 %v4645_v59, 16  ;;  %v4314_v43 = vld [vmem:[%s5457_s1 + $0x190] sm:$0xff]  }
  0x38   : > { %4121 = vmatpush3.bf16.msra.mxu1 %v4290_v4  ;;  %4010 = vmatprep.subr.bf16.mxu0 %v4295_v19  ;;  %v3289_v31 = vcombine.high %v4585_v15, %v361_v25  ;;  %v406_v40 = vshll.u32 %v252_v24, 16  ;;  %v3288_v60 = vcombine.low %v4585_v15, %v361_v25  ;;  %v438_v10 = vshll.u32 %v4645_v59, 16  ;;  %v254_v24 = vld [vmem:[%s4479_s27 + $0xb8] sm:$0x11]  ;;  %v4319_v58 = vld [vmem:[%s5457_s1 + $0x148] sm:$0xff]  }
  0x39   : > { %v4664_v4 = vrot.slane %v403_v52, 4  ;;  %v430_v12 = vshll.u32 %v253_v63, 16  ;;  %v448_v17 = vshrl.u32 %v4654_v2, 16  ;;  %v4680_v19 = vsel %vm4494_vm2, %v394_v61, %v398_v42  ;;  %v4313_v42 = vld [vmem:[%s5457_s1 + $0x1d0] sm:$0xff]  }
  0x3a   : > { %4011 = vmatpush3.bf16.msra.mxu0 %v4296_v30  ;;  %v408_v55 = vrot.slane %v406_v40, 5  ;;  %v417_v21 = vor.u32 %v416_v5, %v413_v0  ;;  %v427_v22 = vor.u32 %v426_v7, %v422_v6  ;;  %v4688_v25 = vcombine.low %v4581_v13, %v4590_v18  ;;  %v4311_v30 = vld [vmem:[%s5457_s1 + $0x150] sm:$0xff]   ;;  %v4738_v0 = vld [vmem:[%s4479_s27 + $0xd8] sm:$0xff] }
  0x3b   : > { %4012 = vmatprep.subr.bf16.mxu0 %v4303_v47  ;;  %v437_v26 = vrot.slane %v435_v8, 4  ;;  %v440_v27 = vrot.slane %v438_v10, 5  ;;  %v4700_v32 = vcombine.high %v4606_v29, %v4622_v44  ;;  %v4312_v13 = vld [vmem:[%s5457_s1 + $0x110] sm:$0xff]   ;;  %v432_v33 = vrot.slane %v430_v12, 5  ;;  %v4741_v47 = vld [vmem:[%s4479_s27 + $0xe0] sm:$0xff]  ;;  %v4320_v10 = vld [vmem:[%s5457_s1 + $0x108] sm:$0xff]  }
  0x3c   : > { %v409_v20 = vsel %vm4494_vm2, %v4664_v4, %v408_v55  ;;  %5485 = vst [vmem:[#allocation5_spill] sm:$0xff] %v4688_v25  ;;  %v450_v35 = vrot.slane %v448_v17, 4  ;;  %v418_v37 = vrot.slane %v417_v21, 4  ;;  %v4709_v38 = vrot.slane %v427_v22, 4  ;;  %v255_v5 = vld [vmem:[%s4479_s27 + $0xd0] sm:$0x11] }
  0x3d   : > { %956 = vmatmul.mubr.bf16.gmra.mxu0 %v3286_v14  ;;  %v444_v14 = vshll.u32 %v4654_v2, 16  ;;  %5486 = vst [vmem:[#allocation6_spill] sm:$0xff] %v4700_v32  ;;  %v3293_v18 = vcombine.high %v4680_v19, %v409_v20  ;;  %v441_v40 = vor.u32 %v440_v27, %v437_v26  ;;  %v454_v41 = vshll.u32 %v254_v24, 16  ;;  %v4321_v12 = vld [vmem:[%s5457_s1 + $0x1c8] sm:$0xff]  }
  0x3e   : > { %1373 = vmatmul.mubr.bf16.gmra.mxu1 %v3334_v34  ;;  %v4297_v34 = vld [vmem:[%s5457_s1 + $0x1e0] sm:$0xff]   ;;  %963 = vmatprep.mubr.bf16.mxu0 %v3289_v31  ;;  %v3290_v31 = vcombine.low %v4631_v50, %v4636_v51  ;;  %v462_v48 = vshll.u32 %v4691_v28, 16  ;;  %v468_v51 = vshll.u32 %v4707_v36, 16  ;;  %v472_v52 = vshrl.u32 %v4707_v36, 16  ;;  %v4322_v21 = vld [vmem:[%s5457_s1 + $0x188] sm:$0xff]  }
  0x3f   : > { %1380 = vmatprep.mubr.bf16.mxu1 %v4557_v57  ;;  %4122 = vmatprep.subr.bf16.mxu1 %v4297_v34  ;;  %v446_v34 = vrot.slane %v444_v14, 5  ;;  %v4725_v55 = vsel %vm4494_vm2, %v418_v37, %v422_v6  ;;  %v433_v56 = vsel %vm4494_vm2, %v4709_v38, %v432_v33  ;;  %v442_v61 = vrot.slane %v441_v40, 4 }
  0x40   : > { %4123 = vmatpush3.bf16.msra.mxu1 %v4298_v45  ;;  %4013 = vmatpush3.bf16.msra.mxu0 %v4304_v53  ;;  %v459_v45 = vshrl.u32 %v4691_v28, 16  ;;  %v456_v63 = vrot.slane %v454_v41, 5  ;;  %v3292_v53 = vcombine.low %v4680_v19, %v409_v20  ;;  %v464_v7 = vrot.slane %v462_v48, 5  ;;  %v4329_v48 = vld [vmem:[%s5457_s1 + $0x1c0] sm:$0xff]  }
  0x41   : > { %4124 = vmatprep.subr.bf16.mxu1 %v4305_v9  ;;  %4014 = vmatprep.subr.bf16.mxu0 %v4311_v30  ;;  %v451_v49 = vor.u32 %v450_v35, %v446_v34  ;;  %v3295_v8 = vcombine.high %v4725_v55, %v433_v56  ;;  %v474_v9 = vrot.slane %v472_v52, 4  ;;  %v486_v14 = vshll.u32 %v4738_v0, 16 }
  0x42   : > { %v461_v6 = vrot.slane %v459_v45, 4  ;;  %v492_v17 = vshll.u32 %v4741_v47, 16  ;;  %v496_v20 = vshrl.u32 %v4741_v47, 16  ;;  %v4769_v22 = vsel %vm4494_vm2, %v442_v61, %v446_v34  ;;  %v4327_v34 = vld [vmem:[%s5457_s1 + $0x140] sm:$0xff]  }
  0x43   : > { %v478_v24 = vshll.u32 %v255_v5, 16  ;;  %v488_v33 = vrot.slane %v486_v14, 5  ;;  %v3294_v35 = vcombine.low %v4725_v55, %v433_v56  ;;  %v4785_v37 = vcombine.high %v4691_v28, %v4707_v36  ;;  %v4328_v45 = vld [vmem:[%s5457_s1 + $0x100] sm:$0xff]  }
  0x44   : > { %4125 = vmatpush3.bf16.msra.mxu1 %v4306_v11  ;;  %4015 = vmatpush3.bf16.msra.mxu0 %v4312_v13  ;;  %v483_v11 = vshrl.u32 %v4738_v0, 16  ;;  %v465_v27 = vor.u32 %v464_v7, %v461_v6  ;;  %v4776_v13 = vcombine.low %v4645_v59, %v4654_v2  ;;  %v494_v40 = vrot.slane %v492_v17, 5  ;;  %v4330_v56 = vld [vmem:[%s5457_s1 + $0x180] sm:$0xff]  }
  0x45   : > { %964 = vmatmul.mubr.bf16.gmra.mxu0 %v3288_v60  ;;  %4126 = vmatprep.subr.bf16.mxu1 %v4313_v42  ;;  %v4735_v60 = vcombine.low %v4606_v29, %v4622_v44  ;;  %v4750_v29 = vrot.slane %v451_v49, 4  ;;  %v470_v44 = vrot.slane %v468_v51, 5  ;;  %5490 = vst [vmem:[#allocation10_spill] sm:$0xff] %v4785_v37  ;;  %v498_v41 = vrot.slane %v496_v20, 4  ;;  %v4788_v42 = vld [vmem:[%s4479_s27 + $0xf0] sm:$0xff] }
  0x46   : > { %1381 = vmatmul.mubr.bf16.gmra.mxu1 %v4570_v1  ;;  %971 = vmatprep.mubr.bf16.mxu0 %v3291_v3  ;;  %v4746_v3 = vcombine.high %v4645_v59, %v4654_v2  ;;  %5489 = vst [vmem:[#allocation9_spill] sm:$0xff] %v4776_v13  ;;  %v480_v2 = vrot.slane %v478_v24, 5  ;;  %v466_v49 = vrot.slane %v465_v27, 4  ;;  %v257_v24 = vld [vmem:[%s4479_s27 + $0x100] sm:$0x11] }
  0x47   : > { %1388 = vmatprep.mubr.bf16.mxu1 %v4597_v23  ;;  %5487 = vst [vmem:[#allocation7_spill] sm:$0xff] %v4735_v60  ;;  %4016 = vmatprep.subr.bf16.mxu0 %v4319_v58  ;;  %v457_v26 = vsel %vm4494_vm2, %v4750_v29, %v456_v63  ;;  %v475_v30 = vor.u32 %v474_v9, %v470_v44  ;;  %v507_v63 = vshrl.u32 %v4788_v42, 16 }
  0x48   : > { %4127 = vmatpush3.bf16.msra.mxu1 %v4314_v43  ;;  %5488 = vst [vmem:[#allocation8_spill] sm:$0xff] %v4746_v3  ;;  %4017 = vmatpush3.bf16.msra.mxu0 %v4320_v10  ;;  %v4791_v43 = vld [vmem:[%s4479_s27 + $0xf8] sm:$0xff]  ;;  %v3297_v59 = vcombine.high %v4769_v22, %v457_v26  ;;  %v499_v58 = vor.u32 %v498_v41, %v494_v40  ;;  %v4853_v41 = vld [vmem:[%s4479_s27 + $0x128] sm:$0xff] }
  0x49   : > { %4128 = vmatprep.subr.bf16.mxu1 %v4321_v12  ;;  %4018 = vmatprep.subr.bf16.mxu0 %v4327_v34  ;;  %v4800_v51 = vrot.slane %v475_v30, 4  ;;  %v516_v5 = vshll.u32 %v4791_v43, 16  ;;  %v520_v6 = vshrl.u32 %v4791_v43, 16  ;;  %v4813_v7 = vsel %vm4494_vm2, %v466_v49, %v470_v44  ;;  %v4832_v30 = vld [vmem:[%s4479_s27 + $0x108] sm:$0xff] }
  0x4a   : > { %v3296_v9 = vcombine.low %v4769_v22, %v457_v26  ;;  %v4821_v10 = vcombine.low %v4691_v28, %v4707_v36  ;;  %v4825_v12 = vcombine.high %v4738_v0, %v4741_v47  ;;  %v4827_v44 = vrot.slane %v499_v58, 4  ;;  %v4835_v28 = vld [vmem:[%s4479_s27 + $0x110] sm:$0xff] }
  0x4b   : > { %v509_v17 = vrot.slane %v507_v63, 4  ;;  %v518_v26 = vrot.slane %v516_v5, 5  ;;  %v522_v27 = vrot.slane %v520_v6, 4  ;;  %v526_v34 = vshll.u32 %v257_v24, 16 }
  0x4c   : > { %4129 = vmatpush3.bf16.msra.mxu1 %v4322_v21  ;;  %4019 = vmatpush3.bf16.msra.mxu0 %v4328_v45  ;;  %5491 = vst [vmem:[#allocation11_spill] sm:$0xff] %v4821_v10  ;;  %5492 = vst [vmem:[#allocation12_spill] sm:$0xff] %v4825_v12  ;;  %v544_v45 = vshrl.u32 %v4835_v28, 16  ;;  %v4867_v58 = vcombine.high %v4788_v42, %v4791_v43  ;;  %v568_v63 = vshrl.u32 %v4853_v41, 16 }
  0x4d   : > { %972 = vmatmul.mubr.bf16.gmra.mxu0 %v3290_v31  ;;  %v485_v31 = vrot.slane %v483_v11, 4  ;;  %4130 = vmatprep.subr.bf16.mxu1 %v4329_v48  ;;  %v4860_v48 = vcombine.low %v4738_v0, %v4741_v47  ;;  %v528_v5 = vrot.slane %v526_v34, 5 }
  0x4e   : > { %1389 = vmatmul.mubr.bf16.gmra.mxu1 %v4640_v54  ;;  %979 = vmatprep.mubr.bf16.mxu0 %v3293_v18  ;;  %v256_v18 = vld [vmem:[%s4479_s27 + $0xe8] sm:$0x11]  ;;  %5494 = vst [vmem:[#allocation14_spill] sm:$0xff] %v4867_v58 }
  0x4f   : > { %1396 = vmatprep.mubr.bf16.mxu1 %v4650_v62  ;;  %v489_v52 = vor.u32 %v488_v33, %v485_v31  ;;  %v502_v61 = vshll.u32 %v256_v18, 16  ;;  %v4843_v31 = vld [vmem:[%s4479_s27 + $0x120] sm:$0xff]  ;;  %5493 = vst [vmem:[#allocation13_spill] sm:$0xff] %v4860_v48 }
  0x50   : > { %4131 = vmatpush3.bf16.msra.mxu1 %v4330_v56  ;;  %v555_v49 = vshrl.u32 %v4843_v31, 16  ;;  %v3495_v62 = vld [vmem:[%s4479_s27 + $0x40] sm:$0x11] }
  0x51   : > { %v490_v11 = vrot.slane %v489_v52, 4  ;;  %v504_v14 = vrot.slane %v502_v61, 5  ;;  %v558_v52 = vshll.u32 %v4843_v31, 16  ;;  %v564_v61 = vshll.u32 %v4853_v41, 16 }
  0x53   : > { %v4840_v36 = vsel %vm4494_vm2, %v490_v11, %v494_v40  ;;  %v4848_v18 = vsel %vm4494_vm2, %v4827_v44, %v504_v14  ;;  %v523_v40 = vor.u32 %v522_v27, %v518_v26  ;;  %v560_v24 = vrot.slane %v558_v52, 5 }
  0x54   : > { %v3301_v0 = vcombine.high %v4840_v36, %v4848_v18  ;;  %v566_v34 = vrot.slane %v564_v61, 5  ;;  %v4898_v61 = vld [vmem:[%s4479_s27 + $0x150] sm:$0xff] }
  0x55   : > { %980 = vmatmul.mubr.bf16.gmra.mxu0 %v3292_v53  ;;  %v510_v53 = vshll.u32 %v4788_v42, 16 }
  0x56   : > { %1397 = vmatmul.mubr.bf16.gmra.mxu1 %v4688_v25  ;;  %987 = vmatprep.mubr.bf16.mxu0 %v3295_v8  ;;  %v481_v8 = vsel %vm4494_vm2, %v4800_v51, %v480_v2  ;;  %v540_v2 = vshll.u32 %v4835_v28, 16 }
  0x57   : > { %1404 = vmatprep.mubr.bf16.mxu1 %v4700_v32  ;;  %v512_v20 = vrot.slane %v510_v53, 5  ;;  %v3299_v21 = vcombine.high %v4813_v7, %v481_v8  ;;  %v3298_v56 = vcombine.low %v4813_v7, %v481_v8  ;;  %v4872_v53 = vld [vmem:[%s4479_s27 + $0x138] sm:$0xff]  ;;  %v4879_v8 = vrot.slane %v523_v40, 4 }
  0x58   : > { %v542_v14 = vrot.slane %v540_v2, 5  ;;  %v579_v27 = vshrl.u32 %v4872_v53, 16 }
  0x59   : > { %v513_v33 = vor.u32 %v512_v20, %v509_v17  ;;  %v546_v17 = vrot.slane %v544_v45, 4  ;;  %v258_v20 = vld [vmem:[%s4479_s27 + $0x118] sm:$0x11] }
  0x5a   : > { %v550_v52 = vshll.u32 %v258_v20, 16 }
  0x5b   : > { %v514_v47 = vrot.slane %v513_v33, 4  ;;  %v259_v33 = vld [vmem:[%s4479_s27 + $0x130] sm:$0x11] }
  0x5d   : > { %988 = vmatmul.mubr.bf16.gmra.mxu0 %v3294_v35  ;;  %v531_v35 = vshrl.u32 %v4832_v30, 16  ;;  %v4895_v2 = vsel %vm4494_vm2, %v514_v47, %v518_v26  ;;  %v4906_v26 = vld [vmem:[%s4479_s27 + $0x158] sm:$0xff]  ;;  %v3300_v47 = vcombine.low %v4840_v36, %v4848_v18 }
  0x5e   : > { %1405 = vmatmul.mubr.bf16.gmra.mxu1 %v4735_v60  ;;  %995 = vmatprep.mubr.bf16.mxu0 %v3297_v59  ;;  %v534_v59 = vshll.u32 %v4832_v30, 16  ;;  %v612_v18 = vshll.u32 %v4906_v26, 16  ;;  %v3519_v60 = vld [vmem:[%s4479_s27 + $0x100] sm:$0x11] }
  0x5f   : > { %1412 = vmatprep.mubr.bf16.mxu1 %v4746_v3  ;;  %v533_v6 = vrot.slane %v531_v35, 4  ;;  %v570_v35 = vrot.slane %v568_v63, 4  ;;  %v574_v63 = vshll.u32 %v259_v33, 16  ;;  %v616_v33 = vshrl.u32 %v4906_v26, 16 }
  0x60   : > { %v536_v11 = vrot.slane %v534_v59, 5  ;;  %v4891_v59 = vcombine.low %v4788_v42, %v4791_v43  ;;  %v2284_v32 = vshll.u32 %v3519_v60, 16 }
  0x62   : > { %5495 = vst [vmem:[#allocation15_spill] sm:$0xff] %v4891_v59  ;;  %v537_v45 = vor.u32 %v536_v11, %v533_v6  ;;  %v4912_v6 = vcombine.high %v4832_v30, %v4835_v28  ;;  %v260_v11 = vld [vmem:[%s4479_s27 + $0x148] sm:$0x11] }
  0x63   : > { %v598_v3 = vshll.u32 %v260_v11, 16 }
  0x64   : > { %5496 = vst [vmem:[#allocation16_spill] sm:$0xff] %v4912_v6  ;;  %v538_v20 = vrot.slane %v537_v45, 4 }
  0x65   : > { %996 = vmatmul.mubr.bf16.gmra.mxu0 %v3296_v9  ;;  %v4877_v9 = vld [vmem:[%s4479_s27 + $0x140] sm:$0xff] }
  0x66   : > { %1413 = vmatmul.mubr.bf16.gmra.mxu1 %v4776_v13  ;;  %1003 = vmatprep.mubr.bf16.mxu0 %v3299_v21  ;;  %v557_v21 = vrot.slane %v555_v49, 4  ;;  %v592_v40 = vshrl.u32 %v4877_v9, 16  ;;  %v547_v49 = vor.u32 %v546_v17, %v542_v14  ;;  %v606_v17 = vshll.u32 %v4898_v61, 16 }
  0x67   : > { %1420 = vmatprep.mubr.bf16.mxu1 %v4785_v37 }
  0x68   : > { %v561_v43 = vor.u32 %v560_v24, %v557_v21  ;;  %v594_v37 = vrot.slane %v592_v40, 4  ;;  %v552_v21 = vrot.slane %v550_v52, 5  ;;  %v576_v24 = vrot.slane %v574_v63, 5 }
  0x69   : > { %v4931_v52 = vsel %vm4494_vm2, %v538_v20, %v542_v14  ;;  %v618_v14 = vrot.slane %v616_v33, 4 }
  0x6d   : > { %1004 = vmatmul.mubr.bf16.gmra.mxu0 %v3298_v56  ;;  %v4903_v56 = vsel %vm4494_vm2, %v4879_v8, %v528_v5  ;;  %v603_v5 = vshrl.u32 %v4898_v61, 16 }
  0x6e   : > { %1421 = vmatmul.mubr.bf16.gmra.mxu1 %v4821_v10  ;;  %v588_v10 = vshll.u32 %v4877_v9, 16  ;;  %1011 = vmatprep.mubr.bf16.mxu0 %v3301_v0  ;;  %v571_v0 = vor.u32 %v570_v35, %v566_v34  ;;  %v562_v35 = vrot.slane %v561_v43, 4  ;;  %v4945_v43 = vcombine.high %v4843_v31, %v4853_v41 }
  0x6f   : > { %1428 = vmatprep.mubr.bf16.mxu1 %v4825_v12  ;;  %v582_v12 = vshll.u32 %v4872_v53, 16  ;;  %v605_v45 = vrot.slane %v603_v5, 4  ;;  %v600_v5 = vrot.slane %v598_v3, 5  ;;  %v4975_v3 = vcombine.high %v4872_v53, %v4877_v9 }
  0x70   : > { %v4924_v40 = vrot.slane %v571_v0, 4  ;;  %5498 = vst [vmem:[#allocation18_spill] sm:$0xff] %v4945_v43  ;;  %v4947_v0 = vrot.slane %v612_v18, 5  ;;  %v4954_v11 = vsel %vm4494_vm2, %v562_v35, %v566_v34  ;;  %v3504_v34 = vld [vmem:[%s4479_s27 + $0x88] sm:$0x11] }
  0x71   : > { %v584_v42 = vrot.slane %v582_v12, 5  ;;  %v3303_v12 = vcombine.high %v4895_v2, %v4903_v56 }
  0x75   : > { %1012 = vmatmul.mubr.bf16.gmra.mxu0 %v3300_v47  ;;  %v4950_v47 = vld [vmem:[%s4479_s27 + $0x168] sm:$0xff] }
  0x76   : > { %1429 = vmatmul.mubr.bf16.gmra.mxu1 %v4860_v48  ;;  %v590_v48 = vrot.slane %v588_v10, 5  ;;  %v4919_v10 = vrot.slane %v547_v49, 4  ;;  %v608_v49 = vrot.slane %v606_v17, 5  ;;  %1019 = vmatprep.mubr.bf16.mxu0 %v3303_v12  ;;  %v4967_v12 = vcombine.low %v4843_v31, %v4853_v41  ;;  %v3510_v41 = vld [vmem:[%s4479_s27 + $0xb8] sm:$0x11] }
  0x77   : > { %1436 = vmatprep.mubr.bf16.mxu1 %v4867_v58  ;;  %v581_v58 = vrot.slane %v579_v27, 4  ;;  %v627_v31 = vshrl.u32 %v4950_v47, 16 }
  0x78   : > { %v595_v13 = vor.u32 %v594_v37, %v590_v48  ;;  %v4936_v63 = vsel %vm4494_vm2, %v4919_v10, %v552_v21  ;;  %v4940_v37 = vcombine.low %v4832_v30, %v4835_v28  ;;  %v4959_v30 = vsel %vm4494_vm2, %v4924_v40, %v576_v24 }
  0x79   : > { %v585_v27 = vor.u32 %v584_v42, %v581_v58  ;;  %v3302_v58 = vcombine.low %v4895_v2, %v4903_v56  ;;  %v261_v42 = vld [vmem:[%s4479_s27 + $0x160] sm:$0x11]  ;;  %v3305_v17 = vcombine.high %v4931_v52, %v4936_v63  ;;  %v609_v20 = vor.u32 %v608_v49, %v605_v45  ;;  %v3513_v49 = vld [vmem:[%s4479_s27 + $0xd0] sm:$0x11] }
  0x7a   : > { %5497 = vst [vmem:[#allocation17_spill] sm:$0xff] %v4940_v37  ;;  %v4961_v28 = vrot.slane %v595_v13, 4  ;;  %v622_v21 = vshll.u32 %v261_v42, 16  ;;  %v3304_v24 = vcombine.low %v4931_v52, %v4936_v63  ;;  %v4979_v13 = vcombine.low %v4872_v53, %v4877_v9  ;;  %v5002_v63 = vld [vmem:[%s4479_s27 + $0x170] sm:$0xff]  ;;  %v5005_v42 = vld [vmem:[%s4479_s27 + $0x18] sm:$0xff] }
  0x7b   : > { %v586_v56 = vrot.slane %v585_v27, 4  ;;  %v3507_v27 = vld [vmem:[%s4479_s27 + $0xa0] sm:$0x11]  ;;  %v3307_v18 = vcombine.high %v4954_v11, %v4959_v30  ;;  %v619_v45 = vor.u32 %v618_v14, %v4947_v0  ;;  %v5008_v14 = vrot.slane %v609_v20, 4 }
  0x7c   : > { %5499 = vst [vmem:[#allocation19_spill] sm:$0xff] %v4979_v13  ;;  %v4997_v53 = vsel %vm4494_vm2, %v4961_v28, %v600_v5  ;;  %v5010_v33 = vrot.slane %v622_v21, 5  ;;  %v2212_v9 = vshll.u32 %v3510_v41, 16  ;;  %v636_v20 = vshll.u32 %v5002_v63, 16 }
  0x7d   : > { %v4989_v35 = vsel %vm4494_vm2, %v586_v56, %v590_v48  ;;  %v2164_v48 = vshll.u32 %v3504_v34, 16  ;;  %v2188_v56 = vshll.u32 %v3507_v27, 16  ;;  %1020 = vmatmul.mubr.bf16.gmra.mxu0 %v3302_v58  ;;  %v2236_v58 = vshll.u32 %v3513_v49, 16 }
  0x7e   : > { %1437 = vmatmul.mubr.bf16.gmra.mxu1 %v4891_v59  ;;  %1027 = vmatprep.mubr.bf16.mxu0 %v3305_v17  ;;  %v3516_v59 = vld [vmem:[%s4479_s27 + $0xe8] sm:$0x11]  ;;  %v640_v21 = vshrl.u32 %v5002_v63, 16  ;;  %v2049_v5 = vshrl.u32 %v5005_v42, 16  ;;  %v2052_v17 = vshll.u32 %v5005_v42, 16  ;;  %v2214_v25 = vrot.slane %v2212_v9, 5 }
  0x7f   : > { %1444 = vmatprep.mubr.bf16.mxu1 %v4912_v6  ;;  %v5016_v6 = vrot.slane %v627_v31, 4  ;;  %v2166_v34 = vrot.slane %v2164_v48, 5  ;;  %v2190_v27 = vrot.slane %v2188_v56, 5  ;;  %v3525_v48 = vld [vmem:[%s4479_s27 + $0x130] sm:$0x11]  ;;  %v2260_v54 = vshll.u32 %v3516_v59, 16 }
  0x80   : > { %v5052_v56 = vsel %vm4494_vm2, %v4750_v29, %v2214_v25  ;;  %v2286_v29 = vrot.slane %v2284_v32, 5  ;;  %v642_v25 = vrot.slane %v640_v21, 4  ;;  %v5114_v9 = vld [vmem:[%s4479_s27 + $0x38] sm:$0xff]  ;;  %v5502_v21 = vcombine.low %v4954_v11, %v4959_v30 }
  0x81   : > { %v5032_v49 = vsel %vm4494_vm2, %v4664_v4, %v2166_v34  ;;  %v5043_v41 = vsel %vm4494_vm2, %v4709_v38, %v2190_v27  ;;  %v2238_v34 = vrot.slane %v2236_v58, 5  ;;  %v2262_v27 = vrot.slane %v2260_v54, 5  ;;  %v3528_v58 = vld [vmem:[%s4479_s27 + $0x148] sm:$0x11] }
  0x82   : > { %5500 = vst [vmem:[#allocation20_spill] sm:$0xff] %v5032_v49  ;;  %v2332_v49 = vshll.u32 %v3525_v48, 16 }
  0x83   : > { %v5062_v59 = vsel %vm4494_vm2, %v4800_v51, %v2238_v34  ;;  %v5074_v54 = vsel %vm4494_vm2, %v4827_v44, %v2262_v27  ;;  %v638_v34 = vrot.slane %v636_v20, 5  ;;  %v3358_v27 = vcombine.low %v4898_v61, %v4906_v26 }
  0x84   : > { %v2334_v51 = vrot.slane %v2332_v49, 5 }
  0x85   : > { %1028 = vmatmul.mubr.bf16.gmra.mxu0 %v3304_v24  ;;  %v2356_v24 = vshll.u32 %v3528_v58, 16  ;;  %v2054_v58 = vrot.slane %v2052_v17, 5  ;;  %v643_v20 = vor.u32 %v642_v25, %v638_v34 }
  0x86   : > { %1445 = vmatmul.mubr.bf16.gmra.mxu1 %v4940_v37  ;;  %v5014_v37 = vld [vmem:[%s4479_s27 + $0x20] sm:$0xff]  ;;  %1035 = vmatprep.mubr.bf16.mxu0 %v3307_v18  ;;  %v5105_v18 = vld [vmem:[%s4479_s27 + $0x30] sm:$0xff] }
  0x87   : > { %1452 = vmatprep.mubr.bf16.mxu1 %v4945_v43  ;;  %v5019_v43 = vrot.slane %v619_v45, 4  ;;  %v2058_v31 = vshll.u32 %v5014_v37, 16  ;;  %v3522_v45 = vld [vmem:[%s4479_s27 + $0x118] sm:$0x11]  ;;  %v2062_v48 = vshrl.u32 %v5014_v37, 16 }
  0x88   : > { %v2308_v23 = vshll.u32 %v3522_v45, 16 }
  0x89   : > { %v2060_v44 = vrot.slane %v2058_v31, 5  ;;  %v2064_v60 = vrot.slane %v2062_v48, 4  ;;  %v615_v31 = vsel %vm4494_vm2, %v5008_v14, %v4947_v0  ;;  %v262_v48 = vld [vmem:[%s4479_s27 + $0x178] sm:$0x11]  ;;  %v2073_v14 = vshrl.u32 %v5105_v18, 16 }
  0x8a   : > { %v2310_v45 = vrot.slane %v2308_v23, 5  ;;  %v5083_v23 = vsel %vm4494_vm2, %v4879_v8, %v2286_v29  ;;  %v2051_v8 = vrot.slane %v2049_v5, 4  ;;  %v2358_v29 = vrot.slane %v2356_v24, 5 }
  0x8b   : > { %v5501_v5 = vshll.u32 %v4950_v47, 16  ;;  %v5503_v24 = vcombine.high %v4898_v61, %v4906_v26  ;;  %v2092_v61 = vshll.u32 %v3495_v62, 16 }
  0x8c   : > { %v5088_v32 = vsel %vm4494_vm2, %v4919_v10, %v2310_v45  ;;  %v5101_v10 = vsel %vm4494_vm2, %v4924_v40, %v2334_v51  ;;  %v3492_v45 = vld [vmem:[%s4479_s27 + $0x28] sm:$0x11]  ;;  %v5119_v40 = vsel %vm4494_vm2, %v4961_v28, %v2358_v29  ;;  %v625_v28 = vsel %vm4494_vm2, %v5019_v43, %v5010_v33 }
  0x8d   : > { %v632_v17 = vrot.slane %v5501_v5, 5  ;;  %1036 = vmatmul.mubr.bf16.gmra.mxu0 %v5502_v21  ;;  %v2068_v0 = vshll.u32 %v3492_v45, 16  ;;  %v2076_v29 = vshll.u32 %v5105_v18, 16  ;;  %v5504_v5 = vcombine.high %v4989_v35, %v4997_v53 }
  0x8e   : > { %1453 = vmatmul.mubr.bf16.gmra.mxu1 %v4967_v12  ;;  %v2055_v30 = vor.u32 %v2054_v58, %v2051_v8  ;;  %v2065_v21 = vor.u32 %v2064_v60, %v2060_v44  ;;  %v2082_v51 = vshll.u32 %v5114_v9, 16  ;;  %v2086_v43 = vshrl.u32 %v5114_v9, 16 }
  0x8f   : > { %1460 = vmatprep.mubr.bf16.mxu1 %v4975_v3  ;;  %1043 = vmatprep.mubr.bf16.mxu0 %v5504_v5  ;;  %v633_v33 = vor.u32 %v632_v17, %v5016_v6  ;;  %v3308_v45 = vcombine.low %v4989_v35, %v4997_v53  ;;  %v3361_v5 = vcombine.high %v4950_v47, %v5002_v63  ;;  %v2070_v58 = vrot.slane %v2068_v0, 5 }
  0x90   : > { %v3311_v8 = vcombine.high %v615_v31, %v625_v28  ;;  %v2075_v60 = vrot.slane %v2073_v14, 4  ;;  %v2078_v49 = vrot.slane %v2076_v29, 5  ;;  %v2056_v38 = vrot.slane %v2055_v30, 4 }
  0x91   : > { %v2066_v4 = vrot.slane %v2065_v21, 4  ;;  %v2088_v6 = vrot.slane %v2086_v43, 4  ;;  %v634_v25 = vrot.slane %v633_v33, 4  ;;  %v644_v17 = vrot.slane %v643_v20, 4  ;;  %v3498_v43 = vld [vmem:[%s4479_s27 + $0x58] sm:$0x11] }
  0x92   : > { %v2061_v26 = vsel %vm4494_vm2, %v2056_v38, %v2060_v44  ;;  %v2079_v0 = vor.u32 %v2078_v49, %v2075_v60  ;;  %v3310_v29 = vcombine.low %v615_v31, %v625_v28  ;;  %v2094_v44 = vrot.slane %v2092_v61, 5  ;;  %v5513_v61 = vld [vmem:[#allocation5_spill] sm:$0xff] }
  0x93   : > { %v2071_v53 = vsel %vm4494_vm2, %v2066_v4, %v2070_v58  ;;  %v2116_v49 = vshll.u32 %v3498_v43, 16  ;;  %v3443_v28 = vcombine.high %v5005_v42, %v5014_v37  ;;  %v3445_v60 = vcombine.high %v5105_v18, %v5114_v9 }
  0x94   : > { %v3571_v62 = vcombine.high %v2061_v26, %v2071_v53  ;;  %v2080_v21 = vrot.slane %v2079_v0, 4  ;;  %v5517_v0 = vld [vmem:[#allocation7_spill] sm:$0xff] }
  0x95   : > { %1044 = vmatmul.mubr.bf16.gmra.mxu0 %v3308_v45  ;;  %v2118_v33 = vrot.slane %v2116_v49, 5 }
  0x96   : > { %1461 = vmatmul.mubr.bf16.gmra.mxu1 %v4979_v13  ;;  %v2084_v13 = vrot.slane %v2082_v51, 5  ;;  %1051 = vmatprep.mubr.bf16.mxu0 %v3311_v8  ;;  %v639_v51 = vsel %vm4494_vm2, %v634_v25, %v638_v34  ;;  %v3442_v8 = vcombine.low %v5005_v42, %v5014_v37 }
  0x97   : > { %1468 = vmatprep.mubr.bf16.mxu1 %v5503_v24  ;;  %v646_v24 = vshll.u32 %v262_v48, 16 }
  0x98   : > { %v2089_v14 = vor.u32 %v2088_v6, %v2084_v13  ;;  %v2085_v4 = vsel %vm4494_vm2, %v2080_v21, %v2084_v13  ;;  %v2119_v13 = vsel %vm4494_vm2, %v4587_v16, %v2118_v33  ;;  %v5530_v33 = vcombine.high %v4931_v52, %v5088_v32 }
  0x99   : > { %v648_v48 = vrot.slane %v646_v24, 5  ;;  %v3501_v24 = vld [vmem:[%s4479_s27 + $0x70] sm:$0x11]  ;;  %v3575_v58 = vcombine.high %v4585_v15, %v2119_v13  ;;  %v3574_v16 = vcombine.low %v4585_v15, %v2119_v13  ;;  %v5507_v15 = vld [vmem:[#allocation2_spill] sm:$0xff] }
  0x9a   : > { %v2090_v38 = vrot.slane %v2089_v14, 4  ;;  %v2140_v45 = vshll.u32 %v3501_v24, 16  ;;  %v5518_v14 = vcombine.high %v4813_v7, %v5062_v59  ;;  %v5531_v24 = vld [vmem:[#allocation14_spill] sm:$0xff] }
  0x9b   : > { %v649_v20 = vsel %vm4494_vm2, %v644_v17, %v648_v48  ;;  %v3444_v17 = vcombine.low %v5105_v18, %v5114_v9  ;;  %v5505_v48 = vld [vmem:[#allocation20_spill] sm:$0xff]  ;;  %v5509_v18 = vld [vmem:[#allocation3_spill] sm:$0xff] }
  0x9c   : > { %v3313_v30 = vcombine.high %v639_v51, %v649_v20  ;;  %v2095_v34 = vsel %vm4494_vm2, %v2090_v38, %v2094_v44  ;;  %v2142_v6 = vrot.slane %v2140_v45, 5  ;;  %v5508_v9 = vcombine.low %v4680_v19, %v5505_v48  ;;  %v5237_v38 = vld [vmem:[%s4479_s27 + $0x150] sm:$0xff]  ;;  %v5240_v44 = vld [vmem:[%s4479_s27 + $0x158] sm:$0xff] }
  0x9d   : > { %1052 = vmatmul.mubr.bf16.gmra.mxu0 %v3310_v29  ;;  %v3573_v31 = vcombine.high %v2085_v4, %v2095_v34  ;;  %v5525_v29 = vld [vmem:[#allocation11_spill] sm:$0xff]  ;;  %v2364_v49 = vshll.u32 %v5237_v38, 16 }
  0x9e   : > { %1469 = vmatmul.mubr.bf16.gmra.mxu1 %v3358_v27  ;;  %v3360_v27 = vcombine.low %v4950_v47, %v5002_v63  ;;  %1059 = vmatprep.mubr.bf16.mxu0 %v3313_v30  ;;  %v3570_v47 = vcombine.low %v2061_v26, %v2071_v53  ;;  %v3312_v63 = vcombine.low %v639_v51, %v649_v20  ;;  %v5521_v51 = vld [vmem:[#allocation9_spill] sm:$0xff] }
  0x9f   : > { %1476 = vmatprep.mubr.bf16.mxu1 %v3361_v5  ;;  %v3572_v5 = vcombine.low %v2085_v4, %v2095_v34  ;;  %v2143_v25 = vsel %vm4494_vm2, %v4618_v39, %v2142_v6  ;;  %v5506_v39 = vcombine.high %v4680_v19, %v5505_v48  ;;  %v5514_v26 = vcombine.high %v4769_v22, %v5052_v56  ;;  %v5515_v19 = vld [vmem:[#allocation6_spill] sm:$0xff]  ;;  %v5261_v48 = vld [vmem:[%s4479_s27 + $0x170] sm:$0xff] }
  0xa0   : > { %v3577_v37 = vcombine.high %v4631_v50, %v2143_v25  ;;  %v3576_v42 = vcombine.low %v4631_v50, %v2143_v25  ;;  %v5511_v50 = vld [vmem:[#allocation4_spill] sm:$0xff]  ;;  %v5516_v53 = vcombine.low %v4769_v22, %v5052_v56  ;;  %v5522_v22 = vcombine.high %v4840_v36, %v5074_v54  ;;  %v5523_v56 = vld [vmem:[#allocation10_spill] sm:$0xff] }
  0xa1   : > { %v5528_v34 = vcombine.low %v4895_v2, %v5083_v23 }
  0xa5   : > { %1060 = vmatmul.mubr.bf16.gmra.mxu0 %v3312_v63  ;;  %v2374_v63 = vshrl.u32 %v5240_v44, 16 }
  0xa6   : > { %1477 = vmatmul.mubr.bf16.gmra.mxu1 %v3360_v27  ;;  %1839 = vmatprep.mubr.bf16.mxu0 %v3443_v28  ;;  %v5524_v27 = vcombine.low %v4840_v36, %v5074_v54  ;;  %v2361_v36 = vshrl.u32 %v5237_v38, 16  ;;  %v5529_v28 = vld [vmem:[#allocation13_spill] sm:$0xff] }
  0xa7   : > { %2721 = vmatprep.mubr.bf16.mxu1 %v3571_v62  ;;  %v5526_v62 = vcombine.high %v4895_v2, %v5083_v23  ;;  %v2376_v6 = vrot.slane %v2374_v63, 4 }
  0xa8   : > { %v2363_v45 = vrot.slane %v2361_v36, 4 }
  0xad   : > { %1840 = vmatmul.mubr.bf16.vlgmr.msra.gmra.mxu0 %v3442_v8 }
  0xae   : > { %2722 = vmatmul.mubr.bf16.vlgmr.msra.gmra.mxu1 %v3570_v47  ;;  %1847 = vmatprep.mubr.bf16.mxu0 %v3445_v60  ;;  %v2370_v47 = vshll.u32 %v5240_v44, 16 }
  0xaf   : > { %2729 = vmatprep.mubr.bf16.mxu1 %v3573_v31 }
  0xb0   : > { %v2372_v60 = vrot.slane %v2370_v47, 5 }
  0xb5   : > { %1848 = vmatmul.mubr.bf16.gmra.mxu0 %v3444_v17 }
  0xb6   : > { %2730 = vmatmul.mubr.bf16.gmra.mxu1 %v3572_v5  ;;  %1855 = vmatprep.mubr.bf16.mxu0 %v4557_v57  ;;  %v5510_v57 = vcombine.high %v4725_v55, %v5043_v41 }
  0xb7   : > { %2737 = vmatprep.mubr.bf16.mxu1 %v3575_v58  ;;  %v2366_v58 = vrot.slane %v2364_v49, 5  ;;  %v5281_v49 = vld [vmem:[%s4479_s27 + $0x180] sm:$0xff] }
  0xbd   : > { %1856 = vmatmul.mubr.bf16.gmra.mxu0 %v4570_v1  ;;  %v5512_v1 = vcombine.low %v4725_v55, %v5043_v41  ;;  %v5519_v55 = vld [vmem:[#allocation8_spill] sm:$0xff]  ;;  %v5520_v41 = vcombine.low %v4813_v7, %v5062_v59 }
  0xbe   : > { %2738 = vmatmul.mubr.bf16.gmra.mxu1 %v3574_v16  ;;  %1863 = vmatprep.mubr.bf16.mxu0 %v5507_v15  ;;  %v5527_v7 = vld [vmem:[#allocation12_spill] sm:$0xff]  ;;  %v3531_v16 = vld [vmem:[%s4479_s27 + $0x160] sm:$0x11] }
  0xbf   : > { %2745 = vmatprep.mubr.bf16.mxu1 %v3577_v37 }
  0xc5   : > { %1864 = vmatmul.mubr.bf16.gmra.mxu0 %v5509_v18 }
  0xc6   : > { %2746 = vmatmul.mubr.bf16.gmra.mxu1 %v3576_v42  ;;  %1871 = vmatprep.mubr.bf16.mxu0 %v5511_v50  ;;  %v5258_v42 = vld [vmem:[%s4479_s27 + $0x168] sm:$0xff]  ;;  %v2367_v50 = vor.u32 %v2366_v58, %v2363_v45  ;;  %v5537_v45 = vld [vmem:[#allocation17_spill] sm:$0xff] }
  0xc7   : > { %2753 = vmatprep.mubr.bf16.mxu1 %v5506_v39 }
  0xcd   : > { %1872 = vmatmul.mubr.bf16.gmra.mxu0 %v5513_v61  ;;  %v2380_v61 = vshll.u32 %v3531_v16, 16  ;;  %v2412_v16 = vshll.u32 %v5281_v49, 16 }
  0xce   : > { %2754 = vmatmul.mubr.bf16.gmra.mxu1 %v5508_v9  ;;  %1879 = vmatprep.mubr.bf16.mxu0 %v5515_v19  ;;  %v5533_v19 = vld [vmem:[#allocation15_spill] sm:$0xff] }
  0xcf   : > { %2761 = vmatprep.mubr.bf16.mxu1 %v5510_v57  ;;  %v5532_v57 = vcombine.low %v4931_v52, %v5088_v32  ;;  %v5535_v32 = vld [vmem:[#allocation16_spill] sm:$0xff] }
  0xd5   : > { %1880 = vmatmul.mubr.bf16.gmra.mxu0 %v5517_v0  ;;  %v2385_v0 = vshrl.u32 %v5258_v42, 16 }
  0xd6   : > { %2762 = vmatmul.mubr.bf16.gmra.mxu1 %v5512_v1  ;;  %1887 = vmatprep.mubr.bf16.mxu0 %v5519_v55  ;;  %v2377_v1 = vor.u32 %v2376_v6, %v2372_v60  ;;  %v2394_v55 = vshll.u32 %v5261_v48, 16 }
  0xd7   : > { %2769 = vmatprep.mubr.bf16.mxu1 %v5514_v26 }
  0xdd   : > { %1888 = vmatmul.mubr.bf16.gmra.mxu0 %v5521_v51 }
  0xde   : > { %2770 = vmatmul.mubr.bf16.gmra.mxu1 %v5516_v53  ;;  %1895 = vmatprep.mubr.bf16.mxu0 %v5523_v56  ;;  %v5534_v53 = vcombine.high %v4954_v11, %v5101_v10 }
  0xdf   : > { %2777 = vmatprep.mubr.bf16.mxu1 %v5518_v14  ;;  %v2388_v14 = vshll.u32 %v5258_v42, 16 }
  0xe5   : > { %1896 = vmatmul.mubr.bf16.gmra.mxu0 %v5525_v29  ;;  %v2368_v29 = vrot.slane %v2367_v50, 4 }
  0xe6   : > { %2778 = vmatmul.mubr.bf16.gmra.mxu1 %v5520_v41  ;;  %1903 = vmatprep.mubr.bf16.mxu0 %v5527_v7  ;;  %v2398_v41 = vshrl.u32 %v5261_v48, 16  ;;  %v2382_v7 = vrot.slane %v2380_v61, 5 }
  0xe7   : > { %2785 = vmatprep.mubr.bf16.mxu1 %v5522_v22 }
  0xe8   : > { %v2400_v36 = vrot.slane %v2398_v41, 4 }
  0xed   : > { %v3796_v31 = vpop.f32.mrf.mxu0  ;;  %1904 = vmatmul.mubr.bf16.gmra.mxu0 %v5529_v28 }
  0xee   : > { %v3908_v20 = vpop.f32.mrf.mxu1  ;;  %2786 = vmatmul.mubr.bf16.gmra.mxu1 %v5524_v27  ;;  %1911 = vmatprep.mubr.bf16.mxu0 %v5531_v24  ;;  %v5536_v24 = vcombine.low %v4954_v11, %v5101_v10  ;;  %v2409_v11 = vshrl.u32 %v5281_v49, 16 }
  0xef   : > { %2793 = vmatprep.mubr.bf16.mxu1 %v5526_v62  ;;  %v3797_v23 = vpop.f32.mrf.mxu0  ;;  %v2378_v62 = vrot.slane %v2377_v1, 4 }
  0xf0   : > { %v3909_v59 = vpop.f32.mrf.mxu1  ;;  %v3798_v5 = vadd.f32 %v3797_v23, %v3796_v31  ;;  %v5284_v31 = vld [vmem:[%s4479_s27 + $0x188] sm:$0xff] }
  0xf1   : > { %v3910_v30 = vadd.f32 %v3909_v59, %v3908_v20  ;;  %v3799_v25 = vpop.f32.mrf.mxu0  ;;  %v5295_v23 = vsel %vm4494_vm2, %v2378_v62, %v2382_v7  ;;  %v5540_v62 = vcombine.low %v4989_v35, %v5119_v40 }
  0xf2   : > { %v3911_v21 = vpop.f32.mrf.mxu1 }
  0xf3   : > { %v5255_v17 = vadd.f32 %v3910_v30, %v3798_v5  ;;  %v3800_v39 = vpop.f32.mrf.mxu0  ;;  %v2387_v30 = vrot.slane %v2385_v0, 4  ;;  %v5538_v5 = vcombine.high %v4989_v35, %v5119_v40 }
  0xf4   : > { %v3912_v43 = vpop.f32.mrf.mxu1  ;;  %v3801_v9 = vadd.f32 %v3800_v39, %v3799_v25  ;;  %v2422_v39 = vshrl.u32 %v5284_v31, 16 }
  0xf5   : > { %v3913_v4 = vadd.f32 %v3912_v43, %v3911_v21  ;;  %v3802_v26 = vpop.f32.mrf.mxu0  ;;  %1912 = vmatmul.mubr.bf16.gmra.mxu0 %v5533_v19  ;;  %v2390_v21 = vrot.slane %v2388_v14, 5  ;;  %v2396_v43 = vrot.slane %v2394_v55, 5  ;;  %v2414_v55 = vrot.slane %v2412_v16, 5 }
  0xf6   : > { %v3914_v54 = vpop.f32.mrf.mxu1  ;;  %2794 = vmatmul.mubr.bf16.gmra.mxu1 %v5528_v34  ;;  %1919 = vmatprep.mubr.bf16.mxu0 %v5535_v32  ;;  %v3534_v34 = vld [vmem:[%s4479_s27 + $0x178] sm:$0x11]  ;;  %v2424_v32 = vrot.slane %v2422_v39, 4 }
  0xf7   : > { %2801 = vmatprep.mubr.bf16.mxu1 %v5530_v33  ;;  %v5274_v52 = vadd.f32 %v3913_v4, %v3801_v9  ;;  %v3803_v22 = vpop.f32.mrf.mxu0  ;;  %v2401_v58 = vor.u32 %v2400_v36, %v2396_v43  ;;  %v2404_v6 = vshll.u32 %v3534_v34, 16 }
  0xf8   : > { %v3915_v2 = vpop.f32.mrf.mxu1  ;;  %v3804_v20 = vadd.f32 %v3803_v22, %v3802_v26 }
  0xf9   : > { %v3916_v13 = vadd.f32 %v3915_v2, %v3914_v54  ;;  %v3805_v59 = vpop.f32.mrf.mxu0  ;;  %v5291_v2 = vsel %vm4494_vm2, %v2368_v29, %v2372_v60  ;;  %v5539_v60 = vld [vmem:[#allocation18_spill] sm:$0xff]  ;;  %v2402_v26 = vrot.slane %v2401_v58, 4  ;;  %v2406_v19 = vrot.slane %v2404_v6, 5 }
  0xfa   : > { %v3917_v8 = vpop.f32.mrf.mxu1  ;;  %v3597_v1 = vcombine.high %v5291_v2, %v5295_v23 }
  0xfb   : > { %v5277_v4 = vadd.f32 %v3916_v13, %v3804_v20  ;;  %v3806_v47 = vpop.f32.mrf.mxu0  ;;  %v3537_v20 = vld [vmem:[%s4479_s27 + $0x190] sm:$0x11]  ;;  %s3652_s27 = sshll.u32 %s5543_s13, 7 }
  0xfc   : > { %v3918_v37 = vpop.f32.mrf.mxu1  ;;  %v3807_v28 = vadd.f32 %v3806_v47, %v3805_v59  ;;  %v2407_v59 = vsel %vm4494_vm2, %v2402_v26, %v2406_v19  ;;  %v2428_v34 = vshll.u32 %v3537_v20, 16  ;;  %s5401_s25 = scalar_lea.vmem %s5458_s2, %s3652_s27 }
  0xfd   : > { %v3919_v15 = vadd.f32 %v3918_v37, %v3917_v8  ;;  %v3808_v13 = vpop.f32.mrf.mxu0  ;;  %1920 = vmatmul.mubr.bf16.gmra.mxu0 %v5537_v45  ;;  %v2391_v8 = vor.u32 %v2390_v21, %v2387_v30  ;;  %v2418_v37 = vshll.u32 %v5284_v31, 16 }
  0xfe   : > { %v3920_v18 = vpop.f32.mrf.mxu1  ;;  %2802 = vmatmul.mubr.bf16.gmra.mxu1 %v5532_v57  ;;  %1927 = vmatprep.mubr.bf16.mxu0 %v5539_v60 }
  0xff   : > { %2809 = vmatprep.mubr.bf16.mxu1 %v5534_v53  ;;  %v5302_v10 = vadd.f32 %v3919_v15, %v3807_v28  ;;  %v3809_v9 = vpop.f32.mrf.mxu0  ;;  %v2392_v15 = vrot.slane %v2391_v8, 4  ;;  %v2411_v53 = vrot.slane %v2409_v11, 4  ;;  %v2420_v41 = vrot.slane %v2418_v37, 5 }
 0x100   : > { %v3921_v51 = vpop.f32.mrf.mxu1  ;;  %v3810_v57 = vadd.f32 %v3809_v9, %v3808_v13 }
 0x101   : > { %v3922_v56 = vadd.f32 %v3921_v51, %v3920_v18  ;;  %v3811_v61 = vpop.f32.mrf.mxu0  ;;  %v2415_v36 = vor.u32 %v2414_v55, %v2411_v53  ;;  %v3471_v53 = vcombine.high %v5258_v42, %v5261_v48 }
 0x102   : > { %v3923_v27 = vpop.f32.mrf.mxu1 }
 0x103   : > { %v5310_v0 = vadd.f32 %v3922_v56, %v3810_v57  ;;  %v3812_v51 = vpop.f32.mrf.mxu0  ;;  %v2397_v56 = vsel %vm4494_vm2, %v2392_v15, %v2396_v43  ;;  %v3469_v43 = vcombine.high %v5237_v38, %v5240_v44 }
 0x104   : > { %v3924_v54 = vpop.f32.mrf.mxu1 }
 0x105   : > { %v3925_v63 = vadd.f32 %v3924_v54, %v3923_v27  ;;  %v3813_v27 = vadd.f32 %v3812_v51, %v3811_v61  ;;  %v3814_v7 = vpop.f32.mrf.mxu0  ;;  %1928 = vmatmul.mubr.bf16.gmra.mxu0 %v4967_v12  ;;  %v2425_v54 = vor.u32 %v2424_v32, %v2420_v41  ;;  %v3596_v12 = vcombine.low %v5291_v2, %v5295_v23 }
 0x106   : > { %v3926_v33 = vpop.f32.mrf.mxu1  ;;  %2810 = vmatmul.mubr.bf16.gmra.mxu1 %v5536_v24  ;;  %1935 = vmatprep.mubr.bf16.mxu0 %v4975_v3  ;;  %v3599_v24 = vcombine.high %v2397_v56, %v2407_v59  ;;  %v2416_v3 = vrot.slane %v2415_v36, 4  ;;  %v3468_v61 = vcombine.low %v5237_v38, %v5240_v44 }
 0x107   : > { %2817 = vmatprep.mubr.bf16.mxu1 %v5538_v5  ;;  %v5321_v30 = vadd.f32 %v3925_v63, %v3813_v27  ;;  %v3815_v35 = vpop.f32.mrf.mxu0  ;;  %v2426_v45 = vrot.slane %v2425_v54, 4  ;;  %v2430_v5 = vrot.slane %v2428_v34, 5 }
 0x108   : > { %v3927_v25 = vpop.f32.mrf.mxu1  ;;  %v3816_v47 = vadd.f32 %v3815_v35, %v3814_v7  ;;  %v2421_v16 = vsel %vm4494_vm2, %v2416_v3, %v2420_v41  ;;  %v3470_v7 = vcombine.low %v5258_v42, %v5261_v48 }
 0x109   : > { %v3928_v18 = vadd.f32 %v3927_v25, %v3926_v33  ;;  %v3817_v33 = vpop.f32.mrf.mxu0  ;;  %v5541_v25 = vld [vmem:[#allocation19_spill] sm:$0xff]  ;;  %v2431_v37 = vsel %vm4494_vm2, %v2426_v45, %v2430_v5 }
 0x10a   : > { %v3929_v50 = vpop.f32.mrf.mxu1  ;;  %v3601_v15 = vcombine.high %v2421_v16, %v2431_v37 }
 0x10b   : > { %v5328_v63 = vadd.f32 %v3928_v18, %v3816_v47  ;;  %v3818_v8 = vpop.f32.mrf.mxu0 }
 0x10c   : > { %v3930_v14 = vpop.f32.mrf.mxu1  ;;  %v3819_v6 = vadd.f32 %v3818_v8, %v3817_v33 }
 0x10d   : > { %v3931_v22 = vadd.f32 %v3930_v14, %v3929_v50  ;;  %v3820_v60 = vpop.f32.mrf.mxu0  ;;  %1936 = vmatmul.mubr.bf16.gmra.mxu0 %v5541_v25  ;;  %v3598_v50 = vcombine.low %v2397_v56, %v2407_v59 }
 0x10e   : > { %v3932_v29 = vpop.f32.mrf.mxu1  ;;  %2818 = vmatmul.mubr.bf16.gmra.mxu1 %v5540_v62  ;;  %1943 = vmatprep.mubr.bf16.mxu0 %v3469_v43 }
 0x10f   : > { %2825 = vmatprep.mubr.bf16.mxu1 %v3597_v1  ;;  %v5331_v2 = vadd.f32 %v3931_v22, %v3819_v6  ;;  %v3821_v39 = vpop.f32.mrf.mxu0 }
 0x110   : > { %v3933_v21 = vpop.f32.mrf.mxu1  ;;  %v3822_v18 = vadd.f32 %v3821_v39, %v3820_v60 }
 0x111   : > { %v3934_v40 = vadd.f32 %v3933_v21, %v3932_v29  ;;  %v3823_v1 = vpop.f32.mrf.mxu0  ;;  %v3600_v29 = vcombine.low %v2421_v16, %v2431_v37  ;;  %v3473_v21 = vcombine.high %v5281_v49, %v5284_v31 }
 0x112   : > { %v3935_v28 = vpop.f32.mrf.mxu1 }
 0x113   : > { %v5339_v26 = vadd.f32 %v3934_v40, %v3822_v18  ;;  %v3824_v14 = vpop.f32.mrf.mxu0 }
 0x114   : > { %v3936_v13 = vpop.f32.mrf.mxu1  ;;  %v3825_v46 = vadd.f32 %v3824_v14, %v3823_v1 }
 0x115   : > { %v3937_v58 = vadd.f32 %v3936_v13, %v3935_v28  ;;  %v3826_v32 = vpop.f32.mrf.mxu0  ;;  %1944 = vmatmul.mubr.bf16.gmra.mxu0 %v3468_v61 }
 0x116   : > { %v3938_v11 = vpop.f32.mrf.mxu1  ;;  %2826 = vmatmul.mubr.bf16.gmra.mxu1 %v3596_v12  ;;  %1951 = vmatprep.mubr.bf16.mxu0 %v3471_v53 }
 0x117   : > { %2833 = vmatprep.mubr.bf16.mxu1 %v3599_v24  ;;  %v5343_v51 = vadd.f32 %v3937_v58, %v3825_v46  ;;  %v3827_v38 = vpop.f32.mrf.mxu0  ;;  %v3472_v24 = vcombine.low %v5281_v49, %v5284_v31 }
 0x118   : > { %v3939_v23 = vpop.f32.mrf.mxu1  ;;  %v3828_v20 = vadd.f32 %v3827_v38, %v3826_v32 }
 0x119   : > { %v3940_v9 = vadd.f32 %v3939_v23, %v3938_v11  ;;  %v3829_v62 = vpop.f32.mrf.mxu0 }
 0x11a   : > { %v3941_v57 = vpop.f32.mrf.mxu1 }
 0x11b   : > { %v5347_v56 = vadd.f32 %v3940_v9, %v3828_v20  ;;  %v3830_v36 = vpop.f32.mrf.mxu0 }
 0x11c   : > { %v3942_v19 = vpop.f32.mrf.mxu1  ;;  %v3831_v34 = vadd.f32 %v3830_v36, %v3829_v62 }
 0x11d   : > { %v3943_v55 = vadd.f32 %v3942_v19, %v3941_v57  ;;  %v3832_v40 = vpop.f32.mrf.mxu0  ;;  %1952 = vmatmul.mubr.bf16.gmra.mxu0 %v3470_v7 }
 0x11e   : > { %v3944_v41 = vpop.f32.mrf.mxu1  ;;  %2834 = vmatmul.mubr.bf16.gmra.mxu1 %v3598_v50  ;;  %1959 = vmatprep.mubr.bf16.mxu0 %v3473_v21 }
 0x11f   : > { %2841 = vmatprep.mubr.bf16.mxu1 %v3601_v15  ;;  %v5351_v47 = vadd.f32 %v3943_v55, %v3831_v34  ;;  %v3833_v12 = vpop.f32.mrf.mxu0 }
 0x120   : > { %v3945_v22 = vpop.f32.mrf.mxu1  ;;  %v3834_v42 = vadd.f32 %v3833_v12, %v3832_v40 }
 0x121   : > { %v3946_v44 = vadd.f32 %v3945_v22, %v3944_v41  ;;  %v3835_v43 = vpop.f32.mrf.mxu0 }
 0x122   : > { %v3947_v27 = vpop.f32.mrf.mxu1 }
 0x123   : > { %v5355_v13 = vadd.f32 %v3946_v44, %v3834_v42  ;;  %v3836_v45 = vpop.f32.mrf.mxu0 }
 0x124   : > { %v3948_v59 = vpop.f32.mrf.mxu1  ;;  %v3837_v8 = vadd.f32 %v3836_v45, %v3835_v43 }
 0x125   : > { %v3949_v54 = vadd.f32 %v3948_v59, %v3947_v27  ;;  %v3838_v6 = vpop.f32.mrf.mxu0  ;;  %1960 = vmatmul.mubr.bf16.gmra.mxu0 %v3472_v24 }
 0x126   : > { %v3950_v35 = vpop.f32.mrf.mxu1  ;;  %2842 = vmatmul.mubr.bf16.gmra.mxu1 %v3600_v29 }
 0x127   : > { %v5357_v11 = vadd.f32 %v3949_v54, %v3837_v8  ;;  %v3839_v25 = vpop.f32.mrf.mxu0 }
 0x128   : > { %v3951_v28 = vpop.f32.mrf.mxu1  ;;  %v3840_v16 = vadd.f32 %v3839_v25, %v3838_v6 }
 0x129   : > { %v3952_v33 = vadd.f32 %v3951_v28, %v3950_v35  ;;  %v3841_v39 = vpop.f32.mrf.mxu0 }
 0x12a   : > { %v3953_v48 = vpop.f32.mrf.mxu1 }
 0x12b   : > { %v5359_v9 = vadd.f32 %v3952_v33, %v3840_v16  ;;  %v3842_v31 = vpop.f32.mrf.mxu0 }
 0x12c   : > { %v3954_v3 = vpop.f32.mrf.mxu1  ;;  %v3843_v57 = vadd.f32 %v3842_v31, %v3841_v39 }
 0x12d   : > { %v3955_v5 = vadd.f32 %v3954_v3, %v3953_v48  ;;  %v3844_v1 = vpop.f32.mrf.mxu0 }
 0x12e   : > { %v3956_v58 = vpop.f32.mrf.mxu1 }
 0x12f   : > { %v5361_v61 = vadd.f32 %v3955_v5, %v3843_v57  ;;  %v3845_v19 = vpop.f32.mrf.mxu0 }
 0x130   : > { %v3957_v60 = vpop.f32.mrf.mxu1  ;;  %v3846_v14 = vadd.f32 %v3845_v19, %v3844_v1 }
 0x131   : > { %v3958_v23 = vadd.f32 %v3957_v60, %v3956_v58  ;;  %v3847_v46 = vpop.f32.mrf.mxu0 }
 0x132   : > { %v3959_v37 = vpop.f32.mrf.mxu1 }
 0x133   : > { %v5363_v41 = vadd.f32 %v3958_v23, %v3846_v14  ;;  %v3848_v22 = vpop.f32.mrf.mxu0 }
 0x134   : > { %v3960_v49 = vpop.f32.mrf.mxu1  ;;  %v3849_v44 = vadd.f32 %v3848_v22, %v3847_v46 }
 0x135   : > { %v3961_v18 = vadd.f32 %v3960_v49, %v3959_v37  ;;  %v3850_v27 = vpop.f32.mrf.mxu0 }
 0x136   : > { %v3962_v50 = vpop.f32.mrf.mxu1 }
 0x137   : > { %v5365_v29 = vadd.f32 %v3961_v18, %v3849_v44  ;;  %v3851_v7 = vpop.f32.mrf.mxu0 }
 0x138   : > { %v3963_v15 = vpop.f32.mrf.mxu1  ;;  %v3852_v21 = vadd.f32 %v3851_v7, %v3850_v27 }
 0x139   : > { %v3964_v53 = vadd.f32 %v3963_v15, %v3962_v50  ;;  %v3853_v54 = vpop.f32.mrf.mxu0 }
 0x13a   : > { %v3965_v55 = vpop.f32.mrf.mxu1 }
 0x13b   : > { %v5367_v34 = vadd.f32 %v3964_v53, %v3852_v21  ;;  %v3854_v40 = vpop.f32.mrf.mxu0 }
 0x13c   : > { %v3966_v32 = vpop.f32.mrf.mxu1  ;;  %v3855_v12 = vadd.f32 %v3854_v40, %v3853_v54 }
 0x13d   : > { %v3967_v38 = vadd.f32 %v3966_v32, %v3965_v55  ;;  %v3856_v42 = vpop.f32.mrf.mxu0 }
 0x13e   : > { %v3968_v20 = vpop.f32.mrf.mxu1 }
 0x13f   : > { %v5369_v48 = vadd.f32 %v3967_v38, %v3855_v12  ;;  %v3857_v24 = vpop.f32.mrf.mxu0 }
 0x140   : > { %v3969_v62 = vpop.f32.mrf.mxu1  ;;  %v3858_v45 = vadd.f32 %v3857_v24, %v3856_v42 }
 0x141   : > { %v3970_v59 = vadd.f32 %v3969_v62, %v3968_v20  ;;  %v3859_v8 = vpop.f32.mrf.mxu0 }
 0x142   : > { %v3971_v36 = vpop.f32.mrf.mxu1 }
 0x143   : > { %v5371_v58 = vadd.f32 %v3970_v59, %v3858_v45  ;;  %v3860_v60 = vpop.f32.mrf.mxu0 }
 0x144   : > { %v3972_v35 = vpop.f32.mrf.mxu1  ;;  %v3861_v23 = vadd.f32 %v3860_v60, %v3859_v8 }
 0x145   : > { %v3973_v28 = vadd.f32 %v3972_v35, %v3971_v36  ;;  %v3862_v37 = vpop.f32.mrf.mxu0 }
 0x146   : > { %v3974_v33 = vpop.f32.mrf.mxu1 }
 0x147   : > { %v5373_v39 = vadd.f32 %v3973_v28, %v3861_v23  ;;  %v3863_v31 = vpop.f32.mrf.mxu0 }
 0x148   : > { %v3975_v43 = vpop.f32.mrf.mxu1  ;;  %v3864_v57 = vadd.f32 %v3863_v31, %v3862_v37 }
 0x149   : > { %v3976_v3 = vadd.f32 %v3975_v43, %v3974_v33  ;;  %v3865_v1 = vpop.f32.mrf.mxu0 }
 0x14a   : > { %v3977_v5 = vpop.f32.mrf.mxu1 }
 0x14b   : > { %v5375_v15 = vadd.f32 %v3976_v3, %v3864_v57  ;;  %v3866_v53 = vpop.f32.mrf.mxu0 }
 0x14c   : > { %v3978_v6 = vpop.f32.mrf.mxu1  ;;  %v3867_v55 = vadd.f32 %v3866_v53, %v3865_v1 }
 0x14d   : > { %v3979_v25 = vadd.f32 %v3978_v6, %v3977_v5  ;;  %v3868_v32 = vpop.f32.mrf.mxu0 }
 0x14e   : > { %v3980_v16 = vpop.f32.mrf.mxu1 }
 0x14f   : > { %v5377_v22 = vadd.f32 %v3979_v25, %v3867_v55  ;;  %v3869_v44 = vpop.f32.mrf.mxu0 }
 0x150   : > { %v3981_v49 = vpop.f32.mrf.mxu1  ;;  %v3870_v27 = vadd.f32 %v3869_v44, %v3868_v32 }
 0x151   : > { %v3982_v18 = vadd.f32 %v3981_v49, %v3980_v16  ;;  %v3871_v7 = vpop.f32.mrf.mxu0 }
 0x152   : > { %v3983_v50 = vpop.f32.mrf.mxu1 }
 0x153   : > { %v5379_v59 = vadd.f32 %v3982_v18, %v3870_v27  ;;  %v3872_v36 = vpop.f32.mrf.mxu0 }
 0x154   : > { %v3984_v19 = vpop.f32.mrf.mxu1  ;;  %v3873_v35 = vadd.f32 %v3872_v36, %v3871_v7 }
 0x155   : > { %v3985_v14 = vadd.f32 %v3984_v19, %v3983_v50  ;;  %v3874_v28 = vpop.f32.mrf.mxu0 }
 0x156   : > { %v3986_v46 = vpop.f32.mrf.mxu1 }
 0x157   : > { %v5381_v12 = vadd.f32 %v3985_v14, %v3873_v35  ;;  %v3875_v42 = vpop.f32.mrf.mxu0 }
 0x158   : > { %v3987_v38 = vpop.f32.mrf.mxu1  ;;  %v3876_v24 = vadd.f32 %v3875_v42, %v3874_v28 }
 0x159   : > { %v3988_v20 = vadd.f32 %v3987_v38, %v3986_v46  ;;  %v3877_v45 = vpop.f32.mrf.mxu0 }
 0x15a   : > { %v3989_v62 = vpop.f32.mrf.mxu1 }
 0x15b   : > { %v5383_v5 = vadd.f32 %v3988_v20, %v3876_v24  ;;  %v3878_v6 = vpop.f32.mrf.mxu0 }
 0x15c   : > { %v3990_v21 = vpop.f32.mrf.mxu1  ;;  %v3879_v25 = vadd.f32 %v3878_v6, %v3877_v45 }
 0x15d   : > { %v3991_v54 = vadd.f32 %v3990_v21, %v3989_v62  ;;  %v3880_v16 = vpop.f32.mrf.mxu0 }
 0x15e   : > { %v3992_v40 = vpop.f32.mrf.mxu1 }
 0x15f   : > { %v5385_v37 = vadd.f32 %v3991_v54, %v3879_v25  ;;  %v3881_v31 = vpop.f32.mrf.mxu0 }
 0x160   : > { %v3993_v33 = vpop.f32.mrf.mxu1  ;;  %v3882_v57 = vadd.f32 %v3881_v31, %v3880_v16 }
 0x161   : > { %v3994_v43 = vadd.f32 %v3993_v33, %v3992_v40  ;;  %v3883_v1 = vpop.f32.mrf.mxu0 }
 0x162   : > { %v3995_v3 = vpop.f32.mrf.mxu1 }
 0x163   : > { %v5387_v19 = vadd.f32 %v3994_v43, %v3882_v57  ;;  %v3884_v14 = vpop.f32.mrf.mxu0 }
 0x164   : > { %v3996_v8 = vpop.f32.mrf.mxu1  ;;  %v3885_v46 = vadd.f32 %v3884_v14, %v3883_v1 }
 0x165   : > { %v3997_v60 = vadd.f32 %v3996_v8, %v3995_v3  ;;  %v3886_v38 = vpop.f32.mrf.mxu0 }
 0x166   : > { %v3998_v23 = vpop.f32.mrf.mxu1 }
 0x167   : > { %v5389_v44 = vadd.f32 %v3997_v60, %v3885_v46  ;;  %v3887_v27 = vpop.f32.mrf.mxu0 }
 0x168   : > { %v3999_v49 = vpop.f32.mrf.mxu1  ;;  %v3888_v62 = vadd.f32 %v3887_v27, %v3886_v38 }
 0x169   : > { %v4000_v18 = vadd.f32 %v3999_v49, %v3998_v23  ;;  %v3889_v21 = vpop.f32.mrf.mxu0 }
 0x16a   : > { %v4001_v50 = vpop.f32.mrf.mxu1 }
 0x16b   : > { %v5391_v36 = vadd.f32 %v4000_v18, %v3888_v62  ;;  %v3890_v35 = vpop.f32.mrf.mxu0 }
 0x16c   : > { %v4002_v53 = vpop.f32.mrf.mxu1  ;;  %v3891_v40 = vadd.f32 %v3890_v35, %v3889_v21 }
 0x16d   : > { %v4003_v55 = vadd.f32 %v4002_v53, %v4001_v50  ;;  %v4020_v33 = vpop.f32.mrf.mxu0 }
 0x16e   : > { %v4132_v32 = vpop.f32.mrf.mxu1 }
 0x16f   : > { %v5393_v42 = vadd.f32 %v4003_v55, %v3891_v40  ;;  %v4021_v24 = vpop.f32.mrf.mxu0 }
 0x170   : > { %v4133_v20 = vpop.f32.mrf.mxu1  ;;  %v4022_v3 = vadd.f32 %v4021_v24, %v4020_v33 }
 0x171   : > { %v4023_v8 = vpop.f32.mrf.mxu0  ;;  %v4134_v25 = vadd.f32 %v4133_v20, %v4132_v32 }
 0x172   : > { %v4135_v7 = vpop.f32.mrf.mxu1  ;;  %v1968_v6 = vadd.f32 %v4022_v3, %v5255_v17 }
 0x173   : > { %v4024_v23 = vpop.f32.mrf.mxu0 }
 0x174   : > { %v4136_v54 = vpop.f32.mrf.mxu1  ;;  %v4025_v16 = vadd.f32 %v4024_v23, %v4023_v8  ;;  %v2850_v31 = vadd.f32 %v4134_v25, %v1968_v6 }
 0x175   : > { %v4026_v18 = vpop.f32.mrf.mxu0  ;;  %v4137_v50 = vadd.f32 %v4136_v54, %v4135_v7 }
 0x176   : > { %v4138_v28 = vpop.f32.mrf.mxu1  ;;  %v1969_v57 = vadd.f32 %v4025_v16, %v5274_v52  ;;  %v2920_v38 = vmul.f32 %v2850_v31, %v2850_v31 }
 0x177   : > { %v4027_v53 = vpop.f32.mrf.mxu0 }
 0x178   : > { %v4139_v43 = vpop.f32.mrf.mxu1  ;;  %v2851_v14 = vadd.f32 %v4137_v50, %v1969_v57  ;;  %v4028_v55 = vadd.f32 %v4027_v53, %v4026_v18 }
 0x179   : > { %v4140_v17 = vadd.f32 %v4139_v43, %v4138_v28  ;;  %v4029_v32 = vpop.f32.mrf.mxu0 }
 0x17a   : > { %v4141_v45 = vpop.f32.mrf.mxu1  ;;  %v2882_v20 = vadd.f32 %v2851_v14, %v2850_v31  ;;  %v2921_v27 = vmul.f32 %v2851_v14, %v2851_v14  ;;  %v3688_v62 = vpack.c.bf16 %v2851_v14, %v2850_v31  ;;  %v1970_v52 = vadd.f32 %v4028_v55, %v5277_v4 }
 0x17b   : > { %v4030_v21 = vpop.f32.mrf.mxu0 }
 0x17c   : > { %v4142_v60 = vpop.f32.mrf.mxu1  ;;  %v2952_v54 = vadd.f32 %v2921_v27, %v2920_v38  ;;  %3689 = vst [vmem:[%s5401_s25] sm:$0xff] %v3688_v62   ;;  %v2852_v35 = vadd.f32 %v4140_v17, %v1970_v52  ;;  %v4031_v40 = vadd.f32 %v4030_v21, %v4029_v32 }
 0x17d   : > { %v4032_v24 = vpop.f32.mrf.mxu0  ;;  %v4143_v25 = vadd.f32 %v4142_v60, %v4141_v45 }
 0x17e   : > { %v4144_v49 = vpop.f32.mrf.mxu1  ;;  %v2883_v3 = vadd.f32 %v2882_v20, %v2852_v35  ;;  %v2922_v8 = vmul.f32 %v2852_v35, %v2852_v35  ;;  %v1971_v6 = vadd.f32 %v4031_v40, %v5302_v10 }
 0x17f   : > { %v4033_v43 = vpop.f32.mrf.mxu0 }
 0x180   : > { %v4145_v1 = vpop.f32.mrf.mxu1  ;;  %v2953_v23 = vadd.f32 %v2952_v54, %v2922_v8  ;;  %v2853_v16 = vadd.f32 %v4143_v25, %v1971_v6  ;;  %v4034_v31 = vadd.f32 %v4033_v43, %v4032_v24 }
 0x181   : > { %v4146_v18 = vadd.f32 %v4145_v1, %v4144_v49  ;;  %v4035_v57 = vpop.f32.mrf.mxu0 }
 0x182   : > { %v4147_v46 = vpop.f32.mrf.mxu1  ;;  %v2884_v50 = vadd.f32 %v2883_v3, %v2853_v16  ;;  %v2923_v53 = vmul.f32 %v2853_v16, %v2853_v16  ;;  %v3693_v14 = vpack.c.bf16 %v2853_v16, %v2852_v35  ;;  %v1972_v55 = vadd.f32 %v4034_v31, %v5310_v0 }
 0x183   : > { %v4036_v17 = vpop.f32.mrf.mxu0 }
 0x184   : > { %v4148_v7 = vpop.f32.mrf.mxu1  ;;  %v2954_v32 = vadd.f32 %v2953_v23, %v2923_v53  ;;  %3765 = vst [vmem:[%s5401_s25 + $0x8] sm:$0xff] %v3693_v14   ;;  %v2854_v10 = vadd.f32 %v4146_v18, %v1972_v55  ;;  %v4037_v45 = vadd.f32 %v4036_v17, %v4035_v57 }
 0x185   : > { %v4038_v20 = vpop.f32.mrf.mxu0  ;;  %v4149_v21 = vadd.f32 %v4148_v7, %v4147_v46 }
 0x186   : > { %v4150_v33 = vpop.f32.mrf.mxu1  ;;  %v2885_v27 = vadd.f32 %v2884_v50, %v2854_v10  ;;  %v2924_v62 = vmul.f32 %v2854_v10, %v2854_v10  ;;  %v1973_v52 = vadd.f32 %v4037_v45, %v5321_v30 }
 0x187   : > { %v4039_v1 = vpop.f32.mrf.mxu0 }
 0x188   : > { %v4151_v28 = vpop.f32.mrf.mxu1  ;;  %v2955_v54 = vadd.f32 %v2954_v32, %v2924_v62  ;;  %v2855_v35 = vadd.f32 %v4149_v21, %v1973_v52  ;;  %v4040_v40 = vadd.f32 %v4039_v1, %v4038_v20 }
 0x189   : > { %v4152_v24 = vadd.f32 %v4151_v28, %v4150_v33  ;;  %v4041_v3 = vpop.f32.mrf.mxu0 }
 0x18a   : > { %v4153_v4 = vpop.f32.mrf.mxu1  ;;  %v2886_v8 = vadd.f32 %v2885_v27, %v2855_v35  ;;  %v2925_v6 = vmul.f32 %v2855_v35, %v2855_v35  ;;  %v3698_v25 = vpack.c.bf16 %v2855_v35, %v2854_v10  ;;  %v1974_v43 = vadd.f32 %v4040_v40, %v5328_v63 }
 0x18b   : > { %v4042_v16 = vpop.f32.mrf.mxu0 }
 0x18c   : > { %v4154_v38 = vpop.f32.mrf.mxu1  ;;  %v2956_v31 = vadd.f32 %v2955_v54, %v2925_v6  ;;  %3766 = vst [vmem:[%s5401_s25 + $0x10] sm:$0xff] %v3698_v25   ;;  %v2856_v30 = vadd.f32 %v4152_v24, %v1974_v43  ;;  %v4043_v46 = vadd.f32 %v4042_v16, %v4041_v3 }
 0x18d   : > { %v4044_v18 = vpop.f32.mrf.mxu0  ;;  %v4155_v14 = vadd.f32 %v4154_v38, %v4153_v4 }
 0x18e   : > { %v4156_v60 = vpop.f32.mrf.mxu1  ;;  %v2887_v57 = vadd.f32 %v2886_v8, %v2856_v30  ;;  %v2926_v50 = vmul.f32 %v2856_v30, %v2856_v30  ;;  %v1975_v53 = vadd.f32 %v4043_v46, %v5331_v2 }
 0x18f   : > { %v4045_v28 = vpop.f32.mrf.mxu0 }
 0x190   : > { %v4157_v49 = vpop.f32.mrf.mxu1  ;;  %v2957_v55 = vadd.f32 %v2956_v31, %v2926_v50  ;;  %v2857_v17 = vadd.f32 %v4155_v14, %v1975_v53  ;;  %v4046_v32 = vadd.f32 %v4045_v28, %v4044_v18 }
 0x191   : > { %v4158_v10 = vadd.f32 %v4157_v49, %v4156_v60  ;;  %v4047_v45 = vpop.f32.mrf.mxu0 }
 0x192   : > { %v4159_v0 = vpop.f32.mrf.mxu1  ;;  %v2888_v20 = vadd.f32 %v2887_v57, %v2857_v17  ;;  %v2927_v27 = vmul.f32 %v2857_v17, %v2857_v17  ;;  %v3703_v62 = vpack.c.bf16 %v2857_v17, %v2856_v30  ;;  %v1976_v52 = vadd.f32 %v4046_v32, %v5339_v26 }
 0x193   : > { %v4048_v1 = vpop.f32.mrf.mxu0 }
 0x194   : > { %v4160_v23 = vpop.f32.mrf.mxu1  ;;  %v2958_v54 = vadd.f32 %v2957_v55, %v2927_v27  ;;  %3767 = vst [vmem:[%s5401_s25 + $0x18] sm:$0xff] %v3703_v62   ;;  %v2858_v2 = vadd.f32 %v4158_v10, %v1976_v52  ;;  %v4049_v4 = vadd.f32 %v4048_v1, %v4047_v45 }
 0x195   : > { %v4050_v35 = vpop.f32.mrf.mxu0  ;;  %v4161_v8 = vadd.f32 %v4160_v23, %v4159_v0 }
 0x196   : > { %v4162_v7 = vpop.f32.mrf.mxu1  ;;  %v2889_v40 = vadd.f32 %v2888_v20, %v2858_v2  ;;  %v2928_v24 = vmul.f32 %v2858_v2, %v2858_v2  ;;  %v1977_v3 = vadd.f32 %v4049_v4, %v5343_v51 }
 0x197   : > { %v4051_v49 = vpop.f32.mrf.mxu0 }
 0x198   : > { %v4163_v33 = vpop.f32.mrf.mxu1  ;;  %v2959_v6 = vadd.f32 %v2958_v54, %v2928_v24  ;;  %v2859_v25 = vadd.f32 %v4161_v8, %v1977_v3  ;;  %v4052_v43 = vadd.f32 %v4051_v49, %v4050_v35 }
 0x199   : > { %v4164_v16 = vadd.f32 %v4163_v33, %v4162_v7  ;;  %v4053_v31 = vpop.f32.mrf.mxu0 }
 0x19a   : > { %v4165_v63 = vpop.f32.mrf.mxu1  ;;  %v2890_v30 = vadd.f32 %v2889_v40, %v2859_v25  ;;  %v2929_v46 = vmul.f32 %v2859_v25, %v2859_v25  ;;  %v3708_v18 = vpack.c.bf16 %v2859_v25, %v2858_v2  ;;  %v1978_v57 = vadd.f32 %v4052_v43, %v5347_v56 }
 0x19b   : > { %v4054_v53 = vpop.f32.mrf.mxu0 }
 0x19c   : > { %v4166_v21 = vpop.f32.mrf.mxu1  ;;  %v2960_v14 = vadd.f32 %v2959_v6, %v2929_v46  ;;  %3768 = vst [vmem:[%s5401_s25 + $0x20] sm:$0xff] %v3708_v18   ;;  %v2860_v51 = vadd.f32 %v4164_v16, %v1978_v57  ;;  %v4055_v0 = vadd.f32 %v4054_v53, %v4053_v31 }
 0x19d   : > { %v4056_v28 = vpop.f32.mrf.mxu0  ;;  %v4167_v10 = vadd.f32 %v4166_v21, %v4165_v63 }
 0x19e   : > { %v4168_v38 = vpop.f32.mrf.mxu1  ;;  %v2891_v55 = vadd.f32 %v2890_v30, %v2860_v51  ;;  %v2930_v17 = vmul.f32 %v2860_v51, %v2860_v51  ;;  %v1979_v32 = vadd.f32 %v4055_v0, %v5351_v47 }
 0x19f   : > { %v4057_v33 = vpop.f32.mrf.mxu0 }
 0x1a0   : > { %v4169_v60 = vpop.f32.mrf.mxu1  ;;  %v2961_v45 = vadd.f32 %v2960_v14, %v2930_v17  ;;  %v2861_v20 = vadd.f32 %v4167_v10, %v1979_v32  ;;  %v4058_v27 = vadd.f32 %v4057_v33, %v4056_v28 }
 0x1a1   : > { %v4170_v62 = vadd.f32 %v4169_v60, %v4168_v38  ;;  %v4059_v52 = vpop.f32.mrf.mxu0 }
 0x1a2   : > { %v4171_v26 = vpop.f32.mrf.mxu1  ;;  %v2892_v1 = vadd.f32 %v2891_v55, %v2861_v20  ;;  %v2931_v54 = vmul.f32 %v2861_v20, %v2861_v20  ;;  %v3713_v2 = vpack.c.bf16 %v2861_v20, %v2860_v51  ;;  %v1980_v4 = vadd.f32 %v4058_v27, %v5355_v13 }
 0x1a3   : > { %v4060_v40 = vpop.f32.mrf.mxu0 }
 0x1a4   : > { %v4172_v50 = vpop.f32.mrf.mxu1  ;;  %v2962_v24 = vadd.f32 %v2961_v45, %v2931_v54  ;;  %3769 = vst [vmem:[%s5401_s25 + $0x28] sm:$0xff] %v3713_v2   ;;  %v2862_v47 = vadd.f32 %v4170_v62, %v1980_v4  ;;  %v4061_v63 = vadd.f32 %v4060_v40, %v4059_v52 }
 0x1a5   : > { %v4062_v3 = vpop.f32.mrf.mxu0  ;;  %v4173_v25 = vadd.f32 %v4172_v50, %v4171_v26 }
 0x1a6   : > { %v4174_v23 = vpop.f32.mrf.mxu1  ;;  %v2893_v8 = vadd.f32 %v2892_v1, %v2862_v47  ;;  %v2932_v49 = vmul.f32 %v2862_v47, %v2862_v47  ;;  %v1981_v6 = vadd.f32 %v4061_v63, %v5357_v11 }
 0x1a7   : > { %v4063_v60 = vpop.f32.mrf.mxu0 }
 0x1a8   : > { %v4175_v7 = vpop.f32.mrf.mxu1  ;;  %v2963_v43 = vadd.f32 %v2962_v24, %v2932_v49  ;;  %v2863_v16 = vadd.f32 %v4173_v25, %v1981_v6  ;;  %v4064_v31 = vadd.f32 %v4063_v60, %v4062_v3 }
 0x1a9   : > { %v4176_v30 = vadd.f32 %v4175_v7, %v4174_v23  ;;  %v4065_v46 = vpop.f32.mrf.mxu0 }
 0x1aa   : > { %v4177_v56 = vpop.f32.mrf.mxu1  ;;  %v2894_v18 = vadd.f32 %v2893_v8, %v2863_v16  ;;  %v2933_v57 = vmul.f32 %v2863_v16, %v2863_v16  ;;  %v3718_v53 = vpack.c.bf16 %v2863_v16, %v2862_v47  ;;  %v1982_v14 = vadd.f32 %v4064_v31, %v5359_v9 }
 0x1ab   : > { %v4066_v0 = vpop.f32.mrf.mxu0 }
 0x1ac   : > { %v4178_v35 = vpop.f32.mrf.mxu1  ;;  %v2964_v28 = vadd.f32 %v2963_v43, %v2933_v57  ;;  %3770 = vst [vmem:[%s5401_s25 + $0x30] sm:$0xff] %v3718_v53   ;;  %v2864_v11 = vadd.f32 %v4176_v30, %v1982_v14  ;;  %v4067_v26 = vadd.f32 %v4066_v0, %v4065_v46 }
 0x1ad   : > { %v4068_v55 = vpop.f32.mrf.mxu0  ;;  %v4179_v33 = vadd.f32 %v4178_v35, %v4177_v56 }
 0x1ae   : > { %v4180_v21 = vpop.f32.mrf.mxu1  ;;  %v2895_v17 = vadd.f32 %v2894_v18, %v2864_v11  ;;  %v2934_v32 = vmul.f32 %v2864_v11, %v2864_v11  ;;  %v1983_v10 = vadd.f32 %v4067_v26, %v5361_v61 }
 0x1af   : > { %v4069_v7 = vpop.f32.mrf.mxu0 }
 0x1b0   : > { %v4181_v38 = vpop.f32.mrf.mxu1  ;;  %v2965_v45 = vadd.f32 %v2964_v28, %v2934_v32  ;;  %v2865_v20 = vadd.f32 %v4179_v33, %v1983_v10  ;;  %v4070_v27 = vadd.f32 %v4069_v7, %v4068_v55 }
 0x1b1   : > { %v4182_v62 = vadd.f32 %v4181_v38, %v4180_v21  ;;  %v4071_v52 = vpop.f32.mrf.mxu0 }
 0x1b2   : > { %v4183_v13 = vpop.f32.mrf.mxu1  ;;  %v2896_v1 = vadd.f32 %v2895_v17, %v2865_v20  ;;  %v2935_v54 = vmul.f32 %v2865_v20, %v2865_v20  ;;  %v3723_v2 = vpack.c.bf16 %v2865_v20, %v2864_v11  ;;  %v1984_v4 = vadd.f32 %v4070_v27, %v5363_v41 }
 0x1b3   : > { %v4072_v24 = vpop.f32.mrf.mxu0 }
 0x1b4   : > { %v4184_v51 = vpop.f32.mrf.mxu1  ;;  %v2966_v47 = vadd.f32 %v2965_v45, %v2935_v54  ;;  %3771 = vst [vmem:[%s5401_s25 + $0x38] sm:$0xff] %v3723_v2   ;;  %v2866_v61 = vadd.f32 %v4182_v62, %v1984_v4  ;;  %v4073_v56 = vadd.f32 %v4072_v24, %v4071_v52 }
 0x1b5   : > { %v4074_v63 = vpop.f32.mrf.mxu0  ;;  %v4185_v6 = vadd.f32 %v4184_v51, %v4183_v13 }
 0x1b6   : > { %v4186_v50 = vpop.f32.mrf.mxu1  ;;  %v2897_v3 = vadd.f32 %v2896_v1, %v2866_v61  ;;  %v2936_v8 = vmul.f32 %v2866_v61, %v2866_v61  ;;  %v1985_v49 = vadd.f32 %v4073_v56, %v5365_v29 }
 0x1b7   : > { %v4075_v25 = vpop.f32.mrf.mxu0 }
 0x1b8   : > { %v4187_v23 = vpop.f32.mrf.mxu1  ;;  %v2967_v38 = vadd.f32 %v2966_v47, %v2936_v8  ;;  %v2867_v60 = vadd.f32 %v4185_v6, %v1985_v49  ;;  %v4076_v43 = vadd.f32 %v4075_v25, %v4074_v63 }
 0x1b9   : > { %v4188_v16 = vadd.f32 %v4187_v23, %v4186_v50  ;;  %v4077_v31 = vpop.f32.mrf.mxu0 }
 0x1ba   : > { %v4189_v9 = vpop.f32.mrf.mxu1  ;;  %v2898_v30 = vadd.f32 %v2897_v3, %v2867_v60  ;;  %v2937_v46 = vmul.f32 %v2867_v60, %v2867_v60  ;;  %v3728_v18 = vpack.c.bf16 %v2867_v60, %v2866_v61  ;;  %v1986_v57 = vadd.f32 %v4076_v43, %v5367_v34 }
 0x1bb   : > { %v4078_v14 = vpop.f32.mrf.mxu0 }
 0x1bc   : > { %v4190_v40 = vpop.f32.mrf.mxu1  ;;  %v2968_v0 = vadd.f32 %v2967_v38, %v2937_v46  ;;  %3772 = vst [vmem:[%s5401_s25 + $0x40] sm:$0xff] %v3728_v18   ;;  %v2868_v29 = vadd.f32 %v4188_v16, %v1986_v57  ;;  %v4079_v13 = vadd.f32 %v4078_v14, %v4077_v31 }
 0x1bd   : > { %v4080_v28 = vpop.f32.mrf.mxu0  ;;  %v4191_v17 = vadd.f32 %v4190_v40, %v4189_v9 }
 0x1be   : > { %v4192_v35 = vpop.f32.mrf.mxu1  ;;  %v2899_v11 = vadd.f32 %v2898_v30, %v2868_v29  ;;  %v2938_v26 = vmul.f32 %v2868_v29, %v2868_v29  ;;  %v1987_v55 = vadd.f32 %v4079_v13, %v5369_v48 }
 0x1bf   : > { %v4081_v32 = vpop.f32.mrf.mxu0 }
 0x1c0   : > { %v4193_v21 = vpop.f32.mrf.mxu1  ;;  %v2969_v10 = vadd.f32 %v2968_v0, %v2938_v26  ;;  %v2869_v33 = vadd.f32 %v4191_v17, %v1987_v55  ;;  %v4082_v23 = vadd.f32 %v4081_v32, %v4080_v28 }
 0x1c1   : > { %v4194_v7 = vadd.f32 %v4193_v21, %v4192_v35  ;;  %v4083_v45 = vpop.f32.mrf.mxu0 }
 0x1c2   : > { %v4195_v41 = vpop.f32.mrf.mxu1  ;;  %v2900_v20 = vadd.f32 %v2899_v11, %v2869_v33  ;;  %v2939_v27 = vmul.f32 %v2869_v33, %v2869_v33  ;;  %v3733_v62 = vpack.c.bf16 %v2869_v33, %v2868_v29  ;;  %v1988_v52 = vadd.f32 %v4082_v23, %v5371_v58 }
 0x1c3   : > { %v4084_v54 = vpop.f32.mrf.mxu0 }
 0x1c4   : > { %v4196_v53 = vpop.f32.mrf.mxu1  ;;  %v2970_v2 = vadd.f32 %v2969_v10, %v2939_v27  ;;  %3773 = vst [vmem:[%s5401_s25 + $0x48] sm:$0xff] %v3733_v62   ;;  %v2870_v48 = vadd.f32 %v4194_v7, %v1988_v52  ;;  %v4085_v9 = vadd.f32 %v4084_v54, %v4083_v45 }
 0x1c5   : > { %v4086_v40 = vpop.f32.mrf.mxu0  ;;  %v4197_v56 = vadd.f32 %v4196_v53, %v4195_v41 }
 0x1c6   : > { %v4198_v51 = vpop.f32.mrf.mxu1  ;;  %v2901_v24 = vadd.f32 %v2900_v20, %v2870_v48  ;;  %v2940_v47 = vmul.f32 %v2870_v48, %v2870_v48  ;;  %v1989_v61 = vadd.f32 %v4085_v9, %v5373_v39 }
 0x1c7   : > { %v4087_v63 = vpop.f32.mrf.mxu0 }
 0x1c8   : > { %v4199_v50 = vpop.f32.mrf.mxu1  ;;  %v2971_v3 = vadd.f32 %v2970_v2, %v2940_v47  ;;  %v2871_v8 = vadd.f32 %v4197_v56, %v1989_v61  ;;  %v4088_v49 = vadd.f32 %v4087_v63, %v4086_v40 }
 0x1c9   : > { %v4200_v6 = vadd.f32 %v4199_v50, %v4198_v51  ;;  %v4089_v21 = vpop.f32.mrf.mxu0 }
 0x1ca   : > { %v4201_v34 = vpop.f32.mrf.mxu1  ;;  %v2902_v25 = vadd.f32 %v2901_v24, %v2871_v8  ;;  %v2941_v38 = vmul.f32 %v2871_v8, %v2871_v8  ;;  %v3738_v60 = vpack.c.bf16 %v2871_v8, %v2870_v48  ;;  %v1990_v43 = vadd.f32 %v4088_v49, %v5375_v15 }
 0x1cb   : > { %v4090_v31 = vpop.f32.mrf.mxu0 }
 0x1cc   : > { %v4202_v1 = vpop.f32.mrf.mxu1  ;;  %v2972_v30 = vadd.f32 %v2971_v3, %v2941_v38  ;;  %3774 = vst [vmem:[%s5401_s25 + $0x50] sm:$0xff] %v3738_v60   ;;  %v2872_v39 = vadd.f32 %v4200_v6, %v1990_v43  ;;  %v4091_v41 = vadd.f32 %v4090_v31, %v4089_v21 }
 0x1cd   : > { %v4092_v18 = vpop.f32.mrf.mxu0  ;;  %v4203_v0 = vadd.f32 %v4202_v1, %v4201_v34 }
 0x1ce   : > { %v4204_v4 = vpop.f32.mrf.mxu1  ;;  %v2903_v57 = vadd.f32 %v2902_v25, %v2872_v39  ;;  %v2942_v53 = vmul.f32 %v2872_v39, %v2872_v39  ;;  %v1991_v14 = vadd.f32 %v4091_v41, %v5377_v22 }
 0x1cf   : > { %v4093_v13 = vpop.f32.mrf.mxu0 }
 0x1d0   : > { %v4205_v35 = vpop.f32.mrf.mxu1  ;;  %v2973_v51 = vadd.f32 %v2972_v30, %v2942_v53  ;;  %v2873_v28 = vadd.f32 %v4203_v0, %v1991_v14  ;;  %v4094_v11 = vadd.f32 %v4093_v13, %v4092_v18 }
 0x1d1   : > { %v4206_v26 = vadd.f32 %v4205_v35, %v4204_v4  ;;  %v4095_v55 = vpop.f32.mrf.mxu0 }
 0x1d2   : > { %v4207_v58 = vpop.f32.mrf.mxu1  ;;  %v2904_v17 = vadd.f32 %v2903_v57, %v2873_v28  ;;  %v2943_v50 = vmul.f32 %v2873_v28, %v2873_v28  ;;  %v3743_v32 = vpack.c.bf16 %v2873_v28, %v2872_v39  ;;  %v1992_v10 = vadd.f32 %v4094_v11, %v5379_v59 }
 0x1d3   : > { %v4096_v23 = vpop.f32.mrf.mxu0 }
 0x1d4   : > { %v4208_v16 = vpop.f32.mrf.mxu1  ;;  %v2974_v7 = vadd.f32 %v2973_v51, %v2943_v50  ;;  %3775 = vst [vmem:[%s5401_s25 + $0x58] sm:$0xff] %v3743_v32   ;;  %v2874_v22 = vadd.f32 %v4206_v26, %v1992_v10  ;;  %v4097_v34 = vadd.f32 %v4096_v23, %v4095_v55 }
 0x1d5   : > { %v4098_v20 = vpop.f32.mrf.mxu0  ;;  %v4209_v1 = vadd.f32 %v4208_v16, %v4207_v58 }
 0x1d6   : > { %v4210_v46 = vpop.f32.mrf.mxu1  ;;  %v2905_v27 = vadd.f32 %v2904_v17, %v2874_v22  ;;  %v2944_v62 = vmul.f32 %v2874_v22, %v2874_v22  ;;  %v1993_v52 = vadd.f32 %v4097_v34, %v5381_v12 }
 0x1d7   : > { %v4099_v2 = vpop.f32.mrf.mxu0 }
 0x1d8   : > { %v4211_v29 = vpop.f32.mrf.mxu1  ;;  %v2975_v48 = vadd.f32 %v2974_v7, %v2944_v62  ;;  %v2875_v9 = vadd.f32 %v4209_v1, %v1993_v52  ;;  %v4100_v4 = vadd.f32 %v4099_v2, %v4098_v20 }
 0x1d9   : > { %v4212_v40 = vadd.f32 %v4211_v29, %v4210_v46  ;;  %v4101_v24 = vpop.f32.mrf.mxu0 }
 0x1da   : > { %v4213_v15 = vpop.f32.mrf.mxu1  ;;  %v2906_v47 = vadd.f32 %v2905_v27, %v2875_v9  ;;  %v2945_v61 = vmul.f32 %v2875_v9, %v2875_v9  ;;  %v3748_v56 = vpack.c.bf16 %v2875_v9, %v2874_v22  ;;  %v1994_v35 = vadd.f32 %v4100_v4, %v5383_v5 }
 0x1db   : > { %v4102_v63 = vpop.f32.mrf.mxu0 }
 0x1dc   : > { %v4214_v33 = vpop.f32.mrf.mxu1  ;;  %v2976_v8 = vadd.f32 %v2975_v48, %v2945_v61  ;;  %3776 = vst [vmem:[%s5401_s25 + $0x60] sm:$0xff] %v3748_v56   ;;  %v2876_v12 = vadd.f32 %v4212_v40, %v1994_v35  ;;  %v4103_v49 = vadd.f32 %v4102_v63, %v4101_v24 }
 0x1dd   : > { %v4104_v58 = vpop.f32.mrf.mxu0  ;;  %v4215_v38 = vadd.f32 %v4214_v33, %v4213_v15 }
 0x1de   : > { %v4216_v45 = vpop.f32.mrf.mxu1  ;;  %v2907_v6 = vadd.f32 %v2906_v47, %v2876_v12  ;;  %v2946_v21 = vmul.f32 %v2876_v12, %v2876_v12  ;;  %v1995_v25 = vadd.f32 %v4103_v49, %v5385_v37 }
 0x1df   : > { %v4105_v60 = vpop.f32.mrf.mxu0 }
 0x1e0   : > { %v4217_v54 = vpop.f32.mrf.mxu1  ;;  %v2977_v16 = vadd.f32 %v2976_v8, %v2946_v21  ;;  %v2877_v31 = vadd.f32 %v4215_v38, %v1995_v25  ;;  %v4106_v30 = vadd.f32 %v4105_v60, %v4104_v58 }
 0x1e1   : > { %v4218_v39 = vadd.f32 %v4217_v54, %v4216_v45  ;;  %v4107_v5 = vpop.f32.mrf.mxu0 }
 0x1e2   : > { %v4219_v59 = vpop.f32.mrf.mxu1  ;;  %v2908_v41 = vadd.f32 %v2907_v6, %v2877_v31  ;;  %v2947_v46 = vmul.f32 %v2877_v31, %v2877_v31  ;;  %v3753_v18 = vpack.c.bf16 %v2877_v31, %v2876_v12  ;;  %v1996_v57 = vadd.f32 %v4106_v30, %v5387_v19 }
 0x1e3   : > { %v4108_v53 = vpop.f32.mrf.mxu0 }
 0x1e4   : > { %v4220_v3 = vpop.f32.mrf.mxu1  ;;  %v2978_v0 = vadd.f32 %v2977_v16, %v2947_v46  ;;  %3777 = vst [vmem:[%s5401_s25 + $0x68] sm:$0xff] %v3753_v18   ;;  %v2878_v29 = vadd.f32 %v4218_v39, %v1996_v57  ;;  %v4109_v37 = vadd.f32 %v4108_v53, %v4107_v5 }
 0x1e5   : > { %v4110_v13 = vpop.f32.mrf.mxu0  ;;  %v4221_v15 = vadd.f32 %v4220_v3, %v4219_v59 }
 0x1e6   : > { %v4222_v43 = vpop.f32.mrf.mxu1  ;;  %v2909_v51 = vadd.f32 %v2908_v41, %v2878_v29  ;;  %v2948_v28 = vmul.f32 %v2878_v29, %v2878_v29  ;;  %v1997_v11 = vadd.f32 %v4109_v37, %v5389_v44 }
 0x1e7   : > { %v4111_v26 = vpop.f32.mrf.mxu0 }
 0x1e8   : > { %v4223_v14 = vpop.f32.mrf.mxu1  ;;  %v2979_v17 = vadd.f32 %v2978_v0, %v2948_v28  ;;  %v2879_v50 = vadd.f32 %v4221_v15, %v1997_v11  ;;  %v4112_v32 = vadd.f32 %v4111_v26, %v4110_v13 }
 0x1e9   : > { %v4224_v10 = vadd.f32 %v4223_v14, %v4222_v43  ;;  %v4113_v19 = vpop.f32.mrf.mxu0 }
 0x1ea   : > { %v4225_v55 = vpop.f32.mrf.mxu1  ;;  %v2910_v33 = vadd.f32 %v2909_v51, %v2879_v50  ;;  %v2949_v23 = vmul.f32 %v2879_v50, %v2879_v50  ;;  %v3758_v7 = vpack.c.bf16 %v2879_v50, %v2878_v29  ;;  %v1998_v22 = vadd.f32 %v4112_v32, %v5391_v36 }
 0x1eb   : > { %v4114_v34 = vpop.f32.mrf.mxu0 }
 0x1ec   : > { %v4226_v45 = vpop.f32.mrf.mxu1  ;;  %v2980_v20 = vadd.f32 %v2979_v17, %v2949_v23  ;;  %3778 = vst [vmem:[%s5401_s25 + $0x70] sm:$0xff] %v3758_v7   ;;  %v2880_v44 = vadd.f32 %v4224_v10, %v1998_v22  ;;  %v4115_v27 = vadd.f32 %v4114_v34, %v4113_v19 }
 0x1ed   : > { %v4227_v54 = vadd.f32 %v4226_v45, %v4225_v55 }
 0x1ee   : > { %v2911_v62 = vadd.f32 %v2910_v33, %v2880_v44  ;;  %v2950_v52 = vmul.f32 %v2880_v44, %v2880_v44  ;;  %v1999_v1 = vadd.f32 %v4115_v27, %v5393_v42 }
 0x1f0   : > { %v2981_v2 = vadd.f32 %v2980_v20, %v2950_v52  ;;  %v2881_v48 = vadd.f32 %v4227_v54, %v1999_v1 }
 0x1f2   : > { %v2912_v9 = vadd.f32 %v2911_v62, %v2881_v48  ;;  %v2951_v4 = vmul.f32 %v2881_v48, %v2881_v48  ;;  %v3763_v59 = vpack.c.bf16 %v2881_v48, %v2880_v44 }
 0x1f4   : > { %v2913_v40 = vrot.slane %v2912_v9, 4  ;;  %v2982_v36 = vadd.f32 %v2981_v2, %v2951_v4  ;;  %3779 = vst [vmem:[%s5401_s25 + $0x78] sm:$0xff] %v3763_v59  }
 0x1f6   : > { %v2914_v24 = vadd.f32 %v2913_v40, %v2912_v9  ;;  %v2983_v47 = vrot.slane %v2982_v36, 4 }
 0x1f8   : > { %v2915_v61 = vrot.slane %v2914_v24, 2  ;;  %v2984_v56 = vadd.f32 %v2983_v47, %v2982_v36 }
 0x1fa   : > { %v2916_v35 = vadd.f32 %v2915_v61, %v2914_v24  ;;  %v2985_v63 = vrot.slane %v2984_v56, 2 }
 0x1fc   : > { %v2917_v3 = vrot.slane %v2916_v35, 1  ;;  %v2986_v8 = vadd.f32 %v2985_v63, %v2984_v56 }
 0x1fe   : > { %v2987_v42 = vrot.slane %v2986_v8, 1  ;;  %v2918_v12 = vadd.f32 %v2917_v3, %v2916_v35 }
 0x200   : > { %v2988_v49 = vadd.f32 %v2987_v42, %v2986_v8 }
 0x202   : > { %v3151_v58 = vsel %vm3150_vm3, %v2918_v12, %v2988_v49 }
 0x203   : > { %v3153_v6 = vsel %vm3152_vm4, %v3151_v58, 0.0 }
 0x204   : > { %3154 = vst [vmem:[%s181_s30] sm:$0xff] %v3153_v6 }
 0x205 PF: > { %s14_s12 = sadd.s32 1, %s4349_s12  }
 0x206   : > { %p11_p4 = scmp.ge.s32.totalorder %s14_s12, 4  }
 0x208   :  { %13 = sbr.rel (!%p11_p4) target bundleno = 1 (0x1), region = 74 }

// kernel: discriminator_forward.6
= control target key start
LH: loop header
LB: loop body
LE: loop exit
PB: predicated region body
PF: predicated region fallthrough
CT: control target
= control target key end

     0   :  { %s3684_s12 = smov 0   ;;  %s4797_s0 = inlined_call_operand.vmem [shape: bf16[2,64,2048], index: 0, kind: input, shape index: {}]   ;;  %s4798_s1 = inlined_call_operand.vmem [shape: bf16[1,1,2048,256], index: 1, kind: input, shape index: {}]   ;;  %s4799_s2 = inlined_call_operand.vmem [shape: bf16[2,64,256], index: 2, kind: output, shape index: {0}]   ;;  %s4800_s3 = inlined_call_operand.vmem [shape: f32[2,8,256], index: 3, kind: output, shape index: {1}]  }
   0x1 LB: > { %s2912_s13 = sadd.s32 4294967295, %s3662_s12   ;;  %p2916_p0 = scmp.ge.s32.totalorder %s3662_s12, 1  ;;  %s3662_s12 = sphi %s3684_s12, %s14_s12  }
   0x2   : > { %p140_p1 = scmp.lt.s32.totalorder %s3662_s12, 3 }
   0x4   : > { %p141_p2 = pnand %p2916_p0, %p140_p1 }
   0x6   : > { %144 = sbr.rel (%p141_p2) target bundleno = 514 (0x202), region = 28 }
   0xb   : > { %v3272_v0 = vld [vmem:[%s4798_s1 + $0x74] ss:$8 sps:$4 sm:$0xff]   ;;  %v3276_v2 = vld [vmem:[%s4798_s1 + $0x70] ss:$8 sps:$4 sm:$0xff]   ;;  %v3278_v4 = vld [vmem:[%s4798_s1 + $0x64] ss:$8 sps:$4 sm:$0xff]  }
   0xc   : > { %v3274_v1 = vld [vmem:[%s4798_s1 + $0x174] ss:$8 sps:$4 sm:$0xff]   ;;  %2104 = vmatprep.subr.bf16.mxu0 %v3272_v0  ;;  %v3277_v3 = vld [vmem:[%s4798_s1 + $0x170] ss:$8 sps:$4 sm:$0xff]   ;;  %v3280_v5 = vld [vmem:[%s4798_s1 + $0x164] ss:$8 sps:$4 sm:$0xff]  }
   0xd   : > { %2177 = vmatprep.subr.bf16.mxu1 %v3274_v1  ;;  %2105 = vmatpush1.bf16.msra.mxu0 %v3276_v2  ;;  %v3282_v6 = vld [vmem:[%s4798_s1 + $0x60] ss:$8 sps:$4 sm:$0xff]   ;;  %v3284_v8 = vld [vmem:[%s4798_s1 + $0x54] ss:$8 sps:$4 sm:$0xff]   ;;  %v3288_v10 = vld [vmem:[%s4798_s1 + $0x50] ss:$8 sps:$4 sm:$0xff]  }
   0xe   : > { %2178 = vmatpush1.bf16.msra.mxu1 %v3277_v3  ;;  %2106 = vmatprep.subr.bf16.mxu0 %v3278_v4  ;;  %v3283_v7 = vld [vmem:[%s4798_s1 + $0x160] ss:$8 sps:$4 sm:$0xff]   ;;  %v3286_v9 = vld [vmem:[%s4798_s1 + $0x154] ss:$8 sps:$4 sm:$0xff]   ;;  %v3289_v11 = vld [vmem:[%s4798_s1 + $0x150] ss:$8 sps:$4 sm:$0xff]  }
   0xf   : > { %2179 = vmatprep.subr.bf16.mxu1 %v3280_v5  ;;  %v3290_v12 = vld [vmem:[%s4798_s1 + $0x44] ss:$8 sps:$4 sm:$0xff]   ;;  %v3294_v14 = vld [vmem:[%s4798_s1 + $0x40] ss:$8 sps:$4 sm:$0xff]   ;;  %v3296_v16 = vld [vmem:[%s4798_s1 + $0x34] ss:$8 sps:$4 sm:$0xff]  }
  0x10   : > { %v3292_v13 = vld [vmem:[%s4798_s1 + $0x144] ss:$8 sps:$4 sm:$0xff]   ;;  %v3295_v15 = vld [vmem:[%s4798_s1 + $0x140] ss:$8 sps:$4 sm:$0xff]   ;;  %v3298_v17 = vld [vmem:[%s4798_s1 + $0x134] ss:$8 sps:$4 sm:$0xff]  }
  0x11   : > { %2107 = vmatpush1.bf16.msra.mxu0 %v3282_v6  ;;  %v3300_v18 = vld [vmem:[%s4798_s1 + $0x30] ss:$8 sps:$4 sm:$0xff]   ;;  %v3302_v20 = vld [vmem:[%s4798_s1 + $0x24] ss:$8 sps:$4 sm:$0xff]   ;;  %v3306_v22 = vld [vmem:[%s4798_s1 + $0x20] ss:$8 sps:$4 sm:$0xff]  }
  0x12   : > { %2180 = vmatpush1.bf16.msra.mxu1 %v3283_v7  ;;  %2108 = vmatprep.subr.bf16.mxu0 %v3284_v8  ;;  %v3301_v19 = vld [vmem:[%s4798_s1 + $0x130] ss:$8 sps:$4 sm:$0xff]   ;;  %v3304_v21 = vld [vmem:[%s4798_s1 + $0x124] ss:$8 sps:$4 sm:$0xff]   ;;  %v3307_v23 = vld [vmem:[%s4798_s1 + $0x120] ss:$8 sps:$4 sm:$0xff]  }
  0x13   : > { %2181 = vmatprep.subr.bf16.mxu1 %v3286_v9  ;;  %v3308_v24 = vld [vmem:[%s4798_s1 + $0x14] ss:$8 sps:$4 sm:$0xff]   ;;  %v3312_v26 = vld [vmem:[%s4798_s1 + $0x10] ss:$8 sps:$4 sm:$0xff]   ;;  %v3314_v28 = vld [vmem:[%s4798_s1 + $0x4] ss:$8 sps:$4 sm:$0xff]  }
  0x14   : > { %v3310_v25 = vld [vmem:[%s4798_s1 + $0x114] ss:$8 sps:$4 sm:$0xff]   ;;  %v3313_v27 = vld [vmem:[%s4798_s1 + $0x110] ss:$8 sps:$4 sm:$0xff]   ;;  %v3316_v29 = vld [vmem:[%s4798_s1 + $0x104] ss:$8 sps:$4 sm:$0xff]  }
  0x15   : > { %2109 = vmatpush1.bf16.msra.mxu0 %v3288_v10  ;;  %v3318_v30 = vld [vmem:[%s4798_s1] ss:$8 sps:$4 sm:$0xff]   ;;  %v3320_v32 = vld [vmem:[%s4798_s1 + $0xf4] ss:$8 sps:$4 sm:$0xff]   ;;  %p169_p3 = scmp.lt.s32.totalorder %s2912_s13, 1  ;;  %vm2816_vm0 = vcmask 1040384  }
  0x16   : > { %2182 = vmatpush1.bf16.msra.mxu1 %v3289_v11  ;;  %2110 = vmatprep.subr.bf16.mxu0 %v3290_v12  ;;  %v3319_v31 = vld [vmem:[%s4798_s1 + $0x100] ss:$8 sps:$4 sm:$0xff]   ;;  %v3322_v33 = vld [vmem:[%s4798_s1 + $0x1f4] ss:$8 sps:$4 sm:$0xff]   ;;  %v3324_v34 = vld [vmem:[%s4798_s1 + $0xf0] ss:$8 sps:$4 sm:$0xff]  }
  0x17   : > { %2183 = vmatprep.subr.bf16.mxu1 %v3292_v13  ;;  %v3325_v35 = vld [vmem:[%s4798_s1 + $0x1f0] ss:$8 sps:$4 sm:$0xff]   ;;  %v3326_v36 = vld [vmem:[%s4798_s1 + $0xe4] ss:$8 sps:$4 sm:$0xff]   ;;  %s4848_s13 = smov (!%p169_p3, %s2912_s13), 1  ;;  %vm2819_vm1 = vcmask 1041408  }
  0x18   : > { %v3328_v37 = vld [vmem:[%s4798_s1 + $0x1e4] ss:$8 sps:$4 sm:$0xff]   ;;  %v3330_v38 = vld [vmem:[%s4798_s1 + $0xe0] ss:$8 sps:$4 sm:$0xff]   ;;  %v3332_v40 = vld [vmem:[%s4798_s1 + $0xd4] ss:$8 sps:$4 sm:$0xff]  }
  0x19   : > { %2111 = vmatpush1.bf16.msra.mxu0 %v3294_v14  ;;  %v3331_v39 = vld [vmem:[%s4798_s1 + $0x1e0] ss:$8 sps:$4 sm:$0xff]   ;;  %s3253_s21 = sshll.u32 %s4848_s13, 9  ;;  %v3334_v41 = vld [vmem:[%s4798_s1 + $0x1d4] ss:$8 sps:$4 sm:$0xff]   ;;  %s3255_s25 = sshll.u32 %s4848_s13, 4 }
  0x1a   : > { %2184 = vmatpush1.bf16.msra.mxu1 %v3295_v15  ;;  %2112 = vmatprep.subr.bf16.mxu0 %v3296_v16  ;;  %v3336_v42 = vld [vmem:[%s4798_s1 + $0xd0] ss:$8 sps:$4 sm:$0xff]   ;;  %s3834_s30 = scalar_lea.vmem %s4797_s0, %s3253_s21  ;;  %v3338_v44 = vld [vmem:[%s4798_s1 + $0xc4] ss:$8 sps:$4 sm:$0xff]   ;;  %v3342_v46 = vld [vmem:[%s4798_s1 + $0xc0] ss:$8 sps:$4 sm:$0xff]   ;;  %s183_s28 = scalar_lea.vmem %s4800_s3, %s3255_s25 }
  0x1b   : > { %2185 = vmatprep.subr.bf16.mxu1 %v3298_v17  ;;  %v3337_v43 = vld [vmem:[%s4798_s1 + $0x1d0] ss:$8 sps:$4 sm:$0xff]   ;;  %v3340_v45 = vld [vmem:[%s4798_s1 + $0x1c4] ss:$8 sps:$4 sm:$0xff]   ;;  %v3343_v47 = vld [vmem:[%s4798_s1 + $0x1c0] ss:$8 sps:$4 sm:$0xff]  }
  0x1c   : > { %v184_v48 = vld [vmem:[%s3834_s30] sm:$0xff]  ;;  %v185_v50 = vld [vmem:[%s3834_s30 + $0x8] sm:$0xff]  ;;  %v3344_v52 = vld [vmem:[%s4798_s1 + $0xb4] ss:$8 sps:$4 sm:$0xff]  }
  0x1d   : > { %2113 = vmatpush1.bf16.msra.mxu0 %v3300_v18  ;;  %v192_v49 = vld [vmem:[%s3834_s30 + $0x40] sm:$0xff]  ;;  %v193_v51 = vld [vmem:[%s3834_s30 + $0x48] sm:$0xff]  ;;  %v3346_v54 = vld [vmem:[%s4798_s1 + $0x1b4] ss:$8 sps:$4 sm:$0xff]  }
  0x1e   : > { %2186 = vmatpush1.bf16.msra.mxu1 %v3301_v19  ;;  %2114 = vmatprep.subr.bf16.mxu0 %v3302_v20  ;;  %v2924_v53 = vcombine.high %v184_v48, %v192_v49  ;;  %v2926_v55 = vcombine.high %v185_v50, %v193_v51  ;;  %v3348_v56 = vld [vmem:[%s4798_s1 + $0xb0] ss:$8 sps:$4 sm:$0xff]   ;;  %v3350_v58 = vld [vmem:[%s4798_s1 + $0xa4] ss:$8 sps:$4 sm:$0xff]   ;;  %v3354_v60 = vld [vmem:[%s4798_s1 + $0xa0] ss:$8 sps:$4 sm:$0xff]   ;;  %v2923_v8 = vcombine.low %v184_v48, %v192_v49 }
  0x1f   : > { %2187 = vmatprep.subr.bf16.mxu1 %v3304_v21  ;;  %v3349_v57 = vld [vmem:[%s4798_s1 + $0x1b0] ss:$8 sps:$4 sm:$0xff]   ;;  %v3352_v59 = vld [vmem:[%s4798_s1 + $0x1a4] ss:$8 sps:$4 sm:$0xff]   ;;  %v3355_v61 = vld [vmem:[%s4798_s1 + $0x1a0] ss:$8 sps:$4 sm:$0xff]   ;;  %v2925_v9 = vcombine.low %v185_v50, %v193_v51 }
  0x20   : > { %2136 = vmatprep.mubr.bf16.mxu0 %v2924_v53  ;;  %2209 = vmatprep.mubr.bf16.mxu1 %v2926_v55  ;;  %v3356_v62 = vld [vmem:[%s4798_s1 + $0x94] ss:$8 sps:$4 sm:$0xff]   ;;  %v3360_v0 = vld [vmem:[%s4798_s1 + $0x90] ss:$8 sps:$4 sm:$0xff]   ;;  %v3362_v2 = vld [vmem:[%s4798_s1 + $0x84] ss:$8 sps:$4 sm:$0xff]  }
  0x21   : > { %2115 = vmatpush1.bf16.msra.mxu0 %v3306_v22  ;;  %v3358_v63 = vld [vmem:[%s4798_s1 + $0x194] ss:$8 sps:$4 sm:$0xff]   ;;  %v3361_v1 = vld [vmem:[%s4798_s1 + $0x190] ss:$8 sps:$4 sm:$0xff]   ;;  %v3364_v3 = vld [vmem:[%s4798_s1 + $0x184] ss:$8 sps:$4 sm:$0xff]  }
  0x22   : > { %2188 = vmatpush1.bf16.msra.mxu1 %v3307_v23  ;;  %2116 = vmatprep.subr.bf16.mxu0 %v3308_v24  ;;  %v3366_v4 = vld [vmem:[%s4798_s1 + $0x80] ss:$8 sps:$4 sm:$0xff]   ;;  %v3370_v6 = vld [vmem:[%s4798_s1 + $0x274] ss:$8 sps:$4 sm:$0xff]   ;;  %v3368_v10 = vld [vmem:[%s4798_s1 + $0x270] ss:$8 sps:$4 sm:$0xff]  }
  0x23   : > { %2189 = vmatprep.subr.bf16.mxu1 %v3310_v25  ;;  %v3367_v5 = vld [vmem:[%s4798_s1 + $0x180] ss:$8 sps:$4 sm:$0xff]   ;;  %v3373_v7 = vld [vmem:[%s4798_s1 + $0x374] ss:$8 sps:$4 sm:$0xff]   ;;  %v3371_v11 = vld [vmem:[%s4798_s1 + $0x370] ss:$8 sps:$4 sm:$0xff]  }
  0x24   : > { %v3376_v12 = vld [vmem:[%s4798_s1 + $0x264] ss:$8 sps:$4 sm:$0xff]   ;;  %v3374_v14 = vld [vmem:[%s4798_s1 + $0x260] ss:$8 sps:$4 sm:$0xff]   ;;  %v3382_v16 = vld [vmem:[%s4798_s1 + $0x254] ss:$8 sps:$4 sm:$0xff]  }
  0x25   : > { %2117 = vmatpush1.bf16.msra.mxu0 %v3312_v26  ;;  %v3379_v13 = vld [vmem:[%s4798_s1 + $0x364] ss:$8 sps:$4 sm:$0xff]   ;;  %v3377_v15 = vld [vmem:[%s4798_s1 + $0x360] ss:$8 sps:$4 sm:$0xff]   ;;  %v3385_v17 = vld [vmem:[%s4798_s1 + $0x354] ss:$8 sps:$4 sm:$0xff]  }
  0x26   : > { %2190 = vmatpush1.bf16.msra.mxu1 %v3313_v27  ;;  %2118 = vmatprep.subr.bf16.mxu0 %v3314_v28  ;;  %v200_v18 = vld [vmem:[%s3834_s30 + $0x80] sm:$0xff]  ;;  %v201_v20 = vld [vmem:[%s3834_s30 + $0x88] sm:$0xff]  ;;  %v3380_v24 = vld [vmem:[%s4798_s1 + $0x250] ss:$8 sps:$4 sm:$0xff]  }
  0x27   : > { %2191 = vmatprep.subr.bf16.mxu1 %v3316_v29  ;;  %v208_v19 = vld [vmem:[%s3834_s30 + $0xc0] sm:$0xff]  ;;  %v209_v22 = vld [vmem:[%s3834_s30 + $0xc8] sm:$0xff]  ;;  %v3383_v25 = vld [vmem:[%s4798_s1 + $0x350] ss:$8 sps:$4 sm:$0xff]  }
  0x28   : > { %v2940_v21 = vcombine.high %v200_v18, %v208_v19  ;;  %v2942_v23 = vcombine.high %v201_v20, %v209_v22  ;;  %v2939_v26 = vcombine.low %v200_v18, %v208_v19  ;;  %v2941_v27 = vcombine.low %v201_v20, %v209_v22  ;;  %v3388_v28 = vld [vmem:[%s4798_s1 + $0x244] ss:$8 sps:$4 sm:$0xff]   ;;  %v3398_v51 = vld [vmem:[%s4798_s1 + $0x220] ss:$8 sps:$4 sm:$0xff]   ;;  %v3409_v55 = vld [vmem:[%s4798_s1 + $0x314] ss:$8 sps:$4 sm:$0xff]  }
  0x29   : > { %2119 = vmatpush1.bf16.msra.mxu0 %v3318_v30  ;;  %v3391_v29 = vld [vmem:[%s4798_s1 + $0x344] ss:$8 sps:$4 sm:$0xff]   ;;  %v3386_v30 = vld [vmem:[%s4798_s1 + $0x240] ss:$8 sps:$4 sm:$0xff]   ;;  %v3442_v22 = vld [vmem:[%s4798_s1 + $0x2b4] ss:$8 sps:$4 sm:$0xff]  }
  0x2a   : > { %2192 = vmatpush1.bf16.msra.mxu1 %v3319_v31  ;;  %2120 = vmatprep.subr.bf16.mxu0 %v3320_v32  ;;  %v3389_v31 = vld [vmem:[%s4798_s1 + $0x340] ss:$8 sps:$4 sm:$0xff]   ;;  %v3436_v18 = vld [vmem:[%s4798_s1 + $0x2c4] ss:$8 sps:$4 sm:$0xff]  }
  0x2b   : > { %2193 = vmatprep.subr.bf16.mxu1 %v3322_v33  ;;  %v216_v32 = vld [vmem:[%s3834_s30 + $0x100] sm:$0xff]  ;;  %v233_v49 = vld [vmem:[%s3834_s30 + $0x188] sm:$0xff] }
  0x2c   : > { %v224_v33 = vld [vmem:[%s3834_s30 + $0x140] sm:$0xff]  ;;  %v241_v50 = vld [vmem:[%s3834_s30 + $0x1c8] sm:$0xff] }
  0x2d   : > { %2121 = vmatpush2.bf16.msra.mxu0 %v3324_v34  ;;  %v217_v34 = vld [vmem:[%s3834_s30 + $0x108] sm:$0xff]  ;;  %v2974_v53 = vcombine.high %v233_v49, %v241_v50 }
  0x2e   : > { %2194 = vmatpush2.bf16.msra.mxu1 %v3325_v35  ;;  %2122 = vmatprep.subr.bf16.mxu0 %v3326_v36  ;;  %v225_v35 = vld [vmem:[%s3834_s30 + $0x148] sm:$0xff]  ;;  %v3394_v36 = vld [vmem:[%s4798_s1 + $0x234] ss:$8 sps:$4 sm:$0xff]  }
  0x2f   : > { %2195 = vmatprep.subr.bf16.mxu1 %v3328_v37  ;;  %v2956_v37 = vcombine.high %v216_v32, %v224_v33  ;;  %v3439_v19 = vld [vmem:[%s4798_s1 + $0x3c4] ss:$8 sps:$4 sm:$0xff]   ;;  %v3434_v20 = vld [vmem:[%s4798_s1 + $0x2c0] ss:$8 sps:$4 sm:$0xff]  }
  0x31   : > { %2123 = vmatpush2.bf16.msra.mxu0 %v3330_v38  ;;  %v2958_v38 = vcombine.high %v217_v34, %v225_v35 }
  0x32   : > { %2196 = vmatpush2.bf16.msra.mxu1 %v3331_v39  ;;  %2124 = vmatprep.subr.bf16.mxu0 %v3332_v40  ;;  %v3397_v39 = vld [vmem:[%s4798_s1 + $0x334] ss:$8 sps:$4 sm:$0xff]   ;;  %v3392_v40 = vld [vmem:[%s4798_s1 + $0x230] ss:$8 sps:$4 sm:$0xff]  }
  0x33   : > { %2197 = vmatprep.subr.bf16.mxu1 %v3334_v41  ;;  %v3395_v41 = vld [vmem:[%s4798_s1 + $0x330] ss:$8 sps:$4 sm:$0xff]  }
  0x35   : > { %2125 = vmatpush2.bf16.msra.mxu0 %v3336_v42  ;;  %v2955_v42 = vcombine.low %v216_v32, %v224_v33  ;;  %v3452_v32 = vld [vmem:[%s4798_s1 + $0x290] ss:$8 sps:$4 sm:$0xff]  }
  0x36   : > { %2198 = vmatpush2.bf16.msra.mxu1 %v3337_v43  ;;  %2126 = vmatprep.subr.bf16.mxu0 %v3338_v44  ;;  %v2957_v43 = vcombine.low %v217_v34, %v225_v35  ;;  %v3400_v44 = vld [vmem:[%s4798_s1 + $0x224] ss:$8 sps:$4 sm:$0xff]   ;;  %v3455_v33 = vld [vmem:[%s4798_s1 + $0x390] ss:$8 sps:$4 sm:$0xff]  }
  0x37   : > { %2199 = vmatprep.subr.bf16.mxu1 %v3340_v45  ;;  %v3403_v45 = vld [vmem:[%s4798_s1 + $0x324] ss:$8 sps:$4 sm:$0xff]  }
  0x38   : > { %v3460_v34 = vld [vmem:[%s4798_s1 + $0x284] ss:$8 sps:$4 sm:$0xff]  }
  0x39   : > { %2127 = vmatpush2.bf16.msra.mxu0 %v3342_v46  ;;  %v232_v46 = vld [vmem:[%s3834_s30 + $0x180] sm:$0xff] }
  0x3a   : > { %2200 = vmatpush2.bf16.msra.mxu1 %v3343_v47  ;;  %2128 = vmatprep.subr.bf16.mxu0 %v3344_v52  ;;  %v240_v47 = vld [vmem:[%s3834_s30 + $0x1c0] sm:$0xff] }
  0x3b   : > { %2201 = vmatprep.subr.bf16.mxu1 %v3346_v54  ;;  %v2972_v48 = vcombine.high %v232_v46, %v240_v47  ;;  %v3401_v52 = vld [vmem:[%s4798_s1 + $0x320] ss:$8 sps:$4 sm:$0xff]   ;;  %v3406_v54 = vld [vmem:[%s4798_s1 + $0x214] ss:$8 sps:$4 sm:$0xff]   ;;  %v3463_v35 = vld [vmem:[%s4798_s1 + $0x384] ss:$8 sps:$4 sm:$0xff]  }
  0x3d   : > { %2129 = vmatpush2.bf16.msra.mxu0 %v3348_v56  ;;  %v3404_v56 = vld [vmem:[%s4798_s1 + $0x210] ss:$8 sps:$4 sm:$0xff]  }
  0x3e   : > { %2202 = vmatpush2.bf16.msra.mxu1 %v3349_v57  ;;  %2130 = vmatprep.subr.bf16.mxu0 %v3350_v58  ;;  %v3407_v57 = vld [vmem:[%s4798_s1 + $0x310] ss:$8 sps:$4 sm:$0xff]   ;;  %v2971_v58 = vcombine.low %v232_v46, %v240_v47 }
  0x3f   : > { %2203 = vmatprep.subr.bf16.mxu1 %v3352_v59  ;;  %v2973_v59 = vcombine.low %v233_v49, %v241_v50  ;;  %v203_v46 = vld [vmem:[%s3834_s30 + $0x98] sm:$0xff]  ;;  %v3475_v49 = vld [vmem:[%s4798_s1 + $0x564] ss:$8 sps:$4 sm:$0xff]  }
  0x40   : > { %v211_v47 = vld [vmem:[%s3834_s30 + $0xd8] sm:$0xff] }
  0x41   : > { %2131 = vmatpush2.bf16.msra.mxu0 %v3354_v60  ;;  %v3412_v60 = vld [vmem:[%s4798_s1 + $0x204] ss:$8 sps:$4 sm:$0xff]  }
  0x42   : > { %2204 = vmatpush2.bf16.msra.mxu1 %v3355_v61  ;;  %2132 = vmatprep.subr.bf16.mxu0 %v3356_v62  ;;  %v3415_v61 = vld [vmem:[%s4798_s1 + $0x304] ss:$8 sps:$4 sm:$0xff]   ;;  %v3410_v62 = vld [vmem:[%s4798_s1 + $0x200] ss:$8 sps:$4 sm:$0xff]  }
  0x43   : > { %2205 = vmatprep.subr.bf16.mxu1 %v3358_v63  ;;  %v3413_v63 = vld [vmem:[%s4798_s1 + $0x300] ss:$8 sps:$4 sm:$0xff]  }
  0x45   : > { %2133 = vmatpush2.bf16.msra.mxu0 %v3360_v0  ;;  %v4009_v0 = vld [vmem:[%s3834_s30 + $0x10] sm:$0xff] }
  0x46   : > { %2206 = vmatpush2.bf16.msra.mxu1 %v3361_v1  ;;  %2134 = vmatprep.subr.bf16.mxu0 %v3362_v2  ;;  %v4012_v1 = vld [vmem:[%s3834_s30 + $0x50] sm:$0xff]  ;;  %v4015_v2 = vld [vmem:[%s3834_s30 + $0x18] sm:$0xff] }
  0x47   : > { %2207 = vmatprep.subr.bf16.mxu1 %v3364_v3  ;;  %v4018_v3 = vld [vmem:[%s3834_s30 + $0x58] sm:$0xff] }
  0x49   : > { %2135 = vmatpush2.bf16.msra.mxu0 %v3366_v4  ;;  %v3418_v4 = vld [vmem:[%s4798_s1 + $0x2f4] ss:$8 sps:$4 sm:$0xff]  }
  0x4a   : > { %2208 = vmatpush2.bf16.msra.mxu1 %v3367_v5  ;;  %2250 = vmatprep.subr.bf16.mxu0 %v3370_v6  ;;  %v2928_v5 = vcombine.high %v4009_v0, %v4012_v1  ;;  %v3421_v6 = vld [vmem:[%s4798_s1 + $0x3f4] ss:$8 sps:$4 sm:$0xff]  }
  0x4b   : > { %2323 = vmatprep.subr.bf16.mxu1 %v3373_v7  ;;  %v2930_v7 = vcombine.high %v4015_v2, %v4018_v3 }
  0x4c   : > { %2137 = vmatmul.mubr.bf16.vlgmr.msra.gmra.mxu0 %v2923_v8  ;;  %v3416_v8 = vld [vmem:[%s4798_s1 + $0x2f0] ss:$8 sps:$4 sm:$0xff]  }
  0x4d   : > { %2210 = vmatmul.mubr.bf16.vlgmr.msra.gmra.mxu1 %v2925_v9  ;;  %2251 = vmatpush1.bf16.msra.mxu0 %v3368_v10  ;;  %v3419_v9 = vld [vmem:[%s4798_s1 + $0x3f0] ss:$8 sps:$4 sm:$0xff]   ;;  %v3424_v10 = vld [vmem:[%s4798_s1 + $0x2e4] ss:$8 sps:$4 sm:$0xff]  }
  0x4e   : > { %2324 = vmatpush1.bf16.msra.mxu1 %v3371_v11  ;;  %2252 = vmatprep.subr.bf16.mxu0 %v3376_v12  ;;  %v3427_v11 = vld [vmem:[%s4798_s1 + $0x3e4] ss:$8 sps:$4 sm:$0xff]   ;;  %v3422_v12 = vld [vmem:[%s4798_s1 + $0x2e0] ss:$8 sps:$4 sm:$0xff]  }
  0x4f   : > { %2325 = vmatprep.subr.bf16.mxu1 %v3379_v13  ;;  %2146 = vmatprep.mubr.bf16.mxu0 %v2940_v21  ;;  %v3425_v13 = vld [vmem:[%s4798_s1 + $0x3e0] ss:$8 sps:$4 sm:$0xff]  }
  0x50   : > { %2219 = vmatprep.mubr.bf16.mxu1 %v2942_v23  ;;  %v3437_v21 = vld [vmem:[%s4798_s1 + $0x3c0] ss:$8 sps:$4 sm:$0xff]   ;;  %v3445_v23 = vld [vmem:[%s4798_s1 + $0x3b4] ss:$8 sps:$4 sm:$0xff]  }
  0x51   : > { %2253 = vmatpush1.bf16.msra.mxu0 %v3374_v14  ;;  %v3430_v14 = vld [vmem:[%s4798_s1 + $0x2d4] ss:$8 sps:$4 sm:$0xff]  }
  0x52   : > { %2326 = vmatpush1.bf16.msra.mxu1 %v3377_v15  ;;  %2254 = vmatprep.subr.bf16.mxu0 %v3382_v16  ;;  %v3433_v15 = vld [vmem:[%s4798_s1 + $0x3d4] ss:$8 sps:$4 sm:$0xff]   ;;  %v3428_v16 = vld [vmem:[%s4798_s1 + $0x2d0] ss:$8 sps:$4 sm:$0xff]  }
  0x53   : > { %2327 = vmatprep.subr.bf16.mxu1 %v3385_v17  ;;  %v3431_v17 = vld [vmem:[%s4798_s1 + $0x3d0] ss:$8 sps:$4 sm:$0xff]  }
  0x54   : > { %2147 = vmatmul.mubr.bf16.gmra.mxu0 %v2939_v26  ;;  %v3448_v26 = vld [vmem:[%s4798_s1 + $0x2a4] ss:$8 sps:$4 sm:$0xff]  }
  0x55   : > { %2220 = vmatmul.mubr.bf16.gmra.mxu1 %v2941_v27  ;;  %2255 = vmatpush1.bf16.msra.mxu0 %v3380_v24  ;;  %v3440_v24 = vld [vmem:[%s4798_s1 + $0x2b0] ss:$8 sps:$4 sm:$0xff]   ;;  %v3451_v27 = vld [vmem:[%s4798_s1 + $0x3a4] ss:$8 sps:$4 sm:$0xff]  }
  0x56   : > { %2328 = vmatpush1.bf16.msra.mxu1 %v3383_v25  ;;  %2256 = vmatprep.subr.bf16.mxu0 %v3388_v28  ;;  %v3443_v25 = vld [vmem:[%s4798_s1 + $0x3b0] ss:$8 sps:$4 sm:$0xff]   ;;  %v3446_v28 = vld [vmem:[%s4798_s1 + $0x2a0] ss:$8 sps:$4 sm:$0xff]  }
  0x57   : > { %2329 = vmatprep.subr.bf16.mxu1 %v3391_v29  ;;  %2156 = vmatprep.mubr.bf16.mxu0 %v2956_v37  ;;  %v3449_v29 = vld [vmem:[%s4798_s1 + $0x3a0] ss:$8 sps:$4 sm:$0xff]  }
  0x58   : > { %2229 = vmatprep.mubr.bf16.mxu1 %v2958_v38  ;;  %v3461_v37 = vld [vmem:[%s4798_s1 + $0x380] ss:$8 sps:$4 sm:$0xff]   ;;  %v3466_v38 = vld [vmem:[%s4798_s1 + $0x474] ss:$8 sps:$4 sm:$0xff]  }
  0x59   : > { %2257 = vmatpush1.bf16.msra.mxu0 %v3386_v30  ;;  %v3454_v30 = vld [vmem:[%s4798_s1 + $0x294] ss:$8 sps:$4 sm:$0xff]  }
  0x5a   : > { %2330 = vmatpush1.bf16.msra.mxu1 %v3389_v31  ;;  %2258 = vmatprep.subr.bf16.mxu0 %v3394_v36  ;;  %v3457_v31 = vld [vmem:[%s4798_s1 + $0x394] ss:$8 sps:$4 sm:$0xff]   ;;  %v3458_v36 = vld [vmem:[%s4798_s1 + $0x280] ss:$8 sps:$4 sm:$0xff]  }
  0x5b   : > { %2331 = vmatprep.subr.bf16.mxu1 %v3397_v39  ;;  %v3469_v39 = vld [vmem:[%s4798_s1 + $0x574] ss:$8 sps:$4 sm:$0xff]  }
  0x5c   : > { %2157 = vmatmul.mubr.bf16.gmra.mxu0 %v2955_v42  ;;  %v202_v42 = vld [vmem:[%s3834_s30 + $0x90] sm:$0xff] }
  0x5d   : > { %2230 = vmatmul.mubr.bf16.gmra.mxu1 %v2957_v43  ;;  %2259 = vmatpush1.bf16.msra.mxu0 %v3392_v40  ;;  %v3464_v40 = vld [vmem:[%s4798_s1 + $0x470] ss:$8 sps:$4 sm:$0xff]  }
  0x5e   : > { %2332 = vmatpush1.bf16.msra.mxu1 %v3395_v41  ;;  %2260 = vmatprep.subr.bf16.mxu0 %v3400_v44  ;;  %v3467_v41 = vld [vmem:[%s4798_s1 + $0x570] ss:$8 sps:$4 sm:$0xff]   ;;  %v2927_v44 = vcombine.low %v4009_v0, %v4012_v1  ;;  %v3484_v0 = vld [vmem:[%s4798_s1 + $0x444] ss:$8 sps:$4 sm:$0xff]  }
  0x5f   : > { %2333 = vmatprep.subr.bf16.mxu1 %v3403_v45  ;;  %2166 = vmatprep.mubr.bf16.mxu0 %v2972_v48  ;;  %v210_v43 = vld [vmem:[%s3834_s30 + $0xd0] sm:$0xff]  ;;  %v2929_v45 = vcombine.low %v4015_v2, %v4018_v3  ;;  %v3472_v48 = vld [vmem:[%s4798_s1 + $0x464] ss:$8 sps:$4 sm:$0xff]  }
  0x60   : > { %2239 = vmatprep.mubr.bf16.mxu1 %v2974_v53  ;;  %v2944_v50 = vcombine.high %v202_v42, %v210_v43  ;;  %v3473_v53 = vld [vmem:[%s4798_s1 + $0x560] ss:$8 sps:$4 sm:$0xff]   ;;  %v3487_v1 = vld [vmem:[%s4798_s1 + $0x544] ss:$8 sps:$4 sm:$0xff]  }
  0x61   : > { %2261 = vmatpush1.bf16.msra.mxu0 %v3398_v51  ;;  %v2946_v51 = vcombine.high %v203_v46, %v211_v47 }
  0x62   : > { %2334 = vmatpush1.bf16.msra.mxu1 %v3401_v52  ;;  %2262 = vmatprep.subr.bf16.mxu0 %v3406_v54  ;;  %v3470_v52 = vld [vmem:[%s4798_s1 + $0x460] ss:$8 sps:$4 sm:$0xff]   ;;  %v3478_v54 = vld [vmem:[%s4798_s1 + $0x454] ss:$8 sps:$4 sm:$0xff]  }
  0x63   : > { %2335 = vmatprep.subr.bf16.mxu1 %v3409_v55  ;;  %v3481_v55 = vld [vmem:[%s4798_s1 + $0x554] ss:$8 sps:$4 sm:$0xff]  }
  0x64   : > { %2167 = vmatmul.mubr.bf16.gmra.mxu0 %v2971_v58  ;;  %v218_v58 = vld [vmem:[%s3834_s30 + $0x110] sm:$0xff] }
  0x65   : > { %2240 = vmatmul.mubr.bf16.gmra.mxu1 %v2973_v59  ;;  %2263 = vmatpush1.bf16.msra.mxu0 %v3404_v56  ;;  %v3476_v56 = vld [vmem:[%s4798_s1 + $0x450] ss:$8 sps:$4 sm:$0xff]  }
  0x66   : > { %2336 = vmatpush1.bf16.msra.mxu1 %v3407_v57  ;;  %2264 = vmatprep.subr.bf16.mxu0 %v3412_v60  ;;  %v3479_v57 = vld [vmem:[%s4798_s1 + $0x550] ss:$8 sps:$4 sm:$0xff]   ;;  %v2943_v60 = vcombine.low %v202_v42, %v210_v43  ;;  %v3520_v42 = vld [vmem:[%s4798_s1 + $0x4e4] ss:$8 sps:$4 sm:$0xff]  }
  0x67   : > { %2337 = vmatprep.subr.bf16.mxu1 %v3415_v61  ;;  %2282 = vmatprep.mubr.bf16.mxu0 %v2928_v5  ;;  %v226_v59 = vld [vmem:[%s3834_s30 + $0x150] sm:$0xff]  ;;  %v2945_v61 = vcombine.low %v203_v46, %v211_v47  ;;  %v3485_v5 = vld [vmem:[%s4798_s1 + $0x540] ss:$8 sps:$4 sm:$0xff]   ;;  %v3523_v43 = vld [vmem:[%s4798_s1 + $0x5e4] ss:$8 sps:$4 sm:$0xff]  }
  0x68   : > { %2355 = vmatprep.mubr.bf16.mxu1 %v2930_v7  ;;  %v2960_v2 = vcombine.high %v218_v58, %v226_v59  ;;  %v3493_v7 = vld [vmem:[%s4798_s1 + $0x534] ss:$8 sps:$4 sm:$0xff]  }
  0x69   : > { %2265 = vmatpush1.bf16.msra.mxu0 %v3410_v62  ;;  %v219_v62 = vld [vmem:[%s3834_s30 + $0x118] sm:$0xff] }
  0x6a   : > { %2338 = vmatpush1.bf16.msra.mxu1 %v3413_v63  ;;  %2266 = vmatprep.subr.bf16.mxu0 %v3418_v4  ;;  %v227_v63 = vld [vmem:[%s3834_s30 + $0x158] sm:$0xff]  ;;  %v3482_v4 = vld [vmem:[%s4798_s1 + $0x440] ss:$8 sps:$4 sm:$0xff]  }
  0x6b   : > { %2339 = vmatprep.subr.bf16.mxu1 %v3421_v6  ;;  %v2962_v3 = vcombine.high %v219_v62, %v227_v63  ;;  %v3490_v6 = vld [vmem:[%s4798_s1 + $0x434] ss:$8 sps:$4 sm:$0xff]  }
  0x6c   : > { %v3526_v46 = vld [vmem:[%s4798_s1 + $0x4d4] ss:$8 sps:$4 sm:$0xff]  }
  0x6d   : > { %2267 = vmatpush2.bf16.msra.mxu0 %v3416_v8  ;;  %v3488_v8 = vld [vmem:[%s4798_s1 + $0x430] ss:$8 sps:$4 sm:$0xff]   ;;  %v3529_v47 = vld [vmem:[%s4798_s1 + $0x5d4] ss:$8 sps:$4 sm:$0xff]  }
  0x6e   : > { %2340 = vmatpush2.bf16.msra.mxu1 %v3419_v9  ;;  %2268 = vmatprep.subr.bf16.mxu0 %v3424_v10  ;;  %v234_v9 = vld [vmem:[%s3834_s30 + $0x190] sm:$0xff] }
  0x6f   : > { %2341 = vmatprep.subr.bf16.mxu1 %v3427_v11  ;;  %v242_v10 = vld [vmem:[%s3834_s30 + $0x1d0] sm:$0xff]  ;;  %v2959_v11 = vcombine.low %v218_v58, %v226_v59  ;;  %v3544_v58 = vld [vmem:[%s4798_s1 + $0x4a4] ss:$8 sps:$4 sm:$0xff]  }
  0x70   : > { %v3547_v59 = vld [vmem:[%s4798_s1 + $0x5a4] ss:$8 sps:$4 sm:$0xff]  }
  0x71   : > { %2269 = vmatpush2.bf16.msra.mxu0 %v3422_v12  ;;  %v2961_v12 = vcombine.low %v219_v62, %v227_v63  ;;  %v3550_v62 = vld [vmem:[%s4798_s1 + $0x494] ss:$8 sps:$4 sm:$0xff]  }
  0x72   : > { %2342 = vmatpush2.bf16.msra.mxu1 %v3425_v13  ;;  %2270 = vmatprep.subr.bf16.mxu0 %v3430_v14  ;;  %v235_v13 = vld [vmem:[%s3834_s30 + $0x198] sm:$0xff] }
  0x73   : > { %2343 = vmatprep.subr.bf16.mxu1 %v3433_v15  ;;  %v243_v14 = vld [vmem:[%s3834_s30 + $0x1d8] sm:$0xff] }
  0x74   : > { %v3491_v15 = vld [vmem:[%s4798_s1 + $0x530] ss:$8 sps:$4 sm:$0xff]   ;;  %v3553_v63 = vld [vmem:[%s4798_s1 + $0x594] ss:$8 sps:$4 sm:$0xff]  }
  0x75   : > { %2271 = vmatpush2.bf16.msra.mxu0 %v3428_v16  ;;  %v3496_v16 = vld [vmem:[%s4798_s1 + $0x424] ss:$8 sps:$4 sm:$0xff]  }
  0x76   : > { %2344 = vmatpush2.bf16.msra.mxu1 %v3431_v17  ;;  %2272 = vmatprep.subr.bf16.mxu0 %v3436_v18  ;;  %v3499_v17 = vld [vmem:[%s4798_s1 + $0x524] ss:$8 sps:$4 sm:$0xff]   ;;  %v2976_v18 = vcombine.high %v234_v9, %v242_v10 }
  0x77   : > { %2345 = vmatprep.subr.bf16.mxu1 %v3439_v19  ;;  %v2978_v19 = vcombine.high %v235_v13, %v243_v14 }
  0x79   : > { %2273 = vmatpush2.bf16.msra.mxu0 %v3434_v20  ;;  %v3494_v20 = vld [vmem:[%s4798_s1 + $0x420] ss:$8 sps:$4 sm:$0xff]  }
  0x7a   : > { %2346 = vmatpush2.bf16.msra.mxu1 %v3437_v21  ;;  %2274 = vmatprep.subr.bf16.mxu0 %v3442_v22  ;;  %v3497_v21 = vld [vmem:[%s4798_s1 + $0x520] ss:$8 sps:$4 sm:$0xff]   ;;  %v3502_v22 = vld [vmem:[%s4798_s1 + $0x414] ss:$8 sps:$4 sm:$0xff]  }
  0x7b   : > { %2347 = vmatprep.subr.bf16.mxu1 %v3445_v23  ;;  %v3505_v23 = vld [vmem:[%s4798_s1 + $0x514] ss:$8 sps:$4 sm:$0xff]  }
  0x7d   : > { %2275 = vmatpush2.bf16.msra.mxu0 %v3440_v24  ;;  %v4215_v24 = vld [vmem:[%s3834_s30 + $0x20] sm:$0xff] }
  0x7e   : > { %2348 = vmatpush2.bf16.msra.mxu1 %v3443_v25  ;;  %2276 = vmatprep.subr.bf16.mxu0 %v3448_v26  ;;  %v4218_v25 = vld [vmem:[%s3834_s30 + $0x60] sm:$0xff]  ;;  %v2975_v26 = vcombine.low %v234_v9, %v242_v10 }
  0x7f   : > { %2349 = vmatprep.subr.bf16.mxu1 %v3451_v27  ;;  %v2977_v27 = vcombine.low %v235_v13, %v243_v14  ;;  %v2931_v9 = vcombine.low %v4215_v24, %v4218_v25  ;;  %v213_v13 = vld [vmem:[%s3834_s30 + $0xe8] sm:$0xff]  ;;  %v3560_v14 = vld [vmem:[%s4798_s1 + $0x670] ss:$8 sps:$4 sm:$0xff]  }
  0x81   : > { %2277 = vmatpush2.bf16.msra.mxu0 %v3446_v28  ;;  %v4221_v28 = vld [vmem:[%s3834_s30 + $0x28] sm:$0xff] }
  0x82   : > { %2350 = vmatpush2.bf16.msra.mxu1 %v3449_v29  ;;  %2278 = vmatprep.subr.bf16.mxu0 %v3454_v30  ;;  %v4224_v29 = vld [vmem:[%s3834_s30 + $0x68] sm:$0xff]  ;;  %v3500_v30 = vld [vmem:[%s4798_s1 + $0x410] ss:$8 sps:$4 sm:$0xff]  }
  0x83   : > { %2351 = vmatprep.subr.bf16.mxu1 %v3457_v31  ;;  %v3503_v31 = vld [vmem:[%s4798_s1 + $0x510] ss:$8 sps:$4 sm:$0xff]   ;;  %v2933_v10 = vcombine.low %v4221_v28, %v4224_v29 }
  0x85   : > { %2279 = vmatpush2.bf16.msra.mxu0 %v3452_v32  ;;  %v3508_v32 = vld [vmem:[%s4798_s1 + $0x404] ss:$8 sps:$4 sm:$0xff]  }
  0x86   : > { %2352 = vmatpush2.bf16.msra.mxu1 %v3455_v33  ;;  %2280 = vmatprep.subr.bf16.mxu0 %v3460_v34  ;;  %v3511_v33 = vld [vmem:[%s4798_s1 + $0x504] ss:$8 sps:$4 sm:$0xff]   ;;  %v2932_v34 = vcombine.high %v4215_v24, %v4218_v25 }
  0x87   : > { %2353 = vmatprep.subr.bf16.mxu1 %v3463_v35  ;;  %v2934_v35 = vcombine.high %v4221_v28, %v4224_v29  ;;  %v220_v24 = vld [vmem:[%s3834_s30 + $0x120] sm:$0xff]  ;;  %v221_v28 = vld [vmem:[%s3834_s30 + $0x128] sm:$0xff] }
  0x88   : > { %v229_v29 = vld [vmem:[%s3834_s30 + $0x168] sm:$0xff] }
  0x89   : > { %2281 = vmatpush2.bf16.msra.mxu0 %v3458_v36  ;;  %v3506_v36 = vld [vmem:[%s4798_s1 + $0x400] ss:$8 sps:$4 sm:$0xff]  }
  0x8a   : > { %2354 = vmatpush2.bf16.msra.mxu1 %v3461_v37  ;;  %2396 = vmatprep.subr.bf16.mxu0 %v3466_v38  ;;  %v3509_v37 = vld [vmem:[%s4798_s1 + $0x500] ss:$8 sps:$4 sm:$0xff]   ;;  %v3514_v38 = vld [vmem:[%s4798_s1 + $0x4f4] ss:$8 sps:$4 sm:$0xff]  }
  0x8b   : > { %2469 = vmatprep.subr.bf16.mxu1 %v3469_v39  ;;  %v3517_v39 = vld [vmem:[%s4798_s1 + $0x5f4] ss:$8 sps:$4 sm:$0xff]  }
  0x8c   : > { %2283 = vmatmul.mubr.bf16.vlgmr.msra.gmra.mxu0 %v2927_v44  ;;  %v3518_v44 = vld [vmem:[%s4798_s1 + $0x4e0] ss:$8 sps:$4 sm:$0xff]  }
  0x8d   : > { %2356 = vmatmul.mubr.bf16.vlgmr.msra.gmra.mxu1 %v2929_v45  ;;  %2397 = vmatpush1.bf16.msra.mxu0 %v3464_v40  ;;  %v3512_v40 = vld [vmem:[%s4798_s1 + $0x4f0] ss:$8 sps:$4 sm:$0xff]   ;;  %v3521_v45 = vld [vmem:[%s4798_s1 + $0x5e0] ss:$8 sps:$4 sm:$0xff]  }
  0x8e   : > { %2470 = vmatpush1.bf16.msra.mxu1 %v3467_v41  ;;  %2398 = vmatprep.subr.bf16.mxu0 %v3472_v48  ;;  %v3515_v41 = vld [vmem:[%s4798_s1 + $0x5f0] ss:$8 sps:$4 sm:$0xff]  }
  0x8f   : > { %2471 = vmatprep.subr.bf16.mxu1 %v3475_v49  ;;  %2292 = vmatprep.mubr.bf16.mxu0 %v2944_v50  ;;  %v3524_v48 = vld [vmem:[%s4798_s1 + $0x4d0] ss:$8 sps:$4 sm:$0xff]   ;;  %v3532_v50 = vld [vmem:[%s4798_s1 + $0x4c4] ss:$8 sps:$4 sm:$0xff]  }
  0x90   : > { %2365 = vmatprep.mubr.bf16.mxu1 %v2946_v51  ;;  %v3527_v49 = vld [vmem:[%s4798_s1 + $0x5d0] ss:$8 sps:$4 sm:$0xff]   ;;  %v3535_v51 = vld [vmem:[%s4798_s1 + $0x5c4] ss:$8 sps:$4 sm:$0xff]  }
  0x91   : > { %2399 = vmatpush1.bf16.msra.mxu0 %v3470_v52  ;;  %v3530_v52 = vld [vmem:[%s4798_s1 + $0x4c0] ss:$8 sps:$4 sm:$0xff]  }
  0x92   : > { %2472 = vmatpush1.bf16.msra.mxu1 %v3473_v53  ;;  %2400 = vmatprep.subr.bf16.mxu0 %v3478_v54  ;;  %v3533_v53 = vld [vmem:[%s4798_s1 + $0x5c0] ss:$8 sps:$4 sm:$0xff]   ;;  %v3538_v54 = vld [vmem:[%s4798_s1 + $0x4b4] ss:$8 sps:$4 sm:$0xff]  }
  0x93   : > { %2473 = vmatprep.subr.bf16.mxu1 %v3481_v55  ;;  %v3541_v55 = vld [vmem:[%s4798_s1 + $0x5b4] ss:$8 sps:$4 sm:$0xff]  }
  0x94   : > { %2293 = vmatmul.mubr.bf16.gmra.mxu0 %v2943_v60  ;;  %v3542_v60 = vld [vmem:[%s4798_s1 + $0x4a0] ss:$8 sps:$4 sm:$0xff]  }
  0x95   : > { %2366 = vmatmul.mubr.bf16.gmra.mxu1 %v2945_v61  ;;  %2401 = vmatpush1.bf16.msra.mxu0 %v3476_v56  ;;  %v3536_v56 = vld [vmem:[%s4798_s1 + $0x4b0] ss:$8 sps:$4 sm:$0xff]   ;;  %v3545_v61 = vld [vmem:[%s4798_s1 + $0x5a0] ss:$8 sps:$4 sm:$0xff]  }
  0x96   : > { %2474 = vmatpush1.bf16.msra.mxu1 %v3479_v57  ;;  %2402 = vmatprep.subr.bf16.mxu0 %v3484_v0  ;;  %v3539_v57 = vld [vmem:[%s4798_s1 + $0x5b0] ss:$8 sps:$4 sm:$0xff]  }
  0x97   : > { %2475 = vmatprep.subr.bf16.mxu1 %v3487_v1  ;;  %2302 = vmatprep.mubr.bf16.mxu0 %v2960_v2  ;;  %v3548_v0 = vld [vmem:[%s4798_s1 + $0x490] ss:$8 sps:$4 sm:$0xff]   ;;  %v3556_v2 = vld [vmem:[%s4798_s1 + $0x484] ss:$8 sps:$4 sm:$0xff]  }
  0x98   : > { %2375 = vmatprep.mubr.bf16.mxu1 %v2962_v3  ;;  %v3551_v1 = vld [vmem:[%s4798_s1 + $0x590] ss:$8 sps:$4 sm:$0xff]   ;;  %v3559_v3 = vld [vmem:[%s4798_s1 + $0x584] ss:$8 sps:$4 sm:$0xff]  }
  0x99   : > { %2403 = vmatpush1.bf16.msra.mxu0 %v3482_v4  ;;  %v3554_v4 = vld [vmem:[%s4798_s1 + $0x480] ss:$8 sps:$4 sm:$0xff]  }
  0x9a   : > { %2476 = vmatpush1.bf16.msra.mxu1 %v3485_v5  ;;  %2404 = vmatprep.subr.bf16.mxu0 %v3490_v6  ;;  %v3557_v5 = vld [vmem:[%s4798_s1 + $0x580] ss:$8 sps:$4 sm:$0xff]   ;;  %v3562_v6 = vld [vmem:[%s4798_s1 + $0x674] ss:$8 sps:$4 sm:$0xff]  }
  0x9b   : > { %2477 = vmatprep.subr.bf16.mxu1 %v3493_v7  ;;  %v3565_v7 = vld [vmem:[%s4798_s1 + $0x774] ss:$8 sps:$4 sm:$0xff]  }
  0x9c   : > { %2303 = vmatmul.mubr.bf16.gmra.mxu0 %v2959_v11  ;;  %v212_v11 = vld [vmem:[%s3834_s30 + $0xe0] sm:$0xff] }
  0x9d   : > { %2376 = vmatmul.mubr.bf16.gmra.mxu1 %v2961_v12  ;;  %2405 = vmatpush1.bf16.msra.mxu0 %v3488_v8  ;;  %v204_v8 = vld [vmem:[%s3834_s30 + $0xa0] sm:$0xff]  ;;  %v205_v12 = vld [vmem:[%s3834_s30 + $0xa8] sm:$0xff] }
  0x9e   : > { %2478 = vmatpush1.bf16.msra.mxu1 %v3491_v15  ;;  %2406 = vmatprep.subr.bf16.mxu0 %v3496_v16  ;;  %v3563_v15 = vld [vmem:[%s4798_s1 + $0x770] ss:$8 sps:$4 sm:$0xff]   ;;  %v3568_v16 = vld [vmem:[%s4798_s1 + $0x664] ss:$8 sps:$4 sm:$0xff]   ;;  %v2947_v25 = vcombine.low %v204_v8, %v212_v11 }
  0x9f   : > { %2479 = vmatprep.subr.bf16.mxu1 %v3499_v17  ;;  %2312 = vmatprep.mubr.bf16.mxu0 %v2976_v18  ;;  %v3571_v17 = vld [vmem:[%s4798_s1 + $0x764] ss:$8 sps:$4 sm:$0xff]   ;;  %v2948_v18 = vcombine.high %v204_v8, %v212_v11  ;;  %v3608_v8 = vld [vmem:[%s4798_s1 + $0x6f0] ss:$8 sps:$4 sm:$0xff]  }
  0xa0   : > { %2385 = vmatprep.mubr.bf16.mxu1 %v2978_v19  ;;  %v2950_v19 = vcombine.high %v205_v12, %v213_v13  ;;  %v3619_v11 = vld [vmem:[%s4798_s1 + $0x7e4] ss:$8 sps:$4 sm:$0xff]  }
  0xa1   : > { %2407 = vmatpush1.bf16.msra.mxu0 %v3494_v20  ;;  %v3566_v20 = vld [vmem:[%s4798_s1 + $0x660] ss:$8 sps:$4 sm:$0xff]  }
  0xa2   : > { %2480 = vmatpush1.bf16.msra.mxu1 %v3497_v21  ;;  %2408 = vmatprep.subr.bf16.mxu0 %v3502_v22  ;;  %v3569_v21 = vld [vmem:[%s4798_s1 + $0x760] ss:$8 sps:$4 sm:$0xff]   ;;  %v3574_v22 = vld [vmem:[%s4798_s1 + $0x654] ss:$8 sps:$4 sm:$0xff]  }
  0xa3   : > { %2481 = vmatprep.subr.bf16.mxu1 %v3505_v23  ;;  %v3577_v23 = vld [vmem:[%s4798_s1 + $0x754] ss:$8 sps:$4 sm:$0xff]  }
  0xa4   : > { %2313 = vmatmul.mubr.bf16.gmra.mxu0 %v2975_v26  ;;  %v2949_v26 = vcombine.low %v205_v12, %v213_v13  ;;  %v3614_v12 = vld [vmem:[%s4798_s1 + $0x6e0] ss:$8 sps:$4 sm:$0xff]  }
  0xa5   : > { %2386 = vmatmul.mubr.bf16.gmra.mxu1 %v2977_v27  ;;  %2409 = vmatpush1.bf16.msra.mxu0 %v3500_v30  ;;  %v228_v27 = vld [vmem:[%s3834_s30 + $0x160] sm:$0xff]  ;;  %v3572_v30 = vld [vmem:[%s4798_s1 + $0x650] ss:$8 sps:$4 sm:$0xff]  }
  0xa6   : > { %2482 = vmatpush1.bf16.msra.mxu1 %v3503_v31  ;;  %2410 = vmatprep.subr.bf16.mxu0 %v3508_v32  ;;  %v3575_v31 = vld [vmem:[%s4798_s1 + $0x750] ss:$8 sps:$4 sm:$0xff]   ;;  %v3580_v32 = vld [vmem:[%s4798_s1 + $0x644] ss:$8 sps:$4 sm:$0xff]   ;;  %v3617_v13 = vld [vmem:[%s4798_s1 + $0x7e0] ss:$8 sps:$4 sm:$0xff]  }
  0xa7   : > { %2483 = vmatprep.subr.bf16.mxu1 %v3511_v33  ;;  %2428 = vmatprep.mubr.bf16.mxu0 %v2932_v34  ;;  %v3583_v33 = vld [vmem:[%s4798_s1 + $0x744] ss:$8 sps:$4 sm:$0xff]   ;;  %v2964_v34 = vcombine.high %v220_v24, %v228_v27 }
  0xa8   : > { %2501 = vmatprep.mubr.bf16.mxu1 %v2934_v35  ;;  %v2966_v35 = vcombine.high %v221_v28, %v229_v29 }
  0xa9   : > { %2411 = vmatpush1.bf16.msra.mxu0 %v3506_v36  ;;  %v3578_v36 = vld [vmem:[%s4798_s1 + $0x640] ss:$8 sps:$4 sm:$0xff]  }
  0xaa   : > { %2484 = vmatpush1.bf16.msra.mxu1 %v3509_v37  ;;  %2412 = vmatprep.subr.bf16.mxu0 %v3514_v38  ;;  %v3581_v37 = vld [vmem:[%s4798_s1 + $0x740] ss:$8 sps:$4 sm:$0xff]   ;;  %v3586_v38 = vld [vmem:[%s4798_s1 + $0x634] ss:$8 sps:$4 sm:$0xff]  }
  0xab   : > { %2485 = vmatprep.subr.bf16.mxu1 %v3517_v39  ;;  %v3589_v39 = vld [vmem:[%s4798_s1 + $0x734] ss:$8 sps:$4 sm:$0xff]  }
  0xad   : > { %2413 = vmatpush2.bf16.msra.mxu0 %v3512_v40  ;;  %v236_v40 = vld [vmem:[%s3834_s30 + $0x1a0] sm:$0xff] }
  0xae   : > { %2486 = vmatpush2.bf16.msra.mxu1 %v3515_v41  ;;  %2414 = vmatprep.subr.bf16.mxu0 %v3520_v42  ;;  %v2963_v41 = vcombine.low %v220_v24, %v228_v27  ;;  %v2965_v42 = vcombine.low %v221_v28, %v229_v29  ;;  %v3632_v24 = vld [vmem:[%s4798_s1 + $0x6b0] ss:$8 sps:$4 sm:$0xff]   ;;  %v3643_v27 = vld [vmem:[%s4798_s1 + $0x7a4] ss:$8 sps:$4 sm:$0xff]   ;;  %v3638_v28 = vld [vmem:[%s4798_s1 + $0x6a0] ss:$8 sps:$4 sm:$0xff]  }
  0xaf   : > { %2487 = vmatprep.subr.bf16.mxu1 %v3523_v43  ;;  %v244_v43 = vld [vmem:[%s3834_s30 + $0x1e0] sm:$0xff] }
  0xb0   : > { %v3641_v29 = vld [vmem:[%s4798_s1 + $0x7a0] ss:$8 sps:$4 sm:$0xff]  }
  0xb1   : > { %2415 = vmatpush2.bf16.msra.mxu0 %v3518_v44  ;;  %v237_v44 = vld [vmem:[%s3834_s30 + $0x1a8] sm:$0xff] }
  0xb2   : > { %2488 = vmatpush2.bf16.msra.mxu1 %v3521_v45  ;;  %2416 = vmatprep.subr.bf16.mxu0 %v3526_v46  ;;  %v245_v45 = vld [vmem:[%s3834_s30 + $0x1e8] sm:$0xff]  ;;  %v3584_v46 = vld [vmem:[%s4798_s1 + $0x630] ss:$8 sps:$4 sm:$0xff]  }
  0xb3   : > { %2489 = vmatprep.subr.bf16.mxu1 %v3529_v47  ;;  %v3587_v47 = vld [vmem:[%s4798_s1 + $0x730] ss:$8 sps:$4 sm:$0xff]  }
  0xb5   : > { %2417 = vmatpush2.bf16.msra.mxu0 %v3524_v48  ;;  %v3592_v48 = vld [vmem:[%s4798_s1 + $0x624] ss:$8 sps:$4 sm:$0xff]  }
  0xb6   : > { %2490 = vmatpush2.bf16.msra.mxu1 %v3527_v49  ;;  %2418 = vmatprep.subr.bf16.mxu0 %v3532_v50  ;;  %v3595_v49 = vld [vmem:[%s4798_s1 + $0x724] ss:$8 sps:$4 sm:$0xff]   ;;  %v2980_v50 = vcombine.high %v236_v40, %v244_v43 }
  0xb7   : > { %2491 = vmatprep.subr.bf16.mxu1 %v3535_v51  ;;  %v2982_v51 = vcombine.high %v237_v44, %v245_v45 }
  0xb9   : > { %2419 = vmatpush2.bf16.msra.mxu0 %v3530_v52  ;;  %v3590_v52 = vld [vmem:[%s4798_s1 + $0x620] ss:$8 sps:$4 sm:$0xff]  }
  0xba   : > { %2492 = vmatpush2.bf16.msra.mxu1 %v3533_v53  ;;  %2420 = vmatprep.subr.bf16.mxu0 %v3538_v54  ;;  %v3593_v53 = vld [vmem:[%s4798_s1 + $0x720] ss:$8 sps:$4 sm:$0xff]   ;;  %v3598_v54 = vld [vmem:[%s4798_s1 + $0x614] ss:$8 sps:$4 sm:$0xff]  }
  0xbb   : > { %2493 = vmatprep.subr.bf16.mxu1 %v3541_v55  ;;  %v3601_v55 = vld [vmem:[%s4798_s1 + $0x714] ss:$8 sps:$4 sm:$0xff]  }
  0xbd   : > { %2421 = vmatpush2.bf16.msra.mxu0 %v3536_v56  ;;  %v4439_v56 = vld [vmem:[%s3834_s30 + $0x30] sm:$0xff] }
  0xbe   : > { %2494 = vmatpush2.bf16.msra.mxu1 %v3539_v57  ;;  %2422 = vmatprep.subr.bf16.mxu0 %v3544_v58  ;;  %v2979_v57 = vcombine.low %v236_v40, %v244_v43  ;;  %v2981_v58 = vcombine.low %v237_v44, %v245_v45  ;;  %v207_v40 = vld [vmem:[%s3834_s30 + $0xb8] sm:$0xff] }
  0xbf   : > { %2495 = vmatprep.subr.bf16.mxu1 %v3547_v59  ;;  %v4442_v59 = vld [vmem:[%s3834_s30 + $0x70] sm:$0xff] }
  0xc1   : > { %2423 = vmatpush2.bf16.msra.mxu0 %v3542_v60  ;;  %v4445_v60 = vld [vmem:[%s3834_s30 + $0x38] sm:$0xff] }
  0xc2   : > { %2496 = vmatpush2.bf16.msra.mxu1 %v3545_v61  ;;  %2424 = vmatprep.subr.bf16.mxu0 %v3550_v62  ;;  %v4448_v61 = vld [vmem:[%s3834_s30 + $0x78] sm:$0xff] }
  0xc3   : > { %2497 = vmatprep.subr.bf16.mxu1 %v3553_v63  ;;  %v3596_v62 = vld [vmem:[%s4798_s1 + $0x610] ss:$8 sps:$4 sm:$0xff]   ;;  %v2937_v43 = vcombine.low %v4445_v60, %v4448_v61 }
  0xc4   : > { %v3599_v63 = vld [vmem:[%s4798_s1 + $0x710] ss:$8 sps:$4 sm:$0xff]  }
  0xc5   : > { %2425 = vmatpush2.bf16.msra.mxu0 %v3548_v0  ;;  %v3604_v0 = vld [vmem:[%s4798_s1 + $0x604] ss:$8 sps:$4 sm:$0xff]  }
  0xc6   : > { %2498 = vmatpush2.bf16.msra.mxu1 %v3551_v1  ;;  %2426 = vmatprep.subr.bf16.mxu0 %v3556_v2  ;;  %v3607_v1 = vld [vmem:[%s4798_s1 + $0x704] ss:$8 sps:$4 sm:$0xff]   ;;  %v2936_v2 = vcombine.high %v4439_v56, %v4442_v59 }
  0xc7   : > { %2499 = vmatprep.subr.bf16.mxu1 %v3559_v3  ;;  %v2938_v3 = vcombine.high %v4445_v60, %v4448_v61 }
  0xc9   : > { %2427 = vmatpush2.bf16.msra.mxu0 %v3554_v4  ;;  %v3602_v4 = vld [vmem:[%s4798_s1 + $0x600] ss:$8 sps:$4 sm:$0xff]  }
  0xca   : > { %2500 = vmatpush2.bf16.msra.mxu1 %v3557_v5  ;;  %2542 = vmatprep.subr.bf16.mxu0 %v3562_v6  ;;  %v3605_v5 = vld [vmem:[%s4798_s1 + $0x700] ss:$8 sps:$4 sm:$0xff]   ;;  %v3610_v6 = vld [vmem:[%s4798_s1 + $0x6f4] ss:$8 sps:$4 sm:$0xff]  }
  0xcb   : > { %2615 = vmatprep.subr.bf16.mxu1 %v3565_v7  ;;  %v3613_v7 = vld [vmem:[%s4798_s1 + $0x7f4] ss:$8 sps:$4 sm:$0xff]  }
  0xcc   : > { %2429 = vmatmul.mubr.bf16.vlgmr.msra.gmra.mxu0 %v2931_v9  ;;  %v3611_v9 = vld [vmem:[%s4798_s1 + $0x7f0] ss:$8 sps:$4 sm:$0xff]  }
  0xcd   : > { %2502 = vmatmul.mubr.bf16.vlgmr.msra.gmra.mxu1 %v2933_v10  ;;  %2543 = vmatpush1.bf16.msra.mxu0 %v3560_v14  ;;  %v3616_v10 = vld [vmem:[%s4798_s1 + $0x6e4] ss:$8 sps:$4 sm:$0xff]   ;;  %v3622_v14 = vld [vmem:[%s4798_s1 + $0x6d4] ss:$8 sps:$4 sm:$0xff]  }
  0xce   : > { %2616 = vmatpush1.bf16.msra.mxu1 %v3563_v15  ;;  %2544 = vmatprep.subr.bf16.mxu0 %v3568_v16  ;;  %v3625_v15 = vld [vmem:[%s4798_s1 + $0x7d4] ss:$8 sps:$4 sm:$0xff]   ;;  %v3620_v16 = vld [vmem:[%s4798_s1 + $0x6d0] ss:$8 sps:$4 sm:$0xff]  }
  0xcf   : > { %2617 = vmatprep.subr.bf16.mxu1 %v3571_v17  ;;  %2438 = vmatprep.mubr.bf16.mxu0 %v2948_v18  ;;  %v3623_v17 = vld [vmem:[%s4798_s1 + $0x7d0] ss:$8 sps:$4 sm:$0xff]   ;;  %v3628_v18 = vld [vmem:[%s4798_s1 + $0x6c4] ss:$8 sps:$4 sm:$0xff]  }
  0xd0   : > { %2511 = vmatprep.mubr.bf16.mxu1 %v2950_v19  ;;  %v3631_v19 = vld [vmem:[%s4798_s1 + $0x7c4] ss:$8 sps:$4 sm:$0xff]  }
  0xd1   : > { %2545 = vmatpush1.bf16.msra.mxu0 %v3566_v20  ;;  %v3626_v20 = vld [vmem:[%s4798_s1 + $0x6c0] ss:$8 sps:$4 sm:$0xff]  }
  0xd2   : > { %2618 = vmatpush1.bf16.msra.mxu1 %v3569_v21  ;;  %2546 = vmatprep.subr.bf16.mxu0 %v3574_v22  ;;  %v3629_v21 = vld [vmem:[%s4798_s1 + $0x7c0] ss:$8 sps:$4 sm:$0xff]   ;;  %v3634_v22 = vld [vmem:[%s4798_s1 + $0x6b4] ss:$8 sps:$4 sm:$0xff]  }
  0xd3   : > { %2619 = vmatprep.subr.bf16.mxu1 %v3577_v23  ;;  %v3637_v23 = vld [vmem:[%s4798_s1 + $0x7b4] ss:$8 sps:$4 sm:$0xff]  }
  0xd4   : > { %2439 = vmatmul.mubr.bf16.gmra.mxu0 %v2947_v25  ;;  %v3635_v25 = vld [vmem:[%s4798_s1 + $0x7b0] ss:$8 sps:$4 sm:$0xff]  }
  0xd5   : > { %2512 = vmatmul.mubr.bf16.gmra.mxu1 %v2949_v26  ;;  %2547 = vmatpush1.bf16.msra.mxu0 %v3572_v30  ;;  %v3640_v26 = vld [vmem:[%s4798_s1 + $0x6a4] ss:$8 sps:$4 sm:$0xff]   ;;  %v3646_v30 = vld [vmem:[%s4798_s1 + $0x694] ss:$8 sps:$4 sm:$0xff]  }
  0xd6   : > { %2620 = vmatpush1.bf16.msra.mxu1 %v3575_v31  ;;  %2548 = vmatprep.subr.bf16.mxu0 %v3580_v32  ;;  %v3649_v31 = vld [vmem:[%s4798_s1 + $0x794] ss:$8 sps:$4 sm:$0xff]   ;;  %v3644_v32 = vld [vmem:[%s4798_s1 + $0x690] ss:$8 sps:$4 sm:$0xff]  }
  0xd7   : > { %2621 = vmatprep.subr.bf16.mxu1 %v3583_v33  ;;  %2448 = vmatprep.mubr.bf16.mxu0 %v2964_v34  ;;  %v3647_v33 = vld [vmem:[%s4798_s1 + $0x790] ss:$8 sps:$4 sm:$0xff]   ;;  %v3652_v34 = vld [vmem:[%s4798_s1 + $0x684] ss:$8 sps:$4 sm:$0xff]  }
  0xd8   : > { %2521 = vmatprep.mubr.bf16.mxu1 %v2966_v35  ;;  %v3655_v35 = vld [vmem:[%s4798_s1 + $0x784] ss:$8 sps:$4 sm:$0xff]  }
  0xd9   : > { %2549 = vmatpush1.bf16.msra.mxu0 %v3578_v36  ;;  %v3650_v36 = vld [vmem:[%s4798_s1 + $0x680] ss:$8 sps:$4 sm:$0xff]  }
  0xda   : > { %2622 = vmatpush1.bf16.msra.mxu1 %v3581_v37  ;;  %2550 = vmatprep.subr.bf16.mxu0 %v3586_v38  ;;  %v3653_v37 = vld [vmem:[%s4798_s1 + $0x780] ss:$8 sps:$4 sm:$0xff]   ;;  %v206_v38 = vld [vmem:[%s3834_s30 + $0xb0] sm:$0xff] }
  0xdb   : > { %2623 = vmatprep.subr.bf16.mxu1 %v3589_v39  ;;  %v214_v39 = vld [vmem:[%s3834_s30 + $0xf0] sm:$0xff] }
  0xdc   : > { %2449 = vmatmul.mubr.bf16.gmra.mxu0 %v2963_v41  ;;  %v215_v41 = vld [vmem:[%s3834_s30 + $0xf8] sm:$0xff]  ;;  %v2952_v44 = vcombine.high %v206_v38, %v214_v39 }
  0xdd   : > { %2522 = vmatmul.mubr.bf16.gmra.mxu1 %v2965_v42  ;;  %2551 = vmatpush1.bf16.msra.mxu0 %v3584_v46  ;;  %v2935_v42 = vcombine.low %v4439_v56, %v4442_v59  ;;  %v2954_v45 = vcombine.high %v207_v40, %v215_v41  ;;  %v2953_v59 = vcombine.low %v207_v40, %v215_v41 }
  0xde   : > { %2624 = vmatpush1.bf16.msra.mxu1 %v3587_v47  ;;  %2552 = vmatprep.subr.bf16.mxu0 %v3592_v48 }
  0xdf   : > { %2625 = vmatprep.subr.bf16.mxu1 %v3595_v49  ;;  %2458 = vmatprep.mubr.bf16.mxu0 %v2980_v50  ;;  %v222_v49 = vld [vmem:[%s3834_s30 + $0x130] sm:$0xff] }
  0xe0   : > { %2531 = vmatprep.mubr.bf16.mxu1 %v2982_v51 }
  0xe1   : > { %2553 = vmatpush1.bf16.msra.mxu0 %v3590_v52  ;;  %v230_v52 = vld [vmem:[%s3834_s30 + $0x170] sm:$0xff] }
  0xe2   : > { %2626 = vmatpush1.bf16.msra.mxu1 %v3593_v53  ;;  %2554 = vmatprep.subr.bf16.mxu0 %v3598_v54  ;;  %v223_v53 = vld [vmem:[%s3834_s30 + $0x138] sm:$0xff]  ;;  %v2968_v61 = vcombine.high %v222_v49, %v230_v52 }
  0xe3   : > { %2627 = vmatprep.subr.bf16.mxu1 %v3601_v55  ;;  %v231_v54 = vld [vmem:[%s3834_s30 + $0x178] sm:$0xff] }
  0xe4   : > { %2459 = vmatmul.mubr.bf16.gmra.mxu0 %v2979_v57 }
  0xe5   : > { %2532 = vmatmul.mubr.bf16.gmra.mxu1 %v2981_v58  ;;  %2555 = vmatpush1.bf16.msra.mxu0 %v3596_v62  ;;  %v2951_v58 = vcombine.low %v206_v38, %v214_v39  ;;  %v2970_v62 = vcombine.high %v223_v53, %v231_v54 }
  0xe6   : > { %2628 = vmatpush1.bf16.msra.mxu1 %v3599_v63  ;;  %2556 = vmatprep.subr.bf16.mxu0 %v3604_v0 }
  0xe7   : > { %2629 = vmatprep.subr.bf16.mxu1 %v3607_v1  ;;  %2574 = vmatprep.mubr.bf16.mxu0 %v2936_v2 }
  0xe8   : > { %2647 = vmatprep.mubr.bf16.mxu1 %v2938_v3 }
  0xe9   : > { %2557 = vmatpush1.bf16.msra.mxu0 %v3602_v4  ;;  %v238_v4 = vld [vmem:[%s3834_s30 + $0x1b0] sm:$0xff] }
  0xea   : > { %2630 = vmatpush1.bf16.msra.mxu1 %v3605_v5  ;;  %2558 = vmatprep.subr.bf16.mxu0 %v3610_v6  ;;  %v246_v6 = vld [vmem:[%s3834_s30 + $0x1f0] sm:$0xff] }
  0xeb   : > { %2631 = vmatprep.subr.bf16.mxu1 %v3613_v7  ;;  %v239_v7 = vld [vmem:[%s3834_s30 + $0x1b8] sm:$0xff] }
  0xed   : > { %2559 = vmatpush2.bf16.msra.mxu0 %v3608_v8  ;;  %v247_v8 = vld [vmem:[%s3834_s30 + $0x1f8] sm:$0xff]  ;;  %s3254_s30 = sshll.u32 %s4848_s13, 6 }
  0xee   : > { %2632 = vmatpush2.bf16.msra.mxu1 %v3611_v9  ;;  %2560 = vmatprep.subr.bf16.mxu0 %v3616_v10  ;;  %s4751_s24 = scalar_lea.vmem %s4799_s2, %s3254_s30 }
  0xef   : > { %2633 = vmatprep.subr.bf16.mxu1 %v3619_v11 }
  0xf1   : > { %2561 = vmatpush2.bf16.msra.mxu0 %v3614_v12  ;;  %v2967_v12 = vcombine.low %v222_v49, %v230_v52 }
  0xf2   : > { %2634 = vmatpush2.bf16.msra.mxu1 %v3617_v13  ;;  %2562 = vmatprep.subr.bf16.mxu0 %v3622_v14  ;;  %v2969_v13 = vcombine.low %v223_v53, %v231_v54 }
  0xf3   : > { %2635 = vmatprep.subr.bf16.mxu1 %v3625_v15 }
  0xf5   : > { %2563 = vmatpush2.bf16.msra.mxu0 %v3620_v16  ;;  %v2984_v16 = vcombine.high %v238_v4, %v246_v6 }
  0xf6   : > { %2636 = vmatpush2.bf16.msra.mxu1 %v3623_v17  ;;  %2564 = vmatprep.subr.bf16.mxu0 %v3628_v18  ;;  %v2986_v17 = vcombine.high %v239_v7, %v247_v8 }
  0xf7   : > { %2637 = vmatprep.subr.bf16.mxu1 %v3631_v19 }
  0xf9   : > { %2565 = vmatpush2.bf16.msra.mxu0 %v3626_v20 }
  0xfa   : > { %2638 = vmatpush2.bf16.msra.mxu1 %v3629_v21  ;;  %2566 = vmatprep.subr.bf16.mxu0 %v3634_v22 }
  0xfb   : > { %2639 = vmatprep.subr.bf16.mxu1 %v3637_v23 }
  0xfd   : > { %2567 = vmatpush2.bf16.msra.mxu0 %v3632_v24 }
  0xfe   : > { %2640 = vmatpush2.bf16.msra.mxu1 %v3635_v25  ;;  %2568 = vmatprep.subr.bf16.mxu0 %v3640_v26 }
  0xff   : > { %2641 = vmatprep.subr.bf16.mxu1 %v3643_v27 }
 0x101   : > { %2569 = vmatpush2.bf16.msra.mxu0 %v3638_v28  ;;  %v2983_v28 = vcombine.low %v238_v4, %v246_v6 }
 0x102   : > { %2642 = vmatpush2.bf16.msra.mxu1 %v3641_v29  ;;  %2570 = vmatprep.subr.bf16.mxu0 %v3646_v30  ;;  %v2985_v29 = vcombine.low %v239_v7, %v247_v8 }
 0x103   : > { %2643 = vmatprep.subr.bf16.mxu1 %v3649_v31 }
 0x105   : > { %2571 = vmatpush2.bf16.msra.mxu0 %v3644_v32 }
 0x106   : > { %2644 = vmatpush2.bf16.msra.mxu1 %v3647_v33  ;;  %2572 = vmatprep.subr.bf16.mxu0 %v3652_v34 }
 0x107   : > { %2645 = vmatprep.subr.bf16.mxu1 %v3655_v35 }
 0x109   : > { %2573 = vmatpush2.bf16.msra.mxu0 %v3650_v36 }
 0x10a   : > { %2646 = vmatpush2.bf16.msra.mxu1 %v3653_v37 }
 0x10c   : > { %v2138_v46 = vpop.f32.mrf.mxu0  ;;  %2575 = vmatmul.mubr.bf16.vlgmr.msra.gmra.mxu0 %v2935_v42 }
 0x10d   : > { %v2211_v47 = vpop.f32.mrf.mxu1  ;;  %2648 = vmatmul.mubr.bf16.vlgmr.msra.gmra.mxu1 %v2937_v43  ;;  %2584 = vmatprep.mubr.bf16.mxu0 %v2952_v44 }
 0x10e   : > { %v4576_v48 = vadd.f32 %v2211_v47, %v2138_v46  ;;  %2657 = vmatprep.mubr.bf16.mxu1 %v2954_v45  ;;  %v2140_v50 = vpop.f32.mrf.mxu0 }
 0x10f   : > { %v2213_v51 = vpop.f32.mrf.mxu1 }
 0x110   : > { %v4582_v55 = vadd.f32 %v2213_v51, %v2140_v50  ;;  %v2142_v56 = vpop.f32.mrf.mxu0 }
 0x111   : > { %v2215_v57 = vpop.f32.mrf.mxu1 }
 0x112   : > { %v4584_v60 = vadd.f32 %v2215_v57, %v2142_v56  ;;  %v2144_v63 = vpop.f32.mrf.mxu0 }
 0x113   : > { %v2217_v0 = vpop.f32.mrf.mxu1 }
 0x114   : > { %v4586_v1 = vadd.f32 %v2217_v0, %v2144_v63  ;;  %2585 = vmatmul.mubr.bf16.gmra.mxu0 %v2951_v58  ;;  %v2148_v2 = vpop.f32.mrf.mxu0 }
 0x115   : > { %2658 = vmatmul.mubr.bf16.gmra.mxu1 %v2953_v59  ;;  %v2221_v3 = vpop.f32.mrf.mxu1  ;;  %2594 = vmatprep.mubr.bf16.mxu0 %v2968_v61 }
 0x116   : > { %2667 = vmatprep.mubr.bf16.mxu1 %v2970_v62  ;;  %v4589_v5 = vadd.f32 %v2221_v3, %v2148_v2  ;;  %v2150_v9 = vpop.f32.mrf.mxu0 }
 0x117   : > { %v2223_v10 = vpop.f32.mrf.mxu1 }
 0x118   : > { %v4594_v11 = vadd.f32 %v2223_v10, %v2150_v9  ;;  %v2152_v14 = vpop.f32.mrf.mxu0 }
 0x119   : > { %v2225_v15 = vpop.f32.mrf.mxu1 }
 0x11a   : > { %v4596_v18 = vadd.f32 %v2225_v15, %v2152_v14  ;;  %v2154_v19 = vpop.f32.mrf.mxu0 }
 0x11b   : > { %v2227_v20 = vpop.f32.mrf.mxu1 }
 0x11c   : > { %v4598_v21 = vadd.f32 %v2227_v20, %v2154_v19  ;;  %2595 = vmatmul.mubr.bf16.gmra.mxu0 %v2967_v12  ;;  %v2158_v22 = vpop.f32.mrf.mxu0 }
 0x11d   : > { %2668 = vmatmul.mubr.bf16.gmra.mxu1 %v2969_v13  ;;  %v2231_v23 = vpop.f32.mrf.mxu1  ;;  %2604 = vmatprep.mubr.bf16.mxu0 %v2984_v16 }
 0x11e   : > { %2677 = vmatprep.mubr.bf16.mxu1 %v2986_v17  ;;  %v4600_v24 = vadd.f32 %v2231_v23, %v2158_v22  ;;  %v2160_v25 = vpop.f32.mrf.mxu0 }
 0x11f   : > { %v2233_v26 = vpop.f32.mrf.mxu1 }
 0x120   : > { %v4602_v27 = vadd.f32 %v2233_v26, %v2160_v25  ;;  %v2162_v30 = vpop.f32.mrf.mxu0 }
 0x121   : > { %v2235_v31 = vpop.f32.mrf.mxu1 }
 0x122   : > { %v4604_v32 = vadd.f32 %v2235_v31, %v2162_v30  ;;  %v2164_v33 = vpop.f32.mrf.mxu0 }
 0x123   : > { %v2237_v34 = vpop.f32.mrf.mxu1 }
 0x124   : > { %v4606_v35 = vadd.f32 %v2237_v34, %v2164_v33  ;;  %2605 = vmatmul.mubr.bf16.gmra.mxu0 %v2983_v28  ;;  %v2168_v36 = vpop.f32.mrf.mxu0 }
 0x125   : > { %2678 = vmatmul.mubr.bf16.gmra.mxu1 %v2985_v29  ;;  %v2241_v37 = vpop.f32.mrf.mxu1 }
 0x126   : > { %v4608_v38 = vadd.f32 %v2241_v37, %v2168_v36  ;;  %v2170_v39 = vpop.f32.mrf.mxu0 }
 0x127   : > { %v2243_v40 = vpop.f32.mrf.mxu1 }
 0x128   : > { %v4610_v41 = vadd.f32 %v2243_v40, %v2170_v39  ;;  %v2172_v42 = vpop.f32.mrf.mxu0 }
 0x129   : > { %v2245_v43 = vpop.f32.mrf.mxu1 }
 0x12a   : > { %v4612_v44 = vadd.f32 %v2245_v43, %v2172_v42  ;;  %v2174_v45 = vpop.f32.mrf.mxu0 }
 0x12b   : > { %v2247_v46 = vpop.f32.mrf.mxu1 }
 0x12c   : > { %4801 = vst [vmem:[#allocation2_spill] sm:$0xff] %v4612_v44  ;;  %v4614_v47 = vadd.f32 %v2247_v46, %v2174_v45 }
 0x12e   : > { %4802 = vst [vmem:[#allocation3_spill] sm:$0xff] %v4614_v47 }
 0x14c   : > { %v2284_v49 = vpop.f32.mrf.mxu0 }
 0x14d   : > { %v2357_v50 = vpop.f32.mrf.mxu1 }
 0x14e   : > { %v2286_v51 = vpop.f32.mrf.mxu0 }
 0x14f   : > { %v4616_v52 = vpop.f32.mrf.mxu1 }
 0x150   : > { %v2288_v53 = vpop.f32.mrf.mxu0 }
 0x151   : > { %v4618_v54 = vpop.f32.mrf.mxu1 }
 0x152   : > { %v2290_v56 = vpop.f32.mrf.mxu0 }
 0x153   : > { %v4620_v57 = vpop.f32.mrf.mxu1 }
 0x154   : > { %v2294_v58 = vpop.f32.mrf.mxu0 }
 0x155   : > { %v4622_v59 = vpop.f32.mrf.mxu1 }
 0x156   : > { %v2296_v61 = vpop.f32.mrf.mxu0 }
 0x157   : > { %v4624_v62 = vpop.f32.mrf.mxu1 }
 0x158   : > { %v2298_v63 = vpop.f32.mrf.mxu0 }
 0x159   : > { %v4626_v0 = vpop.f32.mrf.mxu1 }
 0x15a   : > { %v4628_v2 = vpop.f32.mrf.mxu0 }
 0x15b   : > { %v4630_v3 = vpop.f32.mrf.mxu1 }
 0x15c   : > { %v4632_v4 = vpop.f32.mrf.mxu0 }
 0x15d   : > { %v4634_v6 = vpop.f32.mrf.mxu1 }
 0x15e   : > { %v4636_v7 = vpop.f32.mrf.mxu0 }
 0x15f   : > { %v4638_v8 = vpop.f32.mrf.mxu1 }
 0x160   : > { %v4640_v9 = vpop.f32.mrf.mxu0 }
 0x161   : > { %v4642_v10 = vpop.f32.mrf.mxu1 }
 0x162   : > { %v4644_v12 = vpop.f32.mrf.mxu0 }
 0x163   : > { %v4646_v13 = vpop.f32.mrf.mxu1 }
 0x164   : > { %v4648_v14 = vpop.f32.mrf.mxu0 }
 0x165   : > { %v4650_v15 = vpop.f32.mrf.mxu1 }
 0x166   : > { %v4652_v16 = vpop.f32.mrf.mxu0 }
 0x167   : > { %v4654_v17 = vpop.f32.mrf.mxu1 }
 0x168   : > { %4803 = vst [vmem:[#allocation4_spill] sm:$0xff] %v4654_v17  ;;  %v4656_v19 = vpop.f32.mrf.mxu0 }
 0x169   : > { %4804 = vst [vmem:[#allocation5_spill] sm:$0xff] %v4656_v19  ;;  %v4658_v20 = vpop.f32.mrf.mxu1 }
 0x16a   : > { %4805 = vst [vmem:[#allocation6_spill] sm:$0xff] %v4658_v20  ;;  %v4660_v22 = vpop.f32.mrf.mxu0 }
 0x16b   : > { %4806 = vst [vmem:[#allocation7_spill] sm:$0xff] %v4660_v22  ;;  %v4662_v23 = vpop.f32.mrf.mxu1 }
 0x16c   : > { %4807 = vst [vmem:[#allocation8_spill] sm:$0xff] %v4662_v23 }
 0x18c   : > { %v2430_v25 = vpop.f32.mrf.mxu0 }
 0x18d   : > { %v2503_v26 = vpop.f32.mrf.mxu1 }
 0x18e   : > { %v2432_v28 = vpop.f32.mrf.mxu0 }
 0x18f   : > { %v2505_v29 = vpop.f32.mrf.mxu1 }
 0x190   : > { %v2434_v30 = vpop.f32.mrf.mxu0 }
 0x191   : > { %v2507_v31 = vpop.f32.mrf.mxu1 }
 0x192   : > { %v2436_v33 = vpop.f32.mrf.mxu0 }
 0x193   : > { %v4664_v34 = vpop.f32.mrf.mxu1 }
 0x194   : > { %v2440_v36 = vpop.f32.mrf.mxu0 }
 0x195   : > { %v4666_v37 = vpop.f32.mrf.mxu1 }
 0x196   : > { %v4668_v39 = vpop.f32.mrf.mxu0 }
 0x197   : > { %v4670_v40 = vpop.f32.mrf.mxu1 }
 0x198   : > { %4808 = vst [vmem:[#allocation9_spill] sm:$0xff] %v4670_v40  ;;  %v4672_v42 = vpop.f32.mrf.mxu0 }
 0x199   : > { %v4674_v43 = vpop.f32.mrf.mxu1 }
 0x19a   : > { %4809 = vst [vmem:[#allocation10_spill] sm:$0xff] %v4674_v43  ;;  %v4676_v45 = vpop.f32.mrf.mxu0 }
 0x19b   : > { %4810 = vst [vmem:[#allocation11_spill] sm:$0xff] %v4676_v45  ;;  %v4678_v46 = vpop.f32.mrf.mxu1 }
 0x19c   : > { %4811 = vst [vmem:[#allocation12_spill] sm:$0xff] %v4678_v46  ;;  %v4680_v23 = vpop.f32.mrf.mxu0  ;;  %v2285_v46 = vadd.f32 %v2284_v49, %v4576_v48  ;;  %v2295_v48 = vadd.f32 %v2294_v58, %v4589_v5 }
 0x19d   : > { %4812 = vst [vmem:[#allocation13_spill] sm:$0xff] %v4680_v23  ;;  %v4682_v20 = vpop.f32.mrf.mxu1 }
 0x19e   : > { %4813 = vst [vmem:[#allocation14_spill] sm:$0xff] %v4682_v20  ;;  %v4684_v22 = vpop.f32.mrf.mxu0  ;;  %v2368_v5 = vadd.f32 %v4622_v59, %v2295_v48  ;;  %v2311_v59 = vadd.f32 %v4644_v12, %v4606_v35 }
 0x19f   : > { %4814 = vst [vmem:[#allocation15_spill] sm:$0xff] %v4684_v22  ;;  %v4686_v47 = vpop.f32.mrf.mxu1  ;;  %v2358_v22 = vadd.f32 %v2357_v50, %v2285_v46  ;;  %v4827_v48 = vld [vmem:[#allocation9_spill] sm:$0xff] }
 0x1a0   : > { %4815 = vst [vmem:[#allocation16_spill] sm:$0xff] %v4686_v47  ;;  %v4688_v17 = vpop.f32.mrf.mxu0  ;;  %v2287_v47 = vadd.f32 %v2286_v51, %v4582_v55  ;;  %v2299_v55 = vadd.f32 %v2298_v63, %v4596_v18 }
 0x1a1   : > { %4816 = vst [vmem:[#allocation17_spill] sm:$0xff] %v4688_v17  ;;  %v4690_v19 = vpop.f32.mrf.mxu1  ;;  %v2289_v17 = vadd.f32 %v2288_v53, %v4584_v60 }
 0x1a2   : > { %4817 = vst [vmem:[#allocation18_spill] sm:$0xff] %v4690_v19  ;;  %v4692_v40 = vpop.f32.mrf.mxu0 }
 0x1a3   : > { %4818 = vst [vmem:[#allocation19_spill] sm:$0xff] %v4692_v40  ;;  %v4694_v44 = vpop.f32.mrf.mxu1  ;;  %v2362_v49 = vadd.f32 %v4618_v54, %v2289_v17  ;;  %v2309_v54 = vadd.f32 %v4640_v9, %v4604_v32 }
 0x1a4   : > { %4819 = vst [vmem:[#allocation20_spill] sm:$0xff] %v4694_v44  ;;  %v4696_v43 = vpop.f32.mrf.mxu0  ;;  %v2360_v44 = vadd.f32 %v4616_v52, %v2287_v47  ;;  %v2301_v47 = vadd.f32 %v4628_v2, %v4598_v21 }
 0x1a5   : > { %4820 = vst [vmem:[#allocation21_spill] sm:$0xff] %v4696_v43  ;;  %v4698_v45 = vpop.f32.mrf.mxu1  ;;  %v2291_v43 = vadd.f32 %v2290_v56, %v4586_v1  ;;  %v2435_v52 = vadd.f32 %v2434_v30, %v2362_v49  ;;  %v2382_v35 = vadd.f32 %v4642_v10, %v2309_v54  ;;  %v4828_v49 = vld [vmem:[#allocation10_spill] sm:$0xff] }
 0x1a6   : > { %4821 = vst [vmem:[#allocation22_spill] sm:$0xff] %v4698_v45  ;;  %v4701_v23 = vpop.f32.mrf.mxu0  ;;  %v2431_v45 = vadd.f32 %v2430_v25, %v2358_v22  ;;  %v2317_v25 = vadd.f32 %v4652_v16, %v4610_v41  ;;  %v4824_v41 = vld [vmem:[#allocation2_spill] sm:$0xff]  ;;  %v4825_v16 = vld [vmem:[#allocation5_spill] sm:$0xff] }
 0x1a7   : > { %4822 = vst [vmem:[#allocation23_spill] sm:$0xff] %v4701_v23  ;;  %v4703_v20 = vpop.f32.mrf.mxu1  ;;  %v2433_v23 = vadd.f32 %v2432_v28, %v2360_v44  ;;  %v2364_v51 = vadd.f32 %v4620_v57, %v2291_v43  ;;  %v2305_v44 = vadd.f32 %v4632_v4, %v4600_v24  ;;  %v2508_v2 = vadd.f32 %v2507_v31, %v2435_v52  ;;  %v4826_v31 = vld [vmem:[#allocation11_spill] sm:$0xff] }
 0x1a8   : > { %4823 = vst [vmem:[#allocation24_spill] sm:$0xff] %v4703_v20  ;;  %v4707_v19 = vpop.f32.mrf.mxu0  ;;  %v2297_v20 = vadd.f32 %v2296_v61, %v4594_v11  ;;  %v2504_v1 = vadd.f32 %v2503_v26, %v2431_v45  ;;  %v2307_v11 = vadd.f32 %v4636_v7, %v4602_v27  ;;  %v2372_v61 = vadd.f32 %v4626_v0, %v2299_v55 }
 0x1a9   : > { %v4709_v40 = vpop.f32.mrf.mxu1  ;;  %v2506_v56 = vadd.f32 %v2505_v29, %v2433_v23  ;;  %v2437_v57 = vadd.f32 %v2436_v33, %v2364_v51  ;;  %v2374_v27 = vadd.f32 %v4630_v3, %v2301_v47  ;;  %v2441_v4 = vadd.f32 %v2440_v36, %v2368_v5  ;;  %v4829_v51 = vld [vmem:[#allocation13_spill] sm:$0xff] }
 0x1aa   : > { %v4717_v50 = vpop.f32.mrf.mxu0  ;;  %v2370_v21 = vadd.f32 %v4624_v62, %v2297_v20  ;;  %v2378_v32 = vadd.f32 %v4634_v6, %v2305_v44  ;;  %v2380_v9 = vadd.f32 %v4638_v8, %v2307_v11  ;;  %v2315_v62 = vadd.f32 %v4648_v14, %v4608_v38 }
 0x1ab   : > { %v4719_v60 = vpop.f32.mrf.mxu1  ;;  %v2510_v12 = vadd.f32 %v4664_v34, %v2437_v57  ;;  %v2384_v23 = vadd.f32 %v4646_v13, %v2311_v59  ;;  %v2445_v8 = vadd.f32 %v4672_v42, %v2372_v61  ;;  %v2514_v14 = vadd.f32 %v4666_v37, %v2441_v4  ;;  %v4832_v57 = vld [vmem:[#allocation7_spill] sm:$0xff] }
 0x1ac   : > { %v2443_v6 = vadd.f32 %v4668_v39, %v2370_v21  ;;  %v2388_v29 = vadd.f32 %v4650_v15, %v2315_v62  ;;  %v2319_v30 = vadd.f32 %v4825_v16, %v4824_v41  ;;  %v2447_v33 = vadd.f32 %v4826_v31, %v2374_v27  ;;  %v4835_v62 = vld [vmem:[#allocation17_spill] sm:$0xff] }
 0x1ad   : > { %v2518_v55 = vadd.f32 %v4828_v49, %v2445_v8  ;;  %v2451_v47 = vadd.f32 %v4829_v51, %v2378_v32  ;;  %v4837_v8 = vld [vmem:[#allocation19_spill] sm:$0xff] }
 0x1ae   : > { %v2516_v37 = vadd.f32 %v4827_v48, %v2443_v6 }
 0x1cc   : > { %v2576_v18 = vpop.f32.mrf.mxu0 }
 0x1cd   : > { %v2649_v53 = vpop.f32.mrf.mxu1  ;;  %v2577_v58 = vadd.f32 %v2576_v18, %v2504_v1 }
 0x1ce   : > { %v2578_v24 = vpop.f32.mrf.mxu0 }
 0x1cf   : > { %v2651_v63 = vpop.f32.mrf.mxu1  ;;  %v2579_v7 = vadd.f32 %v2578_v24, %v2506_v56  ;;  %v2650_v17 = vadd.f32 %v2649_v53, %v2577_v58  ;;  %v4830_v53 = vld [vmem:[#allocation4_spill] sm:$0xff]  ;;  %v4831_v56 = vld [vmem:[#allocation3_spill] sm:$0xff] }
 0x1d0   : > { %v2580_v0 = vpop.f32.mrf.mxu0  ;;  %v2390_v54 = vadd.f32 %v4830_v53, %v2317_v25  ;;  %v2321_v58 = vadd.f32 %v4832_v57, %v4831_v56  ;;  %v4836_v25 = vld [vmem:[#allocation14_spill] sm:$0xff]  ;;  %v4843_v56 = vld [vmem:[#allocation20_spill] sm:$0xff] }
 0x1d1   : > { %v2653_v20 = vpop.f32.mrf.mxu1  ;;  %v2652_v22 = vadd.f32 %v2651_v63, %v2579_v7  ;;  %v2581_v3 = vadd.f32 %v2580_v0, %v2508_v2  ;;  %v2716_v34 = vmul.f32 %v2650_v17, %v2650_v17  ;;  %v4833_v63 = vld [vmem:[#allocation12_spill] sm:$0xff]  ;;  %v4834_v2 = vld [vmem:[#allocation15_spill] sm:$0xff]  ;;  %v2524_v6 = vadd.f32 %v4836_v25, %v2451_v47 }
 0x1d2   : > { %v2582_v38 = vpop.f32.mrf.mxu0  ;;  %v2520_v27 = vadd.f32 %v4833_v63, %v2447_v33  ;;  %v2453_v4 = vadd.f32 %v4834_v2, %v2380_v9 }
 0x1d3   : > { %v2655_v10 = vpop.f32.mrf.mxu1  ;;  %v3256_v26 = vpack.c.bf16 %v2652_v22, %v2650_v17  ;;  %v2654_v28 = vadd.f32 %v2653_v20, %v2581_v3  ;;  %v2583_v13 = vadd.f32 %v2582_v38, %v2510_v12  ;;  %v2717_v15 = vmul.f32 %v2652_v22, %v2652_v22 }
 0x1d4   : > { %v2586_v36 = vpop.f32.mrf.mxu0  ;;  %v2457_v38 = vadd.f32 %v4837_v8, %v2384_v23 }
 0x1d5   : > { %v2659_v39 = vpop.f32.mrf.mxu1  ;;  %2808 = vst [vmem:[%s4751_s24] sm:$0xff] %v3256_v26  ;;  %v2688_v42 = vadd.f32 %v2654_v28, %v2650_v17  ;;  %v2718_v43 = vmul.f32 %v2654_v28, %v2654_v28  ;;  %v2656_v45 = vadd.f32 %v2655_v10, %v2583_v13  ;;  %v2587_v46 = vadd.f32 %v2586_v36, %v2514_v14  ;;  %v4838_v36 = vld [vmem:[#allocation16_spill] sm:$0xff] }
 0x1d6   : > { %v2588_v1 = vpop.f32.mrf.mxu0  ;;  %v2455_v17 = vadd.f32 %v4835_v62, %v2382_v35  ;;  %v2530_v57 = vadd.f32 %v4843_v56, %v2457_v38  ;;  %v4846_v38 = vld [vmem:[#allocation24_spill] sm:$0xff] }
 0x1d7   : > { %v2661_v52 = vpop.f32.mrf.mxu1  ;;  %v2732_v5 = vadd.f32 %v2718_v43, %v2716_v34  ;;  %v2701_v44 = vadd.f32 %v2656_v45, %v2652_v22  ;;  %v2719_v11 = vmul.f32 %v2656_v45, %v2656_v45  ;;  %v3257_v18 = vpack.c.bf16 %v2656_v45, %v2654_v28  ;;  %v4840_v45 = vld [vmem:[#allocation21_spill] sm:$0xff] }
 0x1d8   : > { %v2660_v21 = vadd.f32 %v2659_v39, %v2587_v46  ;;  %v2589_v61 = vadd.f32 %v2588_v1, %v2516_v37  ;;  %v2590_v59 = vpop.f32.mrf.mxu0  ;;  %v2526_v39 = vadd.f32 %v4838_v36, %v2453_v4  ;;  %v2461_v46 = vadd.f32 %v4840_v45, %v2388_v29  ;;  %v4844_v29 = vld [vmem:[#allocation23_spill] sm:$0xff] }
 0x1d9   : > { %v2663_v24 = vpop.f32.mrf.mxu1  ;;  %v2745_v7 = vadd.f32 %v2719_v11, %v2717_v15  ;;  %2809 = vst [vmem:[%s4751_s24 + $0x8] sm:$0xff] %v3257_v18  ;;  %v2591_v32 = vadd.f32 %v2590_v59, %v2518_v55  ;;  %v4841_v15 = vld [vmem:[#allocation6_spill] sm:$0xff] }
 0x1da   : > { %v2689_v0 = vadd.f32 %v2688_v42, %v2660_v21  ;;  %v2720_v20 = vmul.f32 %v2660_v21, %v2660_v21  ;;  %v2662_v12 = vadd.f32 %v2661_v52, %v2589_v61  ;;  %v2592_v22 = vpop.f32.mrf.mxu0  ;;  %v4839_v42 = vld [vmem:[#allocation18_spill] sm:$0xff]  ;;  %v2392_v1 = vadd.f32 %v4841_v15, %v2319_v30  ;;  %v4842_v52 = vld [vmem:[#allocation8_spill] sm:$0xff] }
 0x1db   : > { %v2665_v3 = vpop.f32.mrf.mxu1  ;;  %v2664_v10 = vadd.f32 %v2663_v24, %v2591_v32  ;;  %v2593_v14 = vadd.f32 %v2592_v22, %v2520_v27  ;;  %v2528_v43 = vadd.f32 %v4839_v42, %v2455_v17 }
 0x1dc   : > { %v2733_v26 = vadd.f32 %v2732_v5, %v2720_v20  ;;  %v2702_v28 = vadd.f32 %v2701_v44, %v2662_v12  ;;  %v2721_v9 = vmul.f32 %v2662_v12, %v2662_v12  ;;  %v3258_v13 = vpack.c.bf16 %v2662_v12, %v2660_v21  ;;  %v2596_v41 = vpop.f32.mrf.mxu0 }
 0x1dd   : > { %v2669_v16 = vpop.f32.mrf.mxu1  ;;  %v2690_v31 = vadd.f32 %v2689_v0, %v2664_v10  ;;  %v2722_v35 = vmul.f32 %v2664_v10, %v2664_v10  ;;  %v2666_v33 = vadd.f32 %v2665_v3, %v2593_v14  ;;  %v2597_v34 = vadd.f32 %v2596_v41, %v2524_v6 }
 0x1de   : > { %v2746_v23 = vadd.f32 %v2745_v7, %v2721_v9  ;;  %2810 = vst [vmem:[%s4751_s24 + $0x10] sm:$0xff] %v3258_v13  ;;  %v2598_v48 = vpop.f32.mrf.mxu0  ;;  %v2394_v5 = vadd.f32 %v4842_v52, %v2321_v58  ;;  %v2463_v21 = vadd.f32 %v4844_v29, %v2390_v54  ;;  %v2465_v24 = vadd.f32 %v4707_v19, %v2392_v1  ;;  %v4845_v7 = vld [vmem:[#allocation22_spill] sm:$0xff] }
 0x1df   : > { %v2671_v37 = vpop.f32.mrf.mxu1  ;;  %v2734_v49 = vadd.f32 %v2733_v26, %v2722_v35  ;;  %v2703_v55 = vadd.f32 %v2702_v28, %v2666_v33  ;;  %v2723_v51 = vmul.f32 %v2666_v33, %v2666_v33  ;;  %v3259_v47 = vpack.c.bf16 %v2666_v33, %v2664_v10 }
 0x1e0   : > { %v2670_v44 = vadd.f32 %v2669_v16, %v2597_v34  ;;  %v2599_v11 = vadd.f32 %v2598_v48, %v2526_v39  ;;  %v2600_v18 = vpop.f32.mrf.mxu0  ;;  %v2534_v58 = vadd.f32 %v4845_v7, %v2461_v46  ;;  %v2467_v32 = vadd.f32 %v4717_v50, %v2394_v5 }
 0x1e1   : > { %v2673_v53 = vpop.f32.mrf.mxu1  ;;  %v2747_v61 = vadd.f32 %v2746_v23, %v2723_v51  ;;  %2811 = vst [vmem:[%s4751_s24 + $0x18] sm:$0xff] %v3259_v47  ;;  %v2601_v59 = vadd.f32 %v2600_v18, %v2528_v43  ;;  %v2536_v10 = vadd.f32 %v4846_v38, %v2463_v21  ;;  %v2538_v14 = vadd.f32 %v4709_v40, %v2465_v24 }
 0x1e2   : > { %v2691_v63 = vadd.f32 %v2690_v31, %v2670_v44  ;;  %v2724_v27 = vmul.f32 %v2670_v44, %v2670_v44  ;;  %v2672_v2 = vadd.f32 %v2671_v37, %v2599_v11  ;;  %v2602_v4 = vpop.f32.mrf.mxu0  ;;  %v2540_v36 = vadd.f32 %v4719_v60, %v2467_v32 }
 0x1e3   : > { %v2675_v30 = vpop.f32.mrf.mxu1  ;;  %v2674_v62 = vadd.f32 %v2673_v53, %v2601_v59  ;;  %v2603_v17 = vadd.f32 %v2602_v4, %v2530_v57 }
 0x1e4   : > { %v2735_v0 = vadd.f32 %v2734_v49, %v2724_v27  ;;  %v2704_v20 = vadd.f32 %v2703_v55, %v2672_v2  ;;  %v2725_v54 = vmul.f32 %v2672_v2, %v2672_v2  ;;  %v3260_v12 = vpack.c.bf16 %v2672_v2, %v2670_v44  ;;  %v2606_v22 = vpop.f32.mrf.mxu0 }
 0x1e5   : > { %v2679_v3 = vpop.f32.mrf.mxu1  ;;  %v2692_v25 = vadd.f32 %v2691_v63, %v2674_v62  ;;  %v2726_v19 = vmul.f32 %v2674_v62, %v2674_v62  ;;  %v2676_v6 = vadd.f32 %v2675_v30, %v2603_v17  ;;  %v2607_v8 = vadd.f32 %v2606_v22, %v2534_v58 }
 0x1e6   : > { %v2748_v26 = vadd.f32 %v2747_v61, %v2725_v54  ;;  %2812 = vst [vmem:[%s4751_s24 + $0x20] sm:$0xff] %v3260_v12  ;;  %v2608_v50 = vpop.f32.mrf.mxu0 }
 0x1e7   : > { %v2681_v28 = vpop.f32.mrf.mxu1  ;;  %v2736_v9 = vadd.f32 %v2735_v0, %v2726_v19  ;;  %v2705_v13 = vadd.f32 %v2704_v20, %v2676_v6  ;;  %v2727_v41 = vmul.f32 %v2676_v6, %v2676_v6  ;;  %v3261_v16 = vpack.c.bf16 %v2676_v6, %v2674_v62 }
 0x1e8   : > { %v2680_v31 = vadd.f32 %v2679_v3, %v2607_v8  ;;  %v2609_v35 = vadd.f32 %v2608_v50, %v2536_v10  ;;  %v2610_v33 = vpop.f32.mrf.mxu0 }
 0x1e9   : > { %v2683_v34 = vpop.f32.mrf.mxu1  ;;  %v2749_v39 = vadd.f32 %v2748_v26, %v2727_v41  ;;  %2813 = vst [vmem:[%s4751_s24 + $0x28] sm:$0xff] %v3261_v16  ;;  %v2611_v42 = vadd.f32 %v2610_v33, %v2538_v14 }
 0x1ea   : > { %v2693_v43 = vadd.f32 %v2692_v25, %v2680_v31  ;;  %v2728_v40 = vmul.f32 %v2680_v31, %v2680_v31  ;;  %v2682_v45 = vadd.f32 %v2681_v28, %v2609_v35  ;;  %v2612_v46 = vpop.f32.mrf.mxu0 }
 0x1eb   : > { %v2684_v23 = vadd.f32 %v2683_v34, %v2611_v42  ;;  %v2613_v48 = vadd.f32 %v2612_v46, %v2540_v36  ;;  %v2685_v47 = vpop.f32.mrf.mxu1 }
 0x1ec   : > { %v2737_v37 = vadd.f32 %v2736_v9, %v2728_v40  ;;  %v2706_v49 = vadd.f32 %v2705_v13, %v2682_v45  ;;  %v2729_v55 = vmul.f32 %v2682_v45, %v2682_v45  ;;  %v3262_v51 = vpack.c.bf16 %v2682_v45, %v2680_v31 }
 0x1ed   : > { %v2694_v15 = vadd.f32 %v2693_v43, %v2684_v23  ;;  %v2730_v1 = vmul.f32 %v2684_v23, %v2684_v23  ;;  %v2686_v52 = vadd.f32 %v2685_v47, %v2613_v48 }
 0x1ee   : > { %v2750_v60 = vadd.f32 %v2749_v39, %v2729_v55  ;;  %2814 = vst [vmem:[%s4751_s24 + $0x30] sm:$0xff] %v3262_v51 }
 0x1ef   : > { %v2695_v5 = vrot.slane %v2694_v15, 4  ;;  %v2738_v44 = vadd.f32 %v2737_v37, %v2730_v1  ;;  %v2707_v11 = vadd.f32 %v2706_v49, %v2686_v52  ;;  %v2731_v18 = vmul.f32 %v2686_v52, %v2686_v52 }
 0x1f0   : > { %v3263_v53 = vpack.c.bf16 %v2686_v52, %v2684_v23 }
 0x1f1   : > { %v2696_v56 = vadd.f32 %v2695_v5, %v2694_v15  ;;  %v2739_v57 = vrot.slane %v2738_v44, 4  ;;  %v2708_v29 = vrot.slane %v2707_v11, 4  ;;  %v2751_v21 = vadd.f32 %v2750_v60, %v2731_v18 }
 0x1f2   : > { %2815 = vst [vmem:[%s4751_s24 + $0x38] sm:$0xff] %v3263_v53 }
 0x1f3   : > { %v2697_v61 = vrot.slane %v2696_v56, 2  ;;  %v2740_v59 = vadd.f32 %v2739_v57, %v2738_v44  ;;  %v2709_v24 = vadd.f32 %v2708_v29, %v2707_v11  ;;  %v2752_v63 = vrot.slane %v2751_v21, 4 }
 0x1f5   : > { %v2698_v27 = vadd.f32 %v2697_v61, %v2696_v56  ;;  %v2741_v2 = vrot.slane %v2740_v59, 2  ;;  %v2710_v4 = vrot.slane %v2709_v24, 2  ;;  %v2753_v30 = vadd.f32 %v2752_v63, %v2751_v21 }
 0x1f7   : > { %v2699_v7 = vrot.slane %v2698_v27, 1  ;;  %v2742_v58 = vadd.f32 %v2741_v2, %v2740_v59  ;;  %v2711_v32 = vadd.f32 %v2710_v4, %v2709_v24  ;;  %v2754_v62 = vrot.slane %v2753_v30, 2 }
 0x1f9   : > { %v2743_v17 = vrot.slane %v2742_v58, 1  ;;  %v2712_v0 = vrot.slane %v2711_v32, 1  ;;  %v2755_v20 = vadd.f32 %v2754_v62, %v2753_v30  ;;  %v2700_v54 = vadd.f32 %v2699_v7, %v2698_v27 }
 0x1fb   : > { %v2744_v12 = vadd.f32 %v2743_v17, %v2742_v58  ;;  %v2756_v22 = vrot.slane %v2755_v20, 1  ;;  %v2713_v25 = vadd.f32 %v2712_v0, %v2711_v32 }
 0x1fd   : > { %v2817_v3 = vsel %vm2816_vm0, %v2700_v54, %v2744_v12  ;;  %v2757_v19 = vadd.f32 %v2756_v22, %v2755_v20 }
 0x1fe   : > { %v2820_v6 = vsel %vm2819_vm1, %v2817_v3, 0.0 }
 0x1ff   : > { %2822 = vst [vmem:[%s183_s28] sm:$0xff] %v2820_v6  ;;  %v2818_v8 = vsel %vm2816_vm0, %v2713_v25, %v2757_v19 }
 0x200   : > { %v2821_v38 = vsel %vm2819_vm1, %v2818_v8, 0.0 }
 0x201   : > { %2823 = vst [vmem:[%s183_s28 + $0x8] sm:$0xff] %v2821_v38 }
 0x202 PF: > { %s14_s12 = sadd.s32 1, %s3662_s12  }
 0x203   : > { %p11_p4 = scmp.ge.s32.totalorder %s14_s12, 4  }
 0x205   :  { %13 = sbr.rel (!%p11_p4) target bundleno = 1 (0x1), region = 70 }

// kernel: discriminator_forward.7
= control target key start
LH: loop header
LB: loop body
LE: loop exit
PB: predicated region body
PF: predicated region fallthrough
CT: control target
= control target key end

     0   :  { %s10750_s12 = smov 0   ;;  %s14280_s0 = inlined_call_operand.vmem [shape: bf16[2,16,4096], index: 0, kind: input, shape index: {}]   ;;  %s14281_s1 = inlined_call_operand.vmem [shape: bf16[1,1,4096,512], index: 1, kind: input, shape index: {}]   ;;  %s14282_s2 = inlined_call_operand.vmem [shape: bf16[2,16,512], index: 2, kind: output, shape index: {0}]   ;;  %s14283_s3 = inlined_call_operand.vmem [shape: f32[2,8,512], index: 3, kind: output, shape index: {1}]  }
   0x1 LB: > { %s8098_s13 = sadd.s32 4294967295, %s10728_s12   ;;  %p8102_p0 = scmp.ge.s32.totalorder %s10728_s12, 1  ;;  %s10728_s12 = sphi %s10750_s12, %s14_s12  }
   0x2   : > { %p140_p1 = scmp.lt.s32.totalorder %s10728_s12, 3 }
   0x4   : > { %p141_p2 = pnand %p8102_p0, %p140_p1 }
   0x6   : > { %144 = sbr.rel (%p141_p2) target bundleno = 1258 (0x4ea), region = 28 }
   0xb   : > { %v9186_v0 = vld [vmem:[%s14281_s1 + $0xe4] ss:$16 sps:$4 sm:$0xff]   ;;  %v9190_v2 = vld [vmem:[%s14281_s1 + $0xe0] ss:$16 sps:$4 sm:$0xff]   ;;  %p169_p3 = scmp.lt.s32.totalorder %s8098_s13, 1  ;;  %vm7996_vm0 = vcmask 1040384  }
   0xc   : > { %v9188_v1 = vld [vmem:[%s14281_s1 + $0x2e4] ss:$16 sps:$4 sm:$0xff]   ;;  %6520 = vmatprep.subr.bf16.mxu0 %v9186_v0  ;;  %v9191_v3 = vld [vmem:[%s14281_s1 + $0x2e0] ss:$16 sps:$4 sm:$0xff]   ;;  %vm8001_vm1 = vcmask 1041408  }
   0xd   : > { %6563 = vmatprep.subr.bf16.mxu1 %v9188_v1  ;;  %v9192_v4 = vld [vmem:[%s14281_s1 + $0xc4] ss:$16 sps:$4 sm:$0xff]   ;;  %6521 = vmatpush1.bf16.msra.mxu0 %v9190_v2  ;;  %v9196_v6 = vld [vmem:[%s14281_s1 + $0xc0] ss:$16 sps:$4 sm:$0xff]   ;;  %s14300_s13 = smov (!%p169_p3, %s8098_s13), 1 }
   0xe   : > { %6564 = vmatpush1.bf16.msra.mxu1 %v9191_v3  ;;  %v9194_v5 = vld [vmem:[%s14281_s1 + $0x2c4] ss:$16 sps:$4 sm:$0xff]   ;;  %6522 = vmatprep.subr.bf16.mxu0 %v9192_v4  ;;  %v9197_v7 = vld [vmem:[%s14281_s1 + $0x2c0] ss:$16 sps:$4 sm:$0xff]   ;;  %s9171_s21 = sshll.u32 %s14300_s13, 8  ;;  %s9172_s29 = sshll.u32 %s14300_s13, 5 }
   0xf   : > { %6565 = vmatprep.subr.bf16.mxu1 %v9194_v5  ;;  %v9198_v8 = vld [vmem:[%s14281_s1 + $0xa4] ss:$16 sps:$4 sm:$0xff]   ;;  %v9202_v10 = vld [vmem:[%s14281_s1 + $0xa0] ss:$16 sps:$4 sm:$0xff]   ;;  %s10900_s30 = scalar_lea.vmem %s14280_s0, %s9171_s21  ;;  %s13310_s9 = scalar_lea.vmem %s14282_s2, %s9172_s29 }
  0x10   : > { %v9200_v9 = vld [vmem:[%s14281_s1 + $0x2a4] ss:$16 sps:$4 sm:$0xff]   ;;  %v9203_v11 = vld [vmem:[%s14281_s1 + $0x2a0] ss:$16 sps:$4 sm:$0xff]   ;;  %v185_v50 = vld [vmem:[%s10900_s30 + $0x8] sm:$0xff]  ;;  %s13373_s27 = scalar_lea.vmem %s14283_s3, %s9172_s29 }
  0x11   : > { %6523 = vmatpush1.bf16.msra.mxu0 %v9196_v6  ;;  %v9204_v12 = vld [vmem:[%s14281_s1 + $0x84] ss:$16 sps:$4 sm:$0xff]   ;;  %v9208_v14 = vld [vmem:[%s14281_s1 + $0x80] ss:$16 sps:$4 sm:$0xff]   ;;  %v201_v51 = vld [vmem:[%s10900_s30 + $0x88] sm:$0xff] }
  0x12   : > { %6566 = vmatpush1.bf16.msra.mxu1 %v9197_v7  ;;  %6524 = vmatprep.subr.bf16.mxu0 %v9198_v8  ;;  %v9206_v13 = vld [vmem:[%s14281_s1 + $0x284] ss:$16 sps:$4 sm:$0xff]   ;;  %v9209_v15 = vld [vmem:[%s14281_s1 + $0x280] ss:$16 sps:$4 sm:$0xff]   ;;  %v10926_v55 = vcombine.high %v185_v50, %v201_v51 }
  0x13   : > { %6567 = vmatprep.subr.bf16.mxu1 %v9200_v9  ;;  %v9210_v16 = vld [vmem:[%s14281_s1 + $0x64] ss:$16 sps:$4 sm:$0xff]   ;;  %v9214_v18 = vld [vmem:[%s14281_s1 + $0x60] ss:$16 sps:$4 sm:$0xff]   ;;  %v10980_v9 = vcombine.low %v185_v50, %v201_v51 }
  0x14   : > { %v9212_v17 = vld [vmem:[%s14281_s1 + $0x264] ss:$16 sps:$4 sm:$0xff]   ;;  %v9215_v19 = vld [vmem:[%s14281_s1 + $0x260] ss:$16 sps:$4 sm:$0xff]   ;;  %6595 = vmatprep.mubr.bf16.mxu1 %v10926_v55 }
  0x15   : > { %6525 = vmatpush1.bf16.msra.mxu0 %v9202_v10  ;;  %v9216_v20 = vld [vmem:[%s14281_s1 + $0x44] ss:$16 sps:$4 sm:$0xff]   ;;  %v9220_v22 = vld [vmem:[%s14281_s1 + $0x40] ss:$16 sps:$4 sm:$0xff]  }
  0x16   : > { %6568 = vmatpush1.bf16.msra.mxu1 %v9203_v11  ;;  %6526 = vmatprep.subr.bf16.mxu0 %v9204_v12  ;;  %v9218_v21 = vld [vmem:[%s14281_s1 + $0x244] ss:$16 sps:$4 sm:$0xff]   ;;  %v9221_v23 = vld [vmem:[%s14281_s1 + $0x240] ss:$16 sps:$4 sm:$0xff]  }
  0x17   : > { %6569 = vmatprep.subr.bf16.mxu1 %v9206_v13  ;;  %v9222_v24 = vld [vmem:[%s14281_s1 + $0x24] ss:$16 sps:$4 sm:$0xff]   ;;  %v9226_v26 = vld [vmem:[%s14281_s1 + $0x20] ss:$16 sps:$4 sm:$0xff]  }
  0x18   : > { %v9224_v25 = vld [vmem:[%s14281_s1 + $0x224] ss:$16 sps:$4 sm:$0xff]   ;;  %v9227_v27 = vld [vmem:[%s14281_s1 + $0x220] ss:$16 sps:$4 sm:$0xff]  }
  0x19   : > { %6527 = vmatpush1.bf16.msra.mxu0 %v9208_v14  ;;  %v9228_v28 = vld [vmem:[%s14281_s1 + $0x4] ss:$16 sps:$4 sm:$0xff]   ;;  %v9232_v30 = vld [vmem:[%s14281_s1] ss:$16 sps:$4 sm:$0xff]  }
  0x1a   : > { %6570 = vmatpush1.bf16.msra.mxu1 %v9209_v15  ;;  %6528 = vmatprep.subr.bf16.mxu0 %v9210_v16  ;;  %v9230_v29 = vld [vmem:[%s14281_s1 + $0x204] ss:$16 sps:$4 sm:$0xff]   ;;  %v9233_v31 = vld [vmem:[%s14281_s1 + $0x200] ss:$16 sps:$4 sm:$0xff]  }
  0x1b   : > { %6571 = vmatprep.subr.bf16.mxu1 %v9212_v17  ;;  %v9234_v32 = vld [vmem:[%s14281_s1 + $0x1e4] ss:$16 sps:$4 sm:$0xff]   ;;  %v9238_v34 = vld [vmem:[%s14281_s1 + $0x1e0] ss:$16 sps:$4 sm:$0xff]  }
  0x1c   : > { %v9236_v33 = vld [vmem:[%s14281_s1 + $0x3e4] ss:$16 sps:$4 sm:$0xff]   ;;  %v9239_v35 = vld [vmem:[%s14281_s1 + $0x3e0] ss:$16 sps:$4 sm:$0xff]  }
  0x1d   : > { %6529 = vmatpush1.bf16.msra.mxu0 %v9214_v18  ;;  %v9240_v36 = vld [vmem:[%s14281_s1 + $0x1c4] ss:$16 sps:$4 sm:$0xff]   ;;  %v9244_v38 = vld [vmem:[%s14281_s1 + $0x1c0] ss:$16 sps:$4 sm:$0xff]  }
  0x1e   : > { %6572 = vmatpush1.bf16.msra.mxu1 %v9215_v19  ;;  %6530 = vmatprep.subr.bf16.mxu0 %v9216_v20  ;;  %v9242_v37 = vld [vmem:[%s14281_s1 + $0x3c4] ss:$16 sps:$4 sm:$0xff]   ;;  %v9245_v39 = vld [vmem:[%s14281_s1 + $0x3c0] ss:$16 sps:$4 sm:$0xff]  }
  0x1f   : > { %6573 = vmatprep.subr.bf16.mxu1 %v9218_v21  ;;  %v9246_v40 = vld [vmem:[%s14281_s1 + $0x1a4] ss:$16 sps:$4 sm:$0xff]   ;;  %v9250_v42 = vld [vmem:[%s14281_s1 + $0x1a0] ss:$16 sps:$4 sm:$0xff]  }
  0x20   : > { %v9248_v41 = vld [vmem:[%s14281_s1 + $0x3a4] ss:$16 sps:$4 sm:$0xff]   ;;  %v9251_v43 = vld [vmem:[%s14281_s1 + $0x3a0] ss:$16 sps:$4 sm:$0xff]  }
  0x21   : > { %6531 = vmatpush1.bf16.msra.mxu0 %v9220_v22  ;;  %v9252_v44 = vld [vmem:[%s14281_s1 + $0x184] ss:$16 sps:$4 sm:$0xff]   ;;  %v9256_v46 = vld [vmem:[%s14281_s1 + $0x180] ss:$16 sps:$4 sm:$0xff]  }
  0x22   : > { %6574 = vmatpush1.bf16.msra.mxu1 %v9221_v23  ;;  %6532 = vmatprep.subr.bf16.mxu0 %v9222_v24  ;;  %v9254_v45 = vld [vmem:[%s14281_s1 + $0x384] ss:$16 sps:$4 sm:$0xff]   ;;  %v9257_v47 = vld [vmem:[%s14281_s1 + $0x380] ss:$16 sps:$4 sm:$0xff]  }
  0x23   : > { %6575 = vmatprep.subr.bf16.mxu1 %v9224_v25  ;;  %v184_v48 = vld [vmem:[%s10900_s30] sm:$0xff] }
  0x24   : > { %v200_v49 = vld [vmem:[%s10900_s30 + $0x80] sm:$0xff] }
  0x25   : > { %6533 = vmatpush1.bf16.msra.mxu0 %v9226_v26  ;;  %v9258_v52 = vld [vmem:[%s14281_s1 + $0x164] ss:$16 sps:$4 sm:$0xff]   ;;  %v10921_v53 = vcombine.high %v184_v48, %v200_v49  ;;  %v9262_v56 = vld [vmem:[%s14281_s1 + $0x160] ss:$16 sps:$4 sm:$0xff]   ;;  %v10978_v8 = vcombine.low %v184_v48, %v200_v49 }
  0x26   : > { %6576 = vmatpush1.bf16.msra.mxu1 %v9227_v27  ;;  %6534 = vmatprep.subr.bf16.mxu0 %v9228_v28  ;;  %v9260_v54 = vld [vmem:[%s14281_s1 + $0x364] ss:$16 sps:$4 sm:$0xff]   ;;  %v9263_v57 = vld [vmem:[%s14281_s1 + $0x360] ss:$16 sps:$4 sm:$0xff]  }
  0x27   : > { %6577 = vmatprep.subr.bf16.mxu1 %v9230_v29  ;;  %6552 = vmatprep.mubr.bf16.mxu0 %v10921_v53  ;;  %v9264_v58 = vld [vmem:[%s14281_s1 + $0x144] ss:$16 sps:$4 sm:$0xff]   ;;  %v9268_v60 = vld [vmem:[%s14281_s1 + $0x140] ss:$16 sps:$4 sm:$0xff]  }
  0x28   : > { %v9266_v59 = vld [vmem:[%s14281_s1 + $0x344] ss:$16 sps:$4 sm:$0xff]   ;;  %v9269_v61 = vld [vmem:[%s14281_s1 + $0x340] ss:$16 sps:$4 sm:$0xff]  }
  0x29   : > { %6535 = vmatpush1.bf16.msra.mxu0 %v9232_v30  ;;  %v9270_v62 = vld [vmem:[%s14281_s1 + $0x124] ss:$16 sps:$4 sm:$0xff]   ;;  %v9274_v0 = vld [vmem:[%s14281_s1 + $0x120] ss:$16 sps:$4 sm:$0xff]  }
  0x2a   : > { %6578 = vmatpush1.bf16.msra.mxu1 %v9233_v31  ;;  %6536 = vmatprep.subr.bf16.mxu0 %v9234_v32  ;;  %v9272_v63 = vld [vmem:[%s14281_s1 + $0x324] ss:$16 sps:$4 sm:$0xff]   ;;  %v9275_v1 = vld [vmem:[%s14281_s1 + $0x320] ss:$16 sps:$4 sm:$0xff]  }
  0x2b   : > { %6579 = vmatprep.subr.bf16.mxu1 %v9236_v33  ;;  %v9276_v2 = vld [vmem:[%s14281_s1 + $0x104] ss:$16 sps:$4 sm:$0xff]   ;;  %v9280_v4 = vld [vmem:[%s14281_s1 + $0x100] ss:$16 sps:$4 sm:$0xff]  }
  0x2c   : > { %v9278_v3 = vld [vmem:[%s14281_s1 + $0x304] ss:$16 sps:$4 sm:$0xff]   ;;  %v9281_v5 = vld [vmem:[%s14281_s1 + $0x300] ss:$16 sps:$4 sm:$0xff]  }
  0x2d   : > { %6537 = vmatpush2.bf16.msra.mxu0 %v9238_v34  ;;  %v9284_v6 = vld [vmem:[%s14281_s1 + $0x4e4] ss:$16 sps:$4 sm:$0xff]   ;;  %v9282_v10 = vld [vmem:[%s14281_s1 + $0x4e0] ss:$16 sps:$4 sm:$0xff]  }
  0x2e   : > { %6580 = vmatpush2.bf16.msra.mxu1 %v9239_v35  ;;  %6538 = vmatprep.subr.bf16.mxu0 %v9240_v36  ;;  %v9287_v7 = vld [vmem:[%s14281_s1 + $0x6e4] ss:$16 sps:$4 sm:$0xff]   ;;  %v9285_v11 = vld [vmem:[%s14281_s1 + $0x6e0] ss:$16 sps:$4 sm:$0xff]  }
  0x2f   : > { %6581 = vmatprep.subr.bf16.mxu1 %v9242_v37  ;;  %v9290_v12 = vld [vmem:[%s14281_s1 + $0x4c4] ss:$16 sps:$4 sm:$0xff]   ;;  %v9288_v14 = vld [vmem:[%s14281_s1 + $0x4c0] ss:$16 sps:$4 sm:$0xff]  }
  0x30   : > { %v9293_v13 = vld [vmem:[%s14281_s1 + $0x6c4] ss:$16 sps:$4 sm:$0xff]   ;;  %v9291_v15 = vld [vmem:[%s14281_s1 + $0x6c0] ss:$16 sps:$4 sm:$0xff]  }
  0x31   : > { %6539 = vmatpush2.bf16.msra.mxu0 %v9244_v38  ;;  %v9296_v16 = vld [vmem:[%s14281_s1 + $0x4a4] ss:$16 sps:$4 sm:$0xff]   ;;  %v9294_v18 = vld [vmem:[%s14281_s1 + $0x4a0] ss:$16 sps:$4 sm:$0xff]   ;;  %v11069_v38 = vld [vmem:[%s10900_s30 + $0x18] sm:$0xff] }
  0x32   : > { %6582 = vmatpush2.bf16.msra.mxu1 %v9245_v39  ;;  %6540 = vmatprep.subr.bf16.mxu0 %v9246_v40  ;;  %v9299_v17 = vld [vmem:[%s14281_s1 + $0x6a4] ss:$16 sps:$4 sm:$0xff]   ;;  %v9297_v19 = vld [vmem:[%s14281_s1 + $0x6a0] ss:$16 sps:$4 sm:$0xff]   ;;  %v11072_v39 = vld [vmem:[%s10900_s30 + $0x98] sm:$0xff] }
  0x33   : > { %6583 = vmatprep.subr.bf16.mxu1 %v9248_v41  ;;  %v9302_v20 = vld [vmem:[%s14281_s1 + $0x484] ss:$16 sps:$4 sm:$0xff]   ;;  %v9300_v22 = vld [vmem:[%s14281_s1 + $0x480] ss:$16 sps:$4 sm:$0xff]  }
  0x34   : > { %v9305_v21 = vld [vmem:[%s14281_s1 + $0x684] ss:$16 sps:$4 sm:$0xff]   ;;  %v9303_v23 = vld [vmem:[%s14281_s1 + $0x680] ss:$16 sps:$4 sm:$0xff]  }
  0x35   : > { %6541 = vmatpush2.bf16.msra.mxu0 %v9250_v42  ;;  %v9308_v24 = vld [vmem:[%s14281_s1 + $0x464] ss:$16 sps:$4 sm:$0xff]   ;;  %v9306_v26 = vld [vmem:[%s14281_s1 + $0x460] ss:$16 sps:$4 sm:$0xff]  }
  0x36   : > { %6584 = vmatpush2.bf16.msra.mxu1 %v9251_v43  ;;  %6542 = vmatprep.subr.bf16.mxu0 %v9252_v44  ;;  %v9311_v25 = vld [vmem:[%s14281_s1 + $0x664] ss:$16 sps:$4 sm:$0xff]   ;;  %v9309_v27 = vld [vmem:[%s14281_s1 + $0x660] ss:$16 sps:$4 sm:$0xff]   ;;  %v11086_v43 = vcombine.high %v11069_v38, %v11072_v39 }
  0x37   : > { %6585 = vmatprep.subr.bf16.mxu1 %v9254_v45  ;;  %v9314_v28 = vld [vmem:[%s14281_s1 + $0x444] ss:$16 sps:$4 sm:$0xff]   ;;  %v9312_v30 = vld [vmem:[%s14281_s1 + $0x440] ss:$16 sps:$4 sm:$0xff]  }
  0x38   : > { %v9317_v29 = vld [vmem:[%s14281_s1 + $0x644] ss:$16 sps:$4 sm:$0xff]   ;;  %v9315_v31 = vld [vmem:[%s14281_s1 + $0x640] ss:$16 sps:$4 sm:$0xff]  }
  0x39   : > { %6543 = vmatpush2.bf16.msra.mxu0 %v9256_v46  ;;  %v9320_v32 = vld [vmem:[%s14281_s1 + $0x424] ss:$16 sps:$4 sm:$0xff]   ;;  %v9318_v34 = vld [vmem:[%s14281_s1 + $0x420] ss:$16 sps:$4 sm:$0xff]  }
  0x3a   : > { %6586 = vmatpush2.bf16.msra.mxu1 %v9257_v47  ;;  %6544 = vmatprep.subr.bf16.mxu0 %v9258_v52  ;;  %v9323_v33 = vld [vmem:[%s14281_s1 + $0x624] ss:$16 sps:$4 sm:$0xff]   ;;  %v9321_v35 = vld [vmem:[%s14281_s1 + $0x620] ss:$16 sps:$4 sm:$0xff]  }
  0x3b   : > { %6587 = vmatprep.subr.bf16.mxu1 %v9260_v54  ;;  %v11063_v36 = vld [vmem:[%s10900_s30 + $0x10] sm:$0xff] }
  0x3c   : > { %v11066_v37 = vld [vmem:[%s10900_s30 + $0x90] sm:$0xff] }
  0x3d   : > { %6545 = vmatpush2.bf16.msra.mxu0 %v9262_v56  ;;  %v9326_v40 = vld [vmem:[%s14281_s1 + $0x404] ss:$16 sps:$4 sm:$0xff]   ;;  %v11079_v41 = vcombine.high %v11063_v36, %v11066_v37  ;;  %v9324_v44 = vld [vmem:[%s14281_s1 + $0x400] ss:$16 sps:$4 sm:$0xff]  }
  0x3e   : > { %6588 = vmatpush2.bf16.msra.mxu1 %v9263_v57  ;;  %6546 = vmatprep.subr.bf16.mxu0 %v9264_v58  ;;  %v9329_v42 = vld [vmem:[%s14281_s1 + $0x604] ss:$16 sps:$4 sm:$0xff]   ;;  %v9327_v45 = vld [vmem:[%s14281_s1 + $0x600] ss:$16 sps:$4 sm:$0xff]  }
  0x3f   : > { %6589 = vmatprep.subr.bf16.mxu1 %v9266_v59  ;;  %v9332_v46 = vld [vmem:[%s14281_s1 + $0x5e4] ss:$16 sps:$4 sm:$0xff]   ;;  %v9330_v48 = vld [vmem:[%s14281_s1 + $0x5e0] ss:$16 sps:$4 sm:$0xff]  }
  0x40   : > { %v9335_v47 = vld [vmem:[%s14281_s1 + $0x7e4] ss:$16 sps:$4 sm:$0xff]   ;;  %v9333_v49 = vld [vmem:[%s14281_s1 + $0x7e0] ss:$16 sps:$4 sm:$0xff]  }
  0x41   : > { %6547 = vmatpush2.bf16.msra.mxu0 %v9268_v60  ;;  %v9338_v50 = vld [vmem:[%s14281_s1 + $0x5c4] ss:$16 sps:$4 sm:$0xff]   ;;  %v9336_v52 = vld [vmem:[%s14281_s1 + $0x5c0] ss:$16 sps:$4 sm:$0xff]  }
  0x42   : > { %6590 = vmatpush2.bf16.msra.mxu1 %v9269_v61  ;;  %6548 = vmatprep.subr.bf16.mxu0 %v9270_v62  ;;  %v9341_v51 = vld [vmem:[%s14281_s1 + $0x7c4] ss:$16 sps:$4 sm:$0xff]   ;;  %v9339_v54 = vld [vmem:[%s14281_s1 + $0x7c0] ss:$16 sps:$4 sm:$0xff]  }
  0x43   : > { %6591 = vmatprep.subr.bf16.mxu1 %v9272_v63  ;;  %v9344_v56 = vld [vmem:[%s14281_s1 + $0x5a4] ss:$16 sps:$4 sm:$0xff]   ;;  %v9342_v58 = vld [vmem:[%s14281_s1 + $0x5a0] ss:$16 sps:$4 sm:$0xff]  }
  0x44   : > { %v9347_v57 = vld [vmem:[%s14281_s1 + $0x7a4] ss:$16 sps:$4 sm:$0xff]   ;;  %v9345_v59 = vld [vmem:[%s14281_s1 + $0x7a0] ss:$16 sps:$4 sm:$0xff]  }
  0x45   : > { %6549 = vmatpush2.bf16.msra.mxu0 %v9274_v0  ;;  %v9350_v60 = vld [vmem:[%s14281_s1 + $0x584] ss:$16 sps:$4 sm:$0xff]   ;;  %v9348_v62 = vld [vmem:[%s14281_s1 + $0x580] ss:$16 sps:$4 sm:$0xff]  }
  0x46   : > { %6592 = vmatpush2.bf16.msra.mxu1 %v9275_v1  ;;  %6550 = vmatprep.subr.bf16.mxu0 %v9276_v2  ;;  %v9353_v61 = vld [vmem:[%s14281_s1 + $0x784] ss:$16 sps:$4 sm:$0xff]   ;;  %v9351_v63 = vld [vmem:[%s14281_s1 + $0x780] ss:$16 sps:$4 sm:$0xff]  }
  0x47   : > { %6593 = vmatprep.subr.bf16.mxu1 %v9278_v3  ;;  %v9356_v0 = vld [vmem:[%s14281_s1 + $0x564] ss:$16 sps:$4 sm:$0xff]   ;;  %v9354_v2 = vld [vmem:[%s14281_s1 + $0x560] ss:$16 sps:$4 sm:$0xff]  }
  0x48   : > { %v9359_v1 = vld [vmem:[%s14281_s1 + $0x764] ss:$16 sps:$4 sm:$0xff]   ;;  %v9357_v3 = vld [vmem:[%s14281_s1 + $0x760] ss:$16 sps:$4 sm:$0xff]  }
  0x49   : > { %6551 = vmatpush2.bf16.msra.mxu0 %v9280_v4  ;;  %v9362_v4 = vld [vmem:[%s14281_s1 + $0x544] ss:$16 sps:$4 sm:$0xff]  }
  0x4a   : > { %6594 = vmatpush2.bf16.msra.mxu1 %v9281_v5  ;;  %6606 = vmatprep.subr.bf16.mxu0 %v9284_v6  ;;  %v9365_v5 = vld [vmem:[%s14281_s1 + $0x744] ss:$16 sps:$4 sm:$0xff]   ;;  %v9360_v6 = vld [vmem:[%s14281_s1 + $0x540] ss:$16 sps:$4 sm:$0xff]  }
  0x4b   : > { %6649 = vmatprep.subr.bf16.mxu1 %v9287_v7  ;;  %v9363_v7 = vld [vmem:[%s14281_s1 + $0x740] ss:$16 sps:$4 sm:$0xff]  }
  0x4c   : > { %6553 = vmatmul.mubr.bf16.vlgmr.msra.gmra.mxu0 %v10978_v8 }
  0x4d   : > { %6596 = vmatmul.mubr.bf16.vlgmr.msra.gmra.mxu1 %v10980_v9  ;;  %6607 = vmatpush1.bf16.msra.mxu0 %v9282_v10  ;;  %v9368_v10 = vld [vmem:[%s14281_s1 + $0x524] ss:$16 sps:$4 sm:$0xff]  }
  0x4e   : > { %6650 = vmatpush1.bf16.msra.mxu1 %v9285_v11  ;;  %6608 = vmatprep.subr.bf16.mxu0 %v9290_v12  ;;  %v9371_v11 = vld [vmem:[%s14281_s1 + $0x724] ss:$16 sps:$4 sm:$0xff]   ;;  %v9366_v12 = vld [vmem:[%s14281_s1 + $0x520] ss:$16 sps:$4 sm:$0xff]  }
  0x4f   : > { %6651 = vmatprep.subr.bf16.mxu1 %v9293_v13  ;;  %6638 = vmatprep.mubr.bf16.mxu0 %v11079_v41  ;;  %v9369_v13 = vld [vmem:[%s14281_s1 + $0x720] ss:$16 sps:$4 sm:$0xff]  }
  0x50   : > { %6681 = vmatprep.mubr.bf16.mxu1 %v11086_v43 }
  0x51   : > { %6609 = vmatpush1.bf16.msra.mxu0 %v9288_v14  ;;  %v9374_v14 = vld [vmem:[%s14281_s1 + $0x504] ss:$16 sps:$4 sm:$0xff]  }
  0x52   : > { %6652 = vmatpush1.bf16.msra.mxu1 %v9291_v15  ;;  %6610 = vmatprep.subr.bf16.mxu0 %v9296_v16  ;;  %v9377_v15 = vld [vmem:[%s14281_s1 + $0x704] ss:$16 sps:$4 sm:$0xff]   ;;  %v9372_v16 = vld [vmem:[%s14281_s1 + $0x500] ss:$16 sps:$4 sm:$0xff]  }
  0x53   : > { %6653 = vmatprep.subr.bf16.mxu1 %v9299_v17  ;;  %v9375_v17 = vld [vmem:[%s14281_s1 + $0x700] ss:$16 sps:$4 sm:$0xff]  }
  0x55   : > { %6611 = vmatpush1.bf16.msra.mxu0 %v9294_v18  ;;  %v9380_v18 = vld [vmem:[%s14281_s1 + $0x8e4] ss:$16 sps:$4 sm:$0xff]  }
  0x56   : > { %6654 = vmatpush1.bf16.msra.mxu1 %v9297_v19  ;;  %6612 = vmatprep.subr.bf16.mxu0 %v9302_v20  ;;  %v9383_v19 = vld [vmem:[%s14281_s1 + $0xae4] ss:$16 sps:$4 sm:$0xff]   ;;  %v11200_v20 = vcombine.low %v11063_v36, %v11066_v37  ;;  %v9390_v36 = vld [vmem:[%s14281_s1 + $0x8a0] ss:$16 sps:$4 sm:$0xff]  }
  0x57   : > { %6655 = vmatprep.subr.bf16.mxu1 %v9305_v21  ;;  %v11204_v21 = vcombine.low %v11069_v38, %v11072_v39  ;;  %v9393_v37 = vld [vmem:[%s14281_s1 + $0xaa0] ss:$16 sps:$4 sm:$0xff]   ;;  %v9398_v38 = vld [vmem:[%s14281_s1 + $0x884] ss:$16 sps:$4 sm:$0xff]  }
  0x58   : > { %v9401_v39 = vld [vmem:[%s14281_s1 + $0xa84] ss:$16 sps:$4 sm:$0xff]  }
  0x59   : > { %6613 = vmatpush1.bf16.msra.mxu0 %v9300_v22  ;;  %v9378_v22 = vld [vmem:[%s14281_s1 + $0x8e0] ss:$16 sps:$4 sm:$0xff]  }
  0x5a   : > { %6656 = vmatpush1.bf16.msra.mxu1 %v9303_v23  ;;  %6614 = vmatprep.subr.bf16.mxu0 %v9308_v24  ;;  %v9381_v23 = vld [vmem:[%s14281_s1 + $0xae0] ss:$16 sps:$4 sm:$0xff]   ;;  %v9386_v24 = vld [vmem:[%s14281_s1 + $0x8c4] ss:$16 sps:$4 sm:$0xff]  }
  0x5b   : > { %6657 = vmatprep.subr.bf16.mxu1 %v9311_v25  ;;  %v9389_v25 = vld [vmem:[%s14281_s1 + $0xac4] ss:$16 sps:$4 sm:$0xff]  }
  0x5d   : > { %6615 = vmatpush1.bf16.msra.mxu0 %v9306_v26  ;;  %v9384_v26 = vld [vmem:[%s14281_s1 + $0x8c0] ss:$16 sps:$4 sm:$0xff]  }
  0x5e   : > { %6658 = vmatpush1.bf16.msra.mxu1 %v9309_v27  ;;  %6616 = vmatprep.subr.bf16.mxu0 %v9314_v28  ;;  %v9387_v27 = vld [vmem:[%s14281_s1 + $0xac0] ss:$16 sps:$4 sm:$0xff]  }
  0x5f   : > { %6659 = vmatprep.subr.bf16.mxu1 %v9317_v29  ;;  %v11225_v28 = vld [vmem:[%s10900_s30 + $0x20] sm:$0xff] }
  0x60   : > { %v11230_v29 = vld [vmem:[%s10900_s30 + $0xa0] sm:$0xff] }
  0x61   : > { %6617 = vmatpush1.bf16.msra.mxu0 %v9312_v30  ;;  %v11233_v30 = vld [vmem:[%s10900_s30 + $0x28] sm:$0xff] }
  0x62   : > { %6660 = vmatpush1.bf16.msra.mxu1 %v9315_v31  ;;  %6618 = vmatprep.subr.bf16.mxu0 %v9320_v32  ;;  %v11236_v31 = vld [vmem:[%s10900_s30 + $0xa8] sm:$0xff]  ;;  %v9392_v32 = vld [vmem:[%s14281_s1 + $0x8a4] ss:$16 sps:$4 sm:$0xff]  }
  0x63   : > { %6661 = vmatprep.subr.bf16.mxu1 %v9323_v33  ;;  %v11243_v33 = vcombine.high %v11225_v28, %v11230_v29 }
  0x65   : > { %6619 = vmatpush1.bf16.msra.mxu0 %v9318_v34  ;;  %v9395_v34 = vld [vmem:[%s14281_s1 + $0xaa4] ss:$16 sps:$4 sm:$0xff]  }
  0x66   : > { %6662 = vmatpush1.bf16.msra.mxu1 %v9321_v35  ;;  %6620 = vmatprep.subr.bf16.mxu0 %v9326_v40  ;;  %v11250_v35 = vcombine.high %v11233_v30, %v11236_v31  ;;  %v9396_v40 = vld [vmem:[%s14281_s1 + $0x880] ss:$16 sps:$4 sm:$0xff]  }
  0x67   : > { %6663 = vmatprep.subr.bf16.mxu1 %v9329_v42  ;;  %v9399_v42 = vld [vmem:[%s14281_s1 + $0xa80] ss:$16 sps:$4 sm:$0xff]  }
  0x69   : > { %6621 = vmatpush1.bf16.msra.mxu0 %v9324_v44  ;;  %v9404_v44 = vld [vmem:[%s14281_s1 + $0x864] ss:$16 sps:$4 sm:$0xff]  }
  0x6a   : > { %6664 = vmatpush1.bf16.msra.mxu1 %v9327_v45  ;;  %6622 = vmatprep.subr.bf16.mxu0 %v9332_v46  ;;  %v9407_v45 = vld [vmem:[%s14281_s1 + $0xa64] ss:$16 sps:$4 sm:$0xff]   ;;  %v9402_v46 = vld [vmem:[%s14281_s1 + $0x860] ss:$16 sps:$4 sm:$0xff]  }
  0x6b   : > { %6665 = vmatprep.subr.bf16.mxu1 %v9335_v47  ;;  %v9405_v47 = vld [vmem:[%s14281_s1 + $0xa60] ss:$16 sps:$4 sm:$0xff]  }
  0x6d   : > { %6623 = vmatpush2.bf16.msra.mxu0 %v9330_v48  ;;  %v9410_v48 = vld [vmem:[%s14281_s1 + $0x844] ss:$16 sps:$4 sm:$0xff]  }
  0x6e   : > { %6666 = vmatpush2.bf16.msra.mxu1 %v9333_v49  ;;  %6624 = vmatprep.subr.bf16.mxu0 %v9338_v50  ;;  %v9413_v49 = vld [vmem:[%s14281_s1 + $0xa44] ss:$16 sps:$4 sm:$0xff]   ;;  %v9408_v50 = vld [vmem:[%s14281_s1 + $0x840] ss:$16 sps:$4 sm:$0xff]  }
  0x6f   : > { %6667 = vmatprep.subr.bf16.mxu1 %v9341_v51  ;;  %v9411_v51 = vld [vmem:[%s14281_s1 + $0xa40] ss:$16 sps:$4 sm:$0xff]  }
  0x71   : > { %6625 = vmatpush2.bf16.msra.mxu0 %v9336_v52  ;;  %v9416_v52 = vld [vmem:[%s14281_s1 + $0x824] ss:$16 sps:$4 sm:$0xff]  }
  0x72   : > { %6668 = vmatpush2.bf16.msra.mxu1 %v9339_v54  ;;  %6626 = vmatprep.subr.bf16.mxu0 %v9344_v56  ;;  %v9419_v54 = vld [vmem:[%s14281_s1 + $0xa24] ss:$16 sps:$4 sm:$0xff]   ;;  %v9414_v56 = vld [vmem:[%s14281_s1 + $0x820] ss:$16 sps:$4 sm:$0xff]  }
  0x73   : > { %6669 = vmatprep.subr.bf16.mxu1 %v9347_v57  ;;  %v9417_v57 = vld [vmem:[%s14281_s1 + $0xa20] ss:$16 sps:$4 sm:$0xff]  }
  0x75   : > { %6627 = vmatpush2.bf16.msra.mxu0 %v9342_v58  ;;  %v9422_v58 = vld [vmem:[%s14281_s1 + $0x804] ss:$16 sps:$4 sm:$0xff]  }
  0x76   : > { %6670 = vmatpush2.bf16.msra.mxu1 %v9345_v59  ;;  %6628 = vmatprep.subr.bf16.mxu0 %v9350_v60  ;;  %v9425_v59 = vld [vmem:[%s14281_s1 + $0xa04] ss:$16 sps:$4 sm:$0xff]   ;;  %v9420_v60 = vld [vmem:[%s14281_s1 + $0x800] ss:$16 sps:$4 sm:$0xff]  }
  0x77   : > { %6671 = vmatprep.subr.bf16.mxu1 %v9353_v61  ;;  %v9423_v61 = vld [vmem:[%s14281_s1 + $0xa00] ss:$16 sps:$4 sm:$0xff]  }
  0x79   : > { %6629 = vmatpush2.bf16.msra.mxu0 %v9348_v62  ;;  %v9428_v62 = vld [vmem:[%s14281_s1 + $0x9e4] ss:$16 sps:$4 sm:$0xff]  }
  0x7a   : > { %6672 = vmatpush2.bf16.msra.mxu1 %v9351_v63  ;;  %6630 = vmatprep.subr.bf16.mxu0 %v9356_v0  ;;  %v9431_v63 = vld [vmem:[%s14281_s1 + $0xbe4] ss:$16 sps:$4 sm:$0xff]   ;;  %v9426_v0 = vld [vmem:[%s14281_s1 + $0x9e0] ss:$16 sps:$4 sm:$0xff]  }
  0x7b   : > { %6673 = vmatprep.subr.bf16.mxu1 %v9359_v1  ;;  %v9429_v1 = vld [vmem:[%s14281_s1 + $0xbe0] ss:$16 sps:$4 sm:$0xff]  }
  0x7d   : > { %6631 = vmatpush2.bf16.msra.mxu0 %v9354_v2  ;;  %v9434_v2 = vld [vmem:[%s14281_s1 + $0x9c4] ss:$16 sps:$4 sm:$0xff]  }
  0x7e   : > { %6674 = vmatpush2.bf16.msra.mxu1 %v9357_v3  ;;  %6632 = vmatprep.subr.bf16.mxu0 %v9362_v4  ;;  %v9437_v3 = vld [vmem:[%s14281_s1 + $0xbc4] ss:$16 sps:$4 sm:$0xff]   ;;  %v9432_v4 = vld [vmem:[%s14281_s1 + $0x9c0] ss:$16 sps:$4 sm:$0xff]  }
  0x7f   : > { %6675 = vmatprep.subr.bf16.mxu1 %v9365_v5  ;;  %v9435_v5 = vld [vmem:[%s14281_s1 + $0xbc0] ss:$16 sps:$4 sm:$0xff]  }
  0x81   : > { %6633 = vmatpush2.bf16.msra.mxu0 %v9360_v6  ;;  %v9440_v6 = vld [vmem:[%s14281_s1 + $0x9a4] ss:$16 sps:$4 sm:$0xff]  }
  0x82   : > { %6676 = vmatpush2.bf16.msra.mxu1 %v9363_v7  ;;  %6634 = vmatprep.subr.bf16.mxu0 %v9368_v10  ;;  %v9443_v7 = vld [vmem:[%s14281_s1 + $0xba4] ss:$16 sps:$4 sm:$0xff]   ;;  %v9438_v10 = vld [vmem:[%s14281_s1 + $0x9a0] ss:$16 sps:$4 sm:$0xff]  }
  0x83   : > { %6677 = vmatprep.subr.bf16.mxu1 %v9371_v11  ;;  %v9441_v11 = vld [vmem:[%s14281_s1 + $0xba0] ss:$16 sps:$4 sm:$0xff]  }
  0x85   : > { %6635 = vmatpush2.bf16.msra.mxu0 %v9366_v12  ;;  %v9446_v12 = vld [vmem:[%s14281_s1 + $0x984] ss:$16 sps:$4 sm:$0xff]  }
  0x86   : > { %6678 = vmatpush2.bf16.msra.mxu1 %v9369_v13  ;;  %6636 = vmatprep.subr.bf16.mxu0 %v9374_v14  ;;  %v9449_v13 = vld [vmem:[%s14281_s1 + $0xb84] ss:$16 sps:$4 sm:$0xff]   ;;  %v9444_v14 = vld [vmem:[%s14281_s1 + $0x980] ss:$16 sps:$4 sm:$0xff]  }
  0x87   : > { %6679 = vmatprep.subr.bf16.mxu1 %v9377_v15  ;;  %v9447_v15 = vld [vmem:[%s14281_s1 + $0xb80] ss:$16 sps:$4 sm:$0xff]  }
  0x89   : > { %6637 = vmatpush2.bf16.msra.mxu0 %v9372_v16  ;;  %v9452_v16 = vld [vmem:[%s14281_s1 + $0x964] ss:$16 sps:$4 sm:$0xff]  }
  0x8a   : > { %6680 = vmatpush2.bf16.msra.mxu1 %v9375_v17  ;;  %6692 = vmatprep.subr.bf16.mxu0 %v9380_v18  ;;  %v9455_v17 = vld [vmem:[%s14281_s1 + $0xb64] ss:$16 sps:$4 sm:$0xff]   ;;  %v9450_v18 = vld [vmem:[%s14281_s1 + $0x960] ss:$16 sps:$4 sm:$0xff]  }
  0x8b   : > { %6735 = vmatprep.subr.bf16.mxu1 %v9383_v19  ;;  %v9453_v19 = vld [vmem:[%s14281_s1 + $0xb60] ss:$16 sps:$4 sm:$0xff]  }
  0x8c   : > { %6639 = vmatmul.mubr.bf16.vlgmr.msra.gmra.mxu0 %v11200_v20 }
  0x8d   : > { %6682 = vmatmul.mubr.bf16.vlgmr.msra.gmra.mxu1 %v11204_v21  ;;  %6693 = vmatpush1.bf16.msra.mxu0 %v9378_v22  ;;  %v9458_v22 = vld [vmem:[%s14281_s1 + $0x944] ss:$16 sps:$4 sm:$0xff]  }
  0x8e   : > { %6736 = vmatpush1.bf16.msra.mxu1 %v9381_v23  ;;  %6694 = vmatprep.subr.bf16.mxu0 %v9386_v24  ;;  %v9461_v23 = vld [vmem:[%s14281_s1 + $0xb44] ss:$16 sps:$4 sm:$0xff]   ;;  %v9456_v24 = vld [vmem:[%s14281_s1 + $0x940] ss:$16 sps:$4 sm:$0xff]  }
  0x8f   : > { %6737 = vmatprep.subr.bf16.mxu1 %v9389_v25  ;;  %6724 = vmatprep.mubr.bf16.mxu0 %v11243_v33  ;;  %v9459_v25 = vld [vmem:[%s14281_s1 + $0xb40] ss:$16 sps:$4 sm:$0xff]  }
  0x90   : > { %6767 = vmatprep.mubr.bf16.mxu1 %v11250_v35 }
  0x91   : > { %6695 = vmatpush1.bf16.msra.mxu0 %v9384_v26  ;;  %v9464_v26 = vld [vmem:[%s14281_s1 + $0x924] ss:$16 sps:$4 sm:$0xff]  }
  0x92   : > { %6738 = vmatpush1.bf16.msra.mxu1 %v9387_v27  ;;  %6696 = vmatprep.subr.bf16.mxu0 %v9392_v32  ;;  %v9467_v27 = vld [vmem:[%s14281_s1 + $0xb24] ss:$16 sps:$4 sm:$0xff]   ;;  %v9462_v32 = vld [vmem:[%s14281_s1 + $0x920] ss:$16 sps:$4 sm:$0xff]  }
  0x93   : > { %6739 = vmatprep.subr.bf16.mxu1 %v9395_v34  ;;  %v9465_v34 = vld [vmem:[%s14281_s1 + $0xb20] ss:$16 sps:$4 sm:$0xff]  }
  0x95   : > { %6697 = vmatpush1.bf16.msra.mxu0 %v9390_v36  ;;  %v9470_v36 = vld [vmem:[%s14281_s1 + $0x904] ss:$16 sps:$4 sm:$0xff]  }
  0x96   : > { %6740 = vmatpush1.bf16.msra.mxu1 %v9393_v37  ;;  %6698 = vmatprep.subr.bf16.mxu0 %v9398_v38  ;;  %v9473_v37 = vld [vmem:[%s14281_s1 + $0xb04] ss:$16 sps:$4 sm:$0xff]   ;;  %v9468_v38 = vld [vmem:[%s14281_s1 + $0x900] ss:$16 sps:$4 sm:$0xff]  }
  0x97   : > { %6741 = vmatprep.subr.bf16.mxu1 %v9401_v39  ;;  %v9471_v39 = vld [vmem:[%s14281_s1 + $0xb00] ss:$16 sps:$4 sm:$0xff]  }
  0x99   : > { %6699 = vmatpush1.bf16.msra.mxu0 %v9396_v40  ;;  %v9476_v40 = vld [vmem:[%s14281_s1 + $0xce4] ss:$16 sps:$4 sm:$0xff]  }
  0x9a   : > { %6742 = vmatpush1.bf16.msra.mxu1 %v9399_v42  ;;  %6700 = vmatprep.subr.bf16.mxu0 %v9404_v44  ;;  %v9479_v42 = vld [vmem:[%s14281_s1 + $0xee4] ss:$16 sps:$4 sm:$0xff]   ;;  %v9474_v44 = vld [vmem:[%s14281_s1 + $0xce0] ss:$16 sps:$4 sm:$0xff]  }
  0x9b   : > { %6743 = vmatprep.subr.bf16.mxu1 %v9407_v45  ;;  %v9477_v45 = vld [vmem:[%s14281_s1 + $0xee0] ss:$16 sps:$4 sm:$0xff]  }
  0x9d   : > { %6701 = vmatpush1.bf16.msra.mxu0 %v9402_v46  ;;  %v11429_v46 = vld [vmem:[%s10900_s30 + $0x30] sm:$0xff] }
  0x9e   : > { %6744 = vmatpush1.bf16.msra.mxu1 %v9405_v47  ;;  %6702 = vmatprep.subr.bf16.mxu0 %v9410_v48  ;;  %v11432_v47 = vld [vmem:[%s10900_s30 + $0xb0] sm:$0xff]  ;;  %v11436_v48 = vcombine.low %v11225_v28, %v11230_v29 }
  0x9f   : > { %6745 = vmatprep.subr.bf16.mxu1 %v9413_v49  ;;  %v11440_v49 = vcombine.low %v11233_v30, %v11236_v31  ;;  %v9485_v28 = vld [vmem:[%s14281_s1 + $0xec4] ss:$16 sps:$4 sm:$0xff]   ;;  %v11456_v29 = vcombine.high %v11429_v46, %v11432_v47  ;;  %v9480_v31 = vld [vmem:[%s14281_s1 + $0xcc0] ss:$16 sps:$4 sm:$0xff]  }
  0xa1   : > { %6703 = vmatpush1.bf16.msra.mxu0 %v9408_v50  ;;  %v11443_v50 = vld [vmem:[%s10900_s30 + $0x38] sm:$0xff] }
  0xa2   : > { %6746 = vmatpush1.bf16.msra.mxu1 %v9411_v51  ;;  %6704 = vmatprep.subr.bf16.mxu0 %v9416_v52  ;;  %v11446_v51 = vld [vmem:[%s10900_s30 + $0xb8] sm:$0xff]  ;;  %v9482_v52 = vld [vmem:[%s14281_s1 + $0xcc4] ss:$16 sps:$4 sm:$0xff]  }
  0xa3   : > { %6747 = vmatprep.subr.bf16.mxu1 %v9419_v54  ;;  %v11460_v30 = vcombine.high %v11443_v50, %v11446_v51  ;;  %v9483_v54 = vld [vmem:[%s14281_s1 + $0xec0] ss:$16 sps:$4 sm:$0xff]  }
  0xa5   : > { %6705 = vmatpush1.bf16.msra.mxu0 %v9414_v56  ;;  %v9488_v56 = vld [vmem:[%s14281_s1 + $0xca4] ss:$16 sps:$4 sm:$0xff]  }
  0xa6   : > { %6748 = vmatpush1.bf16.msra.mxu1 %v9417_v57  ;;  %6706 = vmatprep.subr.bf16.mxu0 %v9422_v58  ;;  %v9491_v57 = vld [vmem:[%s14281_s1 + $0xea4] ss:$16 sps:$4 sm:$0xff]   ;;  %v9486_v58 = vld [vmem:[%s14281_s1 + $0xca0] ss:$16 sps:$4 sm:$0xff]  }
  0xa7   : > { %6749 = vmatprep.subr.bf16.mxu1 %v9425_v59  ;;  %v9489_v59 = vld [vmem:[%s14281_s1 + $0xea0] ss:$16 sps:$4 sm:$0xff]  }
  0xa9   : > { %6707 = vmatpush1.bf16.msra.mxu0 %v9420_v60  ;;  %v9494_v60 = vld [vmem:[%s14281_s1 + $0xc84] ss:$16 sps:$4 sm:$0xff]  }
  0xaa   : > { %6750 = vmatpush1.bf16.msra.mxu1 %v9423_v61  ;;  %6708 = vmatprep.subr.bf16.mxu0 %v9428_v62  ;;  %v9497_v61 = vld [vmem:[%s14281_s1 + $0xe84] ss:$16 sps:$4 sm:$0xff]   ;;  %v9492_v62 = vld [vmem:[%s14281_s1 + $0xc80] ss:$16 sps:$4 sm:$0xff]  }
  0xab   : > { %6751 = vmatprep.subr.bf16.mxu1 %v9431_v63  ;;  %v9495_v63 = vld [vmem:[%s14281_s1 + $0xe80] ss:$16 sps:$4 sm:$0xff]  }
  0xad   : > { %6709 = vmatpush2.bf16.msra.mxu0 %v9426_v0  ;;  %v9500_v0 = vld [vmem:[%s14281_s1 + $0xc64] ss:$16 sps:$4 sm:$0xff]  }
  0xae   : > { %6752 = vmatpush2.bf16.msra.mxu1 %v9429_v1  ;;  %6710 = vmatprep.subr.bf16.mxu0 %v9434_v2  ;;  %v9503_v1 = vld [vmem:[%s14281_s1 + $0xe64] ss:$16 sps:$4 sm:$0xff]   ;;  %v9498_v2 = vld [vmem:[%s14281_s1 + $0xc60] ss:$16 sps:$4 sm:$0xff]  }
  0xaf   : > { %6753 = vmatprep.subr.bf16.mxu1 %v9437_v3  ;;  %v9501_v3 = vld [vmem:[%s14281_s1 + $0xe60] ss:$16 sps:$4 sm:$0xff]  }
  0xb1   : > { %6711 = vmatpush2.bf16.msra.mxu0 %v9432_v4  ;;  %v9506_v4 = vld [vmem:[%s14281_s1 + $0xc44] ss:$16 sps:$4 sm:$0xff]  }
  0xb2   : > { %6754 = vmatpush2.bf16.msra.mxu1 %v9435_v5  ;;  %6712 = vmatprep.subr.bf16.mxu0 %v9440_v6  ;;  %v9509_v5 = vld [vmem:[%s14281_s1 + $0xe44] ss:$16 sps:$4 sm:$0xff]   ;;  %v9504_v6 = vld [vmem:[%s14281_s1 + $0xc40] ss:$16 sps:$4 sm:$0xff]  }
  0xb3   : > { %6755 = vmatprep.subr.bf16.mxu1 %v9443_v7  ;;  %v9507_v7 = vld [vmem:[%s14281_s1 + $0xe40] ss:$16 sps:$4 sm:$0xff]  }
  0xb5   : > { %6713 = vmatpush2.bf16.msra.mxu0 %v9438_v10  ;;  %v9512_v10 = vld [vmem:[%s14281_s1 + $0xc24] ss:$16 sps:$4 sm:$0xff]  }
  0xb6   : > { %6756 = vmatpush2.bf16.msra.mxu1 %v9441_v11  ;;  %6714 = vmatprep.subr.bf16.mxu0 %v9446_v12  ;;  %v9515_v11 = vld [vmem:[%s14281_s1 + $0xe24] ss:$16 sps:$4 sm:$0xff]   ;;  %v9510_v12 = vld [vmem:[%s14281_s1 + $0xc20] ss:$16 sps:$4 sm:$0xff]  }
  0xb7   : > { %6757 = vmatprep.subr.bf16.mxu1 %v9449_v13  ;;  %v9513_v13 = vld [vmem:[%s14281_s1 + $0xe20] ss:$16 sps:$4 sm:$0xff]  }
  0xb9   : > { %6715 = vmatpush2.bf16.msra.mxu0 %v9444_v14  ;;  %v9518_v14 = vld [vmem:[%s14281_s1 + $0xc04] ss:$16 sps:$4 sm:$0xff]  }
  0xba   : > { %6758 = vmatpush2.bf16.msra.mxu1 %v9447_v15  ;;  %6716 = vmatprep.subr.bf16.mxu0 %v9452_v16  ;;  %v9521_v15 = vld [vmem:[%s14281_s1 + $0xe04] ss:$16 sps:$4 sm:$0xff]   ;;  %v9516_v16 = vld [vmem:[%s14281_s1 + $0xc00] ss:$16 sps:$4 sm:$0xff]  }
  0xbb   : > { %6759 = vmatprep.subr.bf16.mxu1 %v9455_v17  ;;  %v9519_v17 = vld [vmem:[%s14281_s1 + $0xe00] ss:$16 sps:$4 sm:$0xff]  }
  0xbd   : > { %6717 = vmatpush2.bf16.msra.mxu0 %v9450_v18  ;;  %v9524_v18 = vld [vmem:[%s14281_s1 + $0xde4] ss:$16 sps:$4 sm:$0xff]  }
  0xbe   : > { %6760 = vmatpush2.bf16.msra.mxu1 %v9453_v19  ;;  %6718 = vmatprep.subr.bf16.mxu0 %v9458_v22  ;;  %v9527_v19 = vld [vmem:[%s14281_s1 + $0xfe4] ss:$16 sps:$4 sm:$0xff]   ;;  %v9522_v22 = vld [vmem:[%s14281_s1 + $0xde0] ss:$16 sps:$4 sm:$0xff]  }
  0xbf   : > { %6761 = vmatprep.subr.bf16.mxu1 %v9461_v23  ;;  %v9525_v23 = vld [vmem:[%s14281_s1 + $0xfe0] ss:$16 sps:$4 sm:$0xff]  }
  0xc1   : > { %6719 = vmatpush2.bf16.msra.mxu0 %v9456_v24  ;;  %v9530_v24 = vld [vmem:[%s14281_s1 + $0xdc4] ss:$16 sps:$4 sm:$0xff]  }
  0xc2   : > { %6762 = vmatpush2.bf16.msra.mxu1 %v9459_v25  ;;  %6720 = vmatprep.subr.bf16.mxu0 %v9464_v26  ;;  %v9533_v25 = vld [vmem:[%s14281_s1 + $0xfc4] ss:$16 sps:$4 sm:$0xff]   ;;  %v9528_v26 = vld [vmem:[%s14281_s1 + $0xdc0] ss:$16 sps:$4 sm:$0xff]  }
  0xc3   : > { %6763 = vmatprep.subr.bf16.mxu1 %v9467_v27  ;;  %v9531_v27 = vld [vmem:[%s14281_s1 + $0xfc0] ss:$16 sps:$4 sm:$0xff]  }
  0xc5   : > { %6721 = vmatpush2.bf16.msra.mxu0 %v9462_v32  ;;  %v9536_v32 = vld [vmem:[%s14281_s1 + $0xda4] ss:$16 sps:$4 sm:$0xff]  }
  0xc6   : > { %6764 = vmatpush2.bf16.msra.mxu1 %v9465_v34  ;;  %6722 = vmatprep.subr.bf16.mxu0 %v9470_v36  ;;  %v9539_v34 = vld [vmem:[%s14281_s1 + $0xfa4] ss:$16 sps:$4 sm:$0xff]   ;;  %v9534_v36 = vld [vmem:[%s14281_s1 + $0xda0] ss:$16 sps:$4 sm:$0xff]  }
  0xc7   : > { %6765 = vmatprep.subr.bf16.mxu1 %v9473_v37  ;;  %v9537_v37 = vld [vmem:[%s14281_s1 + $0xfa0] ss:$16 sps:$4 sm:$0xff]  }
  0xc9   : > { %6723 = vmatpush2.bf16.msra.mxu0 %v9468_v38  ;;  %v9542_v38 = vld [vmem:[%s14281_s1 + $0xd84] ss:$16 sps:$4 sm:$0xff]  }
  0xca   : > { %6766 = vmatpush2.bf16.msra.mxu1 %v9471_v39  ;;  %6778 = vmatprep.subr.bf16.mxu0 %v9476_v40  ;;  %v9545_v39 = vld [vmem:[%s14281_s1 + $0xf84] ss:$16 sps:$4 sm:$0xff]   ;;  %v9540_v40 = vld [vmem:[%s14281_s1 + $0xd80] ss:$16 sps:$4 sm:$0xff]  }
  0xcb   : > { %6821 = vmatprep.subr.bf16.mxu1 %v9479_v42  ;;  %v9543_v42 = vld [vmem:[%s14281_s1 + $0xf80] ss:$16 sps:$4 sm:$0xff]  }
  0xcc   : > { %6725 = vmatmul.mubr.bf16.vlgmr.msra.gmra.mxu0 %v11436_v48 }
  0xcd   : > { %6768 = vmatmul.mubr.bf16.vlgmr.msra.gmra.mxu1 %v11440_v49  ;;  %6779 = vmatpush1.bf16.msra.mxu0 %v9474_v44  ;;  %v9548_v44 = vld [vmem:[%s14281_s1 + $0xd64] ss:$16 sps:$4 sm:$0xff]  }
  0xce   : > { %6822 = vmatpush1.bf16.msra.mxu1 %v9477_v45  ;;  %6780 = vmatprep.subr.bf16.mxu0 %v9482_v52  ;;  %v9551_v45 = vld [vmem:[%s14281_s1 + $0xf64] ss:$16 sps:$4 sm:$0xff]   ;;  %v9546_v52 = vld [vmem:[%s14281_s1 + $0xd60] ss:$16 sps:$4 sm:$0xff]  }
  0xcf   : > { %6823 = vmatprep.subr.bf16.mxu1 %v9485_v28  ;;  %6810 = vmatprep.mubr.bf16.mxu0 %v11456_v29  ;;  %v9549_v28 = vld [vmem:[%s14281_s1 + $0xf60] ss:$16 sps:$4 sm:$0xff]  }
  0xd0   : > { %6853 = vmatprep.mubr.bf16.mxu1 %v11460_v30 }
  0xd1   : > { %6781 = vmatpush1.bf16.msra.mxu0 %v9480_v31  ;;  %v9554_v31 = vld [vmem:[%s14281_s1 + $0xd44] ss:$16 sps:$4 sm:$0xff]  }
  0xd2   : > { %6824 = vmatpush1.bf16.msra.mxu1 %v9483_v54  ;;  %6782 = vmatprep.subr.bf16.mxu0 %v9488_v56  ;;  %v9557_v54 = vld [vmem:[%s14281_s1 + $0xf44] ss:$16 sps:$4 sm:$0xff]   ;;  %v9552_v56 = vld [vmem:[%s14281_s1 + $0xd40] ss:$16 sps:$4 sm:$0xff]  }
  0xd3   : > { %6825 = vmatprep.subr.bf16.mxu1 %v9491_v57  ;;  %v9555_v57 = vld [vmem:[%s14281_s1 + $0xf40] ss:$16 sps:$4 sm:$0xff]  }
  0xd5   : > { %6783 = vmatpush1.bf16.msra.mxu0 %v9486_v58  ;;  %v9560_v58 = vld [vmem:[%s14281_s1 + $0xd24] ss:$16 sps:$4 sm:$0xff]  }
  0xd6   : > { %6826 = vmatpush1.bf16.msra.mxu1 %v9489_v59  ;;  %6784 = vmatprep.subr.bf16.mxu0 %v9494_v60  ;;  %v9563_v59 = vld [vmem:[%s14281_s1 + $0xf24] ss:$16 sps:$4 sm:$0xff]   ;;  %v9558_v60 = vld [vmem:[%s14281_s1 + $0xd20] ss:$16 sps:$4 sm:$0xff]  }
  0xd7   : > { %6827 = vmatprep.subr.bf16.mxu1 %v9497_v61  ;;  %v9561_v61 = vld [vmem:[%s14281_s1 + $0xf20] ss:$16 sps:$4 sm:$0xff]  }
  0xd9   : > { %6785 = vmatpush1.bf16.msra.mxu0 %v9492_v62  ;;  %v9566_v62 = vld [vmem:[%s14281_s1 + $0xd04] ss:$16 sps:$4 sm:$0xff]  }
  0xda   : > { %6828 = vmatpush1.bf16.msra.mxu1 %v9495_v63  ;;  %6786 = vmatprep.subr.bf16.mxu0 %v9500_v0  ;;  %v9569_v63 = vld [vmem:[%s14281_s1 + $0xf04] ss:$16 sps:$4 sm:$0xff]   ;;  %v9564_v0 = vld [vmem:[%s14281_s1 + $0xd00] ss:$16 sps:$4 sm:$0xff]  }
  0xdb   : > { %6829 = vmatprep.subr.bf16.mxu1 %v9503_v1  ;;  %v9567_v1 = vld [vmem:[%s14281_s1 + $0xf00] ss:$16 sps:$4 sm:$0xff]  }
  0xdd   : > { %6787 = vmatpush1.bf16.msra.mxu0 %v9498_v2  ;;  %v9572_v2 = vld [vmem:[%s14281_s1 + $0x10e4] ss:$16 sps:$4 sm:$0xff]  }
  0xde   : > { %6830 = vmatpush1.bf16.msra.mxu1 %v9501_v3  ;;  %6788 = vmatprep.subr.bf16.mxu0 %v9506_v4  ;;  %v9575_v3 = vld [vmem:[%s14281_s1 + $0x12e4] ss:$16 sps:$4 sm:$0xff]   ;;  %v9570_v4 = vld [vmem:[%s14281_s1 + $0x10e0] ss:$16 sps:$4 sm:$0xff]  }
  0xdf   : > { %6831 = vmatprep.subr.bf16.mxu1 %v9509_v5  ;;  %v9573_v5 = vld [vmem:[%s14281_s1 + $0x12e0] ss:$16 sps:$4 sm:$0xff]  }
  0xe1   : > { %6789 = vmatpush1.bf16.msra.mxu0 %v9504_v6  ;;  %v11653_v6 = vld [vmem:[%s10900_s30 + $0x40] sm:$0xff] }
  0xe2   : > { %6832 = vmatpush1.bf16.msra.mxu1 %v9507_v7  ;;  %6790 = vmatprep.subr.bf16.mxu0 %v9512_v10  ;;  %v11656_v7 = vld [vmem:[%s10900_s30 + $0xc0] sm:$0xff]  ;;  %v11660_v10 = vcombine.low %v11429_v46, %v11432_v47 }
  0xe3   : > { %6833 = vmatprep.subr.bf16.mxu1 %v9515_v11  ;;  %v11664_v11 = vcombine.low %v11443_v50, %v11446_v51  ;;  %v9581_v46 = vld [vmem:[%s14281_s1 + $0x12c4] ss:$16 sps:$4 sm:$0xff]   ;;  %v11680_v47 = vcombine.high %v11653_v6, %v11656_v7  ;;  %v9576_v51 = vld [vmem:[%s14281_s1 + $0x10c0] ss:$16 sps:$4 sm:$0xff]  }
  0xe5   : > { %6791 = vmatpush1.bf16.msra.mxu0 %v9510_v12  ;;  %v11667_v12 = vld [vmem:[%s10900_s30 + $0x48] sm:$0xff] }
  0xe6   : > { %6834 = vmatpush1.bf16.msra.mxu1 %v9513_v13  ;;  %6792 = vmatprep.subr.bf16.mxu0 %v9518_v14  ;;  %v11670_v13 = vld [vmem:[%s10900_s30 + $0xc8] sm:$0xff]  ;;  %v9578_v14 = vld [vmem:[%s14281_s1 + $0x10c4] ss:$16 sps:$4 sm:$0xff]  }
  0xe7   : > { %6835 = vmatprep.subr.bf16.mxu1 %v9521_v15  ;;  %v11684_v50 = vcombine.high %v11667_v12, %v11670_v13  ;;  %v9579_v15 = vld [vmem:[%s14281_s1 + $0x12c0] ss:$16 sps:$4 sm:$0xff]  }
  0xe9   : > { %6793 = vmatpush1.bf16.msra.mxu0 %v9516_v16  ;;  %v9584_v16 = vld [vmem:[%s14281_s1 + $0x10a4] ss:$16 sps:$4 sm:$0xff]  }
  0xea   : > { %6836 = vmatpush1.bf16.msra.mxu1 %v9519_v17  ;;  %6794 = vmatprep.subr.bf16.mxu0 %v9524_v18  ;;  %v9587_v17 = vld [vmem:[%s14281_s1 + $0x12a4] ss:$16 sps:$4 sm:$0xff]   ;;  %v9582_v18 = vld [vmem:[%s14281_s1 + $0x10a0] ss:$16 sps:$4 sm:$0xff]  }
  0xeb   : > { %6837 = vmatprep.subr.bf16.mxu1 %v9527_v19  ;;  %v9585_v19 = vld [vmem:[%s14281_s1 + $0x12a0] ss:$16 sps:$4 sm:$0xff]  }
  0xed   : > { %6795 = vmatpush2.bf16.msra.mxu0 %v9522_v22  ;;  %v9590_v22 = vld [vmem:[%s14281_s1 + $0x1084] ss:$16 sps:$4 sm:$0xff]  }
  0xee   : > { %6838 = vmatpush2.bf16.msra.mxu1 %v9525_v23  ;;  %6796 = vmatprep.subr.bf16.mxu0 %v9530_v24  ;;  %v9593_v23 = vld [vmem:[%s14281_s1 + $0x1284] ss:$16 sps:$4 sm:$0xff]   ;;  %v9588_v24 = vld [vmem:[%s14281_s1 + $0x1080] ss:$16 sps:$4 sm:$0xff]  }
  0xef   : > { %6839 = vmatprep.subr.bf16.mxu1 %v9533_v25  ;;  %v9591_v25 = vld [vmem:[%s14281_s1 + $0x1280] ss:$16 sps:$4 sm:$0xff]  }
  0xf1   : > { %6797 = vmatpush2.bf16.msra.mxu0 %v9528_v26  ;;  %v9596_v26 = vld [vmem:[%s14281_s1 + $0x1064] ss:$16 sps:$4 sm:$0xff]  }
  0xf2   : > { %6840 = vmatpush2.bf16.msra.mxu1 %v9531_v27  ;;  %6798 = vmatprep.subr.bf16.mxu0 %v9536_v32  ;;  %v9599_v27 = vld [vmem:[%s14281_s1 + $0x1264] ss:$16 sps:$4 sm:$0xff]   ;;  %v9594_v32 = vld [vmem:[%s14281_s1 + $0x1060] ss:$16 sps:$4 sm:$0xff]  }
  0xf3   : > { %6841 = vmatprep.subr.bf16.mxu1 %v9539_v34  ;;  %v9597_v34 = vld [vmem:[%s14281_s1 + $0x1260] ss:$16 sps:$4 sm:$0xff]  }
  0xf5   : > { %6799 = vmatpush2.bf16.msra.mxu0 %v9534_v36  ;;  %v9602_v36 = vld [vmem:[%s14281_s1 + $0x1044] ss:$16 sps:$4 sm:$0xff]  }
  0xf6   : > { %6842 = vmatpush2.bf16.msra.mxu1 %v9537_v37  ;;  %6800 = vmatprep.subr.bf16.mxu0 %v9542_v38  ;;  %v9605_v37 = vld [vmem:[%s14281_s1 + $0x1244] ss:$16 sps:$4 sm:$0xff]   ;;  %v9600_v38 = vld [vmem:[%s14281_s1 + $0x1040] ss:$16 sps:$4 sm:$0xff]  }
  0xf7   : > { %6843 = vmatprep.subr.bf16.mxu1 %v9545_v39  ;;  %v9603_v39 = vld [vmem:[%s14281_s1 + $0x1240] ss:$16 sps:$4 sm:$0xff]  }
  0xf9   : > { %6801 = vmatpush2.bf16.msra.mxu0 %v9540_v40  ;;  %v9608_v40 = vld [vmem:[%s14281_s1 + $0x1024] ss:$16 sps:$4 sm:$0xff]  }
  0xfa   : > { %6844 = vmatpush2.bf16.msra.mxu1 %v9543_v42  ;;  %6802 = vmatprep.subr.bf16.mxu0 %v9548_v44  ;;  %v9611_v42 = vld [vmem:[%s14281_s1 + $0x1224] ss:$16 sps:$4 sm:$0xff]   ;;  %v9606_v44 = vld [vmem:[%s14281_s1 + $0x1020] ss:$16 sps:$4 sm:$0xff]  }
  0xfb   : > { %6845 = vmatprep.subr.bf16.mxu1 %v9551_v45  ;;  %v9609_v45 = vld [vmem:[%s14281_s1 + $0x1220] ss:$16 sps:$4 sm:$0xff]  }
  0xfd   : > { %6803 = vmatpush2.bf16.msra.mxu0 %v9546_v52  ;;  %v9614_v52 = vld [vmem:[%s14281_s1 + $0x1004] ss:$16 sps:$4 sm:$0xff]  }
  0xfe   : > { %6846 = vmatpush2.bf16.msra.mxu1 %v9549_v28  ;;  %6804 = vmatprep.subr.bf16.mxu0 %v9554_v31  ;;  %v9617_v28 = vld [vmem:[%s14281_s1 + $0x1204] ss:$16 sps:$4 sm:$0xff]   ;;  %v9612_v31 = vld [vmem:[%s14281_s1 + $0x1000] ss:$16 sps:$4 sm:$0xff]  }
  0xff   : > { %6847 = vmatprep.subr.bf16.mxu1 %v9557_v54  ;;  %v9615_v54 = vld [vmem:[%s14281_s1 + $0x1200] ss:$16 sps:$4 sm:$0xff]  }
 0x101   : > { %6805 = vmatpush2.bf16.msra.mxu0 %v9552_v56  ;;  %v9620_v56 = vld [vmem:[%s14281_s1 + $0x11e4] ss:$16 sps:$4 sm:$0xff]  }
 0x102   : > { %6848 = vmatpush2.bf16.msra.mxu1 %v9555_v57  ;;  %6806 = vmatprep.subr.bf16.mxu0 %v9560_v58  ;;  %v9623_v57 = vld [vmem:[%s14281_s1 + $0x13e4] ss:$16 sps:$4 sm:$0xff]   ;;  %v9618_v58 = vld [vmem:[%s14281_s1 + $0x11e0] ss:$16 sps:$4 sm:$0xff]  }
 0x103   : > { %6849 = vmatprep.subr.bf16.mxu1 %v9563_v59  ;;  %v9621_v59 = vld [vmem:[%s14281_s1 + $0x13e0] ss:$16 sps:$4 sm:$0xff]  }
 0x105   : > { %6807 = vmatpush2.bf16.msra.mxu0 %v9558_v60  ;;  %v9626_v60 = vld [vmem:[%s14281_s1 + $0x11c4] ss:$16 sps:$4 sm:$0xff]  }
 0x106   : > { %6850 = vmatpush2.bf16.msra.mxu1 %v9561_v61  ;;  %6808 = vmatprep.subr.bf16.mxu0 %v9566_v62  ;;  %v9629_v61 = vld [vmem:[%s14281_s1 + $0x13c4] ss:$16 sps:$4 sm:$0xff]   ;;  %v9624_v62 = vld [vmem:[%s14281_s1 + $0x11c0] ss:$16 sps:$4 sm:$0xff]  }
 0x107   : > { %6851 = vmatprep.subr.bf16.mxu1 %v9569_v63  ;;  %v9627_v63 = vld [vmem:[%s14281_s1 + $0x13c0] ss:$16 sps:$4 sm:$0xff]  }
 0x109   : > { %6809 = vmatpush2.bf16.msra.mxu0 %v9564_v0  ;;  %v9632_v0 = vld [vmem:[%s14281_s1 + $0x11a4] ss:$16 sps:$4 sm:$0xff]  }
 0x10a   : > { %6852 = vmatpush2.bf16.msra.mxu1 %v9567_v1  ;;  %6864 = vmatprep.subr.bf16.mxu0 %v9572_v2  ;;  %v9635_v1 = vld [vmem:[%s14281_s1 + $0x13a4] ss:$16 sps:$4 sm:$0xff]   ;;  %v9630_v2 = vld [vmem:[%s14281_s1 + $0x11a0] ss:$16 sps:$4 sm:$0xff]  }
 0x10b   : > { %6907 = vmatprep.subr.bf16.mxu1 %v9575_v3  ;;  %v9633_v3 = vld [vmem:[%s14281_s1 + $0x13a0] ss:$16 sps:$4 sm:$0xff]  }
 0x10c   : > { %6811 = vmatmul.mubr.bf16.vlgmr.msra.gmra.mxu0 %v11660_v10 }
 0x10d   : > { %6854 = vmatmul.mubr.bf16.vlgmr.msra.gmra.mxu1 %v11664_v11  ;;  %6865 = vmatpush1.bf16.msra.mxu0 %v9570_v4  ;;  %v9638_v4 = vld [vmem:[%s14281_s1 + $0x1184] ss:$16 sps:$4 sm:$0xff]  }
 0x10e   : > { %6908 = vmatpush1.bf16.msra.mxu1 %v9573_v5  ;;  %6866 = vmatprep.subr.bf16.mxu0 %v9578_v14  ;;  %v9641_v5 = vld [vmem:[%s14281_s1 + $0x1384] ss:$16 sps:$4 sm:$0xff]   ;;  %v9636_v14 = vld [vmem:[%s14281_s1 + $0x1180] ss:$16 sps:$4 sm:$0xff]  }
 0x10f   : > { %6909 = vmatprep.subr.bf16.mxu1 %v9581_v46  ;;  %6896 = vmatprep.mubr.bf16.mxu0 %v11680_v47  ;;  %v9639_v46 = vld [vmem:[%s14281_s1 + $0x1380] ss:$16 sps:$4 sm:$0xff]  }
 0x110   : > { %6939 = vmatprep.mubr.bf16.mxu1 %v11684_v50 }
 0x111   : > { %6867 = vmatpush1.bf16.msra.mxu0 %v9576_v51  ;;  %v9644_v51 = vld [vmem:[%s14281_s1 + $0x1164] ss:$16 sps:$4 sm:$0xff]  }
 0x112   : > { %6910 = vmatpush1.bf16.msra.mxu1 %v9579_v15  ;;  %6868 = vmatprep.subr.bf16.mxu0 %v9584_v16  ;;  %v9647_v15 = vld [vmem:[%s14281_s1 + $0x1364] ss:$16 sps:$4 sm:$0xff]   ;;  %v9642_v16 = vld [vmem:[%s14281_s1 + $0x1160] ss:$16 sps:$4 sm:$0xff]  }
 0x113   : > { %6911 = vmatprep.subr.bf16.mxu1 %v9587_v17  ;;  %v9645_v17 = vld [vmem:[%s14281_s1 + $0x1360] ss:$16 sps:$4 sm:$0xff]  }
 0x115   : > { %6869 = vmatpush1.bf16.msra.mxu0 %v9582_v18  ;;  %v9650_v18 = vld [vmem:[%s14281_s1 + $0x1144] ss:$16 sps:$4 sm:$0xff]  }
 0x116   : > { %6912 = vmatpush1.bf16.msra.mxu1 %v9585_v19  ;;  %6870 = vmatprep.subr.bf16.mxu0 %v9590_v22  ;;  %v9653_v19 = vld [vmem:[%s14281_s1 + $0x1344] ss:$16 sps:$4 sm:$0xff]   ;;  %v9648_v22 = vld [vmem:[%s14281_s1 + $0x1140] ss:$16 sps:$4 sm:$0xff]  }
 0x117   : > { %6913 = vmatprep.subr.bf16.mxu1 %v9593_v23  ;;  %v9651_v23 = vld [vmem:[%s14281_s1 + $0x1340] ss:$16 sps:$4 sm:$0xff]  }
 0x119   : > { %6871 = vmatpush1.bf16.msra.mxu0 %v9588_v24  ;;  %v9656_v24 = vld [vmem:[%s14281_s1 + $0x1124] ss:$16 sps:$4 sm:$0xff]  }
 0x11a   : > { %6914 = vmatpush1.bf16.msra.mxu1 %v9591_v25  ;;  %6872 = vmatprep.subr.bf16.mxu0 %v9596_v26  ;;  %v9659_v25 = vld [vmem:[%s14281_s1 + $0x1324] ss:$16 sps:$4 sm:$0xff]   ;;  %v9654_v26 = vld [vmem:[%s14281_s1 + $0x1120] ss:$16 sps:$4 sm:$0xff]  }
 0x11b   : > { %6915 = vmatprep.subr.bf16.mxu1 %v9599_v27  ;;  %v9657_v27 = vld [vmem:[%s14281_s1 + $0x1320] ss:$16 sps:$4 sm:$0xff]  }
 0x11d   : > { %6873 = vmatpush1.bf16.msra.mxu0 %v9594_v32  ;;  %v9662_v32 = vld [vmem:[%s14281_s1 + $0x1104] ss:$16 sps:$4 sm:$0xff]  }
 0x11e   : > { %6916 = vmatpush1.bf16.msra.mxu1 %v9597_v34  ;;  %6874 = vmatprep.subr.bf16.mxu0 %v9602_v36  ;;  %v9665_v34 = vld [vmem:[%s14281_s1 + $0x1304] ss:$16 sps:$4 sm:$0xff]   ;;  %v9660_v36 = vld [vmem:[%s14281_s1 + $0x1100] ss:$16 sps:$4 sm:$0xff]  }
 0x11f   : > { %6917 = vmatprep.subr.bf16.mxu1 %v9605_v37  ;;  %v9663_v37 = vld [vmem:[%s14281_s1 + $0x1300] ss:$16 sps:$4 sm:$0xff]  }
 0x121   : > { %6875 = vmatpush1.bf16.msra.mxu0 %v9600_v38  ;;  %v9668_v38 = vld [vmem:[%s14281_s1 + $0x14e4] ss:$16 sps:$4 sm:$0xff]  }
 0x122   : > { %6918 = vmatpush1.bf16.msra.mxu1 %v9603_v39  ;;  %6876 = vmatprep.subr.bf16.mxu0 %v9608_v40  ;;  %v9671_v39 = vld [vmem:[%s14281_s1 + $0x16e4] ss:$16 sps:$4 sm:$0xff]  }
 0x123   : > { %6919 = vmatprep.subr.bf16.mxu1 %v9611_v42  ;;  %v11871_v40 = vld [vmem:[%s10900_s30 + $0x50] sm:$0xff] }
 0x124   : > { %v9666_v42 = vld [vmem:[%s14281_s1 + $0x14e0] ss:$16 sps:$4 sm:$0xff]  }
 0x125   : > { %6877 = vmatpush1.bf16.msra.mxu0 %v9606_v44  ;;  %v11878_v44 = vcombine.low %v11653_v6, %v11656_v7  ;;  %v9674_v6 = vld [vmem:[%s14281_s1 + $0x14c4] ss:$16 sps:$4 sm:$0xff]  }
 0x126   : > { %6920 = vmatpush1.bf16.msra.mxu1 %v9609_v45  ;;  %6878 = vmatprep.subr.bf16.mxu0 %v9614_v52  ;;  %v11882_v45 = vcombine.low %v11667_v12, %v11670_v13  ;;  %v11885_v52 = vld [vmem:[%s10900_s30 + $0xd0] sm:$0xff] }
 0x127   : > { %6921 = vmatprep.subr.bf16.mxu1 %v9617_v28  ;;  %v11888_v28 = vld [vmem:[%s10900_s30 + $0x58] sm:$0xff]  ;;  %v9677_v7 = vld [vmem:[%s14281_s1 + $0x16c4] ss:$16 sps:$4 sm:$0xff]   ;;  %v9672_v12 = vld [vmem:[%s14281_s1 + $0x14c0] ss:$16 sps:$4 sm:$0xff]  }
 0x128   : > { %v9675_v13 = vld [vmem:[%s14281_s1 + $0x16c0] ss:$16 sps:$4 sm:$0xff]  }
 0x129   : > { %6879 = vmatpush1.bf16.msra.mxu0 %v9612_v31  ;;  %v11891_v31 = vld [vmem:[%s10900_s30 + $0xd8] sm:$0xff] }
 0x12a   : > { %6922 = vmatpush1.bf16.msra.mxu1 %v9615_v54  ;;  %6880 = vmatprep.subr.bf16.mxu0 %v9620_v56  ;;  %v9669_v54 = vld [vmem:[%s14281_s1 + $0x16e0] ss:$16 sps:$4 sm:$0xff]   ;;  %v11910_v56 = vcombine.high %v11871_v40, %v11885_v52 }
 0x12b   : > { %6923 = vmatprep.subr.bf16.mxu1 %v9623_v57  ;;  %v11914_v57 = vcombine.high %v11888_v28, %v11891_v31 }
 0x12d   : > { %6881 = vmatpush2.bf16.msra.mxu0 %v9618_v58  ;;  %v9680_v58 = vld [vmem:[%s14281_s1 + $0x14a4] ss:$16 sps:$4 sm:$0xff]  }
 0x12e   : > { %6924 = vmatpush2.bf16.msra.mxu1 %v9621_v59  ;;  %6882 = vmatprep.subr.bf16.mxu0 %v9626_v60  ;;  %v9683_v59 = vld [vmem:[%s14281_s1 + $0x16a4] ss:$16 sps:$4 sm:$0xff]   ;;  %v9678_v60 = vld [vmem:[%s14281_s1 + $0x14a0] ss:$16 sps:$4 sm:$0xff]  }
 0x12f   : > { %6925 = vmatprep.subr.bf16.mxu1 %v9629_v61  ;;  %v9681_v61 = vld [vmem:[%s14281_s1 + $0x16a0] ss:$16 sps:$4 sm:$0xff]  }
 0x131   : > { %6883 = vmatpush2.bf16.msra.mxu0 %v9624_v62  ;;  %v9686_v62 = vld [vmem:[%s14281_s1 + $0x1484] ss:$16 sps:$4 sm:$0xff]  }
 0x132   : > { %6926 = vmatpush2.bf16.msra.mxu1 %v9627_v63  ;;  %6884 = vmatprep.subr.bf16.mxu0 %v9632_v0  ;;  %v9689_v63 = vld [vmem:[%s14281_s1 + $0x1684] ss:$16 sps:$4 sm:$0xff]   ;;  %v9684_v0 = vld [vmem:[%s14281_s1 + $0x1480] ss:$16 sps:$4 sm:$0xff]  }
 0x133   : > { %6927 = vmatprep.subr.bf16.mxu1 %v9635_v1  ;;  %v9687_v1 = vld [vmem:[%s14281_s1 + $0x1680] ss:$16 sps:$4 sm:$0xff]  }
 0x135   : > { %6885 = vmatpush2.bf16.msra.mxu0 %v9630_v2  ;;  %v9692_v2 = vld [vmem:[%s14281_s1 + $0x1464] ss:$16 sps:$4 sm:$0xff]  }
 0x136   : > { %6928 = vmatpush2.bf16.msra.mxu1 %v9633_v3  ;;  %6886 = vmatprep.subr.bf16.mxu0 %v9638_v4  ;;  %v9695_v3 = vld [vmem:[%s14281_s1 + $0x1664] ss:$16 sps:$4 sm:$0xff]   ;;  %v9690_v4 = vld [vmem:[%s14281_s1 + $0x1460] ss:$16 sps:$4 sm:$0xff]  }
 0x137   : > { %6929 = vmatprep.subr.bf16.mxu1 %v9641_v5  ;;  %v9693_v5 = vld [vmem:[%s14281_s1 + $0x1660] ss:$16 sps:$4 sm:$0xff]  }
 0x139   : > { %6887 = vmatpush2.bf16.msra.mxu0 %v9636_v14  ;;  %v9698_v14 = vld [vmem:[%s14281_s1 + $0x1444] ss:$16 sps:$4 sm:$0xff]  }
 0x13a   : > { %6930 = vmatpush2.bf16.msra.mxu1 %v9639_v46  ;;  %6888 = vmatprep.subr.bf16.mxu0 %v9644_v51  ;;  %v9701_v46 = vld [vmem:[%s14281_s1 + $0x1644] ss:$16 sps:$4 sm:$0xff]   ;;  %v9696_v51 = vld [vmem:[%s14281_s1 + $0x1440] ss:$16 sps:$4 sm:$0xff]  }
 0x13b   : > { %6931 = vmatprep.subr.bf16.mxu1 %v9647_v15  ;;  %v9699_v15 = vld [vmem:[%s14281_s1 + $0x1640] ss:$16 sps:$4 sm:$0xff]  }
 0x13d   : > { %6889 = vmatpush2.bf16.msra.mxu0 %v9642_v16  ;;  %v9704_v16 = vld [vmem:[%s14281_s1 + $0x1424] ss:$16 sps:$4 sm:$0xff]  }
 0x13e   : > { %6932 = vmatpush2.bf16.msra.mxu1 %v9645_v17  ;;  %6890 = vmatprep.subr.bf16.mxu0 %v9650_v18  ;;  %v9707_v17 = vld [vmem:[%s14281_s1 + $0x1624] ss:$16 sps:$4 sm:$0xff]   ;;  %v9702_v18 = vld [vmem:[%s14281_s1 + $0x1420] ss:$16 sps:$4 sm:$0xff]  }
 0x13f   : > { %6933 = vmatprep.subr.bf16.mxu1 %v9653_v19  ;;  %v9705_v19 = vld [vmem:[%s14281_s1 + $0x1620] ss:$16 sps:$4 sm:$0xff]  }
 0x141   : > { %6891 = vmatpush2.bf16.msra.mxu0 %v9648_v22  ;;  %v9710_v22 = vld [vmem:[%s14281_s1 + $0x1404] ss:$16 sps:$4 sm:$0xff]  }
 0x142   : > { %6934 = vmatpush2.bf16.msra.mxu1 %v9651_v23  ;;  %6892 = vmatprep.subr.bf16.mxu0 %v9656_v24  ;;  %v9713_v23 = vld [vmem:[%s14281_s1 + $0x1604] ss:$16 sps:$4 sm:$0xff]   ;;  %v9708_v24 = vld [vmem:[%s14281_s1 + $0x1400] ss:$16 sps:$4 sm:$0xff]  }
 0x143   : > { %6935 = vmatprep.subr.bf16.mxu1 %v9659_v25  ;;  %v9711_v25 = vld [vmem:[%s14281_s1 + $0x1600] ss:$16 sps:$4 sm:$0xff]  }
 0x145   : > { %6893 = vmatpush2.bf16.msra.mxu0 %v9654_v26  ;;  %v9716_v26 = vld [vmem:[%s14281_s1 + $0x15e4] ss:$16 sps:$4 sm:$0xff]  }
 0x146   : > { %6936 = vmatpush2.bf16.msra.mxu1 %v9657_v27  ;;  %6894 = vmatprep.subr.bf16.mxu0 %v9662_v32  ;;  %v9719_v27 = vld [vmem:[%s14281_s1 + $0x17e4] ss:$16 sps:$4 sm:$0xff]   ;;  %v9714_v32 = vld [vmem:[%s14281_s1 + $0x15e0] ss:$16 sps:$4 sm:$0xff]  }
 0x147   : > { %6937 = vmatprep.subr.bf16.mxu1 %v9665_v34  ;;  %v9717_v34 = vld [vmem:[%s14281_s1 + $0x17e0] ss:$16 sps:$4 sm:$0xff]  }
 0x149   : > { %6895 = vmatpush2.bf16.msra.mxu0 %v9660_v36  ;;  %v9722_v36 = vld [vmem:[%s14281_s1 + $0x15c4] ss:$16 sps:$4 sm:$0xff]  }
 0x14a   : > { %6938 = vmatpush2.bf16.msra.mxu1 %v9663_v37  ;;  %6950 = vmatprep.subr.bf16.mxu0 %v9668_v38  ;;  %v9725_v37 = vld [vmem:[%s14281_s1 + $0x17c4] ss:$16 sps:$4 sm:$0xff]   ;;  %v9720_v38 = vld [vmem:[%s14281_s1 + $0x15c0] ss:$16 sps:$4 sm:$0xff]  }
 0x14b   : > { %6993 = vmatprep.subr.bf16.mxu1 %v9671_v39  ;;  %v9723_v39 = vld [vmem:[%s14281_s1 + $0x17c0] ss:$16 sps:$4 sm:$0xff]  }
 0x14c   : > { %6897 = vmatmul.mubr.bf16.vlgmr.msra.gmra.mxu0 %v11878_v44 }
 0x14d   : > { %6940 = vmatmul.mubr.bf16.vlgmr.msra.gmra.mxu1 %v11882_v45  ;;  %6951 = vmatpush1.bf16.msra.mxu0 %v9666_v42  ;;  %v9728_v42 = vld [vmem:[%s14281_s1 + $0x15a4] ss:$16 sps:$4 sm:$0xff]  }
 0x14e   : > { %6994 = vmatpush1.bf16.msra.mxu1 %v9669_v54  ;;  %6952 = vmatprep.subr.bf16.mxu0 %v9674_v6  ;;  %v9731_v54 = vld [vmem:[%s14281_s1 + $0x17a4] ss:$16 sps:$4 sm:$0xff]   ;;  %v9726_v6 = vld [vmem:[%s14281_s1 + $0x15a0] ss:$16 sps:$4 sm:$0xff]  }
 0x14f   : > { %6995 = vmatprep.subr.bf16.mxu1 %v9677_v7  ;;  %6982 = vmatprep.mubr.bf16.mxu0 %v11910_v56  ;;  %v9729_v7 = vld [vmem:[%s14281_s1 + $0x17a0] ss:$16 sps:$4 sm:$0xff]  }
 0x150   : > { %7025 = vmatprep.mubr.bf16.mxu1 %v11914_v57 }
 0x151   : > { %6953 = vmatpush1.bf16.msra.mxu0 %v9672_v12  ;;  %v9734_v12 = vld [vmem:[%s14281_s1 + $0x1584] ss:$16 sps:$4 sm:$0xff]  }
 0x152   : > { %6996 = vmatpush1.bf16.msra.mxu1 %v9675_v13  ;;  %6954 = vmatprep.subr.bf16.mxu0 %v9680_v58  ;;  %v9737_v13 = vld [vmem:[%s14281_s1 + $0x1784] ss:$16 sps:$4 sm:$0xff]   ;;  %v9732_v58 = vld [vmem:[%s14281_s1 + $0x1580] ss:$16 sps:$4 sm:$0xff]  }
 0x153   : > { %6997 = vmatprep.subr.bf16.mxu1 %v9683_v59  ;;  %v9735_v59 = vld [vmem:[%s14281_s1 + $0x1780] ss:$16 sps:$4 sm:$0xff]  }
 0x155   : > { %6955 = vmatpush1.bf16.msra.mxu0 %v9678_v60  ;;  %v9740_v60 = vld [vmem:[%s14281_s1 + $0x1564] ss:$16 sps:$4 sm:$0xff]  }
 0x156   : > { %6998 = vmatpush1.bf16.msra.mxu1 %v9681_v61  ;;  %6956 = vmatprep.subr.bf16.mxu0 %v9686_v62  ;;  %v9743_v61 = vld [vmem:[%s14281_s1 + $0x1764] ss:$16 sps:$4 sm:$0xff]   ;;  %v9738_v62 = vld [vmem:[%s14281_s1 + $0x1560] ss:$16 sps:$4 sm:$0xff]  }
 0x157   : > { %6999 = vmatprep.subr.bf16.mxu1 %v9689_v63  ;;  %v9741_v63 = vld [vmem:[%s14281_s1 + $0x1760] ss:$16 sps:$4 sm:$0xff]  }
 0x159   : > { %6957 = vmatpush1.bf16.msra.mxu0 %v9684_v0  ;;  %v9746_v0 = vld [vmem:[%s14281_s1 + $0x1544] ss:$16 sps:$4 sm:$0xff]  }
 0x15a   : > { %7000 = vmatpush1.bf16.msra.mxu1 %v9687_v1  ;;  %6958 = vmatprep.subr.bf16.mxu0 %v9692_v2  ;;  %v9749_v1 = vld [vmem:[%s14281_s1 + $0x1744] ss:$16 sps:$4 sm:$0xff]   ;;  %v9744_v2 = vld [vmem:[%s14281_s1 + $0x1540] ss:$16 sps:$4 sm:$0xff]  }
 0x15b   : > { %7001 = vmatprep.subr.bf16.mxu1 %v9695_v3  ;;  %v9747_v3 = vld [vmem:[%s14281_s1 + $0x1740] ss:$16 sps:$4 sm:$0xff]  }
 0x15d   : > { %6959 = vmatpush1.bf16.msra.mxu0 %v9690_v4  ;;  %v9752_v4 = vld [vmem:[%s14281_s1 + $0x1524] ss:$16 sps:$4 sm:$0xff]  }
 0x15e   : > { %7002 = vmatpush1.bf16.msra.mxu1 %v9693_v5  ;;  %6960 = vmatprep.subr.bf16.mxu0 %v9698_v14  ;;  %v9755_v5 = vld [vmem:[%s14281_s1 + $0x1724] ss:$16 sps:$4 sm:$0xff]   ;;  %v9750_v14 = vld [vmem:[%s14281_s1 + $0x1520] ss:$16 sps:$4 sm:$0xff]  }
 0x15f   : > { %7003 = vmatprep.subr.bf16.mxu1 %v9701_v46  ;;  %v9753_v46 = vld [vmem:[%s14281_s1 + $0x1720] ss:$16 sps:$4 sm:$0xff]  }
 0x161   : > { %6961 = vmatpush1.bf16.msra.mxu0 %v9696_v51  ;;  %v9758_v51 = vld [vmem:[%s14281_s1 + $0x1504] ss:$16 sps:$4 sm:$0xff]  }
 0x162   : > { %7004 = vmatpush1.bf16.msra.mxu1 %v9699_v15  ;;  %6962 = vmatprep.subr.bf16.mxu0 %v9704_v16  ;;  %v9761_v15 = vld [vmem:[%s14281_s1 + $0x1704] ss:$16 sps:$4 sm:$0xff]   ;;  %v9756_v16 = vld [vmem:[%s14281_s1 + $0x1500] ss:$16 sps:$4 sm:$0xff]  }
 0x163   : > { %7005 = vmatprep.subr.bf16.mxu1 %v9707_v17  ;;  %v9759_v17 = vld [vmem:[%s14281_s1 + $0x1700] ss:$16 sps:$4 sm:$0xff]  }
 0x165   : > { %6963 = vmatpush1.bf16.msra.mxu0 %v9702_v18  ;;  %v9764_v18 = vld [vmem:[%s14281_s1 + $0x18e4] ss:$16 sps:$4 sm:$0xff]  }
 0x166   : > { %7006 = vmatpush1.bf16.msra.mxu1 %v9705_v19  ;;  %6964 = vmatprep.subr.bf16.mxu0 %v9710_v22  ;;  %v9767_v19 = vld [vmem:[%s14281_s1 + $0x1ae4] ss:$16 sps:$4 sm:$0xff]  }
 0x167   : > { %7007 = vmatprep.subr.bf16.mxu1 %v9713_v23  ;;  %v12095_v22 = vld [vmem:[%s10900_s30 + $0x60] sm:$0xff] }
 0x168   : > { %v9762_v23 = vld [vmem:[%s14281_s1 + $0x18e0] ss:$16 sps:$4 sm:$0xff]  }
 0x169   : > { %6965 = vmatpush1.bf16.msra.mxu0 %v9708_v24  ;;  %v12102_v24 = vcombine.low %v11871_v40, %v11885_v52  ;;  %v9770_v40 = vld [vmem:[%s14281_s1 + $0x18c4] ss:$16 sps:$4 sm:$0xff]  }
 0x16a   : > { %7008 = vmatpush1.bf16.msra.mxu1 %v9711_v25  ;;  %6966 = vmatprep.subr.bf16.mxu0 %v9716_v26  ;;  %v12106_v25 = vcombine.low %v11888_v28, %v11891_v31  ;;  %v12109_v26 = vld [vmem:[%s10900_s30 + $0xe0] sm:$0xff] }
 0x16b   : > { %7009 = vmatprep.subr.bf16.mxu1 %v9719_v27  ;;  %v12112_v27 = vld [vmem:[%s10900_s30 + $0x68] sm:$0xff]  ;;  %v9773_v52 = vld [vmem:[%s14281_s1 + $0x1ac4] ss:$16 sps:$4 sm:$0xff]   ;;  %v9768_v28 = vld [vmem:[%s14281_s1 + $0x18c0] ss:$16 sps:$4 sm:$0xff]  }
 0x16c   : > { %v9771_v31 = vld [vmem:[%s14281_s1 + $0x1ac0] ss:$16 sps:$4 sm:$0xff]  }
 0x16d   : > { %6967 = vmatpush2.bf16.msra.mxu0 %v9714_v32  ;;  %v12115_v32 = vld [vmem:[%s10900_s30 + $0xe8] sm:$0xff] }
 0x16e   : > { %7010 = vmatpush2.bf16.msra.mxu1 %v9717_v34  ;;  %6968 = vmatprep.subr.bf16.mxu0 %v9722_v36  ;;  %v9765_v34 = vld [vmem:[%s14281_s1 + $0x1ae0] ss:$16 sps:$4 sm:$0xff]   ;;  %v12134_v36 = vcombine.high %v12095_v22, %v12109_v26 }
 0x16f   : > { %7011 = vmatprep.subr.bf16.mxu1 %v9725_v37  ;;  %v12138_v37 = vcombine.high %v12112_v27, %v12115_v32 }
 0x171   : > { %6969 = vmatpush2.bf16.msra.mxu0 %v9720_v38  ;;  %v9776_v38 = vld [vmem:[%s14281_s1 + $0x18a4] ss:$16 sps:$4 sm:$0xff]  }
 0x172   : > { %7012 = vmatpush2.bf16.msra.mxu1 %v9723_v39  ;;  %6970 = vmatprep.subr.bf16.mxu0 %v9728_v42  ;;  %v9779_v39 = vld [vmem:[%s14281_s1 + $0x1aa4] ss:$16 sps:$4 sm:$0xff]   ;;  %v9774_v42 = vld [vmem:[%s14281_s1 + $0x18a0] ss:$16 sps:$4 sm:$0xff]  }
 0x173   : > { %7013 = vmatprep.subr.bf16.mxu1 %v9731_v54  ;;  %v9777_v54 = vld [vmem:[%s14281_s1 + $0x1aa0] ss:$16 sps:$4 sm:$0xff]  }
 0x175   : > { %6971 = vmatpush2.bf16.msra.mxu0 %v9726_v6  ;;  %v9782_v6 = vld [vmem:[%s14281_s1 + $0x1884] ss:$16 sps:$4 sm:$0xff]  }
 0x176   : > { %7014 = vmatpush2.bf16.msra.mxu1 %v9729_v7  ;;  %6972 = vmatprep.subr.bf16.mxu0 %v9734_v12  ;;  %v9785_v7 = vld [vmem:[%s14281_s1 + $0x1a84] ss:$16 sps:$4 sm:$0xff]   ;;  %v9780_v12 = vld [vmem:[%s14281_s1 + $0x1880] ss:$16 sps:$4 sm:$0xff]  }
 0x177   : > { %7015 = vmatprep.subr.bf16.mxu1 %v9737_v13  ;;  %v9783_v13 = vld [vmem:[%s14281_s1 + $0x1a80] ss:$16 sps:$4 sm:$0xff]  }
 0x179   : > { %6973 = vmatpush2.bf16.msra.mxu0 %v9732_v58  ;;  %v9788_v58 = vld [vmem:[%s14281_s1 + $0x1864] ss:$16 sps:$4 sm:$0xff]  }
 0x17a   : > { %7016 = vmatpush2.bf16.msra.mxu1 %v9735_v59  ;;  %6974 = vmatprep.subr.bf16.mxu0 %v9740_v60  ;;  %v9791_v59 = vld [vmem:[%s14281_s1 + $0x1a64] ss:$16 sps:$4 sm:$0xff]   ;;  %v9786_v60 = vld [vmem:[%s14281_s1 + $0x1860] ss:$16 sps:$4 sm:$0xff]  }
 0x17b   : > { %7017 = vmatprep.subr.bf16.mxu1 %v9743_v61  ;;  %v9789_v61 = vld [vmem:[%s14281_s1 + $0x1a60] ss:$16 sps:$4 sm:$0xff]  }
 0x17d   : > { %6975 = vmatpush2.bf16.msra.mxu0 %v9738_v62  ;;  %v9794_v62 = vld [vmem:[%s14281_s1 + $0x1844] ss:$16 sps:$4 sm:$0xff]  }
 0x17e   : > { %7018 = vmatpush2.bf16.msra.mxu1 %v9741_v63  ;;  %6976 = vmatprep.subr.bf16.mxu0 %v9746_v0  ;;  %v9797_v63 = vld [vmem:[%s14281_s1 + $0x1a44] ss:$16 sps:$4 sm:$0xff]   ;;  %v9792_v0 = vld [vmem:[%s14281_s1 + $0x1840] ss:$16 sps:$4 sm:$0xff]  }
 0x17f   : > { %7019 = vmatprep.subr.bf16.mxu1 %v9749_v1  ;;  %v9795_v1 = vld [vmem:[%s14281_s1 + $0x1a40] ss:$16 sps:$4 sm:$0xff]  }
 0x181   : > { %6977 = vmatpush2.bf16.msra.mxu0 %v9744_v2  ;;  %v9800_v2 = vld [vmem:[%s14281_s1 + $0x1824] ss:$16 sps:$4 sm:$0xff]  }
 0x182   : > { %7020 = vmatpush2.bf16.msra.mxu1 %v9747_v3  ;;  %6978 = vmatprep.subr.bf16.mxu0 %v9752_v4  ;;  %v9803_v3 = vld [vmem:[%s14281_s1 + $0x1a24] ss:$16 sps:$4 sm:$0xff]   ;;  %v9798_v4 = vld [vmem:[%s14281_s1 + $0x1820] ss:$16 sps:$4 sm:$0xff]  }
 0x183   : > { %7021 = vmatprep.subr.bf16.mxu1 %v9755_v5  ;;  %v9801_v5 = vld [vmem:[%s14281_s1 + $0x1a20] ss:$16 sps:$4 sm:$0xff]  }
 0x185   : > { %6979 = vmatpush2.bf16.msra.mxu0 %v9750_v14  ;;  %v9806_v14 = vld [vmem:[%s14281_s1 + $0x1804] ss:$16 sps:$4 sm:$0xff]  }
 0x186   : > { %7022 = vmatpush2.bf16.msra.mxu1 %v9753_v46  ;;  %6980 = vmatprep.subr.bf16.mxu0 %v9758_v51  ;;  %v9809_v46 = vld [vmem:[%s14281_s1 + $0x1a04] ss:$16 sps:$4 sm:$0xff]   ;;  %v9804_v51 = vld [vmem:[%s14281_s1 + $0x1800] ss:$16 sps:$4 sm:$0xff]  }
 0x187   : > { %7023 = vmatprep.subr.bf16.mxu1 %v9761_v15  ;;  %v9807_v15 = vld [vmem:[%s14281_s1 + $0x1a00] ss:$16 sps:$4 sm:$0xff]  }
 0x189   : > { %6981 = vmatpush2.bf16.msra.mxu0 %v9756_v16  ;;  %v9812_v16 = vld [vmem:[%s14281_s1 + $0x19e4] ss:$16 sps:$4 sm:$0xff]  }
 0x18a   : > { %7024 = vmatpush2.bf16.msra.mxu1 %v9759_v17  ;;  %7036 = vmatprep.subr.bf16.mxu0 %v9764_v18  ;;  %v9815_v17 = vld [vmem:[%s14281_s1 + $0x1be4] ss:$16 sps:$4 sm:$0xff]   ;;  %v9810_v18 = vld [vmem:[%s14281_s1 + $0x19e0] ss:$16 sps:$4 sm:$0xff]  }
 0x18b   : > { %7079 = vmatprep.subr.bf16.mxu1 %v9767_v19  ;;  %v9813_v19 = vld [vmem:[%s14281_s1 + $0x1be0] ss:$16 sps:$4 sm:$0xff]  }
 0x18c   : > { %6983 = vmatmul.mubr.bf16.vlgmr.msra.gmra.mxu0 %v12102_v24 }
 0x18d   : > { %7026 = vmatmul.mubr.bf16.vlgmr.msra.gmra.mxu1 %v12106_v25  ;;  %7037 = vmatpush1.bf16.msra.mxu0 %v9762_v23  ;;  %v9818_v23 = vld [vmem:[%s14281_s1 + $0x19c4] ss:$16 sps:$4 sm:$0xff]  }
 0x18e   : > { %7080 = vmatpush1.bf16.msra.mxu1 %v9765_v34  ;;  %7038 = vmatprep.subr.bf16.mxu0 %v9770_v40  ;;  %v9821_v34 = vld [vmem:[%s14281_s1 + $0x1bc4] ss:$16 sps:$4 sm:$0xff]   ;;  %v9816_v40 = vld [vmem:[%s14281_s1 + $0x19c0] ss:$16 sps:$4 sm:$0xff]  }
 0x18f   : > { %7081 = vmatprep.subr.bf16.mxu1 %v9773_v52  ;;  %7068 = vmatprep.mubr.bf16.mxu0 %v12134_v36  ;;  %v9819_v52 = vld [vmem:[%s14281_s1 + $0x1bc0] ss:$16 sps:$4 sm:$0xff]  }
 0x190   : > { %7111 = vmatprep.mubr.bf16.mxu1 %v12138_v37 }
 0x191   : > { %7039 = vmatpush1.bf16.msra.mxu0 %v9768_v28  ;;  %v9824_v28 = vld [vmem:[%s14281_s1 + $0x19a4] ss:$16 sps:$4 sm:$0xff]  }
 0x192   : > { %7082 = vmatpush1.bf16.msra.mxu1 %v9771_v31  ;;  %7040 = vmatprep.subr.bf16.mxu0 %v9776_v38  ;;  %v9827_v31 = vld [vmem:[%s14281_s1 + $0x1ba4] ss:$16 sps:$4 sm:$0xff]   ;;  %v9822_v38 = vld [vmem:[%s14281_s1 + $0x19a0] ss:$16 sps:$4 sm:$0xff]  }
 0x193   : > { %7083 = vmatprep.subr.bf16.mxu1 %v9779_v39  ;;  %v9825_v39 = vld [vmem:[%s14281_s1 + $0x1ba0] ss:$16 sps:$4 sm:$0xff]  }
 0x195   : > { %7041 = vmatpush1.bf16.msra.mxu0 %v9774_v42  ;;  %v9830_v42 = vld [vmem:[%s14281_s1 + $0x1984] ss:$16 sps:$4 sm:$0xff]  }
 0x196   : > { %7084 = vmatpush1.bf16.msra.mxu1 %v9777_v54  ;;  %7042 = vmatprep.subr.bf16.mxu0 %v9782_v6  ;;  %v9833_v54 = vld [vmem:[%s14281_s1 + $0x1b84] ss:$16 sps:$4 sm:$0xff]   ;;  %v9828_v6 = vld [vmem:[%s14281_s1 + $0x1980] ss:$16 sps:$4 sm:$0xff]  }
 0x197   : > { %7085 = vmatprep.subr.bf16.mxu1 %v9785_v7  ;;  %v9831_v7 = vld [vmem:[%s14281_s1 + $0x1b80] ss:$16 sps:$4 sm:$0xff]  }
 0x199   : > { %7043 = vmatpush1.bf16.msra.mxu0 %v9780_v12  ;;  %v9836_v12 = vld [vmem:[%s14281_s1 + $0x1964] ss:$16 sps:$4 sm:$0xff]  }
 0x19a   : > { %7086 = vmatpush1.bf16.msra.mxu1 %v9783_v13  ;;  %7044 = vmatprep.subr.bf16.mxu0 %v9788_v58  ;;  %v9839_v13 = vld [vmem:[%s14281_s1 + $0x1b64] ss:$16 sps:$4 sm:$0xff]   ;;  %v9834_v58 = vld [vmem:[%s14281_s1 + $0x1960] ss:$16 sps:$4 sm:$0xff]  }
 0x19b   : > { %7087 = vmatprep.subr.bf16.mxu1 %v9791_v59  ;;  %v9837_v59 = vld [vmem:[%s14281_s1 + $0x1b60] ss:$16 sps:$4 sm:$0xff]  }
 0x19d   : > { %7045 = vmatpush1.bf16.msra.mxu0 %v9786_v60  ;;  %v9842_v60 = vld [vmem:[%s14281_s1 + $0x1944] ss:$16 sps:$4 sm:$0xff]  }
 0x19e   : > { %7088 = vmatpush1.bf16.msra.mxu1 %v9789_v61  ;;  %7046 = vmatprep.subr.bf16.mxu0 %v9794_v62  ;;  %v9845_v61 = vld [vmem:[%s14281_s1 + $0x1b44] ss:$16 sps:$4 sm:$0xff]   ;;  %v9840_v62 = vld [vmem:[%s14281_s1 + $0x1940] ss:$16 sps:$4 sm:$0xff]  }
 0x19f   : > { %7089 = vmatprep.subr.bf16.mxu1 %v9797_v63  ;;  %v9843_v63 = vld [vmem:[%s14281_s1 + $0x1b40] ss:$16 sps:$4 sm:$0xff]  }
 0x1a1   : > { %7047 = vmatpush1.bf16.msra.mxu0 %v9792_v0  ;;  %v9848_v0 = vld [vmem:[%s14281_s1 + $0x1924] ss:$16 sps:$4 sm:$0xff]  }
 0x1a2   : > { %7090 = vmatpush1.bf16.msra.mxu1 %v9795_v1  ;;  %7048 = vmatprep.subr.bf16.mxu0 %v9800_v2  ;;  %v9851_v1 = vld [vmem:[%s14281_s1 + $0x1b24] ss:$16 sps:$4 sm:$0xff]   ;;  %v9846_v2 = vld [vmem:[%s14281_s1 + $0x1920] ss:$16 sps:$4 sm:$0xff]  }
 0x1a3   : > { %7091 = vmatprep.subr.bf16.mxu1 %v9803_v3  ;;  %v9849_v3 = vld [vmem:[%s14281_s1 + $0x1b20] ss:$16 sps:$4 sm:$0xff]  }
 0x1a5   : > { %7049 = vmatpush1.bf16.msra.mxu0 %v9798_v4  ;;  %v9854_v4 = vld [vmem:[%s14281_s1 + $0x1904] ss:$16 sps:$4 sm:$0xff]  }
 0x1a6   : > { %7092 = vmatpush1.bf16.msra.mxu1 %v9801_v5  ;;  %7050 = vmatprep.subr.bf16.mxu0 %v9806_v14  ;;  %v9857_v5 = vld [vmem:[%s14281_s1 + $0x1b04] ss:$16 sps:$4 sm:$0xff]   ;;  %v9852_v14 = vld [vmem:[%s14281_s1 + $0x1900] ss:$16 sps:$4 sm:$0xff]  }
 0x1a7   : > { %7093 = vmatprep.subr.bf16.mxu1 %v9809_v46  ;;  %v9855_v46 = vld [vmem:[%s14281_s1 + $0x1b00] ss:$16 sps:$4 sm:$0xff]  }
 0x1a9   : > { %7051 = vmatpush1.bf16.msra.mxu0 %v9804_v51  ;;  %v9860_v51 = vld [vmem:[%s14281_s1 + $0x1ce4] ss:$16 sps:$4 sm:$0xff]  }
 0x1aa   : > { %7094 = vmatpush1.bf16.msra.mxu1 %v9807_v15  ;;  %7052 = vmatprep.subr.bf16.mxu0 %v9812_v16  ;;  %v9863_v15 = vld [vmem:[%s14281_s1 + $0x1ee4] ss:$16 sps:$4 sm:$0xff]  }
 0x1ab   : > { %7095 = vmatprep.subr.bf16.mxu1 %v9815_v17  ;;  %v12319_v16 = vld [vmem:[%s10900_s30 + $0x70] sm:$0xff] }
 0x1ac   : > { %v12322_v17 = vld [vmem:[%s10900_s30 + $0xf0] sm:$0xff] }
 0x1ad   : > { %7053 = vmatpush2.bf16.msra.mxu0 %v9810_v18  ;;  %v12325_v18 = vld [vmem:[%s10900_s30 + $0x78] sm:$0xff] }
 0x1ae   : > { %7096 = vmatpush2.bf16.msra.mxu1 %v9813_v19  ;;  %7054 = vmatprep.subr.bf16.mxu0 %v9818_v23  ;;  %v12328_v19 = vld [vmem:[%s10900_s30 + $0xf8] sm:$0xff]  ;;  %v9858_v23 = vld [vmem:[%s14281_s1 + $0x1ce0] ss:$16 sps:$4 sm:$0xff]  }
 0x1af   : > { %7097 = vmatprep.subr.bf16.mxu1 %v9821_v34  ;;  %v9861_v34 = vld [vmem:[%s14281_s1 + $0x1ee0] ss:$16 sps:$4 sm:$0xff]  }
 0x1b1   : > { %7055 = vmatpush2.bf16.msra.mxu0 %v9816_v40  ;;  %v12338_v40 = vcombine.low %v12095_v22, %v12109_v26  ;;  %v9864_v22 = vld [vmem:[%s14281_s1 + $0x1cc0] ss:$16 sps:$4 sm:$0xff]  }
 0x1b2   : > { %7098 = vmatpush2.bf16.msra.mxu1 %v9819_v52  ;;  %7056 = vmatprep.subr.bf16.mxu0 %v9824_v28  ;;  %v12342_v52 = vcombine.low %v12112_v27, %v12115_v32  ;;  %v9866_v28 = vld [vmem:[%s14281_s1 + $0x1cc4] ss:$16 sps:$4 sm:$0xff]   ;;  %v9867_v26 = vld [vmem:[%s14281_s1 + $0x1ec0] ss:$16 sps:$4 sm:$0xff]   ;;  %v12358_v27 = vcombine.high %v12319_v16, %v12322_v17  ;;  %v12362_v32 = vcombine.high %v12325_v18, %v12328_v19 }
 0x1b3   : > { %7099 = vmatprep.subr.bf16.mxu1 %v9827_v31  ;;  %v9869_v31 = vld [vmem:[%s14281_s1 + $0x1ec4] ss:$16 sps:$4 sm:$0xff]  }
 0x1b4   : > { %14289 = vst [vmem:[#allocation2_spill] sm:$0xff] %v12342_v52  ;;  %14290 = vst [vmem:[#allocation3_spill] sm:$0xff] %v12358_v27 }
 0x1b5   : > { %7057 = vmatpush2.bf16.msra.mxu0 %v9822_v38  ;;  %14291 = vst [vmem:[#allocation4_spill] sm:$0xff] %v12362_v32  ;;  %v9872_v38 = vld [vmem:[%s14281_s1 + $0x1ca4] ss:$16 sps:$4 sm:$0xff]  }
 0x1b6   : > { %7100 = vmatpush2.bf16.msra.mxu1 %v9825_v39  ;;  %7058 = vmatprep.subr.bf16.mxu0 %v9830_v42  ;;  %v9875_v39 = vld [vmem:[%s14281_s1 + $0x1ea4] ss:$16 sps:$4 sm:$0xff]   ;;  %v9870_v42 = vld [vmem:[%s14281_s1 + $0x1ca0] ss:$16 sps:$4 sm:$0xff]  }
 0x1b7   : > { %7101 = vmatprep.subr.bf16.mxu1 %v9833_v54  ;;  %v9873_v54 = vld [vmem:[%s14281_s1 + $0x1ea0] ss:$16 sps:$4 sm:$0xff]  }
 0x1b9   : > { %7059 = vmatpush2.bf16.msra.mxu0 %v9828_v6  ;;  %v9878_v6 = vld [vmem:[%s14281_s1 + $0x1c84] ss:$16 sps:$4 sm:$0xff]  }
 0x1ba   : > { %7102 = vmatpush2.bf16.msra.mxu1 %v9831_v7  ;;  %7060 = vmatprep.subr.bf16.mxu0 %v9836_v12  ;;  %v9881_v7 = vld [vmem:[%s14281_s1 + $0x1e84] ss:$16 sps:$4 sm:$0xff]   ;;  %v9876_v12 = vld [vmem:[%s14281_s1 + $0x1c80] ss:$16 sps:$4 sm:$0xff]  }
 0x1bb   : > { %7103 = vmatprep.subr.bf16.mxu1 %v9839_v13  ;;  %v9879_v13 = vld [vmem:[%s14281_s1 + $0x1e80] ss:$16 sps:$4 sm:$0xff]  }
 0x1bd   : > { %7061 = vmatpush2.bf16.msra.mxu0 %v9834_v58  ;;  %v9884_v58 = vld [vmem:[%s14281_s1 + $0x1c64] ss:$16 sps:$4 sm:$0xff]  }
 0x1be   : > { %7104 = vmatpush2.bf16.msra.mxu1 %v9837_v59  ;;  %7062 = vmatprep.subr.bf16.mxu0 %v9842_v60  ;;  %v9887_v59 = vld [vmem:[%s14281_s1 + $0x1e64] ss:$16 sps:$4 sm:$0xff]   ;;  %v9882_v60 = vld [vmem:[%s14281_s1 + $0x1c60] ss:$16 sps:$4 sm:$0xff]  }
 0x1bf   : > { %7105 = vmatprep.subr.bf16.mxu1 %v9845_v61  ;;  %v9885_v61 = vld [vmem:[%s14281_s1 + $0x1e60] ss:$16 sps:$4 sm:$0xff]  }
 0x1c1   : > { %7063 = vmatpush2.bf16.msra.mxu0 %v9840_v62  ;;  %v9890_v62 = vld [vmem:[%s14281_s1 + $0x1c44] ss:$16 sps:$4 sm:$0xff]  }
 0x1c2   : > { %7106 = vmatpush2.bf16.msra.mxu1 %v9843_v63  ;;  %7064 = vmatprep.subr.bf16.mxu0 %v9848_v0  ;;  %v9893_v63 = vld [vmem:[%s14281_s1 + $0x1e44] ss:$16 sps:$4 sm:$0xff]   ;;  %v9888_v0 = vld [vmem:[%s14281_s1 + $0x1c40] ss:$16 sps:$4 sm:$0xff]  }
 0x1c3   : > { %7107 = vmatprep.subr.bf16.mxu1 %v9851_v1  ;;  %v9891_v1 = vld [vmem:[%s14281_s1 + $0x1e40] ss:$16 sps:$4 sm:$0xff]  }
 0x1c5   : > { %7065 = vmatpush2.bf16.msra.mxu0 %v9846_v2  ;;  %v9896_v2 = vld [vmem:[%s14281_s1 + $0x1c24] ss:$16 sps:$4 sm:$0xff]  }
 0x1c6   : > { %7108 = vmatpush2.bf16.msra.mxu1 %v9849_v3  ;;  %7066 = vmatprep.subr.bf16.mxu0 %v9854_v4  ;;  %v9899_v3 = vld [vmem:[%s14281_s1 + $0x1e24] ss:$16 sps:$4 sm:$0xff]   ;;  %v9894_v4 = vld [vmem:[%s14281_s1 + $0x1c20] ss:$16 sps:$4 sm:$0xff]  }
 0x1c7   : > { %7109 = vmatprep.subr.bf16.mxu1 %v9857_v5  ;;  %v9897_v5 = vld [vmem:[%s14281_s1 + $0x1e20] ss:$16 sps:$4 sm:$0xff]  }
 0x1c9   : > { %7067 = vmatpush2.bf16.msra.mxu0 %v9852_v14  ;;  %v9902_v14 = vld [vmem:[%s14281_s1 + $0x1c04] ss:$16 sps:$4 sm:$0xff]  }
 0x1ca   : > { %7110 = vmatpush2.bf16.msra.mxu1 %v9855_v46  ;;  %7122 = vmatprep.subr.bf16.mxu0 %v9860_v51  ;;  %v9905_v46 = vld [vmem:[%s14281_s1 + $0x1e04] ss:$16 sps:$4 sm:$0xff]   ;;  %v9900_v51 = vld [vmem:[%s14281_s1 + $0x1c00] ss:$16 sps:$4 sm:$0xff]  }
 0x1cb   : > { %7165 = vmatprep.subr.bf16.mxu1 %v9863_v15  ;;  %v9903_v15 = vld [vmem:[%s14281_s1 + $0x1e00] ss:$16 sps:$4 sm:$0xff]  }
 0x1cc   : > { %7069 = vmatmul.mubr.bf16.vlgmr.msra.gmra.mxu0 %v12338_v40 }
 0x1cd   : > { %7112 = vmatmul.mubr.bf16.vlgmr.msra.gmra.mxu1 %v12342_v52  ;;  %7123 = vmatpush1.bf16.msra.mxu0 %v9858_v23  ;;  %v9908_v23 = vld [vmem:[%s14281_s1 + $0x1de4] ss:$16 sps:$4 sm:$0xff]  }
 0x1ce   : > { %7166 = vmatpush1.bf16.msra.mxu1 %v9861_v34  ;;  %7124 = vmatprep.subr.bf16.mxu0 %v9866_v28  ;;  %v9911_v34 = vld [vmem:[%s14281_s1 + $0x1fe4] ss:$16 sps:$4 sm:$0xff]   ;;  %v9906_v28 = vld [vmem:[%s14281_s1 + $0x1de0] ss:$16 sps:$4 sm:$0xff]  }
 0x1cf   : > { %7167 = vmatprep.subr.bf16.mxu1 %v9869_v31  ;;  %7154 = vmatprep.mubr.bf16.mxu0 %v12358_v27  ;;  %v9909_v31 = vld [vmem:[%s14281_s1 + $0x1fe0] ss:$16 sps:$4 sm:$0xff]  }
 0x1d0   : > { %7197 = vmatprep.mubr.bf16.mxu1 %v12362_v32 }
 0x1d1   : > { %7125 = vmatpush1.bf16.msra.mxu0 %v9864_v22  ;;  %v9914_v22 = vld [vmem:[%s14281_s1 + $0x1dc4] ss:$16 sps:$4 sm:$0xff]  }
 0x1d2   : > { %7168 = vmatpush1.bf16.msra.mxu1 %v9867_v26  ;;  %7126 = vmatprep.subr.bf16.mxu0 %v9872_v38  ;;  %v9917_v26 = vld [vmem:[%s14281_s1 + $0x1fc4] ss:$16 sps:$4 sm:$0xff]   ;;  %v9912_v38 = vld [vmem:[%s14281_s1 + $0x1dc0] ss:$16 sps:$4 sm:$0xff]  }
 0x1d3   : > { %7169 = vmatprep.subr.bf16.mxu1 %v9875_v39  ;;  %v9915_v39 = vld [vmem:[%s14281_s1 + $0x1fc0] ss:$16 sps:$4 sm:$0xff]  }
 0x1d5   : > { %7127 = vmatpush1.bf16.msra.mxu0 %v9870_v42  ;;  %v9920_v42 = vld [vmem:[%s14281_s1 + $0x1da4] ss:$16 sps:$4 sm:$0xff]  }
 0x1d6   : > { %7170 = vmatpush1.bf16.msra.mxu1 %v9873_v54  ;;  %7128 = vmatprep.subr.bf16.mxu0 %v9878_v6  ;;  %v9923_v54 = vld [vmem:[%s14281_s1 + $0x1fa4] ss:$16 sps:$4 sm:$0xff]   ;;  %v9918_v6 = vld [vmem:[%s14281_s1 + $0x1da0] ss:$16 sps:$4 sm:$0xff]  }
 0x1d7   : > { %7171 = vmatprep.subr.bf16.mxu1 %v9881_v7  ;;  %v9921_v7 = vld [vmem:[%s14281_s1 + $0x1fa0] ss:$16 sps:$4 sm:$0xff]  }
 0x1d9   : > { %7129 = vmatpush1.bf16.msra.mxu0 %v9876_v12  ;;  %v9926_v12 = vld [vmem:[%s14281_s1 + $0x1d84] ss:$16 sps:$4 sm:$0xff]  }
 0x1da   : > { %7172 = vmatpush1.bf16.msra.mxu1 %v9879_v13  ;;  %7130 = vmatprep.subr.bf16.mxu0 %v9884_v58  ;;  %v9929_v13 = vld [vmem:[%s14281_s1 + $0x1f84] ss:$16 sps:$4 sm:$0xff]   ;;  %v9924_v58 = vld [vmem:[%s14281_s1 + $0x1d80] ss:$16 sps:$4 sm:$0xff]  }
 0x1db   : > { %7173 = vmatprep.subr.bf16.mxu1 %v9887_v59  ;;  %v9927_v59 = vld [vmem:[%s14281_s1 + $0x1f80] ss:$16 sps:$4 sm:$0xff]  }
 0x1dd   : > { %7131 = vmatpush1.bf16.msra.mxu0 %v9882_v60  ;;  %v9932_v60 = vld [vmem:[%s14281_s1 + $0x1d64] ss:$16 sps:$4 sm:$0xff]  }
 0x1de   : > { %7174 = vmatpush1.bf16.msra.mxu1 %v9885_v61  ;;  %7132 = vmatprep.subr.bf16.mxu0 %v9890_v62  ;;  %v9935_v61 = vld [vmem:[%s14281_s1 + $0x1f64] ss:$16 sps:$4 sm:$0xff]   ;;  %v9930_v62 = vld [vmem:[%s14281_s1 + $0x1d60] ss:$16 sps:$4 sm:$0xff]  }
 0x1df   : > { %7175 = vmatprep.subr.bf16.mxu1 %v9893_v63  ;;  %v9933_v63 = vld [vmem:[%s14281_s1 + $0x1f60] ss:$16 sps:$4 sm:$0xff]  }
 0x1e1   : > { %7133 = vmatpush1.bf16.msra.mxu0 %v9888_v0  ;;  %v9938_v0 = vld [vmem:[%s14281_s1 + $0x1d44] ss:$16 sps:$4 sm:$0xff]  }
 0x1e2   : > { %7176 = vmatpush1.bf16.msra.mxu1 %v9891_v1  ;;  %7134 = vmatprep.subr.bf16.mxu0 %v9896_v2  ;;  %v9941_v1 = vld [vmem:[%s14281_s1 + $0x1f44] ss:$16 sps:$4 sm:$0xff]   ;;  %v9936_v2 = vld [vmem:[%s14281_s1 + $0x1d40] ss:$16 sps:$4 sm:$0xff]  }
 0x1e3   : > { %7177 = vmatprep.subr.bf16.mxu1 %v9899_v3  ;;  %v9939_v3 = vld [vmem:[%s14281_s1 + $0x1f40] ss:$16 sps:$4 sm:$0xff]  }
 0x1e5   : > { %7135 = vmatpush1.bf16.msra.mxu0 %v9894_v4  ;;  %v9944_v4 = vld [vmem:[%s14281_s1 + $0x1d24] ss:$16 sps:$4 sm:$0xff]  }
 0x1e6   : > { %7178 = vmatpush1.bf16.msra.mxu1 %v9897_v5  ;;  %7136 = vmatprep.subr.bf16.mxu0 %v9902_v14  ;;  %v9947_v5 = vld [vmem:[%s14281_s1 + $0x1f24] ss:$16 sps:$4 sm:$0xff]   ;;  %v9942_v14 = vld [vmem:[%s14281_s1 + $0x1d20] ss:$16 sps:$4 sm:$0xff]  }
 0x1e7   : > { %7179 = vmatprep.subr.bf16.mxu1 %v9905_v46  ;;  %v9945_v46 = vld [vmem:[%s14281_s1 + $0x1f20] ss:$16 sps:$4 sm:$0xff]  }
 0x1e9   : > { %7137 = vmatpush1.bf16.msra.mxu0 %v9900_v51  ;;  %v9950_v51 = vld [vmem:[%s14281_s1 + $0x1d04] ss:$16 sps:$4 sm:$0xff]  }
 0x1ea   : > { %7180 = vmatpush1.bf16.msra.mxu1 %v9903_v15  ;;  %7138 = vmatprep.subr.bf16.mxu0 %v9908_v23  ;;  %v9953_v15 = vld [vmem:[%s14281_s1 + $0x1f04] ss:$16 sps:$4 sm:$0xff]   ;;  %v9948_v23 = vld [vmem:[%s14281_s1 + $0x1d00] ss:$16 sps:$4 sm:$0xff]  }
 0x1eb   : > { %7181 = vmatprep.subr.bf16.mxu1 %v9911_v34  ;;  %v9951_v34 = vld [vmem:[%s14281_s1 + $0x1f00] ss:$16 sps:$4 sm:$0xff]  }
 0x1ed   : > { %7139 = vmatpush2.bf16.msra.mxu0 %v9906_v28  ;;  %v9956_v28 = vld [vmem:[%s14281_s1 + $0xec] ss:$16 sps:$4 sm:$0xff]  }
 0x1ee   : > { %7182 = vmatpush2.bf16.msra.mxu1 %v9909_v31  ;;  %7140 = vmatprep.subr.bf16.mxu0 %v9914_v22  ;;  %v9959_v31 = vld [vmem:[%s14281_s1 + $0x2ec] ss:$16 sps:$4 sm:$0xff]   ;;  %v9954_v22 = vld [vmem:[%s14281_s1 + $0xe8] ss:$16 sps:$4 sm:$0xff]  }
 0x1ef   : > { %7183 = vmatprep.subr.bf16.mxu1 %v9917_v26  ;;  %v9957_v26 = vld [vmem:[%s14281_s1 + $0x2e8] ss:$16 sps:$4 sm:$0xff]  }
 0x1f1   : > { %7141 = vmatpush2.bf16.msra.mxu0 %v9912_v38  ;;  %v12550_v38 = vcombine.low %v12319_v16, %v12322_v17  ;;  %v9960_v16 = vld [vmem:[%s14281_s1 + $0xc8] ss:$16 sps:$4 sm:$0xff]  }
 0x1f2   : > { %7184 = vmatpush2.bf16.msra.mxu1 %v9915_v39  ;;  %7142 = vmatprep.subr.bf16.mxu0 %v9920_v42  ;;  %v12554_v39 = vcombine.low %v12325_v18, %v12328_v19  ;;  %v9962_v42 = vld [vmem:[%s14281_s1 + $0xcc] ss:$16 sps:$4 sm:$0xff]   ;;  %v9963_v17 = vld [vmem:[%s14281_s1 + $0x2c8] ss:$16 sps:$4 sm:$0xff]  }
 0x1f3   : > { %7185 = vmatprep.subr.bf16.mxu1 %v9923_v54  ;;  %14292 = vst [vmem:[#allocation5_spill] sm:$0xff] %v12550_v38  ;;  %v9965_v54 = vld [vmem:[%s14281_s1 + $0x2cc] ss:$16 sps:$4 sm:$0xff]  }
 0x1f4   : > { %14293 = vst [vmem:[#allocation6_spill] sm:$0xff] %v12554_v39  ;;  %v9968_v18 = vld [vmem:[%s14281_s1 + $0xac] ss:$16 sps:$4 sm:$0xff]  }
 0x1f5   : > { %7143 = vmatpush2.bf16.msra.mxu0 %v9918_v6  ;;  %v9971_v19 = vld [vmem:[%s14281_s1 + $0x2ac] ss:$16 sps:$4 sm:$0xff]   ;;  %v9966_v6 = vld [vmem:[%s14281_s1 + $0xa8] ss:$16 sps:$4 sm:$0xff]  }
 0x1f6   : > { %7186 = vmatpush2.bf16.msra.mxu1 %v9921_v7  ;;  %7144 = vmatprep.subr.bf16.mxu0 %v9926_v12  ;;  %v9969_v7 = vld [vmem:[%s14281_s1 + $0x2a8] ss:$16 sps:$4 sm:$0xff]   ;;  %v9974_v12 = vld [vmem:[%s14281_s1 + $0x8c] ss:$16 sps:$4 sm:$0xff]  }
 0x1f7   : > { %7187 = vmatprep.subr.bf16.mxu1 %v9929_v13  ;;  %v9977_v13 = vld [vmem:[%s14281_s1 + $0x28c] ss:$16 sps:$4 sm:$0xff]  }
 0x1f9   : > { %7145 = vmatpush2.bf16.msra.mxu0 %v9924_v58  ;;  %v9980_v58 = vld [vmem:[%s14281_s1 + $0x6c] ss:$16 sps:$4 sm:$0xff]  }
 0x1fa   : > { %7188 = vmatpush2.bf16.msra.mxu1 %v9927_v59  ;;  %7146 = vmatprep.subr.bf16.mxu0 %v9932_v60  ;;  %v9983_v59 = vld [vmem:[%s14281_s1 + $0x26c] ss:$16 sps:$4 sm:$0xff]   ;;  %v9978_v60 = vld [vmem:[%s14281_s1 + $0x68] ss:$16 sps:$4 sm:$0xff]  }
 0x1fb   : > { %7189 = vmatprep.subr.bf16.mxu1 %v9935_v61  ;;  %v9981_v61 = vld [vmem:[%s14281_s1 + $0x268] ss:$16 sps:$4 sm:$0xff]  }
 0x1fd   : > { %7147 = vmatpush2.bf16.msra.mxu0 %v9930_v62  ;;  %v9986_v62 = vld [vmem:[%s14281_s1 + $0x4c] ss:$16 sps:$4 sm:$0xff]  }
 0x1fe   : > { %7190 = vmatpush2.bf16.msra.mxu1 %v9933_v63  ;;  %7148 = vmatprep.subr.bf16.mxu0 %v9938_v0  ;;  %v9989_v63 = vld [vmem:[%s14281_s1 + $0x24c] ss:$16 sps:$4 sm:$0xff]   ;;  %v9984_v0 = vld [vmem:[%s14281_s1 + $0x48] ss:$16 sps:$4 sm:$0xff]  }
 0x1ff   : > { %7191 = vmatprep.subr.bf16.mxu1 %v9941_v1  ;;  %v9987_v1 = vld [vmem:[%s14281_s1 + $0x248] ss:$16 sps:$4 sm:$0xff]  }
 0x201   : > { %7149 = vmatpush2.bf16.msra.mxu0 %v9936_v2  ;;  %v9992_v2 = vld [vmem:[%s14281_s1 + $0x2c] ss:$16 sps:$4 sm:$0xff]  }
 0x202   : > { %7192 = vmatpush2.bf16.msra.mxu1 %v9939_v3  ;;  %7150 = vmatprep.subr.bf16.mxu0 %v9944_v4  ;;  %v9995_v3 = vld [vmem:[%s14281_s1 + $0x22c] ss:$16 sps:$4 sm:$0xff]   ;;  %v9990_v4 = vld [vmem:[%s14281_s1 + $0x28] ss:$16 sps:$4 sm:$0xff]  }
 0x203   : > { %7193 = vmatprep.subr.bf16.mxu1 %v9947_v5  ;;  %v9993_v5 = vld [vmem:[%s14281_s1 + $0x228] ss:$16 sps:$4 sm:$0xff]  }
 0x205   : > { %7151 = vmatpush2.bf16.msra.mxu0 %v9942_v14  ;;  %v9998_v14 = vld [vmem:[%s14281_s1 + $0xc] ss:$16 sps:$4 sm:$0xff]  }
 0x206   : > { %7194 = vmatpush2.bf16.msra.mxu1 %v9945_v46  ;;  %7152 = vmatprep.subr.bf16.mxu0 %v9950_v51  ;;  %v10001_v46 = vld [vmem:[%s14281_s1 + $0x20c] ss:$16 sps:$4 sm:$0xff]   ;;  %v9996_v51 = vld [vmem:[%s14281_s1 + $0x8] ss:$16 sps:$4 sm:$0xff]  }
 0x207   : > { %7195 = vmatprep.subr.bf16.mxu1 %v9953_v15  ;;  %v9999_v15 = vld [vmem:[%s14281_s1 + $0x208] ss:$16 sps:$4 sm:$0xff]  }
 0x209   : > { %7153 = vmatpush2.bf16.msra.mxu0 %v9948_v23  ;;  %v10004_v23 = vld [vmem:[%s14281_s1 + $0x1ec] ss:$16 sps:$4 sm:$0xff]  }
 0x20a   : > { %7196 = vmatpush2.bf16.msra.mxu1 %v9951_v34  ;;  %7208 = vmatprep.subr.bf16.mxu0 %v9956_v28  ;;  %v10007_v34 = vld [vmem:[%s14281_s1 + $0x3ec] ss:$16 sps:$4 sm:$0xff]   ;;  %v10002_v28 = vld [vmem:[%s14281_s1 + $0x1e8] ss:$16 sps:$4 sm:$0xff]  }
 0x20b   : > { %7251 = vmatprep.subr.bf16.mxu1 %v9959_v31  ;;  %v10005_v31 = vld [vmem:[%s14281_s1 + $0x3e8] ss:$16 sps:$4 sm:$0xff]  }
 0x20c   : > { %7155 = vmatmul.mubr.bf16.vlgmr.msra.gmra.mxu0 %v12550_v38 }
 0x20d   : > { %7198 = vmatmul.mubr.bf16.vlgmr.msra.gmra.mxu1 %v12554_v39  ;;  %7209 = vmatpush1.bf16.msra.mxu0 %v9954_v22  ;;  %v10010_v22 = vld [vmem:[%s14281_s1 + $0x1cc] ss:$16 sps:$4 sm:$0xff]  }
 0x20e   : > { %7252 = vmatpush1.bf16.msra.mxu1 %v9957_v26  ;;  %7210 = vmatprep.subr.bf16.mxu0 %v9962_v42  ;;  %v10013_v26 = vld [vmem:[%s14281_s1 + $0x3cc] ss:$16 sps:$4 sm:$0xff]   ;;  %v10008_v42 = vld [vmem:[%s14281_s1 + $0x1c8] ss:$16 sps:$4 sm:$0xff]  }
 0x20f   : > { %7253 = vmatprep.subr.bf16.mxu1 %v9965_v54  ;;  %7240 = vmatprep.mubr.bf16.mxu0 %v10921_v53  ;;  %v9972_v53 = vld [vmem:[%s14281_s1 + $0x88] ss:$16 sps:$4 sm:$0xff]   ;;  %v10196_v39 = vld [vmem:[%s14281_s1 + $0x9ec] ss:$16 sps:$4 sm:$0xff]  }
 0x210   : > { %7283 = vmatprep.mubr.bf16.mxu1 %v10926_v55  ;;  %v9975_v55 = vld [vmem:[%s14281_s1 + $0x288] ss:$16 sps:$4 sm:$0xff]  }
 0x211   : > { %7211 = vmatpush1.bf16.msra.mxu0 %v9960_v16  ;;  %v10011_v54 = vld [vmem:[%s14281_s1 + $0x3c8] ss:$16 sps:$4 sm:$0xff]   ;;  %v10016_v16 = vld [vmem:[%s14281_s1 + $0x1ac] ss:$16 sps:$4 sm:$0xff]  }
 0x212   : > { %7254 = vmatpush1.bf16.msra.mxu1 %v9963_v17  ;;  %7212 = vmatprep.subr.bf16.mxu0 %v9968_v18  ;;  %v10019_v17 = vld [vmem:[%s14281_s1 + $0x3ac] ss:$16 sps:$4 sm:$0xff]   ;;  %v10014_v18 = vld [vmem:[%s14281_s1 + $0x1a8] ss:$16 sps:$4 sm:$0xff]  }
 0x213   : > { %7255 = vmatprep.subr.bf16.mxu1 %v9971_v19  ;;  %v10017_v19 = vld [vmem:[%s14281_s1 + $0x3a8] ss:$16 sps:$4 sm:$0xff]  }
 0x215   : > { %7213 = vmatpush1.bf16.msra.mxu0 %v9966_v6  ;;  %v10022_v6 = vld [vmem:[%s14281_s1 + $0x18c] ss:$16 sps:$4 sm:$0xff]  }
 0x216   : > { %7256 = vmatpush1.bf16.msra.mxu1 %v9969_v7  ;;  %7214 = vmatprep.subr.bf16.mxu0 %v9974_v12  ;;  %v10025_v7 = vld [vmem:[%s14281_s1 + $0x38c] ss:$16 sps:$4 sm:$0xff]   ;;  %v10020_v12 = vld [vmem:[%s14281_s1 + $0x188] ss:$16 sps:$4 sm:$0xff]  }
 0x217   : > { %7257 = vmatprep.subr.bf16.mxu1 %v9977_v13  ;;  %v10023_v13 = vld [vmem:[%s14281_s1 + $0x388] ss:$16 sps:$4 sm:$0xff]  }
 0x219   : > { %7215 = vmatpush1.bf16.msra.mxu0 %v9972_v53  ;;  %v10028_v53 = vld [vmem:[%s14281_s1 + $0x16c] ss:$16 sps:$4 sm:$0xff]  }
 0x21a   : > { %7258 = vmatpush1.bf16.msra.mxu1 %v9975_v55  ;;  %7216 = vmatprep.subr.bf16.mxu0 %v9980_v58  ;;  %v10031_v55 = vld [vmem:[%s14281_s1 + $0x36c] ss:$16 sps:$4 sm:$0xff]   ;;  %v10026_v58 = vld [vmem:[%s14281_s1 + $0x168] ss:$16 sps:$4 sm:$0xff]  }
 0x21b   : > { %7259 = vmatprep.subr.bf16.mxu1 %v9983_v59  ;;  %v10029_v59 = vld [vmem:[%s14281_s1 + $0x368] ss:$16 sps:$4 sm:$0xff]  }
 0x21d   : > { %7217 = vmatpush1.bf16.msra.mxu0 %v9978_v60  ;;  %v10034_v60 = vld [vmem:[%s14281_s1 + $0x14c] ss:$16 sps:$4 sm:$0xff]  }
 0x21e   : > { %7260 = vmatpush1.bf16.msra.mxu1 %v9981_v61  ;;  %7218 = vmatprep.subr.bf16.mxu0 %v9986_v62  ;;  %v10037_v61 = vld [vmem:[%s14281_s1 + $0x34c] ss:$16 sps:$4 sm:$0xff]   ;;  %v10032_v62 = vld [vmem:[%s14281_s1 + $0x148] ss:$16 sps:$4 sm:$0xff]  }
 0x21f   : > { %7261 = vmatprep.subr.bf16.mxu1 %v9989_v63  ;;  %v10035_v63 = vld [vmem:[%s14281_s1 + $0x348] ss:$16 sps:$4 sm:$0xff]  }
 0x221   : > { %7219 = vmatpush1.bf16.msra.mxu0 %v9984_v0  ;;  %v10040_v0 = vld [vmem:[%s14281_s1 + $0x12c] ss:$16 sps:$4 sm:$0xff]  }
 0x222   : > { %7262 = vmatpush1.bf16.msra.mxu1 %v9987_v1  ;;  %7220 = vmatprep.subr.bf16.mxu0 %v9992_v2  ;;  %v10043_v1 = vld [vmem:[%s14281_s1 + $0x32c] ss:$16 sps:$4 sm:$0xff]   ;;  %v10038_v2 = vld [vmem:[%s14281_s1 + $0x128] ss:$16 sps:$4 sm:$0xff]  }
 0x223   : > { %7263 = vmatprep.subr.bf16.mxu1 %v9995_v3  ;;  %v10041_v3 = vld [vmem:[%s14281_s1 + $0x328] ss:$16 sps:$4 sm:$0xff]  }
 0x225   : > { %7221 = vmatpush1.bf16.msra.mxu0 %v9990_v4  ;;  %v10046_v4 = vld [vmem:[%s14281_s1 + $0x10c] ss:$16 sps:$4 sm:$0xff]  }
 0x226   : > { %7264 = vmatpush1.bf16.msra.mxu1 %v9993_v5  ;;  %7222 = vmatprep.subr.bf16.mxu0 %v9998_v14  ;;  %v10049_v5 = vld [vmem:[%s14281_s1 + $0x30c] ss:$16 sps:$4 sm:$0xff]   ;;  %v10044_v14 = vld [vmem:[%s14281_s1 + $0x108] ss:$16 sps:$4 sm:$0xff]  }
 0x227   : > { %7265 = vmatprep.subr.bf16.mxu1 %v10001_v46  ;;  %v10047_v46 = vld [vmem:[%s14281_s1 + $0x308] ss:$16 sps:$4 sm:$0xff]  }
 0x229   : > { %7223 = vmatpush1.bf16.msra.mxu0 %v9996_v51  ;;  %v10052_v51 = vld [vmem:[%s14281_s1 + $0x4ec] ss:$16 sps:$4 sm:$0xff]  }
 0x22a   : > { %7266 = vmatpush1.bf16.msra.mxu1 %v9999_v15  ;;  %7224 = vmatprep.subr.bf16.mxu0 %v10004_v23  ;;  %v10055_v15 = vld [vmem:[%s14281_s1 + $0x6ec] ss:$16 sps:$4 sm:$0xff]   ;;  %v10050_v23 = vld [vmem:[%s14281_s1 + $0x4e8] ss:$16 sps:$4 sm:$0xff]  }
 0x22b   : > { %7267 = vmatprep.subr.bf16.mxu1 %v10007_v34  ;;  %v10053_v34 = vld [vmem:[%s14281_s1 + $0x6e8] ss:$16 sps:$4 sm:$0xff]  }
 0x22d   : > { %7225 = vmatpush2.bf16.msra.mxu0 %v10002_v28  ;;  %v10058_v28 = vld [vmem:[%s14281_s1 + $0x4cc] ss:$16 sps:$4 sm:$0xff]  }
 0x22e   : > { %7268 = vmatpush2.bf16.msra.mxu1 %v10005_v31  ;;  %7226 = vmatprep.subr.bf16.mxu0 %v10010_v22  ;;  %v10061_v31 = vld [vmem:[%s14281_s1 + $0x6cc] ss:$16 sps:$4 sm:$0xff]   ;;  %v10056_v22 = vld [vmem:[%s14281_s1 + $0x4c8] ss:$16 sps:$4 sm:$0xff]  }
 0x22f   : > { %7269 = vmatprep.subr.bf16.mxu1 %v10013_v26  ;;  %v10059_v26 = vld [vmem:[%s14281_s1 + $0x6c8] ss:$16 sps:$4 sm:$0xff]  }
 0x231   : > { %7227 = vmatpush2.bf16.msra.mxu0 %v10008_v42  ;;  %v10064_v42 = vld [vmem:[%s14281_s1 + $0x4ac] ss:$16 sps:$4 sm:$0xff]  }
 0x232   : > { %7270 = vmatpush2.bf16.msra.mxu1 %v10011_v54  ;;  %7228 = vmatprep.subr.bf16.mxu0 %v10016_v16  ;;  %v10067_v54 = vld [vmem:[%s14281_s1 + $0x6ac] ss:$16 sps:$4 sm:$0xff]   ;;  %v10062_v16 = vld [vmem:[%s14281_s1 + $0x4a8] ss:$16 sps:$4 sm:$0xff]  }
 0x233   : > { %7271 = vmatprep.subr.bf16.mxu1 %v10019_v17  ;;  %v10073_v17 = vld [vmem:[%s14281_s1 + $0x68c] ss:$16 sps:$4 sm:$0xff]  }
 0x235   : > { %7229 = vmatpush2.bf16.msra.mxu0 %v10014_v18  ;;  %v10068_v18 = vld [vmem:[%s14281_s1 + $0x488] ss:$16 sps:$4 sm:$0xff]  }
 0x236   : > { %7272 = vmatpush2.bf16.msra.mxu1 %v10017_v19  ;;  %7230 = vmatprep.subr.bf16.mxu0 %v10022_v6  ;;  %v10079_v19 = vld [vmem:[%s14281_s1 + $0x66c] ss:$16 sps:$4 sm:$0xff]   ;;  %v10074_v6 = vld [vmem:[%s14281_s1 + $0x468] ss:$16 sps:$4 sm:$0xff]  }
 0x237   : > { %7273 = vmatprep.subr.bf16.mxu1 %v10025_v7  ;;  %v10077_v7 = vld [vmem:[%s14281_s1 + $0x668] ss:$16 sps:$4 sm:$0xff]  }
 0x239   : > { %7231 = vmatpush2.bf16.msra.mxu0 %v10020_v12  ;;  %v10082_v12 = vld [vmem:[%s14281_s1 + $0x44c] ss:$16 sps:$4 sm:$0xff]  }
 0x23a   : > { %7274 = vmatpush2.bf16.msra.mxu1 %v10023_v13  ;;  %7232 = vmatprep.subr.bf16.mxu0 %v10028_v53  ;;  %v10085_v13 = vld [vmem:[%s14281_s1 + $0x64c] ss:$16 sps:$4 sm:$0xff]   ;;  %v10080_v53 = vld [vmem:[%s14281_s1 + $0x448] ss:$16 sps:$4 sm:$0xff]  }
 0x23b   : > { %7275 = vmatprep.subr.bf16.mxu1 %v10031_v55  ;;  %v10083_v55 = vld [vmem:[%s14281_s1 + $0x648] ss:$16 sps:$4 sm:$0xff]  }
 0x23d   : > { %7233 = vmatpush2.bf16.msra.mxu0 %v10026_v58  ;;  %v10088_v58 = vld [vmem:[%s14281_s1 + $0x42c] ss:$16 sps:$4 sm:$0xff]  }
 0x23e   : > { %7276 = vmatpush2.bf16.msra.mxu1 %v10029_v59  ;;  %7234 = vmatprep.subr.bf16.mxu0 %v10034_v60  ;;  %v10091_v59 = vld [vmem:[%s14281_s1 + $0x62c] ss:$16 sps:$4 sm:$0xff]   ;;  %v10086_v60 = vld [vmem:[%s14281_s1 + $0x428] ss:$16 sps:$4 sm:$0xff]  }
 0x23f   : > { %7277 = vmatprep.subr.bf16.mxu1 %v10037_v61  ;;  %v10089_v61 = vld [vmem:[%s14281_s1 + $0x628] ss:$16 sps:$4 sm:$0xff]  }
 0x241   : > { %7235 = vmatpush2.bf16.msra.mxu0 %v10032_v62  ;;  %v10094_v62 = vld [vmem:[%s14281_s1 + $0x40c] ss:$16 sps:$4 sm:$0xff]  }
 0x242   : > { %7278 = vmatpush2.bf16.msra.mxu1 %v10035_v63  ;;  %7236 = vmatprep.subr.bf16.mxu0 %v10040_v0  ;;  %v10097_v63 = vld [vmem:[%s14281_s1 + $0x60c] ss:$16 sps:$4 sm:$0xff]   ;;  %v10092_v0 = vld [vmem:[%s14281_s1 + $0x408] ss:$16 sps:$4 sm:$0xff]  }
 0x243   : > { %7279 = vmatprep.subr.bf16.mxu1 %v10043_v1  ;;  %v10095_v1 = vld [vmem:[%s14281_s1 + $0x608] ss:$16 sps:$4 sm:$0xff]  }
 0x245   : > { %7237 = vmatpush2.bf16.msra.mxu0 %v10038_v2  ;;  %v10100_v2 = vld [vmem:[%s14281_s1 + $0x5ec] ss:$16 sps:$4 sm:$0xff]  }
 0x246   : > { %7280 = vmatpush2.bf16.msra.mxu1 %v10041_v3  ;;  %7238 = vmatprep.subr.bf16.mxu0 %v10046_v4  ;;  %v10103_v3 = vld [vmem:[%s14281_s1 + $0x7ec] ss:$16 sps:$4 sm:$0xff]   ;;  %v10098_v4 = vld [vmem:[%s14281_s1 + $0x5e8] ss:$16 sps:$4 sm:$0xff]  }
 0x247   : > { %7281 = vmatprep.subr.bf16.mxu1 %v10049_v5  ;;  %v10101_v5 = vld [vmem:[%s14281_s1 + $0x7e8] ss:$16 sps:$4 sm:$0xff]  }
 0x249   : > { %7239 = vmatpush2.bf16.msra.mxu0 %v10044_v14  ;;  %v12852_v14 = vpop.f32.mrf.mxu0 }
 0x24a   : > { %7282 = vmatpush2.bf16.msra.mxu1 %v10047_v46  ;;  %7294 = vmatprep.subr.bf16.mxu0 %v10052_v51  ;;  %v12854_v46 = vpop.f32.mrf.mxu1  ;;  %v10106_v51 = vld [vmem:[%s14281_s1 + $0x5cc] ss:$16 sps:$4 sm:$0xff]  }
 0x24b   : > { %7337 = vmatprep.subr.bf16.mxu1 %v10055_v15  ;;  %v10109_v15 = vld [vmem:[%s14281_s1 + $0x7cc] ss:$16 sps:$4 sm:$0xff]  }
 0x24c   : > { %7241 = vmatmul.mubr.bf16.vlgmr.msra.gmra.mxu0 %v10978_v8  ;;  %v10065_v8 = vld [vmem:[%s14281_s1 + $0x6a8] ss:$16 sps:$4 sm:$0xff]  }
 0x24d   : > { %7284 = vmatmul.mubr.bf16.vlgmr.msra.gmra.mxu1 %v10980_v9  ;;  %7295 = vmatpush1.bf16.msra.mxu0 %v10050_v23  ;;  %v10070_v9 = vld [vmem:[%s14281_s1 + $0x48c] ss:$16 sps:$4 sm:$0xff]   ;;  %v10104_v23 = vld [vmem:[%s14281_s1 + $0x5c8] ss:$16 sps:$4 sm:$0xff]  }
 0x24e   : > { %7338 = vmatpush1.bf16.msra.mxu1 %v10053_v34  ;;  %7296 = vmatprep.subr.bf16.mxu0 %v10058_v28  ;;  %v10107_v34 = vld [vmem:[%s14281_s1 + $0x7c8] ss:$16 sps:$4 sm:$0xff]   ;;  %v12868_v28 = vpop.f32.mrf.mxu0 }
 0x24f   : > { %7339 = vmatprep.subr.bf16.mxu1 %v10061_v31  ;;  %7326 = vmatprep.mubr.bf16.mxu0 %v11079_v41  ;;  %v10071_v41 = vld [vmem:[%s14281_s1 + $0x688] ss:$16 sps:$4 sm:$0xff]   ;;  %v12870_v31 = vpop.f32.mrf.mxu1 }
 0x250   : > { %7369 = vmatprep.mubr.bf16.mxu1 %v11086_v43  ;;  %v10076_v43 = vld [vmem:[%s14281_s1 + $0x46c] ss:$16 sps:$4 sm:$0xff]   ;;  %v6600_v38 = vadd.f32 %v12870_v31, %v12868_v28 }
 0x251   : > { %7297 = vmatpush1.bf16.msra.mxu0 %v10056_v22  ;;  %v10112_v22 = vld [vmem:[%s14281_s1 + $0x5ac] ss:$16 sps:$4 sm:$0xff]  }
 0x252   : > { %7340 = vmatpush1.bf16.msra.mxu1 %v10059_v26  ;;  %7298 = vmatprep.subr.bf16.mxu0 %v10064_v42  ;;  %v10115_v26 = vld [vmem:[%s14281_s1 + $0x7ac] ss:$16 sps:$4 sm:$0xff]   ;;  %v10110_v42 = vld [vmem:[%s14281_s1 + $0x5a8] ss:$16 sps:$4 sm:$0xff]  }
 0x253   : > { %7341 = vmatprep.subr.bf16.mxu1 %v10067_v54  ;;  %v10113_v54 = vld [vmem:[%s14281_s1 + $0x7a8] ss:$16 sps:$4 sm:$0xff]  }
 0x255   : > { %7299 = vmatpush1.bf16.msra.mxu0 %v10062_v16  ;;  %v12884_v16 = vpop.f32.mrf.mxu0 }
 0x256   : > { %7342 = vmatpush1.bf16.msra.mxu1 %v10065_v8  ;;  %7300 = vmatprep.subr.bf16.mxu0 %v10070_v9  ;;  %v12886_v8 = vpop.f32.mrf.mxu1  ;;  %v10118_v9 = vld [vmem:[%s14281_s1 + $0x58c] ss:$16 sps:$4 sm:$0xff]  }
 0x257   : > { %7343 = vmatprep.subr.bf16.mxu1 %v10073_v17  ;;  %v10121_v17 = vld [vmem:[%s14281_s1 + $0x78c] ss:$16 sps:$4 sm:$0xff]   ;;  %v6602_v28 = vadd.f32 %v12886_v8, %v12884_v16 }
 0x258   : > { %v10211_v8 = vld [vmem:[%s14281_s1 + $0xbac] ss:$16 sps:$4 sm:$0xff]  }
 0x259   : > { %7301 = vmatpush1.bf16.msra.mxu0 %v10068_v18  ;;  %v10116_v18 = vld [vmem:[%s14281_s1 + $0x588] ss:$16 sps:$4 sm:$0xff]  }
 0x25a   : > { %7344 = vmatpush1.bf16.msra.mxu1 %v10071_v41  ;;  %7302 = vmatprep.subr.bf16.mxu0 %v10076_v43  ;;  %v10119_v41 = vld [vmem:[%s14281_s1 + $0x788] ss:$16 sps:$4 sm:$0xff]   ;;  %v12900_v43 = vpop.f32.mrf.mxu0 }
 0x25b   : > { %7345 = vmatprep.subr.bf16.mxu1 %v10079_v19  ;;  %v12902_v19 = vpop.f32.mrf.mxu1 }
 0x25d   : > { %7303 = vmatpush1.bf16.msra.mxu0 %v10074_v6  ;;  %v10124_v6 = vld [vmem:[%s14281_s1 + $0x56c] ss:$16 sps:$4 sm:$0xff]  }
 0x25e   : > { %7346 = vmatpush1.bf16.msra.mxu1 %v10077_v7  ;;  %7304 = vmatprep.subr.bf16.mxu0 %v10082_v12  ;;  %v10127_v7 = vld [vmem:[%s14281_s1 + $0x76c] ss:$16 sps:$4 sm:$0xff]   ;;  %v12910_v12 = vpop.f32.mrf.mxu0 }
 0x25f   : > { %7347 = vmatprep.subr.bf16.mxu1 %v10085_v13  ;;  %v12912_v13 = vpop.f32.mrf.mxu1 }
 0x261   : > { %7305 = vmatpush1.bf16.msra.mxu0 %v10080_v53  ;;  %v10122_v53 = vld [vmem:[%s14281_s1 + $0x568] ss:$16 sps:$4 sm:$0xff]  }
 0x262   : > { %7348 = vmatpush1.bf16.msra.mxu1 %v10083_v55  ;;  %7306 = vmatprep.subr.bf16.mxu0 %v10088_v58  ;;  %v10125_v55 = vld [vmem:[%s14281_s1 + $0x768] ss:$16 sps:$4 sm:$0xff]   ;;  %v10130_v58 = vld [vmem:[%s14281_s1 + $0x54c] ss:$16 sps:$4 sm:$0xff]  }
 0x263   : > { %7349 = vmatprep.subr.bf16.mxu1 %v10091_v59  ;;  %v10133_v59 = vld [vmem:[%s14281_s1 + $0x74c] ss:$16 sps:$4 sm:$0xff]  }
 0x265   : > { %7307 = vmatpush1.bf16.msra.mxu0 %v10086_v60  ;;  %v12926_v60 = vpop.f32.mrf.mxu0 }
 0x266   : > { %7350 = vmatpush1.bf16.msra.mxu1 %v10089_v61  ;;  %7308 = vmatprep.subr.bf16.mxu0 %v10094_v62  ;;  %v12928_v61 = vpop.f32.mrf.mxu1  ;;  %v10128_v62 = vld [vmem:[%s14281_s1 + $0x548] ss:$16 sps:$4 sm:$0xff]   ;;  %v6643_v31 = vadd.f32 %v12926_v60, %v6600_v38 }
 0x267   : > { %7351 = vmatprep.subr.bf16.mxu1 %v10097_v63  ;;  %v10131_v63 = vld [vmem:[%s14281_s1 + $0x748] ss:$16 sps:$4 sm:$0xff]  }
 0x269   : > { %7309 = vmatpush1.bf16.msra.mxu0 %v10092_v0  ;;  %v10136_v0 = vld [vmem:[%s14281_s1 + $0x52c] ss:$16 sps:$4 sm:$0xff]  }
 0x26a   : > { %7352 = vmatpush1.bf16.msra.mxu1 %v10095_v1  ;;  %7310 = vmatprep.subr.bf16.mxu0 %v10100_v2  ;;  %v10139_v1 = vld [vmem:[%s14281_s1 + $0x72c] ss:$16 sps:$4 sm:$0xff]   ;;  %v12942_v2 = vpop.f32.mrf.mxu0 }
 0x26b   : > { %7353 = vmatprep.subr.bf16.mxu1 %v10103_v3  ;;  %v12944_v3 = vpop.f32.mrf.mxu1 }
 0x26d   : > { %7311 = vmatpush2.bf16.msra.mxu0 %v10098_v4  ;;  %v10134_v4 = vld [vmem:[%s14281_s1 + $0x528] ss:$16 sps:$4 sm:$0xff]  }
 0x26e   : > { %7354 = vmatpush2.bf16.msra.mxu1 %v10101_v5  ;;  %7312 = vmatprep.subr.bf16.mxu0 %v10106_v51  ;;  %v10137_v5 = vld [vmem:[%s14281_s1 + $0x728] ss:$16 sps:$4 sm:$0xff]   ;;  %v10142_v51 = vld [vmem:[%s14281_s1 + $0x50c] ss:$16 sps:$4 sm:$0xff]  }
 0x26f   : > { %7355 = vmatprep.subr.bf16.mxu1 %v10109_v15  ;;  %v10145_v15 = vld [vmem:[%s14281_s1 + $0x70c] ss:$16 sps:$4 sm:$0xff]  }
 0x271   : > { %7313 = vmatpush2.bf16.msra.mxu0 %v10104_v23  ;;  %v12958_v23 = vpop.f32.mrf.mxu0 }
 0x272   : > { %7356 = vmatpush2.bf16.msra.mxu1 %v10107_v34  ;;  %7314 = vmatprep.subr.bf16.mxu0 %v10112_v22  ;;  %v12960_v34 = vpop.f32.mrf.mxu1  ;;  %v10140_v22 = vld [vmem:[%s14281_s1 + $0x508] ss:$16 sps:$4 sm:$0xff]  }
 0x273   : > { %7357 = vmatprep.subr.bf16.mxu1 %v10115_v26  ;;  %v10143_v26 = vld [vmem:[%s14281_s1 + $0x708] ss:$16 sps:$4 sm:$0xff]  }
 0x275   : > { %7315 = vmatpush2.bf16.msra.mxu0 %v10110_v42  ;;  %v12968_v42 = vpop.f32.mrf.mxu0 }
 0x276   : > { %7358 = vmatpush2.bf16.msra.mxu1 %v10113_v54  ;;  %7316 = vmatprep.subr.bf16.mxu0 %v10118_v9  ;;  %v12970_v54 = vpop.f32.mrf.mxu1  ;;  %v10148_v9 = vld [vmem:[%s14281_s1 + $0x8ec] ss:$16 sps:$4 sm:$0xff]  }
 0x277   : > { %7359 = vmatprep.subr.bf16.mxu1 %v10121_v17  ;;  %v10151_v17 = vld [vmem:[%s14281_s1 + $0xaec] ss:$16 sps:$4 sm:$0xff]  }
 0x279   : > { %7317 = vmatpush2.bf16.msra.mxu0 %v10116_v18  ;;  %v10146_v18 = vld [vmem:[%s14281_s1 + $0x8e8] ss:$16 sps:$4 sm:$0xff]  }
 0x27a   : > { %7360 = vmatpush2.bf16.msra.mxu1 %v10119_v41  ;;  %7318 = vmatprep.subr.bf16.mxu0 %v10124_v6  ;;  %v10149_v41 = vld [vmem:[%s14281_s1 + $0xae8] ss:$16 sps:$4 sm:$0xff]   ;;  %v12984_v6 = vpop.f32.mrf.mxu0 }
 0x27b   : > { %7361 = vmatprep.subr.bf16.mxu1 %v10127_v7  ;;  %v12986_v7 = vpop.f32.mrf.mxu1 }
 0x27d   : > { %7319 = vmatpush2.bf16.msra.mxu0 %v10122_v53  ;;  %v10154_v53 = vld [vmem:[%s14281_s1 + $0x8cc] ss:$16 sps:$4 sm:$0xff]  }
 0x27e   : > { %7362 = vmatpush2.bf16.msra.mxu1 %v10125_v55  ;;  %7320 = vmatprep.subr.bf16.mxu0 %v10130_v58  ;;  %v10157_v55 = vld [vmem:[%s14281_s1 + $0xacc] ss:$16 sps:$4 sm:$0xff]   ;;  %v10152_v58 = vld [vmem:[%s14281_s1 + $0x8c8] ss:$16 sps:$4 sm:$0xff]  }
 0x27f   : > { %7363 = vmatprep.subr.bf16.mxu1 %v10133_v59  ;;  %v10155_v59 = vld [vmem:[%s14281_s1 + $0xac8] ss:$16 sps:$4 sm:$0xff]  }
 0x281   : > { %7321 = vmatpush2.bf16.msra.mxu0 %v10128_v62  ;;  %v13002_v62 = vpop.f32.mrf.mxu0 }
 0x282   : > { %7364 = vmatpush2.bf16.msra.mxu1 %v10131_v63  ;;  %7322 = vmatprep.subr.bf16.mxu0 %v10136_v0  ;;  %v13004_v63 = vpop.f32.mrf.mxu1  ;;  %v10158_v0 = vld [vmem:[%s14281_s1 + $0x8a8] ss:$16 sps:$4 sm:$0xff]  }
 0x283   : > { %7365 = vmatprep.subr.bf16.mxu1 %v10139_v1  ;;  %v10161_v1 = vld [vmem:[%s14281_s1 + $0xaa8] ss:$16 sps:$4 sm:$0xff]  }
 0x285   : > { %7323 = vmatpush2.bf16.msra.mxu0 %v10134_v4  ;;  %v13020_v4 = vpop.f32.mrf.mxu0 }
 0x286   : > { %7366 = vmatpush2.bf16.msra.mxu1 %v10137_v5  ;;  %7324 = vmatprep.subr.bf16.mxu0 %v10142_v51  ;;  %v13022_v5 = vpop.f32.mrf.mxu1 }
 0x287   : > { %7367 = vmatprep.subr.bf16.mxu1 %v10145_v15  ;;  %v13030_v51 = vpop.f32.mrf.mxu0 }
 0x288   : > { %v13032_v15 = vpop.f32.mrf.mxu1 }
 0x289   : > { %7325 = vmatpush2.bf16.msra.mxu0 %v10140_v22  ;;  %v10164_v22 = vld [vmem:[%s14281_s1 + $0x888] ss:$16 sps:$4 sm:$0xff]  }
 0x28a   : > { %7368 = vmatpush2.bf16.msra.mxu1 %v10143_v26  ;;  %7380 = vmatprep.subr.bf16.mxu0 %v10148_v9  ;;  %v10167_v26 = vld [vmem:[%s14281_s1 + $0xa88] ss:$16 sps:$4 sm:$0xff]   ;;  %v10172_v9 = vld [vmem:[%s14281_s1 + $0x86c] ss:$16 sps:$4 sm:$0xff]  }
 0x28b   : > { %7423 = vmatprep.subr.bf16.mxu1 %v10151_v17  ;;  %v10175_v17 = vld [vmem:[%s14281_s1 + $0xa6c] ss:$16 sps:$4 sm:$0xff]  }
 0x28c   : > { %7327 = vmatmul.mubr.bf16.vlgmr.msra.gmra.mxu0 %v11200_v20  ;;  %v10160_v20 = vld [vmem:[%s14281_s1 + $0x8ac] ss:$16 sps:$4 sm:$0xff]  }
 0x28d   : > { %7370 = vmatmul.mubr.bf16.vlgmr.msra.gmra.mxu1 %v11204_v21  ;;  %7381 = vmatpush1.bf16.msra.mxu0 %v10146_v18  ;;  %v10163_v21 = vld [vmem:[%s14281_s1 + $0xaac] ss:$16 sps:$4 sm:$0xff]   ;;  %v13046_v18 = vpop.f32.mrf.mxu0 }
 0x28e   : > { %7424 = vmatpush1.bf16.msra.mxu1 %v10149_v41  ;;  %7382 = vmatprep.subr.bf16.mxu0 %v10154_v53  ;;  %v13048_v41 = vpop.f32.mrf.mxu1  ;;  %v10170_v53 = vld [vmem:[%s14281_s1 + $0x868] ss:$16 sps:$4 sm:$0xff]  }
 0x28f   : > { %7425 = vmatprep.subr.bf16.mxu1 %v10157_v55  ;;  %7412 = vmatprep.mubr.bf16.mxu0 %v11243_v33  ;;  %v10166_v33 = vld [vmem:[%s14281_s1 + $0x88c] ss:$16 sps:$4 sm:$0xff]   ;;  %v10173_v55 = vld [vmem:[%s14281_s1 + $0xa68] ss:$16 sps:$4 sm:$0xff]  }
 0x290   : > { %7455 = vmatprep.mubr.bf16.mxu1 %v11250_v35  ;;  %v10169_v35 = vld [vmem:[%s14281_s1 + $0xa8c] ss:$16 sps:$4 sm:$0xff]  }
 0x291   : > { %7383 = vmatpush1.bf16.msra.mxu0 %v10152_v58  ;;  %v10178_v58 = vld [vmem:[%s14281_s1 + $0x84c] ss:$16 sps:$4 sm:$0xff]  }
 0x292   : > { %7426 = vmatpush1.bf16.msra.mxu1 %v10155_v59  ;;  %7384 = vmatprep.subr.bf16.mxu0 %v10160_v20  ;;  %v10181_v59 = vld [vmem:[%s14281_s1 + $0xa4c] ss:$16 sps:$4 sm:$0xff]   ;;  %v13062_v20 = vpop.f32.mrf.mxu0 }
 0x293   : > { %7427 = vmatprep.subr.bf16.mxu1 %v10163_v21  ;;  %v13064_v21 = vpop.f32.mrf.mxu1 }
 0x295   : > { %7385 = vmatpush1.bf16.msra.mxu0 %v10158_v0  ;;  %v10176_v0 = vld [vmem:[%s14281_s1 + $0x848] ss:$16 sps:$4 sm:$0xff]  }
 0x296   : > { %7428 = vmatpush1.bf16.msra.mxu1 %v10161_v1  ;;  %7386 = vmatprep.subr.bf16.mxu0 %v10166_v33  ;;  %v10179_v1 = vld [vmem:[%s14281_s1 + $0xa48] ss:$16 sps:$4 sm:$0xff]   ;;  %v10184_v33 = vld [vmem:[%s14281_s1 + $0x82c] ss:$16 sps:$4 sm:$0xff]  }
 0x297   : > { %7429 = vmatprep.subr.bf16.mxu1 %v10169_v35  ;;  %v10187_v35 = vld [vmem:[%s14281_s1 + $0xa2c] ss:$16 sps:$4 sm:$0xff]  }
 0x299   : > { %7387 = vmatpush1.bf16.msra.mxu0 %v10164_v22  ;;  %v13078_v22 = vpop.f32.mrf.mxu0 }
 0x29a   : > { %7430 = vmatpush1.bf16.msra.mxu1 %v10167_v26  ;;  %7388 = vmatprep.subr.bf16.mxu0 %v10172_v9  ;;  %v13080_v26 = vpop.f32.mrf.mxu1  ;;  %v10182_v9 = vld [vmem:[%s14281_s1 + $0x828] ss:$16 sps:$4 sm:$0xff]  }
 0x29b   : > { %7431 = vmatprep.subr.bf16.mxu1 %v10175_v17  ;;  %v10185_v17 = vld [vmem:[%s14281_s1 + $0xa28] ss:$16 sps:$4 sm:$0xff]  }
 0x29d   : > { %7389 = vmatpush1.bf16.msra.mxu0 %v10170_v53  ;;  %v13088_v53 = vpop.f32.mrf.mxu0 }
 0x29e   : > { %7432 = vmatpush1.bf16.msra.mxu1 %v10173_v55  ;;  %7390 = vmatprep.subr.bf16.mxu0 %v10178_v58  ;;  %v13090_v55 = vpop.f32.mrf.mxu1  ;;  %v10190_v58 = vld [vmem:[%s14281_s1 + $0x80c] ss:$16 sps:$4 sm:$0xff]  }
 0x29f   : > { %7433 = vmatprep.subr.bf16.mxu1 %v10181_v59  ;;  %v10193_v59 = vld [vmem:[%s14281_s1 + $0xa0c] ss:$16 sps:$4 sm:$0xff]  }
 0x2a1   : > { %7391 = vmatpush1.bf16.msra.mxu0 %v10176_v0  ;;  %v10188_v0 = vld [vmem:[%s14281_s1 + $0x808] ss:$16 sps:$4 sm:$0xff]  }
 0x2a2   : > { %7434 = vmatpush1.bf16.msra.mxu1 %v10179_v1  ;;  %7392 = vmatprep.subr.bf16.mxu0 %v10184_v33  ;;  %v10191_v1 = vld [vmem:[%s14281_s1 + $0xa08] ss:$16 sps:$4 sm:$0xff]   ;;  %v13104_v33 = vpop.f32.mrf.mxu0 }
 0x2a3   : > { %7435 = vmatprep.subr.bf16.mxu1 %v10187_v35  ;;  %v13106_v35 = vpop.f32.mrf.mxu1 }
 0x2a4   : > { %v13125_v27 = vpop.f32.mrf.mxu0 }
 0x2a5   : > { %7393 = vmatpush1.bf16.msra.mxu0 %v10182_v9  ;;  %v10199_v9 = vld [vmem:[%s14281_s1 + $0xbec] ss:$16 sps:$4 sm:$0xff]   ;;  %v13127_v52 = vpop.f32.mrf.mxu1 }
 0x2a6   : > { %7436 = vmatpush1.bf16.msra.mxu1 %v10185_v17  ;;  %7394 = vmatprep.subr.bf16.mxu0 %v10190_v58  ;;  %v6598_v17 = vadd.f32 %v12854_v46, %v12852_v14  ;;  %v10194_v58 = vld [vmem:[%s14281_s1 + $0x9e8] ss:$16 sps:$4 sm:$0xff]   ;;  %v10202_v14 = vld [vmem:[%s14281_s1 + $0x9cc] ss:$16 sps:$4 sm:$0xff]   ;;  %v13148_v16 = vpop.f32.mrf.mxu0 }
 0x2a7   : > { %7437 = vmatprep.subr.bf16.mxu1 %v10193_v59  ;;  %v10197_v59 = vld [vmem:[%s14281_s1 + $0xbe8] ss:$16 sps:$4 sm:$0xff]   ;;  %v10205_v46 = vld [vmem:[%s14281_s1 + $0xbcc] ss:$16 sps:$4 sm:$0xff]   ;;  %v13150_v38 = vpop.f32.mrf.mxu1 }
 0x2a8   : > { %v6641_v32 = vadd.f32 %v12910_v12, %v6598_v17  ;;  %v6604_v12 = vadd.f32 %v12902_v19, %v12900_v43  ;;  %v6686_v43 = vadd.f32 %v12928_v61, %v6643_v31  ;;  %v13161_v60 = vpop.f32.mrf.mxu0  ;;  %v10209_v61 = vld [vmem:[%s14281_s1 + $0xba8] ss:$16 sps:$4 sm:$0xff]  }
 0x2a9   : > { %7395 = vmatpush1.bf16.msra.mxu0 %v10188_v0 }
 0x2aa   : > { %7438 = vmatpush1.bf16.msra.mxu1 %v10191_v1  ;;  %7396 = vmatprep.subr.bf16.mxu0 %v10196_v39  ;;  %v6684_v0 = vadd.f32 %v12912_v13, %v6641_v32  ;;  %v6645_v39 = vadd.f32 %v12942_v2, %v6602_v28  ;;  %v10200_v1 = vld [vmem:[%s14281_s1 + $0x9c8] ss:$16 sps:$4 sm:$0xff]   ;;  %v10208_v32 = vld [vmem:[%s14281_s1 + $0x9ac] ss:$16 sps:$4 sm:$0xff]   ;;  %v6647_v19 = vadd.f32 %v12958_v23, %v6604_v12  ;;  %v13163_v2 = vpop.f32.mrf.mxu1 }
 0x2ab   : > { %7439 = vmatprep.subr.bf16.mxu1 %v10199_v9  ;;  %v10203_v9 = vld [vmem:[%s14281_s1 + $0xbc8] ss:$16 sps:$4 sm:$0xff]   ;;  %v10214_v23 = vld [vmem:[%s14281_s1 + $0x98c] ss:$16 sps:$4 sm:$0xff]  }
 0x2ac   : > { %v6727_v13 = vadd.f32 %v12968_v42, %v6684_v0  ;;  %v6688_v17 = vadd.f32 %v12944_v3, %v6645_v39  ;;  %v10217_v3 = vld [vmem:[%s14281_s1 + $0xb8c] ss:$16 sps:$4 sm:$0xff]   ;;  %v6690_v42 = vadd.f32 %v12960_v34, %v6647_v19  ;;  %v13182_v28 = vpop.f32.mrf.mxu1  ;;  %v10212_v39 = vld [vmem:[%s14281_s1 + $0x988] ss:$16 sps:$4 sm:$0xff]  }
 0x2ad   : > { %7397 = vmatpush2.bf16.msra.mxu0 %v10194_v58  ;;  %v6729_v58 = vadd.f32 %v12984_v6, %v6686_v43  ;;  %v10215_v34 = vld [vmem:[%s14281_s1 + $0xb88] ss:$16 sps:$4 sm:$0xff]  }
 0x2ae   : > { %7440 = vmatpush2.bf16.msra.mxu1 %v10197_v59  ;;  %7398 = vmatprep.subr.bf16.mxu0 %v10202_v14  ;;  %v10206_v59 = vld [vmem:[%s14281_s1 + $0x9a8] ss:$16 sps:$4 sm:$0xff]   ;;  %v6770_v6 = vadd.f32 %v12970_v54, %v6727_v13  ;;  %v6731_v14 = vadd.f32 %v13002_v62, %v6688_v17  ;;  %v6733_v12 = vadd.f32 %v13020_v4, %v6690_v42  ;;  %v10220_v54 = vld [vmem:[%s14281_s1 + $0x96c] ss:$16 sps:$4 sm:$0xff]  }
 0x2af   : > { %7441 = vmatprep.subr.bf16.mxu1 %v10205_v46  ;;  %v6986_v46 = vpop.f32.mrf.mxu0  ;;  %v6772_v31 = vadd.f32 %v12986_v7, %v6729_v58  ;;  %v10223_v7 = vld [vmem:[%s14281_s1 + $0xb6c] ss:$16 sps:$4 sm:$0xff]   ;;  %v10218_v43 = vld [vmem:[%s14281_s1 + $0x968] ss:$16 sps:$4 sm:$0xff]  }
 0x2b0   : > { %v6813_v0 = vadd.f32 %v13030_v51, %v6770_v6  ;;  %v6774_v62 = vadd.f32 %v13004_v63, %v6731_v14  ;;  %v10221_v63 = vld [vmem:[%s14281_s1 + $0xb68] ss:$16 sps:$4 sm:$0xff]  }
 0x2b1   : > { %7399 = vmatpush2.bf16.msra.mxu0 %v10200_v1  ;;  %v6815_v4 = vadd.f32 %v13046_v18, %v6772_v31  ;;  %v6988_v51 = vpop.f32.mrf.mxu0  ;;  %v13201_v1 = vpop.f32.mrf.mxu1 }
 0x2b2   : > { %7442 = vmatpush2.bf16.msra.mxu1 %v10203_v9  ;;  %7400 = vmatprep.subr.bf16.mxu0 %v10208_v32  ;;  %v6776_v9 = vadd.f32 %v13022_v5, %v6733_v12  ;;  %v6856_v32 = vadd.f32 %v13032_v15, %v6813_v0  ;;  %v10226_v5 = vld [vmem:[%s14281_s1 + $0x94c] ss:$16 sps:$4 sm:$0xff]   ;;  %v10230_v12 = vld [vmem:[%s14281_s1 + $0x928] ss:$16 sps:$4 sm:$0xff]  }
 0x2b3   : > { %7443 = vmatprep.subr.bf16.mxu1 %v10211_v8  ;;  %v6817_v8 = vadd.f32 %v13062_v20, %v6774_v62  ;;  %v10229_v15 = vld [vmem:[%s14281_s1 + $0xb4c] ss:$16 sps:$4 sm:$0xff]   ;;  %v6858_v18 = vadd.f32 %v13048_v41, %v6815_v4  ;;  %v6990_v13 = vpop.f32.mrf.mxu0  ;;  %v7033_v17 = vpop.f32.mrf.mxu1  ;;  %v10227_v41 = vld [vmem:[%s14281_s1 + $0xb48] ss:$16 sps:$4 sm:$0xff]  }
 0x2b4   : > { %v6819_v20 = vadd.f32 %v13078_v22, %v6776_v9  ;;  %v6899_v19 = vadd.f32 %v13088_v53, %v6856_v32  ;;  %v10235_v53 = vld [vmem:[%s14281_s1 + $0xb2c] ss:$16 sps:$4 sm:$0xff]   ;;  %v10239_v62 = vld [vmem:[%s14281_s1 + $0xb08] ss:$16 sps:$4 sm:$0xff]  }
 0x2b5   : > { %7401 = vmatpush2.bf16.msra.mxu0 %v10206_v59  ;;  %v6860_v58 = vadd.f32 %v13064_v21, %v6817_v8  ;;  %v6901_v59 = vadd.f32 %v13104_v33, %v6858_v18  ;;  %v7113_v22 = vpop.f32.mrf.mxu1  ;;  %v10232_v21 = vld [vmem:[%s14281_s1 + $0x92c] ss:$16 sps:$4 sm:$0xff]  }
 0x2b6   : > { %7444 = vmatpush2.bf16.msra.mxu1 %v10209_v61  ;;  %7402 = vmatprep.subr.bf16.mxu0 %v10214_v23  ;;  %v10224_v61 = vld [vmem:[%s14281_s1 + $0x948] ss:$16 sps:$4 sm:$0xff]   ;;  %v7070_v23 = vpop.f32.mrf.mxu0  ;;  %v6862_v33 = vadd.f32 %v13080_v26, %v6819_v20 }
 0x2b7   : > { %7445 = vmatprep.subr.bf16.mxu1 %v10217_v3  ;;  %v6942_v3 = vadd.f32 %v13090_v55, %v6899_v19  ;;  %v6903_v42 = vadd.f32 %v13125_v27, %v6860_v58  ;;  %v6944_v6 = vadd.f32 %v13106_v35, %v6901_v59  ;;  %v10233_v26 = vld [vmem:[%s14281_s1 + $0xb28] ss:$16 sps:$4 sm:$0xff]   ;;  %v7115_v55 = vpop.f32.mrf.mxu1  ;;  %v10238_v27 = vld [vmem:[%s14281_s1 + $0x90c] ss:$16 sps:$4 sm:$0xff]  }
 0x2b8   : > { %v6905_v14 = vadd.f32 %v13148_v16, %v6862_v33  ;;  %v7072_v0 = vpop.f32.mrf.mxu0  ;;  %v10241_v35 = vld [vmem:[%s14281_s1 + $0xb0c] ss:$16 sps:$4 sm:$0xff]  }
 0x2b9   : > { %7403 = vmatpush2.bf16.msra.mxu0 %v10212_v39  ;;  %v6985_v31 = vadd.f32 %v13161_v60, %v6942_v3  ;;  %v6946_v16 = vadd.f32 %v13127_v52, %v6903_v42  ;;  %v6987_v60 = vadd.f32 %v6986_v46, %v6944_v6  ;;  %v7117_v9 = vpop.f32.mrf.mxu1  ;;  %v10244_v52 = vld [vmem:[%s14281_s1 + $0xcec] ss:$16 sps:$4 sm:$0xff]  }
 0x2ba   : > { %7446 = vmatpush2.bf16.msra.mxu1 %v10215_v34  ;;  %7404 = vmatprep.subr.bf16.mxu0 %v10220_v54  ;;  %v6948_v39 = vadd.f32 %v13150_v38, %v6905_v14  ;;  %v7074_v4 = vpop.f32.mrf.mxu0  ;;  %v10247_v38 = vld [vmem:[%s14281_s1 + $0xeec] ss:$16 sps:$4 sm:$0xff]  }
 0x2bb   : > { %7447 = vmatprep.subr.bf16.mxu1 %v10223_v7  ;;  %v7028_v34 = vadd.f32 %v13163_v2, %v6985_v31  ;;  %v6989_v54 = vadd.f32 %v6988_v51, %v6946_v16  ;;  %v10236_v7 = vld [vmem:[%s14281_s1 + $0x908] ss:$16 sps:$4 sm:$0xff]   ;;  %v7030_v2 = vadd.f32 %v13182_v28, %v6987_v60  ;;  %v10250_v28 = vld [vmem:[%s14281_s1 + $0xccc] ss:$16 sps:$4 sm:$0xff]  }
 0x2bc   : > { %v6991_v46 = vadd.f32 %v6990_v13, %v6948_v39 }
 0x2bd   : > { %7405 = vmatpush2.bf16.msra.mxu0 %v10218_v43  ;;  %v7071_v51 = vadd.f32 %v7070_v23, %v7028_v34  ;;  %v7032_v32 = vadd.f32 %v13201_v1, %v6989_v54  ;;  %v7073_v8 = vadd.f32 %v7072_v0, %v7030_v2  ;;  %v10242_v43 = vld [vmem:[%s14281_s1 + $0xce8] ss:$16 sps:$4 sm:$0xff]   ;;  %v10253_v1 = vld [vmem:[%s14281_s1 + $0xecc] ss:$16 sps:$4 sm:$0xff]  }
 0x2be   : > { %7448 = vmatpush2.bf16.msra.mxu1 %v10221_v63  ;;  %7406 = vmatprep.subr.bf16.mxu0 %v10226_v5  ;;  %v10245_v63 = vld [vmem:[%s14281_s1 + $0xee8] ss:$16 sps:$4 sm:$0xff]   ;;  %v7076_v5 = vpop.f32.mrf.mxu0  ;;  %v7034_v18 = vadd.f32 %v7033_v17, %v6991_v46 }
 0x2bf   : > { %7449 = vmatprep.subr.bf16.mxu1 %v10229_v15  ;;  %v7119_v15 = vpop.f32.mrf.mxu1  ;;  %v7114_v20 = vadd.f32 %v7113_v22, %v7071_v51  ;;  %v7075_v19 = vadd.f32 %v7074_v4, %v7032_v32  ;;  %v7116_v59 = vadd.f32 %v7115_v55, %v7073_v8  ;;  %v10248_v23 = vld [vmem:[%s14281_s1 + $0xcc8] ss:$16 sps:$4 sm:$0xff]   ;;  %v10265_v55 = vld [vmem:[%s14281_s1 + $0xe8c] ss:$16 sps:$4 sm:$0xff]  }
 0x2c0   : > { %v10251_v17 = vld [vmem:[%s14281_s1 + $0xec8] ss:$16 sps:$4 sm:$0xff]  }
 0x2c1   : > { %7407 = vmatpush2.bf16.msra.mxu0 %v10224_v61  ;;  %v7077_v61 = vadd.f32 %v7076_v5, %v7034_v18  ;;  %v10257_v0 = vld [vmem:[%s14281_s1 + $0xea8] ss:$16 sps:$4 sm:$0xff]   ;;  %v10274_v18 = vld [vmem:[%s14281_s1 + $0xc4c] ss:$16 sps:$4 sm:$0xff]  }
 0x2c2   : > { %7450 = vmatpush2.bf16.msra.mxu1 %v10227_v41  ;;  %7408 = vmatprep.subr.bf16.mxu0 %v10232_v21  ;;  %v10263_v4 = vld [vmem:[%s14281_s1 + $0xe88] ss:$16 sps:$4 sm:$0xff]  }
 0x2c3   : > { %7451 = vmatprep.subr.bf16.mxu1 %v10235_v53  ;;  %v7118_v53 = vadd.f32 %v7117_v9, %v7075_v19  ;;  %v7120_v14 = vadd.f32 %v7119_v15, %v7077_v61 }
 0x2c5   : > { %7409 = vmatpush2.bf16.msra.mxu0 %v10230_v12 }
 0x2c6   : > { %7452 = vmatpush2.bf16.msra.mxu1 %v10233_v26  ;;  %7410 = vmatprep.subr.bf16.mxu0 %v10238_v27  ;;  %v10254_v26 = vld [vmem:[%s14281_s1 + $0xca8] ss:$16 sps:$4 sm:$0xff]  }
 0x2c7   : > { %7453 = vmatprep.subr.bf16.mxu1 %v10241_v35 }
 0x2c9   : > { %7411 = vmatpush2.bf16.msra.mxu0 %v10236_v7 }
 0x2ca   : > { %7454 = vmatpush2.bf16.msra.mxu1 %v10239_v62  ;;  %7466 = vmatprep.subr.bf16.mxu0 %v10244_v52  ;;  %v10260_v62 = vld [vmem:[%s14281_s1 + $0xc88] ss:$16 sps:$4 sm:$0xff]   ;;  %v10268_v52 = vld [vmem:[%s14281_s1 + $0xc6c] ss:$16 sps:$4 sm:$0xff]  }
 0x2cb   : > { %7509 = vmatprep.subr.bf16.mxu1 %v10247_v38  ;;  %v10271_v38 = vld [vmem:[%s14281_s1 + $0xe6c] ss:$16 sps:$4 sm:$0xff]  }
 0x2cc   : > { %v7156_v13 = vpop.f32.mrf.mxu0  ;;  %7413 = vmatmul.mubr.bf16.vlgmr.msra.gmra.mxu0 %v11436_v48  ;;  %v10256_v48 = vld [vmem:[%s14281_s1 + $0xcac] ss:$16 sps:$4 sm:$0xff]  }
 0x2cd   : > { %v7199_v58 = vpop.f32.mrf.mxu1  ;;  %7456 = vmatmul.mubr.bf16.vlgmr.msra.gmra.mxu1 %v11440_v49  ;;  %v7157_v41 = vadd.f32 %v7156_v13, %v7114_v20  ;;  %7467 = vmatpush1.bf16.msra.mxu0 %v10242_v43  ;;  %v10259_v49 = vld [vmem:[%s14281_s1 + $0xeac] ss:$16 sps:$4 sm:$0xff]  }
 0x2ce   : > { %7510 = vmatpush1.bf16.msra.mxu1 %v10245_v63  ;;  %v7158_v22 = vpop.f32.mrf.mxu0  ;;  %7468 = vmatprep.subr.bf16.mxu0 %v10250_v28  ;;  %v10266_v28 = vld [vmem:[%s14281_s1 + $0xc68] ss:$16 sps:$4 sm:$0xff]   ;;  %v10277_v20 = vld [vmem:[%s14281_s1 + $0xe4c] ss:$16 sps:$4 sm:$0xff]  }
 0x2cf   : > { %v7201_v21 = vpop.f32.mrf.mxu1  ;;  %7511 = vmatprep.subr.bf16.mxu1 %v10253_v1  ;;  %v7159_v33 = vadd.f32 %v7158_v22, %v7116_v59  ;;  %7498 = vmatprep.mubr.bf16.mxu0 %v11456_v29  ;;  %v7200_v3 = vadd.f32 %v7199_v58, %v7157_v41  ;;  %v10269_v1 = vld [vmem:[%s14281_s1 + $0xe68] ss:$16 sps:$4 sm:$0xff]  }
 0x2d0   : > { %7541 = vmatprep.mubr.bf16.mxu1 %v11460_v30  ;;  %v7160_v42 = vpop.f32.mrf.mxu0  ;;  %v10262_v30 = vld [vmem:[%s14281_s1 + $0xc8c] ss:$16 sps:$4 sm:$0xff]   ;;  %v10272_v22 = vld [vmem:[%s14281_s1 + $0xc48] ss:$16 sps:$4 sm:$0xff]  }
 0x2d1   : > { %v7203_v6 = vpop.f32.mrf.mxu1  ;;  %v7202_v31 = vadd.f32 %v7201_v21, %v7159_v33  ;;  %v7161_v12 = vadd.f32 %v7160_v42, %v7118_v53  ;;  %7469 = vmatpush1.bf16.msra.mxu0 %v10248_v23  ;;  %v7928_v60 = vmul.f32 %v7200_v3, %v7200_v3  ;;  %v10275_v21 = vld [vmem:[%s14281_s1 + $0xe48] ss:$16 sps:$4 sm:$0xff]  }
 0x2d2   : > { %7512 = vmatpush1.bf16.msra.mxu1 %v10251_v17  ;;  %v7162_v29 = vpop.f32.mrf.mxu0  ;;  %7470 = vmatprep.subr.bf16.mxu0 %v10256_v48  ;;  %v10280_v48 = vld [vmem:[%s14281_s1 + $0xc2c] ss:$16 sps:$4 sm:$0xff]  }
 0x2d3   : > { %7513 = vmatprep.subr.bf16.mxu1 %v10259_v49  ;;  %v9174_v27 = vpack.c.bf16 %v7202_v31, %v7200_v3  ;;  %v7204_v35 = vadd.f32 %v7203_v6, %v7161_v12  ;;  %v7163_v16 = vadd.f32 %v7162_v29, %v7120_v14  ;;  %v7205_v39 = vpop.f32.mrf.mxu1  ;;  %v7929_v9 = vmul.f32 %v7202_v31, %v7202_v31  ;;  %v10283_v49 = vld [vmem:[%s14281_s1 + $0xe2c] ss:$16 sps:$4 sm:$0xff]   ;;  %v10278_v12 = vld [vmem:[%s14281_s1 + $0xc28] ss:$16 sps:$4 sm:$0xff]  }
 0x2d4   : > { %v10289_v29 = vld [vmem:[%s14281_s1 + $0xe0c] ss:$16 sps:$4 sm:$0xff]  }
 0x2d5   : > { %7992 = vst [vmem:[%s13310_s9] sm:$0xff] %v9174_v27  ;;  %v7896_v34 = vadd.f32 %v7204_v35, %v7200_v3  ;;  %v7932_v54 = vmul.f32 %v7204_v35, %v7204_v35  ;;  %v7206_v7 = vadd.f32 %v7205_v39, %v7163_v16  ;;  %7471 = vmatpush1.bf16.msra.mxu0 %v10254_v26  ;;  %v10281_v26 = vld [vmem:[%s14281_s1 + $0xe28] ss:$16 sps:$4 sm:$0xff]  }
 0x2d6   : > { %7514 = vmatpush1.bf16.msra.mxu1 %v10257_v0  ;;  %7472 = vmatprep.subr.bf16.mxu0 %v10262_v30  ;;  %v10286_v0 = vld [vmem:[%s14281_s1 + $0xc0c] ss:$16 sps:$4 sm:$0xff]   ;;  %v10284_v39 = vld [vmem:[%s14281_s1 + $0xc08] ss:$16 sps:$4 sm:$0xff]  }
 0x2d7   : > { %7515 = vmatprep.subr.bf16.mxu1 %v10265_v55  ;;  %v7897_v2 = vrot.slane %v7896_v34, 4  ;;  %v7936_v46 = vadd.f32 %v7932_v54, %v7928_v60  ;;  %v7903_v51 = vadd.f32 %v7206_v7, %v7202_v31  ;;  %v7933_v32 = vmul.f32 %v7206_v7, %v7206_v7 }
 0x2d8   : > { %v9176_v8 = vpack.c.bf16 %v7206_v7, %v7204_v35  ;;  %v10292_v7 = vld [vmem:[%s14281_s1 + $0xdec] ss:$16 sps:$4 sm:$0xff]  }
 0x2d9   : > { %v7898_v43 = vadd.f32 %v7897_v2, %v7896_v34  ;;  %v7937_v63 = vrot.slane %v7936_v46, 4  ;;  %v7904_v5 = vrot.slane %v7903_v51, 4  ;;  %v7943_v15 = vadd.f32 %v7933_v32, %v7929_v9  ;;  %7473 = vmatpush1.bf16.msra.mxu0 %v10260_v62  ;;  %v10287_v34 = vld [vmem:[%s14281_s1 + $0xe08] ss:$16 sps:$4 sm:$0xff]   ;;  %v10295_v62 = vld [vmem:[%s14281_s1 + $0xfec] ss:$16 sps:$4 sm:$0xff]  }
 0x2da   : > { %7516 = vmatpush1.bf16.msra.mxu1 %v10263_v4  ;;  %7994 = vst [vmem:[%s13310_s9 + $0x10] sm:$0xff] %v9176_v8  ;;  %7474 = vmatprep.subr.bf16.mxu0 %v10268_v52  ;;  %v10290_v52 = vld [vmem:[%s14281_s1 + $0xde8] ss:$16 sps:$4 sm:$0xff]   ;;  %v10298_v2 = vld [vmem:[%s14281_s1 + $0xdcc] ss:$16 sps:$4 sm:$0xff]  }
 0x2db   : > { %7517 = vmatprep.subr.bf16.mxu1 %v10271_v38  ;;  %v7899_v19 = vrot.slane %v7898_v43, 2  ;;  %v7938_v13 = vadd.f32 %v7937_v63, %v7936_v46  ;;  %v7905_v58 = vadd.f32 %v7904_v5, %v7903_v51  ;;  %v7944_v59 = vrot.slane %v7943_v15, 4  ;;  %v10293_v38 = vld [vmem:[%s14281_s1 + $0xfe8] ss:$16 sps:$4 sm:$0xff]   ;;  %v10301_v46 = vld [vmem:[%s14281_s1 + $0xfcc] ss:$16 sps:$4 sm:$0xff]  }
 0x2dc   : > { %v10296_v51 = vld [vmem:[%s14281_s1 + $0xdc8] ss:$16 sps:$4 sm:$0xff]   ;;  %v10304_v8 = vld [vmem:[%s14281_s1 + $0xdac] ss:$16 sps:$4 sm:$0xff]  }
 0x2dd   : > { %v7900_v61 = vadd.f32 %v7899_v19, %v7898_v43  ;;  %v7939_v41 = vrot.slane %v7938_v13, 2  ;;  %v7906_v23 = vrot.slane %v7905_v58, 2  ;;  %v7945_v17 = vadd.f32 %v7944_v59, %v7943_v15  ;;  %7475 = vmatpush1.bf16.msra.mxu0 %v10266_v28  ;;  %v10299_v32 = vld [vmem:[%s14281_s1 + $0xfc8] ss:$16 sps:$4 sm:$0xff]   ;;  %v10307_v43 = vld [vmem:[%s14281_s1 + $0xfac] ss:$16 sps:$4 sm:$0xff]  }
 0x2de   : > { %7518 = vmatpush1.bf16.msra.mxu1 %v10269_v1  ;;  %7476 = vmatprep.subr.bf16.mxu0 %v10274_v18  ;;  %v10302_v63 = vld [vmem:[%s14281_s1 + $0xda8] ss:$16 sps:$4 sm:$0xff]   ;;  %v10310_v15 = vld [vmem:[%s14281_s1 + $0xd8c] ss:$16 sps:$4 sm:$0xff]  }
 0x2df   : > { %7519 = vmatprep.subr.bf16.mxu1 %v10277_v20  ;;  %v7901_v53 = vrot.slane %v7900_v61, 1  ;;  %v7940_v33 = vadd.f32 %v7939_v41, %v7938_v13  ;;  %v7907_v3 = vadd.f32 %v7906_v23, %v7905_v58  ;;  %v7946_v42 = vrot.slane %v7945_v17, 2  ;;  %v10305_v5 = vld [vmem:[%s14281_s1 + $0xfa8] ss:$16 sps:$4 sm:$0xff]   ;;  %v10313_v28 = vld [vmem:[%s14281_s1 + $0xf8c] ss:$16 sps:$4 sm:$0xff]  }
 0x2e0   : > { %v10308_v1 = vld [vmem:[%s14281_s1 + $0xd88] ss:$16 sps:$4 sm:$0xff]   ;;  %v10316_v20 = vld [vmem:[%s14281_s1 + $0xd6c] ss:$16 sps:$4 sm:$0xff]  }
 0x2e1   : > { %v7941_v6 = vrot.slane %v7940_v33, 1  ;;  %v7908_v14 = vrot.slane %v7907_v3, 1  ;;  %v7947_v31 = vadd.f32 %v7946_v42, %v7945_v17  ;;  %7477 = vmatpush1.bf16.msra.mxu0 %v10272_v22  ;;  %v7902_v30 = vadd.f32 %v7901_v53, %v7900_v61  ;;  %v10311_v18 = vld [vmem:[%s14281_s1 + $0xf88] ss:$16 sps:$4 sm:$0xff]   ;;  %v10319_v19 = vld [vmem:[%s14281_s1 + $0xf6c] ss:$16 sps:$4 sm:$0xff]  }
 0x2e2   : > { %7520 = vmatpush1.bf16.msra.mxu1 %v10275_v21  ;;  %7478 = vmatprep.subr.bf16.mxu0 %v10280_v48  ;;  %v10314_v13 = vld [vmem:[%s14281_s1 + $0xd68] ss:$16 sps:$4 sm:$0xff]   ;;  %v10322_v59 = vld [vmem:[%s14281_s1 + $0xd4c] ss:$16 sps:$4 sm:$0xff]  }
 0x2e3   : > { %7521 = vmatprep.subr.bf16.mxu1 %v10283_v49  ;;  %v7942_v55 = vadd.f32 %v7941_v6, %v7940_v33  ;;  %v7948_v27 = vrot.slane %v7947_v31, 1  ;;  %v7909_v16 = vadd.f32 %v7908_v14, %v7907_v3  ;;  %v10317_v58 = vld [vmem:[%s14281_s1 + $0xf68] ss:$16 sps:$4 sm:$0xff]   ;;  %v10325_v61 = vld [vmem:[%s14281_s1 + $0xf4c] ss:$16 sps:$4 sm:$0xff]  }
 0x2e4   : > { %v10320_v41 = vld [vmem:[%s14281_s1 + $0xd48] ss:$16 sps:$4 sm:$0xff]   ;;  %v10328_v17 = vld [vmem:[%s14281_s1 + $0xd2c] ss:$16 sps:$4 sm:$0xff]  }
 0x2e5   : > { %v7997_v35 = vsel %vm7996_vm0, %v7902_v30, %v7942_v55  ;;  %v7949_v60 = vadd.f32 %v7948_v27, %v7947_v31  ;;  %7479 = vmatpush1.bf16.msra.mxu0 %v10278_v12  ;;  %v10323_v23 = vld [vmem:[%s14281_s1 + $0xf48] ss:$16 sps:$4 sm:$0xff]   ;;  %v10331_v22 = vld [vmem:[%s14281_s1 + $0xf2c] ss:$16 sps:$4 sm:$0xff]  }
 0x2e6   : > { %7522 = vmatpush1.bf16.msra.mxu1 %v10281_v26  ;;  %v8002_v54 = vsel %vm8001_vm1, %v7997_v35, 0.0  ;;  %7480 = vmatprep.subr.bf16.mxu0 %v10286_v0  ;;  %v10326_v21 = vld [vmem:[%s14281_s1 + $0xd28] ss:$16 sps:$4 sm:$0xff]   ;;  %v10334_v49 = vld [vmem:[%s14281_s1 + $0xd0c] ss:$16 sps:$4 sm:$0xff]  }
 0x2e7   : > { %7523 = vmatprep.subr.bf16.mxu1 %v10289_v29  ;;  %8006 = vst [vmem:[%s13373_s27] sm:$0xff] %v8002_v54  ;;  %v7998_v4 = vsel %vm7996_vm0, %v7909_v16, %v7949_v60  ;;  %v10329_v48 = vld [vmem:[%s14281_s1 + $0xf28] ss:$16 sps:$4 sm:$0xff]   ;;  %v10337_v53 = vld [vmem:[%s14281_s1 + $0xf0c] ss:$16 sps:$4 sm:$0xff]  }
 0x2e8   : > { %v8003_v9 = vsel %vm8001_vm1, %v7998_v4, 0.0  ;;  %v10332_v33 = vld [vmem:[%s14281_s1 + $0xd08] ss:$16 sps:$4 sm:$0xff]   ;;  %v10340_v42 = vld [vmem:[%s14281_s1 + $0x10ec] ss:$16 sps:$4 sm:$0xff]  }
 0x2e9   : > { %8007 = vst [vmem:[%s13373_s27 + $0x8] sm:$0xff] %v8003_v9  ;;  %7481 = vmatpush1.bf16.msra.mxu0 %v10284_v39  ;;  %v10335_v3 = vld [vmem:[%s14281_s1 + $0xf08] ss:$16 sps:$4 sm:$0xff]   ;;  %v10343_v6 = vld [vmem:[%s14281_s1 + $0x12ec] ss:$16 sps:$4 sm:$0xff]  }
 0x2ea   : > { %7524 = vmatpush1.bf16.msra.mxu1 %v10287_v34  ;;  %7482 = vmatprep.subr.bf16.mxu0 %v10292_v7  ;;  %v10338_v14 = vld [vmem:[%s14281_s1 + $0x10e8] ss:$16 sps:$4 sm:$0xff]   ;;  %v10346_v12 = vld [vmem:[%s14281_s1 + $0x10cc] ss:$16 sps:$4 sm:$0xff]  }
 0x2eb   : > { %7525 = vmatprep.subr.bf16.mxu1 %v10295_v62  ;;  %v10341_v31 = vld [vmem:[%s14281_s1 + $0x12e8] ss:$16 sps:$4 sm:$0xff]   ;;  %v10349_v26 = vld [vmem:[%s14281_s1 + $0x12cc] ss:$16 sps:$4 sm:$0xff]  }
 0x2ec   : > { %v10344_v0 = vld [vmem:[%s14281_s1 + $0x10c8] ss:$16 sps:$4 sm:$0xff]   ;;  %v10352_v30 = vld [vmem:[%s14281_s1 + $0x10ac] ss:$16 sps:$4 sm:$0xff]  }
 0x2ed   : > { %7483 = vmatpush2.bf16.msra.mxu0 %v10290_v52  ;;  %v10347_v29 = vld [vmem:[%s14281_s1 + $0x12c8] ss:$16 sps:$4 sm:$0xff]   ;;  %v10358_v27 = vld [vmem:[%s14281_s1 + $0x108c] ss:$16 sps:$4 sm:$0xff]  }
 0x2ee   : > { %7526 = vmatpush2.bf16.msra.mxu1 %v10293_v38  ;;  %7484 = vmatprep.subr.bf16.mxu0 %v10298_v2  ;;  %v10353_v55 = vld [vmem:[%s14281_s1 + $0x12a8] ss:$16 sps:$4 sm:$0xff]   ;;  %v10364_v16 = vld [vmem:[%s14281_s1 + $0x106c] ss:$16 sps:$4 sm:$0xff]  }
 0x2ef   : > { %7527 = vmatprep.subr.bf16.mxu1 %v10301_v46  ;;  %v10359_v35 = vld [vmem:[%s14281_s1 + $0x1288] ss:$16 sps:$4 sm:$0xff]   ;;  %v10367_v60 = vld [vmem:[%s14281_s1 + $0x126c] ss:$16 sps:$4 sm:$0xff]  }
 0x2f0   : > { %v10362_v39 = vld [vmem:[%s14281_s1 + $0x1068] ss:$16 sps:$4 sm:$0xff]   ;;  %v10370_v54 = vld [vmem:[%s14281_s1 + $0x104c] ss:$16 sps:$4 sm:$0xff]  }
 0x2f1   : > { %7485 = vmatpush2.bf16.msra.mxu0 %v10296_v51  ;;  %v10365_v34 = vld [vmem:[%s14281_s1 + $0x1268] ss:$16 sps:$4 sm:$0xff]   ;;  %v10373_v7 = vld [vmem:[%s14281_s1 + $0x124c] ss:$16 sps:$4 sm:$0xff]  }
 0x2f2   : > { %7528 = vmatpush2.bf16.msra.mxu1 %v10299_v32  ;;  %7486 = vmatprep.subr.bf16.mxu0 %v10304_v8  ;;  %v10368_v62 = vld [vmem:[%s14281_s1 + $0x1048] ss:$16 sps:$4 sm:$0xff]   ;;  %v10376_v9 = vld [vmem:[%s14281_s1 + $0x102c] ss:$16 sps:$4 sm:$0xff]  }
 0x2f3   : > { %7529 = vmatprep.subr.bf16.mxu1 %v10307_v43  ;;  %v10371_v4 = vld [vmem:[%s14281_s1 + $0x1248] ss:$16 sps:$4 sm:$0xff]   ;;  %v10379_v52 = vld [vmem:[%s14281_s1 + $0x122c] ss:$16 sps:$4 sm:$0xff]  }
 0x2f4   : > { %v10374_v38 = vld [vmem:[%s14281_s1 + $0x1028] ss:$16 sps:$4 sm:$0xff]   ;;  %v10382_v46 = vld [vmem:[%s14281_s1 + $0x100c] ss:$16 sps:$4 sm:$0xff]  }
 0x2f5   : > { %7487 = vmatpush2.bf16.msra.mxu0 %v10302_v63  ;;  %v10377_v2 = vld [vmem:[%s14281_s1 + $0x1228] ss:$16 sps:$4 sm:$0xff]   ;;  %v10385_v51 = vld [vmem:[%s14281_s1 + $0x120c] ss:$16 sps:$4 sm:$0xff]  }
 0x2f6   : > { %7530 = vmatpush2.bf16.msra.mxu1 %v10305_v5  ;;  %7488 = vmatprep.subr.bf16.mxu0 %v10310_v15  ;;  %v10380_v32 = vld [vmem:[%s14281_s1 + $0x1008] ss:$16 sps:$4 sm:$0xff]   ;;  %v10388_v43 = vld [vmem:[%s14281_s1 + $0x11ec] ss:$16 sps:$4 sm:$0xff]  }
 0x2f7   : > { %7531 = vmatprep.subr.bf16.mxu1 %v10313_v28  ;;  %v10383_v8 = vld [vmem:[%s14281_s1 + $0x1208] ss:$16 sps:$4 sm:$0xff]   ;;  %v10391_v63 = vld [vmem:[%s14281_s1 + $0x13ec] ss:$16 sps:$4 sm:$0xff]  }
 0x2f8   : > { %v10386_v5 = vld [vmem:[%s14281_s1 + $0x11e8] ss:$16 sps:$4 sm:$0xff]   ;;  %v10394_v28 = vld [vmem:[%s14281_s1 + $0x11cc] ss:$16 sps:$4 sm:$0xff]  }
 0x2f9   : > { %7489 = vmatpush2.bf16.msra.mxu0 %v10308_v1  ;;  %v10389_v15 = vld [vmem:[%s14281_s1 + $0x13e8] ss:$16 sps:$4 sm:$0xff]   ;;  %v10397_v1 = vld [vmem:[%s14281_s1 + $0x13cc] ss:$16 sps:$4 sm:$0xff]  }
 0x2fa   : > { %7532 = vmatpush2.bf16.msra.mxu1 %v10311_v18  ;;  %7490 = vmatprep.subr.bf16.mxu0 %v10316_v20  ;;  %v10392_v18 = vld [vmem:[%s14281_s1 + $0x11c8] ss:$16 sps:$4 sm:$0xff]  }
 0x2fb   : > { %7533 = vmatprep.subr.bf16.mxu1 %v10319_v19  ;;  %v10395_v20 = vld [vmem:[%s14281_s1 + $0x13c8] ss:$16 sps:$4 sm:$0xff]   ;;  %v10400_v19 = vld [vmem:[%s14281_s1 + $0x11ac] ss:$16 sps:$4 sm:$0xff]  }
 0x2fd   : > { %7491 = vmatpush2.bf16.msra.mxu0 %v10314_v13  ;;  %v10403_v13 = vld [vmem:[%s14281_s1 + $0x13ac] ss:$16 sps:$4 sm:$0xff]  }
 0x2fe   : > { %7534 = vmatpush2.bf16.msra.mxu1 %v10317_v58  ;;  %7492 = vmatprep.subr.bf16.mxu0 %v10322_v59  ;;  %v10398_v58 = vld [vmem:[%s14281_s1 + $0x11a8] ss:$16 sps:$4 sm:$0xff]  }
 0x2ff   : > { %7535 = vmatprep.subr.bf16.mxu1 %v10325_v61  ;;  %v10401_v59 = vld [vmem:[%s14281_s1 + $0x13a8] ss:$16 sps:$4 sm:$0xff]   ;;  %v10406_v61 = vld [vmem:[%s14281_s1 + $0x118c] ss:$16 sps:$4 sm:$0xff]  }
 0x301   : > { %7493 = vmatpush2.bf16.msra.mxu0 %v10320_v41  ;;  %v10409_v41 = vld [vmem:[%s14281_s1 + $0x138c] ss:$16 sps:$4 sm:$0xff]  }
 0x302   : > { %7536 = vmatpush2.bf16.msra.mxu1 %v10323_v23  ;;  %7494 = vmatprep.subr.bf16.mxu0 %v10328_v17  ;;  %v10404_v23 = vld [vmem:[%s14281_s1 + $0x1188] ss:$16 sps:$4 sm:$0xff]  }
 0x303   : > { %7537 = vmatprep.subr.bf16.mxu1 %v10331_v22  ;;  %v10407_v17 = vld [vmem:[%s14281_s1 + $0x1388] ss:$16 sps:$4 sm:$0xff]   ;;  %v10412_v22 = vld [vmem:[%s14281_s1 + $0x116c] ss:$16 sps:$4 sm:$0xff]  }
 0x305   : > { %7495 = vmatpush2.bf16.msra.mxu0 %v10326_v21  ;;  %v10415_v21 = vld [vmem:[%s14281_s1 + $0x136c] ss:$16 sps:$4 sm:$0xff]  }
 0x306   : > { %7538 = vmatpush2.bf16.msra.mxu1 %v10329_v48  ;;  %7496 = vmatprep.subr.bf16.mxu0 %v10334_v49  ;;  %v10410_v48 = vld [vmem:[%s14281_s1 + $0x1168] ss:$16 sps:$4 sm:$0xff]  }
 0x307   : > { %7539 = vmatprep.subr.bf16.mxu1 %v10337_v53  ;;  %v10413_v49 = vld [vmem:[%s14281_s1 + $0x1368] ss:$16 sps:$4 sm:$0xff]   ;;  %v10418_v53 = vld [vmem:[%s14281_s1 + $0x114c] ss:$16 sps:$4 sm:$0xff]  }
 0x309   : > { %7497 = vmatpush2.bf16.msra.mxu0 %v10332_v33  ;;  %v10421_v33 = vld [vmem:[%s14281_s1 + $0x134c] ss:$16 sps:$4 sm:$0xff]  }
 0x30a   : > { %7540 = vmatpush2.bf16.msra.mxu1 %v10335_v3  ;;  %7552 = vmatprep.subr.bf16.mxu0 %v10340_v42  ;;  %v10416_v3 = vld [vmem:[%s14281_s1 + $0x1148] ss:$16 sps:$4 sm:$0xff]  }
 0x30b   : > { %7595 = vmatprep.subr.bf16.mxu1 %v10343_v6  ;;  %v10419_v42 = vld [vmem:[%s14281_s1 + $0x1348] ss:$16 sps:$4 sm:$0xff]   ;;  %v10424_v6 = vld [vmem:[%s14281_s1 + $0x112c] ss:$16 sps:$4 sm:$0xff]  }
 0x30c   : > { %7499 = vmatmul.mubr.bf16.vlgmr.msra.gmra.mxu0 %v11660_v10  ;;  %v10355_v10 = vld [vmem:[%s14281_s1 + $0x12ac] ss:$16 sps:$4 sm:$0xff]  }
 0x30d   : > { %7542 = vmatmul.mubr.bf16.vlgmr.msra.gmra.mxu1 %v11664_v11  ;;  %7553 = vmatpush1.bf16.msra.mxu0 %v10338_v14  ;;  %v10350_v11 = vld [vmem:[%s14281_s1 + $0x10a8] ss:$16 sps:$4 sm:$0xff]   ;;  %v10427_v14 = vld [vmem:[%s14281_s1 + $0x132c] ss:$16 sps:$4 sm:$0xff]  }
 0x30e   : > { %7596 = vmatpush1.bf16.msra.mxu1 %v10341_v31  ;;  %7554 = vmatprep.subr.bf16.mxu0 %v10346_v12  ;;  %v10422_v31 = vld [vmem:[%s14281_s1 + $0x1128] ss:$16 sps:$4 sm:$0xff]  }
 0x30f   : > { %7597 = vmatprep.subr.bf16.mxu1 %v10349_v26  ;;  %7584 = vmatprep.mubr.bf16.mxu0 %v11680_v47  ;;  %v10361_v47 = vld [vmem:[%s14281_s1 + $0x128c] ss:$16 sps:$4 sm:$0xff]   ;;  %v10425_v12 = vld [vmem:[%s14281_s1 + $0x1328] ss:$16 sps:$4 sm:$0xff]  }
 0x310   : > { %7627 = vmatprep.mubr.bf16.mxu1 %v11684_v50  ;;  %v10356_v50 = vld [vmem:[%s14281_s1 + $0x1088] ss:$16 sps:$4 sm:$0xff]   ;;  %v10430_v26 = vld [vmem:[%s14281_s1 + $0x110c] ss:$16 sps:$4 sm:$0xff]  }
 0x311   : > { %7555 = vmatpush1.bf16.msra.mxu0 %v10344_v0  ;;  %v10433_v0 = vld [vmem:[%s14281_s1 + $0x130c] ss:$16 sps:$4 sm:$0xff]  }
 0x312   : > { %7598 = vmatpush1.bf16.msra.mxu1 %v10347_v29  ;;  %7556 = vmatprep.subr.bf16.mxu0 %v10352_v30  ;;  %v10428_v29 = vld [vmem:[%s14281_s1 + $0x1108] ss:$16 sps:$4 sm:$0xff]  }
 0x313   : > { %7599 = vmatprep.subr.bf16.mxu1 %v10355_v10  ;;  %v10431_v30 = vld [vmem:[%s14281_s1 + $0x1308] ss:$16 sps:$4 sm:$0xff]   ;;  %v10436_v10 = vld [vmem:[%s14281_s1 + $0x14ec] ss:$16 sps:$4 sm:$0xff]  }
 0x315   : > { %7557 = vmatpush1.bf16.msra.mxu0 %v10350_v11  ;;  %v10439_v11 = vld [vmem:[%s14281_s1 + $0x16ec] ss:$16 sps:$4 sm:$0xff]  }
 0x316   : > { %7600 = vmatpush1.bf16.msra.mxu1 %v10353_v55  ;;  %7558 = vmatprep.subr.bf16.mxu0 %v10358_v27  ;;  %v10434_v55 = vld [vmem:[%s14281_s1 + $0x14e8] ss:$16 sps:$4 sm:$0xff]  }
 0x317   : > { %7601 = vmatprep.subr.bf16.mxu1 %v10361_v47  ;;  %v10437_v27 = vld [vmem:[%s14281_s1 + $0x16e8] ss:$16 sps:$4 sm:$0xff]   ;;  %v10442_v47 = vld [vmem:[%s14281_s1 + $0x14cc] ss:$16 sps:$4 sm:$0xff]  }
 0x319   : > { %7559 = vmatpush1.bf16.msra.mxu0 %v10356_v50  ;;  %v10445_v50 = vld [vmem:[%s14281_s1 + $0x16cc] ss:$16 sps:$4 sm:$0xff]  }
 0x31a   : > { %7602 = vmatpush1.bf16.msra.mxu1 %v10359_v35  ;;  %7560 = vmatprep.subr.bf16.mxu0 %v10364_v16  ;;  %v10440_v35 = vld [vmem:[%s14281_s1 + $0x14c8] ss:$16 sps:$4 sm:$0xff]  }
 0x31b   : > { %7603 = vmatprep.subr.bf16.mxu1 %v10367_v60  ;;  %v10443_v16 = vld [vmem:[%s14281_s1 + $0x16c8] ss:$16 sps:$4 sm:$0xff]   ;;  %v10448_v60 = vld [vmem:[%s14281_s1 + $0x14ac] ss:$16 sps:$4 sm:$0xff]  }
 0x31d   : > { %7561 = vmatpush1.bf16.msra.mxu0 %v10362_v39  ;;  %v10449_v39 = vld [vmem:[%s14281_s1 + $0x16a8] ss:$16 sps:$4 sm:$0xff]  }
 0x31e   : > { %7604 = vmatpush1.bf16.msra.mxu1 %v10365_v34  ;;  %7562 = vmatprep.subr.bf16.mxu0 %v10370_v54  ;;  %v10454_v34 = vld [vmem:[%s14281_s1 + $0x148c] ss:$16 sps:$4 sm:$0xff]   ;;  %v10455_v54 = vld [vmem:[%s14281_s1 + $0x1688] ss:$16 sps:$4 sm:$0xff]  }
 0x31f   : > { %7605 = vmatprep.subr.bf16.mxu1 %v10373_v7  ;;  %v10460_v7 = vld [vmem:[%s14281_s1 + $0x146c] ss:$16 sps:$4 sm:$0xff]  }
 0x321   : > { %7563 = vmatpush1.bf16.msra.mxu0 %v10368_v62  ;;  %v10463_v62 = vld [vmem:[%s14281_s1 + $0x166c] ss:$16 sps:$4 sm:$0xff]  }
 0x322   : > { %7606 = vmatpush1.bf16.msra.mxu1 %v10371_v4  ;;  %7564 = vmatprep.subr.bf16.mxu0 %v10376_v9  ;;  %v10458_v4 = vld [vmem:[%s14281_s1 + $0x1468] ss:$16 sps:$4 sm:$0xff]  }
 0x323   : > { %7607 = vmatprep.subr.bf16.mxu1 %v10379_v52  ;;  %v10461_v9 = vld [vmem:[%s14281_s1 + $0x1668] ss:$16 sps:$4 sm:$0xff]   ;;  %v10466_v52 = vld [vmem:[%s14281_s1 + $0x144c] ss:$16 sps:$4 sm:$0xff]  }
 0x325   : > { %7565 = vmatpush1.bf16.msra.mxu0 %v10374_v38  ;;  %v10469_v38 = vld [vmem:[%s14281_s1 + $0x164c] ss:$16 sps:$4 sm:$0xff]  }
 0x326   : > { %7608 = vmatpush1.bf16.msra.mxu1 %v10377_v2  ;;  %7566 = vmatprep.subr.bf16.mxu0 %v10382_v46  ;;  %v10464_v2 = vld [vmem:[%s14281_s1 + $0x1448] ss:$16 sps:$4 sm:$0xff]  }
 0x327   : > { %7609 = vmatprep.subr.bf16.mxu1 %v10385_v51  ;;  %v10467_v46 = vld [vmem:[%s14281_s1 + $0x1648] ss:$16 sps:$4 sm:$0xff]   ;;  %v10472_v51 = vld [vmem:[%s14281_s1 + $0x142c] ss:$16 sps:$4 sm:$0xff]  }
 0x329   : > { %7567 = vmatpush1.bf16.msra.mxu0 %v10380_v32  ;;  %v10475_v32 = vld [vmem:[%s14281_s1 + $0x162c] ss:$16 sps:$4 sm:$0xff]  }
 0x32a   : > { %7610 = vmatpush1.bf16.msra.mxu1 %v10383_v8  ;;  %7568 = vmatprep.subr.bf16.mxu0 %v10388_v43  ;;  %v10470_v8 = vld [vmem:[%s14281_s1 + $0x1428] ss:$16 sps:$4 sm:$0xff]  }
 0x32b   : > { %7611 = vmatprep.subr.bf16.mxu1 %v10391_v63  ;;  %v10473_v43 = vld [vmem:[%s14281_s1 + $0x1628] ss:$16 sps:$4 sm:$0xff]   ;;  %v10478_v63 = vld [vmem:[%s14281_s1 + $0x140c] ss:$16 sps:$4 sm:$0xff]  }
 0x32d   : > { %7569 = vmatpush2.bf16.msra.mxu0 %v10386_v5  ;;  %v10481_v5 = vld [vmem:[%s14281_s1 + $0x160c] ss:$16 sps:$4 sm:$0xff]  }
 0x32e   : > { %7612 = vmatpush2.bf16.msra.mxu1 %v10389_v15  ;;  %7570 = vmatprep.subr.bf16.mxu0 %v10394_v28  ;;  %v10476_v15 = vld [vmem:[%s14281_s1 + $0x1408] ss:$16 sps:$4 sm:$0xff]  }
 0x32f   : > { %7613 = vmatprep.subr.bf16.mxu1 %v10397_v1  ;;  %v10479_v28 = vld [vmem:[%s14281_s1 + $0x1608] ss:$16 sps:$4 sm:$0xff]   ;;  %v10484_v1 = vld [vmem:[%s14281_s1 + $0x15ec] ss:$16 sps:$4 sm:$0xff]  }
 0x331   : > { %7571 = vmatpush2.bf16.msra.mxu0 %v10392_v18  ;;  %v10487_v18 = vld [vmem:[%s14281_s1 + $0x17ec] ss:$16 sps:$4 sm:$0xff]  }
 0x332   : > { %7614 = vmatpush2.bf16.msra.mxu1 %v10395_v20  ;;  %7572 = vmatprep.subr.bf16.mxu0 %v10400_v19  ;;  %v10482_v20 = vld [vmem:[%s14281_s1 + $0x15e8] ss:$16 sps:$4 sm:$0xff]  }
 0x333   : > { %7615 = vmatprep.subr.bf16.mxu1 %v10403_v13  ;;  %v10485_v19 = vld [vmem:[%s14281_s1 + $0x17e8] ss:$16 sps:$4 sm:$0xff]   ;;  %v10490_v13 = vld [vmem:[%s14281_s1 + $0x15cc] ss:$16 sps:$4 sm:$0xff]  }
 0x335   : > { %7573 = vmatpush2.bf16.msra.mxu0 %v10398_v58  ;;  %v10493_v58 = vld [vmem:[%s14281_s1 + $0x17cc] ss:$16 sps:$4 sm:$0xff]  }
 0x336   : > { %7616 = vmatpush2.bf16.msra.mxu1 %v10401_v59  ;;  %7574 = vmatprep.subr.bf16.mxu0 %v10406_v61  ;;  %v10488_v59 = vld [vmem:[%s14281_s1 + $0x15c8] ss:$16 sps:$4 sm:$0xff]  }
 0x337   : > { %7617 = vmatprep.subr.bf16.mxu1 %v10409_v41  ;;  %v10491_v61 = vld [vmem:[%s14281_s1 + $0x17c8] ss:$16 sps:$4 sm:$0xff]   ;;  %v10496_v41 = vld [vmem:[%s14281_s1 + $0x15ac] ss:$16 sps:$4 sm:$0xff]  }
 0x339   : > { %7575 = vmatpush2.bf16.msra.mxu0 %v10404_v23  ;;  %v10499_v23 = vld [vmem:[%s14281_s1 + $0x17ac] ss:$16 sps:$4 sm:$0xff]  }
 0x33a   : > { %7618 = vmatpush2.bf16.msra.mxu1 %v10407_v17  ;;  %7576 = vmatprep.subr.bf16.mxu0 %v10412_v22  ;;  %v10494_v17 = vld [vmem:[%s14281_s1 + $0x15a8] ss:$16 sps:$4 sm:$0xff]  }
 0x33b   : > { %7619 = vmatprep.subr.bf16.mxu1 %v10415_v21  ;;  %v10497_v22 = vld [vmem:[%s14281_s1 + $0x17a8] ss:$16 sps:$4 sm:$0xff]   ;;  %v10502_v21 = vld [vmem:[%s14281_s1 + $0x158c] ss:$16 sps:$4 sm:$0xff]  }
 0x33d   : > { %7577 = vmatpush2.bf16.msra.mxu0 %v10410_v48  ;;  %v10505_v48 = vld [vmem:[%s14281_s1 + $0x178c] ss:$16 sps:$4 sm:$0xff]  }
 0x33e   : > { %7620 = vmatpush2.bf16.msra.mxu1 %v10413_v49  ;;  %7578 = vmatprep.subr.bf16.mxu0 %v10418_v53  ;;  %v10500_v49 = vld [vmem:[%s14281_s1 + $0x1588] ss:$16 sps:$4 sm:$0xff]  }
 0x33f   : > { %7621 = vmatprep.subr.bf16.mxu1 %v10421_v33  ;;  %v10503_v53 = vld [vmem:[%s14281_s1 + $0x1788] ss:$16 sps:$4 sm:$0xff]   ;;  %v10508_v33 = vld [vmem:[%s14281_s1 + $0x156c] ss:$16 sps:$4 sm:$0xff]  }
 0x341   : > { %7579 = vmatpush2.bf16.msra.mxu0 %v10416_v3  ;;  %v10511_v3 = vld [vmem:[%s14281_s1 + $0x176c] ss:$16 sps:$4 sm:$0xff]  }
 0x342   : > { %7622 = vmatpush2.bf16.msra.mxu1 %v10419_v42  ;;  %7580 = vmatprep.subr.bf16.mxu0 %v10424_v6  ;;  %v10506_v42 = vld [vmem:[%s14281_s1 + $0x1568] ss:$16 sps:$4 sm:$0xff]  }
 0x343   : > { %7623 = vmatprep.subr.bf16.mxu1 %v10427_v14  ;;  %v10509_v6 = vld [vmem:[%s14281_s1 + $0x1768] ss:$16 sps:$4 sm:$0xff]   ;;  %v10514_v14 = vld [vmem:[%s14281_s1 + $0x154c] ss:$16 sps:$4 sm:$0xff]  }
 0x345   : > { %7581 = vmatpush2.bf16.msra.mxu0 %v10422_v31  ;;  %v10517_v31 = vld [vmem:[%s14281_s1 + $0x174c] ss:$16 sps:$4 sm:$0xff]  }
 0x346   : > { %7624 = vmatpush2.bf16.msra.mxu1 %v10425_v12  ;;  %7582 = vmatprep.subr.bf16.mxu0 %v10430_v26  ;;  %v10512_v12 = vld [vmem:[%s14281_s1 + $0x1548] ss:$16 sps:$4 sm:$0xff]  }
 0x347   : > { %7625 = vmatprep.subr.bf16.mxu1 %v10433_v0  ;;  %v10515_v26 = vld [vmem:[%s14281_s1 + $0x1748] ss:$16 sps:$4 sm:$0xff]   ;;  %v10520_v0 = vld [vmem:[%s14281_s1 + $0x152c] ss:$16 sps:$4 sm:$0xff]  }
 0x349   : > { %7583 = vmatpush2.bf16.msra.mxu0 %v10428_v29  ;;  %v10523_v29 = vld [vmem:[%s14281_s1 + $0x172c] ss:$16 sps:$4 sm:$0xff]  }
 0x34a   : > { %7626 = vmatpush2.bf16.msra.mxu1 %v10431_v30  ;;  %7638 = vmatprep.subr.bf16.mxu0 %v10436_v10  ;;  %v10518_v30 = vld [vmem:[%s14281_s1 + $0x1528] ss:$16 sps:$4 sm:$0xff]  }
 0x34b   : > { %7681 = vmatprep.subr.bf16.mxu1 %v10439_v11  ;;  %v10521_v10 = vld [vmem:[%s14281_s1 + $0x1728] ss:$16 sps:$4 sm:$0xff]   ;;  %v10526_v11 = vld [vmem:[%s14281_s1 + $0x150c] ss:$16 sps:$4 sm:$0xff]  }
 0x34c   : > { %7585 = vmatmul.mubr.bf16.vlgmr.msra.gmra.mxu0 %v11878_v44  ;;  %v10451_v44 = vld [vmem:[%s14281_s1 + $0x16ac] ss:$16 sps:$4 sm:$0xff]  }
 0x34d   : > { %7628 = vmatmul.mubr.bf16.vlgmr.msra.gmra.mxu1 %v11882_v45  ;;  %7639 = vmatpush1.bf16.msra.mxu0 %v10434_v55  ;;  %v10446_v45 = vld [vmem:[%s14281_s1 + $0x14a8] ss:$16 sps:$4 sm:$0xff]   ;;  %v10529_v55 = vld [vmem:[%s14281_s1 + $0x170c] ss:$16 sps:$4 sm:$0xff]  }
 0x34e   : > { %7682 = vmatpush1.bf16.msra.mxu1 %v10437_v27  ;;  %7640 = vmatprep.subr.bf16.mxu0 %v10442_v47  ;;  %v10524_v27 = vld [vmem:[%s14281_s1 + $0x1508] ss:$16 sps:$4 sm:$0xff]  }
 0x34f   : > { %7683 = vmatprep.subr.bf16.mxu1 %v10445_v50  ;;  %7670 = vmatprep.mubr.bf16.mxu0 %v11910_v56  ;;  %v10457_v56 = vld [vmem:[%s14281_s1 + $0x168c] ss:$16 sps:$4 sm:$0xff]   ;;  %v10527_v47 = vld [vmem:[%s14281_s1 + $0x1708] ss:$16 sps:$4 sm:$0xff]  }
 0x350   : > { %7713 = vmatprep.mubr.bf16.mxu1 %v11914_v57  ;;  %v10452_v57 = vld [vmem:[%s14281_s1 + $0x1488] ss:$16 sps:$4 sm:$0xff]   ;;  %v10532_v50 = vld [vmem:[%s14281_s1 + $0x18ec] ss:$16 sps:$4 sm:$0xff]  }
 0x351   : > { %7641 = vmatpush1.bf16.msra.mxu0 %v10440_v35  ;;  %v10535_v35 = vld [vmem:[%s14281_s1 + $0x1aec] ss:$16 sps:$4 sm:$0xff]  }
 0x352   : > { %7684 = vmatpush1.bf16.msra.mxu1 %v10443_v16  ;;  %7642 = vmatprep.subr.bf16.mxu0 %v10448_v60  ;;  %v10530_v16 = vld [vmem:[%s14281_s1 + $0x18e8] ss:$16 sps:$4 sm:$0xff]  }
 0x353   : > { %7685 = vmatprep.subr.bf16.mxu1 %v10451_v44  ;;  %v10533_v60 = vld [vmem:[%s14281_s1 + $0x1ae8] ss:$16 sps:$4 sm:$0xff]   ;;  %v10538_v44 = vld [vmem:[%s14281_s1 + $0x18cc] ss:$16 sps:$4 sm:$0xff]  }
 0x355   : > { %7643 = vmatpush1.bf16.msra.mxu0 %v10446_v45  ;;  %v10541_v45 = vld [vmem:[%s14281_s1 + $0x1acc] ss:$16 sps:$4 sm:$0xff]  }
 0x356   : > { %7686 = vmatpush1.bf16.msra.mxu1 %v10449_v39  ;;  %7644 = vmatprep.subr.bf16.mxu0 %v10454_v34  ;;  %v10536_v39 = vld [vmem:[%s14281_s1 + $0x18c8] ss:$16 sps:$4 sm:$0xff]  }
 0x357   : > { %7687 = vmatprep.subr.bf16.mxu1 %v10457_v56  ;;  %v10539_v34 = vld [vmem:[%s14281_s1 + $0x1ac8] ss:$16 sps:$4 sm:$0xff]   ;;  %v10544_v56 = vld [vmem:[%s14281_s1 + $0x18ac] ss:$16 sps:$4 sm:$0xff]  }
 0x359   : > { %7645 = vmatpush1.bf16.msra.mxu0 %v10452_v57  ;;  %v10545_v57 = vld [vmem:[%s14281_s1 + $0x1aa8] ss:$16 sps:$4 sm:$0xff]  }
 0x35a   : > { %7688 = vmatpush1.bf16.msra.mxu1 %v10455_v54  ;;  %7646 = vmatprep.subr.bf16.mxu0 %v10460_v7  ;;  %v10550_v54 = vld [vmem:[%s14281_s1 + $0x188c] ss:$16 sps:$4 sm:$0xff]   ;;  %v10551_v7 = vld [vmem:[%s14281_s1 + $0x1a88] ss:$16 sps:$4 sm:$0xff]  }
 0x35b   : > { %7689 = vmatprep.subr.bf16.mxu1 %v10463_v62  ;;  %v10556_v62 = vld [vmem:[%s14281_s1 + $0x186c] ss:$16 sps:$4 sm:$0xff]  }
 0x35d   : > { %7647 = vmatpush1.bf16.msra.mxu0 %v10458_v4  ;;  %v10559_v4 = vld [vmem:[%s14281_s1 + $0x1a6c] ss:$16 sps:$4 sm:$0xff]  }
 0x35e   : > { %7690 = vmatpush1.bf16.msra.mxu1 %v10461_v9  ;;  %7648 = vmatprep.subr.bf16.mxu0 %v10466_v52  ;;  %v10554_v9 = vld [vmem:[%s14281_s1 + $0x1868] ss:$16 sps:$4 sm:$0xff]  }
 0x35f   : > { %7691 = vmatprep.subr.bf16.mxu1 %v10469_v38  ;;  %v10557_v52 = vld [vmem:[%s14281_s1 + $0x1a68] ss:$16 sps:$4 sm:$0xff]   ;;  %v10562_v38 = vld [vmem:[%s14281_s1 + $0x184c] ss:$16 sps:$4 sm:$0xff]  }
 0x361   : > { %7649 = vmatpush1.bf16.msra.mxu0 %v10464_v2  ;;  %v10565_v2 = vld [vmem:[%s14281_s1 + $0x1a4c] ss:$16 sps:$4 sm:$0xff]  }
 0x362   : > { %7692 = vmatpush1.bf16.msra.mxu1 %v10467_v46  ;;  %7650 = vmatprep.subr.bf16.mxu0 %v10472_v51  ;;  %v10560_v46 = vld [vmem:[%s14281_s1 + $0x1848] ss:$16 sps:$4 sm:$0xff]  }
 0x363   : > { %7693 = vmatprep.subr.bf16.mxu1 %v10475_v32  ;;  %v10563_v51 = vld [vmem:[%s14281_s1 + $0x1a48] ss:$16 sps:$4 sm:$0xff]   ;;  %v10568_v32 = vld [vmem:[%s14281_s1 + $0x182c] ss:$16 sps:$4 sm:$0xff]  }
 0x365   : > { %7651 = vmatpush1.bf16.msra.mxu0 %v10470_v8  ;;  %v10571_v8 = vld [vmem:[%s14281_s1 + $0x1a2c] ss:$16 sps:$4 sm:$0xff]  }
 0x366   : > { %7694 = vmatpush1.bf16.msra.mxu1 %v10473_v43  ;;  %7652 = vmatprep.subr.bf16.mxu0 %v10478_v63  ;;  %v10566_v43 = vld [vmem:[%s14281_s1 + $0x1828] ss:$16 sps:$4 sm:$0xff]  }
 0x367   : > { %7695 = vmatprep.subr.bf16.mxu1 %v10481_v5  ;;  %v10569_v63 = vld [vmem:[%s14281_s1 + $0x1a28] ss:$16 sps:$4 sm:$0xff]   ;;  %v10574_v5 = vld [vmem:[%s14281_s1 + $0x180c] ss:$16 sps:$4 sm:$0xff]  }
 0x369   : > { %7653 = vmatpush1.bf16.msra.mxu0 %v10476_v15  ;;  %v10577_v15 = vld [vmem:[%s14281_s1 + $0x1a0c] ss:$16 sps:$4 sm:$0xff]  }
 0x36a   : > { %7696 = vmatpush1.bf16.msra.mxu1 %v10479_v28  ;;  %7654 = vmatprep.subr.bf16.mxu0 %v10484_v1  ;;  %v10572_v28 = vld [vmem:[%s14281_s1 + $0x1808] ss:$16 sps:$4 sm:$0xff]  }
 0x36b   : > { %7697 = vmatprep.subr.bf16.mxu1 %v10487_v18  ;;  %v10575_v1 = vld [vmem:[%s14281_s1 + $0x1a08] ss:$16 sps:$4 sm:$0xff]   ;;  %v10580_v18 = vld [vmem:[%s14281_s1 + $0x19ec] ss:$16 sps:$4 sm:$0xff]  }
 0x36d   : > { %7655 = vmatpush2.bf16.msra.mxu0 %v10482_v20  ;;  %v10583_v20 = vld [vmem:[%s14281_s1 + $0x1bec] ss:$16 sps:$4 sm:$0xff]  }
 0x36e   : > { %7698 = vmatpush2.bf16.msra.mxu1 %v10485_v19  ;;  %7656 = vmatprep.subr.bf16.mxu0 %v10490_v13  ;;  %v10578_v19 = vld [vmem:[%s14281_s1 + $0x19e8] ss:$16 sps:$4 sm:$0xff]  }
 0x36f   : > { %7699 = vmatprep.subr.bf16.mxu1 %v10493_v58  ;;  %v10581_v13 = vld [vmem:[%s14281_s1 + $0x1be8] ss:$16 sps:$4 sm:$0xff]   ;;  %v10586_v58 = vld [vmem:[%s14281_s1 + $0x19cc] ss:$16 sps:$4 sm:$0xff]  }
 0x371   : > { %7657 = vmatpush2.bf16.msra.mxu0 %v10488_v59  ;;  %v10589_v59 = vld [vmem:[%s14281_s1 + $0x1bcc] ss:$16 sps:$4 sm:$0xff]  }
 0x372   : > { %7700 = vmatpush2.bf16.msra.mxu1 %v10491_v61  ;;  %7658 = vmatprep.subr.bf16.mxu0 %v10496_v41  ;;  %v10584_v61 = vld [vmem:[%s14281_s1 + $0x19c8] ss:$16 sps:$4 sm:$0xff]  }
 0x373   : > { %7701 = vmatprep.subr.bf16.mxu1 %v10499_v23  ;;  %v10587_v41 = vld [vmem:[%s14281_s1 + $0x1bc8] ss:$16 sps:$4 sm:$0xff]   ;;  %v10592_v23 = vld [vmem:[%s14281_s1 + $0x19ac] ss:$16 sps:$4 sm:$0xff]  }
 0x375   : > { %7659 = vmatpush2.bf16.msra.mxu0 %v10494_v17  ;;  %v10595_v17 = vld [vmem:[%s14281_s1 + $0x1bac] ss:$16 sps:$4 sm:$0xff]  }
 0x376   : > { %7702 = vmatpush2.bf16.msra.mxu1 %v10497_v22  ;;  %7660 = vmatprep.subr.bf16.mxu0 %v10502_v21  ;;  %v10590_v22 = vld [vmem:[%s14281_s1 + $0x19a8] ss:$16 sps:$4 sm:$0xff]  }
 0x377   : > { %7703 = vmatprep.subr.bf16.mxu1 %v10505_v48  ;;  %v10593_v21 = vld [vmem:[%s14281_s1 + $0x1ba8] ss:$16 sps:$4 sm:$0xff]   ;;  %v10598_v48 = vld [vmem:[%s14281_s1 + $0x198c] ss:$16 sps:$4 sm:$0xff]  }
 0x379   : > { %7661 = vmatpush2.bf16.msra.mxu0 %v10500_v49  ;;  %v10601_v49 = vld [vmem:[%s14281_s1 + $0x1b8c] ss:$16 sps:$4 sm:$0xff]  }
 0x37a   : > { %7704 = vmatpush2.bf16.msra.mxu1 %v10503_v53  ;;  %7662 = vmatprep.subr.bf16.mxu0 %v10508_v33  ;;  %v10596_v53 = vld [vmem:[%s14281_s1 + $0x1988] ss:$16 sps:$4 sm:$0xff]  }
 0x37b   : > { %7705 = vmatprep.subr.bf16.mxu1 %v10511_v3  ;;  %v10599_v33 = vld [vmem:[%s14281_s1 + $0x1b88] ss:$16 sps:$4 sm:$0xff]   ;;  %v10604_v3 = vld [vmem:[%s14281_s1 + $0x196c] ss:$16 sps:$4 sm:$0xff]  }
 0x37d   : > { %7663 = vmatpush2.bf16.msra.mxu0 %v10506_v42  ;;  %v10607_v42 = vld [vmem:[%s14281_s1 + $0x1b6c] ss:$16 sps:$4 sm:$0xff]  }
 0x37e   : > { %7706 = vmatpush2.bf16.msra.mxu1 %v10509_v6  ;;  %7664 = vmatprep.subr.bf16.mxu0 %v10514_v14  ;;  %v10602_v6 = vld [vmem:[%s14281_s1 + $0x1968] ss:$16 sps:$4 sm:$0xff]  }
 0x37f   : > { %7707 = vmatprep.subr.bf16.mxu1 %v10517_v31  ;;  %v10605_v14 = vld [vmem:[%s14281_s1 + $0x1b68] ss:$16 sps:$4 sm:$0xff]   ;;  %v10610_v31 = vld [vmem:[%s14281_s1 + $0x194c] ss:$16 sps:$4 sm:$0xff]  }
 0x381   : > { %7665 = vmatpush2.bf16.msra.mxu0 %v10512_v12  ;;  %v10613_v12 = vld [vmem:[%s14281_s1 + $0x1b4c] ss:$16 sps:$4 sm:$0xff]  }
 0x382   : > { %7708 = vmatpush2.bf16.msra.mxu1 %v10515_v26  ;;  %7666 = vmatprep.subr.bf16.mxu0 %v10520_v0  ;;  %v10608_v26 = vld [vmem:[%s14281_s1 + $0x1948] ss:$16 sps:$4 sm:$0xff]  }
 0x383   : > { %7709 = vmatprep.subr.bf16.mxu1 %v10523_v29  ;;  %v10611_v0 = vld [vmem:[%s14281_s1 + $0x1b48] ss:$16 sps:$4 sm:$0xff]   ;;  %v10616_v29 = vld [vmem:[%s14281_s1 + $0x192c] ss:$16 sps:$4 sm:$0xff]  }
 0x385   : > { %7667 = vmatpush2.bf16.msra.mxu0 %v10518_v30  ;;  %v10619_v30 = vld [vmem:[%s14281_s1 + $0x1b2c] ss:$16 sps:$4 sm:$0xff]  }
 0x386   : > { %7710 = vmatpush2.bf16.msra.mxu1 %v10521_v10  ;;  %7668 = vmatprep.subr.bf16.mxu0 %v10526_v11  ;;  %v10614_v10 = vld [vmem:[%s14281_s1 + $0x1928] ss:$16 sps:$4 sm:$0xff]  }
 0x387   : > { %7711 = vmatprep.subr.bf16.mxu1 %v10529_v55  ;;  %v10617_v11 = vld [vmem:[%s14281_s1 + $0x1b28] ss:$16 sps:$4 sm:$0xff]   ;;  %v10622_v55 = vld [vmem:[%s14281_s1 + $0x190c] ss:$16 sps:$4 sm:$0xff]  }
 0x389   : > { %7669 = vmatpush2.bf16.msra.mxu0 %v10524_v27  ;;  %v10625_v27 = vld [vmem:[%s14281_s1 + $0x1b0c] ss:$16 sps:$4 sm:$0xff]  }
 0x38a   : > { %7712 = vmatpush2.bf16.msra.mxu1 %v10527_v47  ;;  %7724 = vmatprep.subr.bf16.mxu0 %v10532_v50  ;;  %v10620_v47 = vld [vmem:[%s14281_s1 + $0x1908] ss:$16 sps:$4 sm:$0xff]  }
 0x38b   : > { %7767 = vmatprep.subr.bf16.mxu1 %v10535_v35  ;;  %v10623_v50 = vld [vmem:[%s14281_s1 + $0x1b08] ss:$16 sps:$4 sm:$0xff]   ;;  %v10628_v35 = vld [vmem:[%s14281_s1 + $0x1cec] ss:$16 sps:$4 sm:$0xff]  }
 0x38c   : > { %7671 = vmatmul.mubr.bf16.vlgmr.msra.gmra.mxu0 %v12102_v24  ;;  %v10547_v24 = vld [vmem:[%s14281_s1 + $0x1aac] ss:$16 sps:$4 sm:$0xff]  }
 0x38d   : > { %7714 = vmatmul.mubr.bf16.vlgmr.msra.gmra.mxu1 %v12106_v25  ;;  %7725 = vmatpush1.bf16.msra.mxu0 %v10530_v16  ;;  %v10542_v25 = vld [vmem:[%s14281_s1 + $0x18a8] ss:$16 sps:$4 sm:$0xff]   ;;  %v10631_v16 = vld [vmem:[%s14281_s1 + $0x1eec] ss:$16 sps:$4 sm:$0xff]  }
 0x38e   : > { %7768 = vmatpush1.bf16.msra.mxu1 %v10533_v60  ;;  %7726 = vmatprep.subr.bf16.mxu0 %v10538_v44  ;;  %v10626_v60 = vld [vmem:[%s14281_s1 + $0x1ce8] ss:$16 sps:$4 sm:$0xff]  }
 0x38f   : > { %7769 = vmatprep.subr.bf16.mxu1 %v10541_v45  ;;  %7756 = vmatprep.mubr.bf16.mxu0 %v12134_v36  ;;  %v10553_v36 = vld [vmem:[%s14281_s1 + $0x1a8c] ss:$16 sps:$4 sm:$0xff]   ;;  %v10629_v44 = vld [vmem:[%s14281_s1 + $0x1ee8] ss:$16 sps:$4 sm:$0xff]  }
 0x390   : > { %7799 = vmatprep.mubr.bf16.mxu1 %v12138_v37  ;;  %v10548_v37 = vld [vmem:[%s14281_s1 + $0x1888] ss:$16 sps:$4 sm:$0xff]   ;;  %v10634_v45 = vld [vmem:[%s14281_s1 + $0x1ccc] ss:$16 sps:$4 sm:$0xff]  }
 0x391   : > { %7727 = vmatpush1.bf16.msra.mxu0 %v10536_v39  ;;  %v10637_v39 = vld [vmem:[%s14281_s1 + $0x1ecc] ss:$16 sps:$4 sm:$0xff]  }
 0x392   : > { %7770 = vmatpush1.bf16.msra.mxu1 %v10539_v34  ;;  %7728 = vmatprep.subr.bf16.mxu0 %v10544_v56  ;;  %v14294_v34 = vld [vmem:[#allocation2_spill] sm:$0xff]  ;;  %v10632_v56 = vld [vmem:[%s14281_s1 + $0x1cc8] ss:$16 sps:$4 sm:$0xff]  }
 0x393   : > { %7771 = vmatprep.subr.bf16.mxu1 %v10547_v24  ;;  %v10635_v24 = vld [vmem:[%s14281_s1 + $0x1ec8] ss:$16 sps:$4 sm:$0xff]  }
 0x395   : > { %7729 = vmatpush1.bf16.msra.mxu0 %v10542_v25  ;;  %v10640_v25 = vld [vmem:[%s14281_s1 + $0x1cac] ss:$16 sps:$4 sm:$0xff]  }
 0x396   : > { %7772 = vmatpush1.bf16.msra.mxu1 %v10545_v57  ;;  %7730 = vmatprep.subr.bf16.mxu0 %v10550_v54  ;;  %v14295_v57 = vld [vmem:[#allocation3_spill] sm:$0xff]  ;;  %v14296_v54 = vld [vmem:[#allocation4_spill] sm:$0xff] }
 0x397   : > { %7773 = vmatprep.subr.bf16.mxu1 %v10553_v36  ;;  %v10638_v36 = vld [vmem:[%s14281_s1 + $0x1ca8] ss:$16 sps:$4 sm:$0xff]  }
 0x399   : > { %7731 = vmatpush1.bf16.msra.mxu0 %v10548_v37  ;;  %v10641_v37 = vld [vmem:[%s14281_s1 + $0x1ea8] ss:$16 sps:$4 sm:$0xff]  }
 0x39a   : > { %7774 = vmatpush1.bf16.msra.mxu1 %v10551_v7  ;;  %7732 = vmatprep.subr.bf16.mxu0 %v10556_v62  ;;  %v10646_v7 = vld [vmem:[%s14281_s1 + $0x1c8c] ss:$16 sps:$4 sm:$0xff]  }
 0x39b   : > { %7775 = vmatprep.subr.bf16.mxu1 %v10559_v4  ;;  %v10649_v62 = vld [vmem:[%s14281_s1 + $0x1e8c] ss:$16 sps:$4 sm:$0xff]   ;;  %v10644_v4 = vld [vmem:[%s14281_s1 + $0x1c88] ss:$16 sps:$4 sm:$0xff]  }
 0x39d   : > { %7733 = vmatpush1.bf16.msra.mxu0 %v10554_v9  ;;  %v10647_v9 = vld [vmem:[%s14281_s1 + $0x1e88] ss:$16 sps:$4 sm:$0xff]  }
 0x39e   : > { %7776 = vmatpush1.bf16.msra.mxu1 %v10557_v52  ;;  %7734 = vmatprep.subr.bf16.mxu0 %v10562_v38  ;;  %v10652_v52 = vld [vmem:[%s14281_s1 + $0x1c6c] ss:$16 sps:$4 sm:$0xff]  }
 0x39f   : > { %7777 = vmatprep.subr.bf16.mxu1 %v10565_v2  ;;  %v10655_v38 = vld [vmem:[%s14281_s1 + $0x1e6c] ss:$16 sps:$4 sm:$0xff]   ;;  %v10650_v2 = vld [vmem:[%s14281_s1 + $0x1c68] ss:$16 sps:$4 sm:$0xff]  }
 0x3a1   : > { %7735 = vmatpush1.bf16.msra.mxu0 %v10560_v46  ;;  %v10653_v46 = vld [vmem:[%s14281_s1 + $0x1e68] ss:$16 sps:$4 sm:$0xff]  }
 0x3a2   : > { %7778 = vmatpush1.bf16.msra.mxu1 %v10563_v51  ;;  %7736 = vmatprep.subr.bf16.mxu0 %v10568_v32  ;;  %v10658_v51 = vld [vmem:[%s14281_s1 + $0x1c4c] ss:$16 sps:$4 sm:$0xff]  }
 0x3a3   : > { %7779 = vmatprep.subr.bf16.mxu1 %v10571_v8  ;;  %v10661_v32 = vld [vmem:[%s14281_s1 + $0x1e4c] ss:$16 sps:$4 sm:$0xff]   ;;  %v10656_v8 = vld [vmem:[%s14281_s1 + $0x1c48] ss:$16 sps:$4 sm:$0xff]  }
 0x3a5   : > { %7737 = vmatpush1.bf16.msra.mxu0 %v10566_v43  ;;  %v10659_v43 = vld [vmem:[%s14281_s1 + $0x1e48] ss:$16 sps:$4 sm:$0xff]  }
 0x3a6   : > { %7780 = vmatpush1.bf16.msra.mxu1 %v10569_v63  ;;  %7738 = vmatprep.subr.bf16.mxu0 %v10574_v5  ;;  %v10664_v63 = vld [vmem:[%s14281_s1 + $0x1c2c] ss:$16 sps:$4 sm:$0xff]  }
 0x3a7   : > { %7781 = vmatprep.subr.bf16.mxu1 %v10577_v15  ;;  %v10667_v5 = vld [vmem:[%s14281_s1 + $0x1e2c] ss:$16 sps:$4 sm:$0xff]   ;;  %v10662_v15 = vld [vmem:[%s14281_s1 + $0x1c28] ss:$16 sps:$4 sm:$0xff]  }
 0x3a9   : > { %7739 = vmatpush1.bf16.msra.mxu0 %v10572_v28  ;;  %v10665_v28 = vld [vmem:[%s14281_s1 + $0x1e28] ss:$16 sps:$4 sm:$0xff]  }
 0x3aa   : > { %7782 = vmatpush1.bf16.msra.mxu1 %v10575_v1  ;;  %7740 = vmatprep.subr.bf16.mxu0 %v10580_v18  ;;  %v10670_v1 = vld [vmem:[%s14281_s1 + $0x1c0c] ss:$16 sps:$4 sm:$0xff]  }
 0x3ab   : > { %7783 = vmatprep.subr.bf16.mxu1 %v10583_v20  ;;  %v10673_v18 = vld [vmem:[%s14281_s1 + $0x1e0c] ss:$16 sps:$4 sm:$0xff]   ;;  %v10668_v20 = vld [vmem:[%s14281_s1 + $0x1c08] ss:$16 sps:$4 sm:$0xff]  }
 0x3ad   : > { %7741 = vmatpush2.bf16.msra.mxu0 %v10578_v19  ;;  %v10671_v19 = vld [vmem:[%s14281_s1 + $0x1e08] ss:$16 sps:$4 sm:$0xff]  }
 0x3ae   : > { %7784 = vmatpush2.bf16.msra.mxu1 %v10581_v13  ;;  %7742 = vmatprep.subr.bf16.mxu0 %v10586_v58  ;;  %v10676_v13 = vld [vmem:[%s14281_s1 + $0x1dec] ss:$16 sps:$4 sm:$0xff]  }
 0x3af   : > { %7785 = vmatprep.subr.bf16.mxu1 %v10589_v59  ;;  %v10679_v58 = vld [vmem:[%s14281_s1 + $0x1fec] ss:$16 sps:$4 sm:$0xff]   ;;  %v10674_v59 = vld [vmem:[%s14281_s1 + $0x1de8] ss:$16 sps:$4 sm:$0xff]  }
 0x3b1   : > { %7743 = vmatpush2.bf16.msra.mxu0 %v10584_v61  ;;  %v10677_v61 = vld [vmem:[%s14281_s1 + $0x1fe8] ss:$16 sps:$4 sm:$0xff]  }
 0x3b2   : > { %7786 = vmatpush2.bf16.msra.mxu1 %v10587_v41  ;;  %7744 = vmatprep.subr.bf16.mxu0 %v10592_v23  ;;  %v10682_v41 = vld [vmem:[%s14281_s1 + $0x1dcc] ss:$16 sps:$4 sm:$0xff]  }
 0x3b3   : > { %7787 = vmatprep.subr.bf16.mxu1 %v10595_v17  ;;  %v10685_v23 = vld [vmem:[%s14281_s1 + $0x1fcc] ss:$16 sps:$4 sm:$0xff]   ;;  %v10680_v17 = vld [vmem:[%s14281_s1 + $0x1dc8] ss:$16 sps:$4 sm:$0xff]  }
 0x3b5   : > { %7745 = vmatpush2.bf16.msra.mxu0 %v10590_v22  ;;  %v10683_v22 = vld [vmem:[%s14281_s1 + $0x1fc8] ss:$16 sps:$4 sm:$0xff]  }
 0x3b6   : > { %7788 = vmatpush2.bf16.msra.mxu1 %v10593_v21  ;;  %7746 = vmatprep.subr.bf16.mxu0 %v10598_v48  ;;  %v10688_v21 = vld [vmem:[%s14281_s1 + $0x1dac] ss:$16 sps:$4 sm:$0xff]  }
 0x3b7   : > { %7789 = vmatprep.subr.bf16.mxu1 %v10601_v49  ;;  %v10691_v48 = vld [vmem:[%s14281_s1 + $0x1fac] ss:$16 sps:$4 sm:$0xff]   ;;  %v10686_v49 = vld [vmem:[%s14281_s1 + $0x1da8] ss:$16 sps:$4 sm:$0xff]  }
 0x3b9   : > { %7747 = vmatpush2.bf16.msra.mxu0 %v10596_v53  ;;  %v10689_v53 = vld [vmem:[%s14281_s1 + $0x1fa8] ss:$16 sps:$4 sm:$0xff]  }
 0x3ba   : > { %7790 = vmatpush2.bf16.msra.mxu1 %v10599_v33  ;;  %7748 = vmatprep.subr.bf16.mxu0 %v10604_v3  ;;  %v10694_v33 = vld [vmem:[%s14281_s1 + $0x1d8c] ss:$16 sps:$4 sm:$0xff]  }
 0x3bb   : > { %7791 = vmatprep.subr.bf16.mxu1 %v10607_v42  ;;  %v10697_v3 = vld [vmem:[%s14281_s1 + $0x1f8c] ss:$16 sps:$4 sm:$0xff]   ;;  %v10692_v42 = vld [vmem:[%s14281_s1 + $0x1d88] ss:$16 sps:$4 sm:$0xff]  }
 0x3bd   : > { %7749 = vmatpush2.bf16.msra.mxu0 %v10602_v6  ;;  %v10695_v6 = vld [vmem:[%s14281_s1 + $0x1f88] ss:$16 sps:$4 sm:$0xff]  }
 0x3be   : > { %7792 = vmatpush2.bf16.msra.mxu1 %v10605_v14  ;;  %7750 = vmatprep.subr.bf16.mxu0 %v10610_v31  ;;  %v10700_v14 = vld [vmem:[%s14281_s1 + $0x1d6c] ss:$16 sps:$4 sm:$0xff]  }
 0x3bf   : > { %7793 = vmatprep.subr.bf16.mxu1 %v10613_v12  ;;  %v10703_v31 = vld [vmem:[%s14281_s1 + $0x1f6c] ss:$16 sps:$4 sm:$0xff]   ;;  %v10698_v12 = vld [vmem:[%s14281_s1 + $0x1d68] ss:$16 sps:$4 sm:$0xff]  }
 0x3c1   : > { %7751 = vmatpush2.bf16.msra.mxu0 %v10608_v26  ;;  %v10701_v26 = vld [vmem:[%s14281_s1 + $0x1f68] ss:$16 sps:$4 sm:$0xff]  }
 0x3c2   : > { %7794 = vmatpush2.bf16.msra.mxu1 %v10611_v0  ;;  %7752 = vmatprep.subr.bf16.mxu0 %v10616_v29  ;;  %v10706_v0 = vld [vmem:[%s14281_s1 + $0x1d4c] ss:$16 sps:$4 sm:$0xff]  }
 0x3c3   : > { %7795 = vmatprep.subr.bf16.mxu1 %v10619_v30  ;;  %v10709_v29 = vld [vmem:[%s14281_s1 + $0x1f4c] ss:$16 sps:$4 sm:$0xff]   ;;  %v10704_v30 = vld [vmem:[%s14281_s1 + $0x1d48] ss:$16 sps:$4 sm:$0xff]  }
 0x3c5   : > { %7753 = vmatpush2.bf16.msra.mxu0 %v10614_v10  ;;  %v10707_v10 = vld [vmem:[%s14281_s1 + $0x1f48] ss:$16 sps:$4 sm:$0xff]  }
 0x3c6   : > { %7796 = vmatpush2.bf16.msra.mxu1 %v10617_v11  ;;  %7754 = vmatprep.subr.bf16.mxu0 %v10622_v55  ;;  %v10712_v11 = vld [vmem:[%s14281_s1 + $0x1d2c] ss:$16 sps:$4 sm:$0xff]  }
 0x3c7   : > { %7797 = vmatprep.subr.bf16.mxu1 %v10625_v27  ;;  %v10715_v55 = vld [vmem:[%s14281_s1 + $0x1f2c] ss:$16 sps:$4 sm:$0xff]   ;;  %v10710_v27 = vld [vmem:[%s14281_s1 + $0x1d28] ss:$16 sps:$4 sm:$0xff]  }
 0x3c9   : > { %7755 = vmatpush2.bf16.msra.mxu0 %v10620_v47  ;;  %v10713_v47 = vld [vmem:[%s14281_s1 + $0x1f28] ss:$16 sps:$4 sm:$0xff]  }
 0x3ca   : > { %7798 = vmatpush2.bf16.msra.mxu1 %v10623_v50  ;;  %7810 = vmatprep.subr.bf16.mxu0 %v10628_v35  ;;  %v10718_v50 = vld [vmem:[%s14281_s1 + $0x1d0c] ss:$16 sps:$4 sm:$0xff]  }
 0x3cb   : > { %7853 = vmatprep.subr.bf16.mxu1 %v10631_v16  ;;  %v10721_v35 = vld [vmem:[%s14281_s1 + $0x1f0c] ss:$16 sps:$4 sm:$0xff]   ;;  %v10716_v16 = vld [vmem:[%s14281_s1 + $0x1d08] ss:$16 sps:$4 sm:$0xff]  }
 0x3cc   : > { %7757 = vmatmul.mubr.bf16.vlgmr.msra.gmra.mxu0 %v12338_v40  ;;  %v10643_v40 = vld [vmem:[%s14281_s1 + $0x1eac] ss:$16 sps:$4 sm:$0xff]  }
 0x3cd   : > { %7800 = vmatmul.mubr.bf16.vlgmr.msra.gmra.mxu1 %v14294_v34  ;;  %7811 = vmatpush1.bf16.msra.mxu0 %v10626_v60  ;;  %v10719_v60 = vld [vmem:[%s14281_s1 + $0x1f08] ss:$16 sps:$4 sm:$0xff]   ;;  %v7285_v34 = vpop.f32.mrf.mxu1 }
 0x3ce   : > { %7854 = vmatpush1.bf16.msra.mxu1 %v10629_v44  ;;  %7812 = vmatprep.subr.bf16.mxu0 %v10634_v45  ;;  %v14297_v44 = vld [vmem:[#allocation5_spill] sm:$0xff]  ;;  %v14298_v45 = vld [vmem:[#allocation6_spill] sm:$0xff] }
 0x3cf   : > { %7855 = vmatprep.subr.bf16.mxu1 %v10637_v39  ;;  %7842 = vmatprep.mubr.bf16.mxu0 %v14295_v57  ;;  %v7242_v39 = vpop.f32.mrf.mxu0 }
 0x3d0   : > { %7885 = vmatprep.mubr.bf16.mxu1 %v14296_v54 }
 0x3d1   : > { %7813 = vmatpush1.bf16.msra.mxu0 %v10632_v56  ;;  %v7244_v56 = vpop.f32.mrf.mxu0 }
 0x3d2   : > { %7856 = vmatpush1.bf16.msra.mxu1 %v10635_v24  ;;  %7814 = vmatprep.subr.bf16.mxu0 %v10640_v25  ;;  %v7287_v24 = vpop.f32.mrf.mxu1 }
 0x3d3   : > { %7857 = vmatprep.subr.bf16.mxu1 %v10643_v40  ;;  %v7246_v25 = vpop.f32.mrf.mxu0 }
 0x3d4   : > { %v7289_v40 = vpop.f32.mrf.mxu1 }
 0x3d5   : > { %7815 = vmatpush1.bf16.msra.mxu0 %v10638_v36  ;;  %v7248_v57 = vpop.f32.mrf.mxu0 }
 0x3d6   : > { %7858 = vmatpush1.bf16.msra.mxu1 %v10641_v37  ;;  %7816 = vmatprep.subr.bf16.mxu0 %v10646_v7  ;;  %v7291_v54 = vpop.f32.mrf.mxu1 }
 0x3d7   : > { %7859 = vmatprep.subr.bf16.mxu1 %v10649_v62  ;;  %v7328_v36 = vpop.f32.mrf.mxu0 }
 0x3d8   : > { %v7371_v37 = vpop.f32.mrf.mxu1 }
 0x3d9   : > { %7817 = vmatpush1.bf16.msra.mxu0 %v10644_v4  ;;  %v7330_v7 = vpop.f32.mrf.mxu0 }
 0x3da   : > { %7860 = vmatpush1.bf16.msra.mxu1 %v10647_v9  ;;  %7818 = vmatprep.subr.bf16.mxu0 %v10652_v52  ;;  %v7373_v62 = vpop.f32.mrf.mxu1 }
 0x3db   : > { %7861 = vmatprep.subr.bf16.mxu1 %v10655_v38  ;;  %v7332_v4 = vpop.f32.mrf.mxu0 }
 0x3dc   : > { %v7375_v9 = vpop.f32.mrf.mxu1 }
 0x3dd   : > { %7819 = vmatpush1.bf16.msra.mxu0 %v10650_v2  ;;  %v7334_v52 = vpop.f32.mrf.mxu0 }
 0x3de   : > { %7862 = vmatpush1.bf16.msra.mxu1 %v10653_v46  ;;  %7820 = vmatprep.subr.bf16.mxu0 %v10658_v51  ;;  %v7377_v38 = vpop.f32.mrf.mxu1 }
 0x3df   : > { %7863 = vmatprep.subr.bf16.mxu1 %v10661_v32  ;;  %v7414_v2 = vpop.f32.mrf.mxu0 }
 0x3e0   : > { %v7457_v46 = vpop.f32.mrf.mxu1 }
 0x3e1   : > { %7821 = vmatpush1.bf16.msra.mxu0 %v10656_v8  ;;  %v7416_v51 = vpop.f32.mrf.mxu0 }
 0x3e2   : > { %7864 = vmatpush1.bf16.msra.mxu1 %v10659_v43  ;;  %7822 = vmatprep.subr.bf16.mxu0 %v10664_v63  ;;  %v7459_v32 = vpop.f32.mrf.mxu1 }
 0x3e3   : > { %7865 = vmatprep.subr.bf16.mxu1 %v10667_v5  ;;  %v7418_v8 = vpop.f32.mrf.mxu0 }
 0x3e4   : > { %v7461_v43 = vpop.f32.mrf.mxu1 }
 0x3e5   : > { %7823 = vmatpush1.bf16.msra.mxu0 %v10662_v15  ;;  %v7420_v63 = vpop.f32.mrf.mxu0 }
 0x3e6   : > { %7866 = vmatpush1.bf16.msra.mxu1 %v10665_v28  ;;  %7824 = vmatprep.subr.bf16.mxu0 %v10670_v1  ;;  %v7463_v5 = vpop.f32.mrf.mxu1 }
 0x3e7   : > { %7867 = vmatprep.subr.bf16.mxu1 %v10673_v18  ;;  %v7500_v15 = vpop.f32.mrf.mxu0 }
 0x3e8   : > { %v7543_v28 = vpop.f32.mrf.mxu1 }
 0x3e9   : > { %7825 = vmatpush1.bf16.msra.mxu0 %v10668_v20  ;;  %v7502_v1 = vpop.f32.mrf.mxu0 }
 0x3ea   : > { %7868 = vmatpush1.bf16.msra.mxu1 %v10671_v19  ;;  %7826 = vmatprep.subr.bf16.mxu0 %v10676_v13  ;;  %v7545_v18 = vpop.f32.mrf.mxu1 }
 0x3eb   : > { %7869 = vmatprep.subr.bf16.mxu1 %v10679_v58  ;;  %v7504_v20 = vpop.f32.mrf.mxu0 }
 0x3ec   : > { %v7547_v19 = vpop.f32.mrf.mxu1 }
 0x3ed   : > { %7827 = vmatpush2.bf16.msra.mxu0 %v10674_v59  ;;  %v7506_v13 = vpop.f32.mrf.mxu0 }
 0x3ee   : > { %7870 = vmatpush2.bf16.msra.mxu1 %v10677_v61  ;;  %7828 = vmatprep.subr.bf16.mxu0 %v10682_v41  ;;  %v7549_v58 = vpop.f32.mrf.mxu1 }
 0x3ef   : > { %7871 = vmatprep.subr.bf16.mxu1 %v10685_v23 }
 0x3f1   : > { %7829 = vmatpush2.bf16.msra.mxu0 %v10680_v17  ;;  %v7286_v17 = vadd.f32 %v7285_v34, %v7242_v39 }
 0x3f2   : > { %7872 = vmatpush2.bf16.msra.mxu1 %v10683_v22  ;;  %7830 = vmatprep.subr.bf16.mxu0 %v10688_v21  ;;  %v7288_v22 = vadd.f32 %v7287_v24, %v7244_v56 }
 0x3f3   : > { %7873 = vmatprep.subr.bf16.mxu1 %v10691_v48  ;;  %v7329_v21 = vadd.f32 %v7328_v36, %v7286_v17 }
 0x3f5   : > { %7831 = vmatpush2.bf16.msra.mxu0 %v10686_v49 }
 0x3f6   : > { %7874 = vmatpush2.bf16.msra.mxu1 %v10689_v53  ;;  %7832 = vmatprep.subr.bf16.mxu0 %v10694_v33  ;;  %v7290_v53 = vadd.f32 %v7289_v40, %v7246_v25  ;;  %v7331_v33 = vadd.f32 %v7330_v7, %v7288_v22 }
 0x3f7   : > { %7875 = vmatprep.subr.bf16.mxu1 %v10697_v3  ;;  %v7292_v3 = vadd.f32 %v7291_v54, %v7248_v57 }
 0x3f9   : > { %7833 = vmatpush2.bf16.msra.mxu0 %v10692_v42  ;;  %v7372_v42 = vadd.f32 %v7371_v37, %v7329_v21 }
 0x3fa   : > { %7876 = vmatpush2.bf16.msra.mxu1 %v10695_v6  ;;  %7834 = vmatprep.subr.bf16.mxu0 %v10700_v14  ;;  %v7333_v6 = vadd.f32 %v7332_v4, %v7290_v53 }
 0x3fb   : > { %7877 = vmatprep.subr.bf16.mxu1 %v10703_v31 }
 0x3fd   : > { %7835 = vmatpush2.bf16.msra.mxu0 %v10698_v12  ;;  %v7374_v12 = vadd.f32 %v7373_v62, %v7331_v33 }
 0x3fe   : > { %7878 = vmatpush2.bf16.msra.mxu1 %v10701_v26  ;;  %7836 = vmatprep.subr.bf16.mxu0 %v10706_v0  ;;  %v7335_v26 = vadd.f32 %v7334_v52, %v7292_v3  ;;  %v7415_v0 = vadd.f32 %v7414_v2, %v7372_v42 }
 0x3ff   : > { %7879 = vmatprep.subr.bf16.mxu1 %v10709_v29 }
 0x401   : > { %7837 = vmatpush2.bf16.msra.mxu0 %v10704_v30 }
 0x402   : > { %7880 = vmatpush2.bf16.msra.mxu1 %v10707_v10  ;;  %7838 = vmatprep.subr.bf16.mxu0 %v10712_v11  ;;  %v7376_v10 = vadd.f32 %v7375_v9, %v7333_v6  ;;  %v7417_v11 = vadd.f32 %v7416_v51, %v7374_v12 }
 0x403   : > { %7881 = vmatprep.subr.bf16.mxu1 %v10715_v55  ;;  %v7378_v55 = vadd.f32 %v7377_v38, %v7335_v26 }
 0x405   : > { %7839 = vmatpush2.bf16.msra.mxu0 %v10710_v27  ;;  %v7458_v27 = vadd.f32 %v7457_v46, %v7415_v0 }
 0x406   : > { %7882 = vmatpush2.bf16.msra.mxu1 %v10713_v47  ;;  %7840 = vmatprep.subr.bf16.mxu0 %v10718_v50  ;;  %v7419_v47 = vadd.f32 %v7418_v8, %v7376_v10 }
 0x407   : > { %7883 = vmatprep.subr.bf16.mxu1 %v10721_v35 }
 0x409   : > { %7841 = vmatpush2.bf16.msra.mxu0 %v10716_v16  ;;  %v7460_v16 = vadd.f32 %v7459_v32, %v7417_v11 }
 0x40a   : > { %7884 = vmatpush2.bf16.msra.mxu1 %v10719_v60  ;;  %v7421_v60 = vadd.f32 %v7420_v63, %v7378_v55 }
 0x40b   : > { %v7503_v39 = vadd.f32 %v7502_v1, %v7460_v16 }
 0x40c   : > { %7843 = vmatmul.mubr.bf16.vlgmr.msra.gmra.mxu0 %v14297_v44  ;;  %v7586_v59 = vpop.f32.mrf.mxu0  ;;  %v7501_v44 = vadd.f32 %v7500_v15, %v7458_v27  ;;  %v7464_v24 = vadd.f32 %v7463_v5, %v7421_v60 }
 0x40d   : > { %7886 = vmatmul.mubr.bf16.vlgmr.msra.gmra.mxu1 %v14298_v45  ;;  %v7629_v61 = vpop.f32.mrf.mxu1  ;;  %v7462_v45 = vadd.f32 %v7461_v43, %v7419_v47  ;;  %v7546_v57 = vadd.f32 %v7545_v18, %v7503_v39 }
 0x40e   : > { %v7588_v41 = vpop.f32.mrf.mxu0  ;;  %v7544_v25 = vadd.f32 %v7543_v28, %v7501_v44  ;;  %v7507_v54 = vadd.f32 %v7506_v13, %v7464_v24 }
 0x40f   : > { %v7631_v23 = vpop.f32.mrf.mxu1  ;;  %v7505_v40 = vadd.f32 %v7504_v20, %v7462_v45  ;;  %v7589_v4 = vadd.f32 %v7588_v41, %v7546_v57 }
 0x410   : > { %v7590_v48 = vpop.f32.mrf.mxu0  ;;  %v7587_v36 = vadd.f32 %v7586_v59, %v7544_v25  ;;  %v7550_v38 = vadd.f32 %v7549_v58, %v7507_v54 }
 0x411   : > { %v7633_v49 = vpop.f32.mrf.mxu1  ;;  %v7548_v62 = vadd.f32 %v7547_v19, %v7505_v40  ;;  %v7632_v51 = vadd.f32 %v7631_v23, %v7589_v4 }
 0x412   : > { %v7592_v14 = vpop.f32.mrf.mxu0  ;;  %v7630_v2 = vadd.f32 %v7629_v61, %v7587_v36 }
 0x413   : > { %v7635_v31 = vpop.f32.mrf.mxu1  ;;  %v7591_v46 = vadd.f32 %v7590_v48, %v7548_v62  ;;  %v7593_v32 = vadd.f32 %v7592_v14, %v7550_v38 }
 0x415   : > { %v7634_v5 = vadd.f32 %v7633_v49, %v7591_v46  ;;  %v7636_v28 = vadd.f32 %v7635_v31, %v7593_v32 }
 0x44c   : > { %v7672_v29 = vpop.f32.mrf.mxu0 }
 0x44d   : > { %v7715_v30 = vpop.f32.mrf.mxu1  ;;  %v7673_v8 = vadd.f32 %v7672_v29, %v7630_v2 }
 0x44e   : > { %v7674_v50 = vpop.f32.mrf.mxu0 }
 0x44f   : > { %v7717_v35 = vpop.f32.mrf.mxu1  ;;  %v7675_v15 = vadd.f32 %v7674_v50, %v7632_v51  ;;  %v7716_v1 = vadd.f32 %v7715_v30, %v7673_v8 }
 0x450   : > { %v7676_v34 = vpop.f32.mrf.mxu0 }
 0x451   : > { %v7719_v56 = vpop.f32.mrf.mxu1  ;;  %v7677_v18 = vadd.f32 %v7676_v34, %v7634_v5  ;;  %v7718_v59 = vadd.f32 %v7717_v35, %v7675_v15 }
 0x452   : > { %v7678_v37 = vpop.f32.mrf.mxu0 }
 0x453   : > { %v7721_v7 = vpop.f32.mrf.mxu1  ;;  %v7679_v19 = vadd.f32 %v7678_v37, %v7636_v28  ;;  %v7720_v17 = vadd.f32 %v7719_v56, %v7677_v18 }
 0x455   : > { %v7722_v21 = vadd.f32 %v7721_v7, %v7679_v19 }
 0x48c   : > { %v7758_v9 = vpop.f32.mrf.mxu0 }
 0x48d   : > { %v7801_v52 = vpop.f32.mrf.mxu1  ;;  %v7759_v41 = vadd.f32 %v7758_v9, %v7716_v1 }
 0x48e   : > { %v7760_v43 = vpop.f32.mrf.mxu0 }
 0x48f   : > { %v7803_v63 = vpop.f32.mrf.mxu1  ;;  %v7761_v22 = vadd.f32 %v7760_v43, %v7718_v59  ;;  %v7802_v23 = vadd.f32 %v7801_v52, %v7759_v41 }
 0x490   : > { %v7762_v20 = vpop.f32.mrf.mxu0 }
 0x491   : > { %v7805_v13 = vpop.f32.mrf.mxu1  ;;  %v7763_v48 = vadd.f32 %v7762_v20, %v7720_v17  ;;  %v7804_v3 = vadd.f32 %v7803_v63, %v7761_v22 }
 0x492   : > { %v7764_v58 = vpop.f32.mrf.mxu0 }
 0x493   : > { %v7807_v61 = vpop.f32.mrf.mxu1  ;;  %v7765_v49 = vadd.f32 %v7764_v58, %v7722_v21  ;;  %v7806_v31 = vadd.f32 %v7805_v13, %v7763_v48 }
 0x495   : > { %v7808_v29 = vadd.f32 %v7807_v61, %v7765_v49 }
 0x4cc   : > { %v7844_v53 = vpop.f32.mrf.mxu0 }
 0x4cd   : > { %v7887_v33 = vpop.f32.mrf.mxu1  ;;  %v7845_v42 = vadd.f32 %v7844_v53, %v7802_v23 }
 0x4ce   : > { %v7846_v6 = vpop.f32.mrf.mxu0 }
 0x4cf   : > { %v7889_v14 = vpop.f32.mrf.mxu1  ;;  %v7847_v12 = vadd.f32 %v7846_v6, %v7804_v3  ;;  %v7888_v30 = vadd.f32 %v7887_v33, %v7845_v42 }
 0x4d0   : > { %v7848_v26 = vpop.f32.mrf.mxu0 }
 0x4d1   : > { %v7891_v0 = vpop.f32.mrf.mxu1  ;;  %v7890_v10 = vadd.f32 %v7889_v14, %v7847_v12  ;;  %v7849_v11 = vadd.f32 %v7848_v26, %v7806_v31  ;;  %v7930_v16 = vmul.f32 %v7888_v30, %v7888_v30 }
 0x4d2   : > { %v7850_v55 = vpop.f32.mrf.mxu0 }
 0x4d3   : > { %v9175_v27 = vpack.c.bf16 %v7890_v10, %v7888_v30  ;;  %v7892_v47 = vadd.f32 %v7891_v0, %v7849_v11  ;;  %v7851_v50 = vadd.f32 %v7850_v55, %v7808_v29  ;;  %v7893_v35 = vpop.f32.mrf.mxu1  ;;  %v7931_v39 = vmul.f32 %v7890_v10, %v7890_v10 }
 0x4d5   : > { %7993 = vst [vmem:[%s13310_s9 + $0x8] sm:$0xff] %v9175_v27  ;;  %v7910_v60 = vadd.f32 %v7892_v47, %v7888_v30  ;;  %v7934_v44 = vmul.f32 %v7892_v47, %v7892_v47  ;;  %v7894_v45 = vadd.f32 %v7893_v35, %v7851_v50 }
 0x4d7   : > { %v7911_v34 = vrot.slane %v7910_v60, 4  ;;  %v7950_v56 = vadd.f32 %v7934_v44, %v7930_v16  ;;  %v7917_v24 = vadd.f32 %v7894_v45, %v7890_v10  ;;  %v7935_v25 = vmul.f32 %v7894_v45, %v7894_v45 }
 0x4d8   : > { %v9177_v40 = vpack.c.bf16 %v7894_v45, %v7892_v47 }
 0x4d9   : > { %v7912_v57 = vadd.f32 %v7911_v34, %v7910_v60  ;;  %v7951_v54 = vrot.slane %v7950_v56, 4  ;;  %v7918_v36 = vrot.slane %v7917_v24, 4  ;;  %v7957_v37 = vadd.f32 %v7935_v25, %v7931_v39 }
 0x4da   : > { %7995 = vst [vmem:[%s13310_s9 + $0x18] sm:$0xff] %v9177_v40 }
 0x4db   : > { %v7913_v7 = vrot.slane %v7912_v57, 2  ;;  %v7952_v62 = vadd.f32 %v7951_v54, %v7950_v56  ;;  %v7919_v4 = vadd.f32 %v7918_v36, %v7917_v24  ;;  %v7958_v9 = vrot.slane %v7957_v37, 4 }
 0x4dd   : > { %v7914_v52 = vadd.f32 %v7913_v7, %v7912_v57  ;;  %v7953_v38 = vrot.slane %v7952_v62, 2  ;;  %v7920_v2 = vrot.slane %v7919_v4, 2  ;;  %v7959_v46 = vadd.f32 %v7958_v9, %v7957_v37 }
 0x4df   : > { %v7915_v51 = vrot.slane %v7914_v52, 1  ;;  %v7954_v32 = vadd.f32 %v7953_v38, %v7952_v62  ;;  %v7921_v8 = vadd.f32 %v7920_v2, %v7919_v4  ;;  %v7960_v43 = vrot.slane %v7959_v46, 2 }
 0x4e1   : > { %v7955_v63 = vrot.slane %v7954_v32, 1  ;;  %v7922_v5 = vrot.slane %v7921_v8, 1  ;;  %v7961_v15 = vadd.f32 %v7960_v43, %v7959_v46  ;;  %v7916_v28 = vadd.f32 %v7915_v51, %v7914_v52 }
 0x4e3   : > { %v7956_v1 = vadd.f32 %v7955_v63, %v7954_v32  ;;  %v7962_v18 = vrot.slane %v7961_v15, 1  ;;  %v7923_v13 = vadd.f32 %v7922_v5, %v7921_v8 }
 0x4e5   : > { %v7999_v20 = vsel %vm7996_vm0, %v7916_v28, %v7956_v1  ;;  %v7963_v59 = vadd.f32 %v7962_v18, %v7961_v15 }
 0x4e6   : > { %v8004_v19 = vsel %vm8001_vm1, %v7999_v20, 0.0 }
 0x4e7   : > { %8008 = vst [vmem:[%s13373_s27 + $0x10] sm:$0xff] %v8004_v19  ;;  %v8000_v41 = vsel %vm7996_vm0, %v7923_v13, %v7963_v59 }
 0x4e8   : > { %v8005_v17 = vsel %vm8001_vm1, %v8000_v41, 0.0 }
 0x4e9   : > { %8009 = vst [vmem:[%s13373_s27 + $0x18] sm:$0xff] %v8005_v17 }
 0x4ea PF: > { %s14_s12 = sadd.s32 1, %s10728_s12  }
 0x4eb   : > { %p11_p4 = scmp.ge.s32.totalorder %s14_s12, 4  }
 0x4ed   :  { %13 = sbr.rel (!%p11_p4) target bundleno = 1 (0x1), region = 70 }

</bundles_post_ra>
